<compile_context>
chip_gen: v6e
topology: v6e:2x2x1
jax: 0.10.0
libtpu: 0.0.40
codegen_flags: <defaults>
</compile_context>

<pallas_src>
import functools

import numpy as np
import jax
import jax.numpy as jnp
from jax.experimental import pallas as pl
from jax.experimental.pallas import tpu as pltpu

LANE = 128


def _round_up(x, m):
    return (x + m - 1) // m * m


# ----------------------------------------------------------------------------
# Fused forward kernel: one image per grid step, everything in VMEM.
# ----------------------------------------------------------------------------
def _dqn_fused_kernel(dims, x_ref,
                      a1_ref, b1_ref, a2_ref, b2_ref, a3_ref, b3_ref,
                      a4_ref, b4_ref, a5_ref, b5_ref,
                      o_ref, h1_ref, h2_ref, h3_ref):
    OH1, OW1, OH2s, OW2s, OH3s, OW3s = dims
    f32 = jnp.float32
    bf16 = jnp.bfloat16

    # --- conv1 (8x8 stride 4) : stride folded into the space-to-depth input.
    # x_ref block: (1, H/4, (W/4)*16*C) f32; two vertical taps -> two matmuls.
    z1 = jnp.dot(x_ref[0, 0:OH1, :].astype(bf16), a1_ref[0],
                 preferred_element_type=f32)
    z1 = z1 + jnp.dot(x_ref[0, 1:OH1 + 1, :].astype(bf16), a1_ref[1],
                      preferred_element_type=f32)
    h1_ref[...] = jnp.maximum(z1 + b1_ref[...], 0.0)          # (OH1, OW1*32)

    # --- conv2 (4x4 stride 2), evaluated at stride 1 over the conv1 grid.
    z2 = jnp.dot(h1_ref[0:OH2s, :].astype(bf16), a2_ref[0],
                 preferred_element_type=f32)
    for kh in range(1, 4):
        z2 = z2 + jnp.dot(h1_ref[kh:kh + OH2s, :].astype(bf16), a2_ref[kh],
                          preferred_element_type=f32)
    h2_ref[...] = jnp.maximum(z2 + b2_ref[...], 0.0)          # (OH2s, OW2s*64)

    # --- conv3 (3x3 stride 1 on the stride-2 grid) == dilation-2 conv here.
    z3 = jnp.dot(h2_ref[0:OH3s, :].astype(bf16), a3_ref[0],
                 preferred_element_type=f32)
    for i in range(1, 3):
        z3 = z3 + jnp.dot(h2_ref[2 * i:2 * i + OH3s, :].astype(bf16),
                          a3_ref[i], preferred_element_type=f32)
    h3_ref[...] = jnp.maximum(z3 + b3_ref[...], 0.0)          # (OH3s, OW3s*64)

    # --- fc1: flatten order + selection of the valid conv3 positions are baked
    # into a4 at convert time -> just accumulate one matmul per scratch row.
    z4 = jnp.dot(h3_ref[0:1, :].astype(bf16), a4_ref[0],
                 preferred_element_type=f32)
    for m in range(1, OH3s):
        z4 = z4 + jnp.dot(h3_ref[m:m + 1, :].astype(bf16), a4_ref[m],
                          preferred_element_type=f32)
    h4 = jnp.maximum(z4 + b4_ref[...], 0.0).astype(bf16)      # (1, 512)

    # --- fc2 (output padded to 128 lanes -> dense store).
    q = jnp.dot(h4, a5_ref[...], preferred_element_type=f32) + b5_ref[...]
    o_ref[0] = q


# ----------------------------------------------------------------------------
# Forward pass (mirrors _Original_DQN.forward).
# ----------------------------------------------------------------------------
def dqn_forward(x_nchw, params, dims, *, num_actions):
    N, C, H, W = x_nchw.shape
    OH1, OW1, OH2s, OW2s, OH3s, OW3s = dims

    # conv1-stride space-to-depth: (N,C,H,W) -> (N, H/4, (W/4)*16*C).
    # This is the only per-step layout op (it replaces the old NCHW->NHWC
    # transpose + HBM im2col of the previous version).
    x = x_nchw.reshape(N, C, H // 4, 4, W // 4, 4)
    x = jnp.transpose(x, (0, 2, 4, 3, 5, 1))
    x1 = x.reshape(N, H // 4, (W // 4) * 16 * C).astype(jnp.float32)

    npad = params["A5"].shape[1]
    kernel = functools.partial(_dqn_fused_kernel, dims)

    q = pl.pallas_call(
        kernel,
        out_shape=jax.ShapeDtypeStruct((N, 1, npad), jnp.float32),
        grid=(N,),
        in_specs=[
            pl.BlockSpec((1, H // 4, (W // 4) * 16 * C), lambda i: (i, 0, 0)),
            pl.BlockSpec(params["A1"].shape, lambda i: (0, 0, 0)),
            pl.BlockSpec(params["B1"].shape, lambda i: (0, 0)),
            pl.BlockSpec(params["A2"].shape, lambda i: (0, 0, 0)),
            pl.BlockSpec(params["B2"].shape, lambda i: (0, 0)),
            pl.BlockSpec(params["A3"].shape, lambda i: (0, 0, 0)),
            pl.BlockSpec(params["B3"].shape, lambda i: (0, 0)),
            pl.BlockSpec(params["A4"].shape, lambda i: (0, 0, 0)),
            pl.BlockSpec(params["B4"].shape, lambda i: (0, 0)),
            pl.BlockSpec(params["A5"].shape, lambda i: (0, 0)),
            pl.BlockSpec(params["B5"].shape, lambda i: (0, 0)),
        ],
        out_specs=pl.BlockSpec((1, 1, npad), lambda i: (i, 0, 0)),
        scratch_shapes=[
            pltpu.VMEM((OH1, OW1 * 32), jnp.float32),
            pltpu.VMEM((OH2s, OW2s * 64), jnp.float32),
            pltpu.VMEM((OH3s, OW3s * 64), jnp.float32),
        ],
        compiler_params=pltpu.CompilerParams(
            dimension_semantics=("parallel",),
            vmem_limit_bytes=32 * 1024 * 1024),
    )(x1, params["A1"], params["B1"], params["A2"], params["B2"],
      params["A3"], params["B3"], params["A4"], params["B4"],
      params["A5"], params["B5"])

    return q[:, 0, :num_actions]


# ----------------------------------------------------------------------------
# Parameters: PyTorch-shaped synthetic init, then a ONE-TIME conversion into
# matmul-ready lowered-convolution matrices (bf16) + f32 bias rows.
# ----------------------------------------------------------------------------
def _conv_sizes(input_size):
    _, H, W = input_size
    oh1, ow1 = (H - 8) // 4 + 1, (W - 8) // 4 + 1
    oh2, ow2 = (oh1 - 4) // 2 + 1, (ow1 - 4) // 2 + 1
    oh3, ow3 = oh2 - 2, ow2 - 2
    return (oh1, ow1), (oh2, ow2), (oh3, ow3)


def init_torch_params(key, input_size, num_actions):
    Cin = input_size[0]
    (_, _), (_, _), (oh3, ow3) = _conv_sizes(input_size)
    feature_size = 64 * oh3 * ow3
    ks = jax.random.split(key, 10)
    s = 0.05
    n = lambda k, shp: s * jax.random.normal(k, shp, jnp.float32)
    tp = {
        "conv1_w": n(ks[0], (32, Cin, 8, 8)),
        "conv1_b": n(ks[1], (32,)),
        "conv2_w": n(ks[2], (64, 32, 4, 4)),
        "conv2_b": n(ks[3], (64,)),
        "conv3_w": n(ks[4], (64, 64, 3, 3)),
        "conv3_b": n(ks[5], (64,)),
        "fc1_w": n(ks[6], (512, feature_size)),
        "fc1_b": n(ks[7], (512,)),
        "fc2_w": n(ks[8], (num_actions, 512)),
        "fc2_b": n(ks[9], (num_actions,)),
    }
    return tp, feature_size


def convert_params(tp, input_size, num_actions):
    """One-time re-layout into lowered-conv (block-Toeplitz) matmul weights."""
    Cin, H, W = input_size
    assert H % 4 == 0 and W % 4 == 0, "spatial dims must be multiples of 4"
    WB = W // 4
    CB = 16 * Cin                              # lanes per W-block after s2d
    (OH1, OW1), (OH2, OW2), (OH3, OW3) = _conv_sizes(input_size)
    OH2s, OW2s = OH1 - 3, OW1 - 3              # conv2 evaluated at stride 1
    OH3s, OW3s = OH2s - 4, OW2s - 4            # conv3 evaluated with dilation 2
    assert 2 * (OH3 - 1) < OH3s and 2 * (OW3 - 1) < OW3s

    w1 = np.asarray(tp["conv1_w"]); b1 = np.asarray(tp["conv1_b"])
    w2 = np.asarray(tp["conv2_w"]); b2 = np.asarray(tp["conv2_b"])
    w3 = np.asarray(tp["conv3_w"]); b3 = np.asarray(tp["conv3_b"])
    fw1 = np.asarray(tp["fc1_w"]); fb1 = np.asarray(tp["fc1_b"])
    fw2 = np.asarray(tp["fc2_w"]); fb2 = np.asarray(tp["fc2_b"])

    # conv1 -> A1[a] of shape (WB*CB, OW1*32); row lanes = (wb, rr, ss, c).
    w1_r = np.transpose(w1, (2, 3, 1, 0))                      # (kh, kw, c, o)
    A1 = np.zeros((2, WB, 4, 4, Cin, OW1, 32), np.float32)
    for a in range(2):
        for bb in range(2):
            blk = w1_r[4 * a:4 * a + 4, 4 * bb:4 * bb + 4]     # (4,4,C,32)
            for ow in range(OW1):
                A1[a, ow + bb, :, :, :, ow, :] = blk
    A1 = A1.reshape(2, WB * CB, OW1 * 32)

    # conv2 (stride-1 evaluation) -> A2[kh] of shape (OW1*32, OW2s*64).
    w2_r = np.transpose(w2, (2, 3, 1, 0))                      # (kh, kw, o1, o2)
    A2 = np.zeros((4, OW1, 32, OW2s, 64), np.float32)
    for kh in range(4):
        for kw in range(4):
            for v in range(OW2s):
                A2[kh, v + kw, :, v, :] = w2_r[kh, kw]
    A2 = A2.reshape(4, OW1 * 32, OW2s * 64)

    # conv3 (dilation-2 over the stride-1 grid) -> A3[i] (OW2s*64, OW3s*64).
    w3_r = np.transpose(w3, (2, 3, 1, 0))                      # (i, j, o2, o3)
    A3 = np.zeros((3, OW2s, 64, OW3s, 64), np.float32)
    for i in range(3):
        for j in range(3):
            for nn in range(OW3s):
                A3[i, nn + 2 * j, :, nn, :] = w3_r[i, j]
    A3 = A3.reshape(3, OW2s * 64, OW3s * 64)

    # fc1 -> per-scratch-row matrices A4[m] of shape (OW3s*64, 512).  Selects
    # the valid (even) conv3 positions and matches torch's x.view(N,-1) order.
    f1r = fw1.reshape(512, 64, OH3, OW3)
    A4 = np.zeros((OH3s, OW3s, 64, 512), np.float32)
    for r in range(OH3):
        for s in range(OW3):
            A4[2 * r, 2 * s, :, :] = f1r[:, :, r, s].T
    A4 = A4.reshape(OH3s, OW3s * 64, 512)

    npad = _round_up(num_actions, LANE)
    A5 = np.zeros((512, npad), np.float32)
    A5[:, :num_actions] = fw2.T
    B5 = np.zeros((1, npad), np.float32)
    B5[0, :num_actions] = fb2

    params = {
        "A1": jnp.asarray(A1, jnp.bfloat16),
        "B1": jnp.asarray(np.tile(b1, OW1)[None, :], jnp.float32),
        "A2": jnp.asarray(A2, jnp.bfloat16),
        "B2": jnp.asarray(np.tile(b2, OW2s)[None, :], jnp.float32),
        "A3": jnp.asarray(A3, jnp.bfloat16),
        "B3": jnp.asarray(np.tile(b3, OW3s)[None, :], jnp.float32),
        "A4": jnp.asarray(A4, jnp.bfloat16),
        "B4": jnp.asarray(fb1[None, :], jnp.float32),
        "A5": jnp.asarray(A5, jnp.bfloat16),
        "B5": jnp.asarray(B5, jnp.float32),
    }
    dims = (OH1, OW1, OH2s, OW2s, OH3s, OW3s)
    return params, dims


# ----------------------------------------------------------------------------
# Pure-JAX f32 reference (loose bf16 tolerance check).
# ----------------------------------------------------------------------------
def dqn_reference(x_nchw, tp):
    def conv(x, w, b, s):
        y = jax.lax.conv_general_dilated(
            x, w, (s, s), "VALID",
            dimension_numbers=("NCHW", "OIHW", "NCHW"))
        return jax.nn.relu(y + b.reshape(1, -1, 1, 1))
    x = conv(x_nchw, tp["conv1_w"], tp["conv1_b"], 4)
    x = conv(x, tp["conv2_w"], tp["conv2_b"], 2)
    x = conv(x, tp["conv3_w"], tp["conv3_b"], 1)
    x = x.reshape(x.shape[0], -1)
    x = jax.nn.relu(x @ tp["fc1_w"].T + tp["fc1_b"])
    return x @ tp["fc2_w"].T + tp["fc2_b"]


if __name__ == "__main__":
    input_size = (4, 52, 52)   # (C, H, W) — small Atari-like frame stack
    num_actions = 6
    batch = 2

    key = jax.random.PRNGKey(0)
    k_x, k_p = jax.random.split(key)
    x = jax.random.normal(k_x, (batch,) + input_size, jnp.float32)

    torch_params, feature_size = init_torch_params(k_p, input_size, num_actions)
    params, dims = convert_params(torch_params, input_size, num_actions)

    fwd = jax.jit(functools.partial(dqn_forward, dims=dims,
                                    num_actions=num_actions))
    q_values = jax.block_until_ready(fwd(x, params))

    assert q_values.shape == (batch, num_actions), q_values.shape
    assert q_values.dtype == jnp.float32
    assert bool(jnp.all(jnp.isfinite(q_values)))

    # Loose tolerance: bf16 MXU operands with f32 accumulation vs f32 reference.
    q_ref = jax.block_until_ready(jax.jit(dqn_reference)(x, torch_params))
    assert bool(jnp.all(jnp.abs(q_values - q_ref) <= 0.1 + 0.1 * jnp.abs(q_ref))), \
        float(jnp.max(jnp.abs(q_values - q_ref)))

    print("KERNEL_OK")
</pallas_src>

<mosaic_0001>
module attributes {stable_mosaic.version = 11 : i64} {
  func.func @_dqn_fused_kernel(%arg0: i32, %arg1: memref<1x13x832xf32, #tpu.memory_space<vmem>>, %arg2: memref<2x832x384xbf16, #tpu.memory_space<vmem>>, %arg3: memref<1x384xf32, #tpu.memory_space<vmem>>, %arg4: memref<4x384x576xbf16, #tpu.memory_space<vmem>>, %arg5: memref<1x576xf32, #tpu.memory_space<vmem>>, %arg6: memref<3x576x320xbf16, #tpu.memory_space<vmem>>, %arg7: memref<1x320xf32, #tpu.memory_space<vmem>>, %arg8: memref<5x320x512xbf16, #tpu.memory_space<vmem>>, %arg9: memref<1x512xf32, #tpu.memory_space<vmem>>, %arg10: memref<512x128xbf16, #tpu.memory_space<vmem>>, %arg11: memref<1x128xf32, #tpu.memory_space<vmem>>, %arg12: memref<1x1x128xf32, #tpu.memory_space<vmem>>, %arg13: memref<12x384xf32, #tpu.memory_space<vmem>>, %arg14: memref<9x576xf32, #tpu.memory_space<vmem>>, %arg15: memref<5x320xf32, #tpu.memory_space<vmem>>) attributes {dimension_semantics = [#tpu.dimension_semantics<parallel>], iteration_bounds = array<i64: 2>, scalar_prefetch = 0 : i64, scratch_operands = 3 : i64, tpu.core_type = #tpu.core_type<tc>, window_params = [{transform_indices = @transform_0, window_bounds = array<i64: 1, 13, 832>}, {pipeline_mode = #tpu.pipeline_mode<synchronous>, transform_indices = @transform_1, window_bounds = array<i64: 2, 832, 384>}, {pipeline_mode = #tpu.pipeline_mode<synchronous>, transform_indices = @transform_2, window_bounds = array<i64: 1, 384>}, {pipeline_mode = #tpu.pipeline_mode<synchronous>, transform_indices = @transform_3, window_bounds = array<i64: 4, 384, 576>}, {pipeline_mode = #tpu.pipeline_mode<synchronous>, transform_indices = @transform_4, window_bounds = array<i64: 1, 576>}, {pipeline_mode = #tpu.pipeline_mode<synchronous>, transform_indices = @transform_5, window_bounds = array<i64: 3, 576, 320>}, {pipeline_mode = #tpu.pipeline_mode<synchronous>, transform_indices = @transform_6, window_bounds = array<i64: 1, 320>}, {pipeline_mode = #tpu.pipeline_mode<synchronous>, transform_indices = @transform_7, window_bounds = array<i64: 5, 320, 512>}, {pipeline_mode = #tpu.pipeline_mode<synchronous>, transform_indices = @transform_8, window_bounds = array<i64: 1, 512>}, {pipeline_mode = #tpu.pipeline_mode<synchronous>, transform_indices = @transform_9, window_bounds = array<i64: 512, 128>}, {pipeline_mode = #tpu.pipeline_mode<synchronous>, transform_indices = @transform_10, window_bounds = array<i64: 1, 128>}, {transform_indices = @transform_11, window_bounds = array<i64: 1, 1, 128>}]} {
    %c0 = arith.constant 0 : index
    %c0_0 = arith.constant 0 : index
    %c0_1 = arith.constant 0 : index
    %0 = vector.load %arg1[%c0, %c0_0, %c0_1] : memref<1x13x832xf32, #tpu.memory_space<vmem>>, vector<1x12x832xf32>
    %1 = vector.shape_cast %0 : vector<1x12x832xf32> to vector<12x832xf32>
    %2 = arith.truncf %1 : vector<12x832xf32> to vector<12x832xbf16>
    %c0_2 = arith.constant 0 : index
    %c0_3 = arith.constant 0 : index
    %c0_4 = arith.constant 0 : index
    %3 = vector.load %arg2[%c0_2, %c0_3, %c0_4] : memref<2x832x384xbf16, #tpu.memory_space<vmem>>, vector<1x832x384xbf16>
    %4 = vector.shape_cast %3 : vector<1x832x384xbf16> to vector<832x384xbf16>
    %cst = arith.constant dense<0.000000e+00> : vector<12x384xf32>
    %5 = tpu.matmul %2, %4, %cst {dimension_numbers = #tpu.dot_dimension_numbers<[1], [0], [0], [1], [0, 0, 1, 1], [], []>} : vector<12x832xbf16>, vector<832x384xbf16>, vector<12x384xf32> -> vector<12x384xf32>
    %c0_5 = arith.constant 0 : index
    %c1 = arith.constant 1 : index
    %c0_6 = arith.constant 0 : index
    %6 = vector.load %arg1[%c0_5, %c1, %c0_6] : memref<1x13x832xf32, #tpu.memory_space<vmem>>, vector<1x12x832xf32>
    %7 = vector.shape_cast %6 : vector<1x12x832xf32> to vector<12x832xf32>
    %8 = arith.truncf %7 : vector<12x832xf32> to vector<12x832xbf16>
    %c1_7 = arith.constant 1 : index
    %c0_8 = arith.constant 0 : index
    %c0_9 = arith.constant 0 : index
    %9 = vector.load %arg2[%c1_7, %c0_8, %c0_9] : memref<2x832x384xbf16, #tpu.memory_space<vmem>>, vector<1x832x384xbf16>
    %10 = vector.shape_cast %9 : vector<1x832x384xbf16> to vector<832x384xbf16>
    %cst_10 = arith.constant dense<0.000000e+00> : vector<12x384xf32>
    %11 = tpu.matmul %8, %10, %cst_10 {dimension_numbers = #tpu.dot_dimension_numbers<[1], [0], [0], [1], [0, 0, 1, 1], [], []>} : vector<12x832xbf16>, vector<832x384xbf16>, vector<12x384xf32> -> vector<12x384xf32>
    %12 = arith.addf %5, %11 : vector<12x384xf32>
    %c0_11 = arith.constant 0 : index
    %c0_12 = arith.constant 0 : index
    %13 = vector.load %arg3[%c0_11, %c0_12] : memref<1x384xf32, #tpu.memory_space<vmem>>, vector<1x384xf32>
    %14 = vector.broadcast %13 : vector<1x384xf32> to vector<12x384xf32>
    %15 = arith.addf %12, %14 : vector<12x384xf32>
    %cst_13 = arith.constant 0.000000e+00 : f32
    %16 = vector.broadcast %cst_13 : f32 to vector<12x384xf32>
    %17 = arith.maximumf %15, %16 : vector<12x384xf32>
    %c0_14 = arith.constant 0 : index
    %c0_15 = arith.constant 0 : index
    %18 = vector.load %arg13[%c0_14, %c0_15] : memref<12x384xf32, #tpu.memory_space<vmem>>, vector<12x384xf32>
    tpu.vector_store %arg13[%c0_14, %c0_15], %17 {strides = array<i32>} : memref<12x384xf32, #tpu.memory_space<vmem>>, vector<12x384xf32>,
    %c0_16 = arith.constant 0 : index
    %c0_17 = arith.constant 0 : index
    %19 = vector.load %arg13[%c0_16, %c0_17] : memref<12x384xf32, #tpu.memory_space<vmem>>, vector<9x384xf32>
    %20 = arith.truncf %19 : vector<9x384xf32> to vector<9x384xbf16>
    %c0_18 = arith.constant 0 : index
    %c0_19 = arith.constant 0 : index
    %c0_20 = arith.constant 0 : index
    %21 = vector.load %arg4[%c0_18, %c0_19, %c0_20] : memref<4x384x576xbf16, #tpu.memory_space<vmem>>, vector<1x384x576xbf16>
    %22 = vector.shape_cast %21 : vector<1x384x576xbf16> to vector<384x576xbf16>
    %cst_21 = arith.constant dense<0.000000e+00> : vector<9x576xf32>
    %23 = tpu.matmul %20, %22, %cst_21 {dimension_numbers = #tpu.dot_dimension_numbers<[1], [0], [0], [1], [0, 0, 1, 1], [], []>} : vector<9x384xbf16>, vector<384x576xbf16>, vector<9x576xf32> -> vector<9x576xf32>
    %c1_22 = arith.constant 1 : index
    %c0_23 = arith.constant 0 : index
    %24 = vector.load %arg13[%c1_22, %c0_23] : memref<12x384xf32, #tpu.memory_space<vmem>>, vector<9x384xf32>
    %25 = arith.truncf %24 : vector<9x384xf32> to vector<9x384xbf16>
    %c1_24 = arith.constant 1 : index
    %c0_25 = arith.constant 0 : index
    %c0_26 = arith.constant 0 : index
    %26 = vector.load %arg4[%c1_24, %c0_25, %c0_26] : memref<4x384x576xbf16, #tpu.memory_space<vmem>>, vector<1x384x576xbf16>
    %27 = vector.shape_cast %26 : vector<1x384x576xbf16> to vector<384x576xbf16>
    %cst_27 = arith.constant dense<0.000000e+00> : vector<9x576xf32>
    %28 = tpu.matmul %25, %27, %cst_27 {dimension_numbers = #tpu.dot_dimension_numbers<[1], [0], [0], [1], [0, 0, 1, 1], [], []>} : vector<9x384xbf16>, vector<384x576xbf16>, vector<9x576xf32> -> vector<9x576xf32>
    %29 = arith.addf %23, %28 : vector<9x576xf32>
    %c2 = arith.constant 2 : index
    %c0_28 = arith.constant 0 : index
    %30 = vector.load %arg13[%c2, %c0_28] : memref<12x384xf32, #tpu.memory_space<vmem>>, vector<9x384xf32>
    %31 = arith.truncf %30 : vector<9x384xf32> to vector<9x384xbf16>
    %c2_29 = arith.constant 2 : index
    %c0_30 = arith.constant 0 : index
    %c0_31 = arith.constant 0 : index
    %32 = vector.load %arg4[%c2_29, %c0_30, %c0_31] : memref<4x384x576xbf16, #tpu.memory_space<vmem>>, vector<1x384x576xbf16>
    %33 = vector.shape_cast %32 : vector<1x384x576xbf16> to vector<384x576xbf16>
    %cst_32 = arith.constant dense<0.000000e+00> : vector<9x576xf32>
    %34 = tpu.matmul %31, %33, %cst_32 {dimension_numbers = #tpu.dot_dimension_numbers<[1], [0], [0], [1], [0, 0, 1, 1], [], []>} : vector<9x384xbf16>, vector<384x576xbf16>, vector<9x576xf32> -> vector<9x576xf32>
    %35 = arith.addf %29, %34 : vector<9x576xf32>
    %c3 = arith.constant 3 : index
    %c0_33 = arith.constant 0 : index
    %36 = vector.load %arg13[%c3, %c0_33] : memref<12x384xf32, #tpu.memory_space<vmem>>, vector<9x384xf32>
    %37 = arith.truncf %36 : vector<9x384xf32> to vector<9x384xbf16>
    %c3_34 = arith.constant 3 : index
    %c0_35 = arith.constant 0 : index
    %c0_36 = arith.constant 0 : index
    %38 = vector.load %arg4[%c3_34, %c0_35, %c0_36] : memref<4x384x576xbf16, #tpu.memory_space<vmem>>, vector<1x384x576xbf16>
    %39 = vector.shape_cast %38 : vector<1x384x576xbf16> to vector<384x576xbf16>
    %cst_37 = arith.constant dense<0.000000e+00> : vector<9x576xf32>
    %40 = tpu.matmul %37, %39, %cst_37 {dimension_numbers = #tpu.dot_dimension_numbers<[1], [0], [0], [1], [0, 0, 1, 1], [], []>} : vector<9x384xbf16>, vector<384x576xbf16>, vector<9x576xf32> -> vector<9x576xf32>
    %41 = arith.addf %35, %40 : vector<9x576xf32>
    %c0_38 = arith.constant 0 : index
    %c0_39 = arith.constant 0 : index
    %42 = vector.load %arg5[%c0_38, %c0_39] : memref<1x576xf32, #tpu.memory_space<vmem>>, vector<1x576xf32>
    %43 = vector.broadcast %42 : vector<1x576xf32> to vector<9x576xf32>
    %44 = arith.addf %41, %43 : vector<9x576xf32>
    %cst_40 = arith.constant 0.000000e+00 : f32
    %45 = vector.broadcast %cst_40 : f32 to vector<9x576xf32>
    %46 = arith.maximumf %44, %45 : vector<9x576xf32>
    %c0_41 = arith.constant 0 : index
    %c0_42 = arith.constant 0 : index
    %47 = vector.load %arg14[%c0_41, %c0_42] : memref<9x576xf32, #tpu.memory_space<vmem>>, vector<9x576xf32>
    tpu.vector_store %arg14[%c0_41, %c0_42], %46 {strides = array<i32>} : memref<9x576xf32, #tpu.memory_space<vmem>>, vector<9x576xf32>,
    %c0_43 = arith.constant 0 : index
    %c0_44 = arith.constant 0 : index
    %48 = vector.load %arg14[%c0_43, %c0_44] : memref<9x576xf32, #tpu.memory_space<vmem>>, vector<5x576xf32>
    %49 = arith.truncf %48 : vector<5x576xf32> to vector<5x576xbf16>
    %c0_45 = arith.constant 0 : index
    %c0_46 = arith.constant 0 : index
    %c0_47 = arith.constant 0 : index
    %50 = vector.load %arg6[%c0_45, %c0_46, %c0_47] : memref<3x576x320xbf16, #tpu.memory_space<vmem>>, vector<1x576x320xbf16>
    %51 = vector.shape_cast %50 : vector<1x576x320xbf16> to vector<576x320xbf16>
    %cst_48 = arith.constant dense<0.000000e+00> : vector<5x320xf32>
    %52 = tpu.matmul %49, %51, %cst_48 {dimension_numbers = #tpu.dot_dimension_numbers<[1], [0], [0], [1], [0, 0, 1, 1], [], []>} : vector<5x576xbf16>, vector<576x320xbf16>, vector<5x320xf32> -> vector<5x320xf32>
    %c2_49 = arith.constant 2 : index
    %c0_50 = arith.constant 0 : index
    %53 = vector.load %arg14[%c2_49, %c0_50] : memref<9x576xf32, #tpu.memory_space<vmem>>, vector<5x576xf32>
    %54 = arith.truncf %53 : vector<5x576xf32> to vector<5x576xbf16>
    %c1_51 = arith.constant 1 : index
    %c0_52 = arith.constant 0 : index
    %c0_53 = arith.constant 0 : index
    %55 = vector.load %arg6[%c1_51, %c0_52, %c0_53] : memref<3x576x320xbf16, #tpu.memory_space<vmem>>, vector<1x576x320xbf16>
    %56 = vector.shape_cast %55 : vector<1x576x320xbf16> to vector<576x320xbf16>
    %cst_54 = arith.constant dense<0.000000e+00> : vector<5x320xf32>
    %57 = tpu.matmul %54, %56, %cst_54 {dimension_numbers = #tpu.dot_dimension_numbers<[1], [0], [0], [1], [0, 0, 1, 1], [], []>} : vector<5x576xbf16>, vector<576x320xbf16>, vector<5x320xf32> -> vector<5x320xf32>
    %58 = arith.addf %52, %57 : vector<5x320xf32>
    %c4 = arith.constant 4 : index
    %c0_55 = arith.constant 0 : index
    %59 = vector.load %arg14[%c4, %c0_55] : memref<9x576xf32, #tpu.memory_space<vmem>>, vector<5x576xf32>
    %60 = arith.truncf %59 : vector<5x576xf32> to vector<5x576xbf16>
    %c2_56 = arith.constant 2 : index
    %c0_57 = arith.constant 0 : index
    %c0_58 = arith.constant 0 : index
    %61 = vector.load %arg6[%c2_56, %c0_57, %c0_58] : memref<3x576x320xbf16, #tpu.memory_space<vmem>>, vector<1x576x320xbf16>
    %62 = vector.shape_cast %61 : vector<1x576x320xbf16> to vector<576x320xbf16>
    %cst_59 = arith.constant dense<0.000000e+00> : vector<5x320xf32>
    %63 = tpu.matmul %60, %62, %cst_59 {dimension_numbers = #tpu.dot_dimension_numbers<[1], [0], [0], [1], [0, 0, 1, 1], [], []>} : vector<5x576xbf16>, vector<576x320xbf16>, vector<5x320xf32> -> vector<5x320xf32>
    %64 = arith.addf %58, %63 : vector<5x320xf32>
    %c0_60 = arith.constant 0 : index
    %c0_61 = arith.constant 0 : index
    %65 = vector.load %arg7[%c0_60, %c0_61] : memref<1x320xf32, #tpu.memory_space<vmem>>, vector<1x320xf32>
    %66 = vector.broadcast %65 : vector<1x320xf32> to vector<5x320xf32>
    %67 = arith.addf %64, %66 : vector<5x320xf32>
    %cst_62 = arith.constant 0.000000e+00 : f32
    %68 = vector.broadcast %cst_62 : f32 to vector<5x320xf32>
    %69 = arith.maximumf %67, %68 : vector<5x320xf32>
    %c0_63 = arith.constant 0 : index
    %c0_64 = arith.constant 0 : index
    %70 = vector.load %arg15[%c0_63, %c0_64] : memref<5x320xf32, #tpu.memory_space<vmem>>, vector<5x320xf32>
    tpu.vector_store %arg15[%c0_63, %c0_64], %69 {strides = array<i32>} : memref<5x320xf32, #tpu.memory_space<vmem>>, vector<5x320xf32>,
    %c0_65 = arith.constant 0 : index
    %c0_66 = arith.constant 0 : index
    %71 = vector.load %arg15[%c0_65, %c0_66] : memref<5x320xf32, #tpu.memory_space<vmem>>, vector<1x320xf32>
    %72 = arith.truncf %71 : vector<1x320xf32> to vector<1x320xbf16>
    %c0_67 = arith.constant 0 : index
    %c0_68 = arith.constant 0 : index
    %c0_69 = arith.constant 0 : index
    %73 = vector.load %arg8[%c0_67, %c0_68, %c0_69] : memref<5x320x512xbf16, #tpu.memory_space<vmem>>, vector<1x320x512xbf16>
    %74 = vector.shape_cast %73 : vector<1x320x512xbf16> to vector<320x512xbf16>
    %cst_70 = arith.constant dense<0.000000e+00> : vector<1x512xf32>
    %75 = tpu.matmul %72, %74, %cst_70 {dimension_numbers = #tpu.dot_dimension_numbers<[1], [0], [0], [1], [0, 0, 1, 1], [], []>} : vector<1x320xbf16>, vector<320x512xbf16>, vector<1x512xf32> -> vector<1x512xf32>
    %c1_71 = arith.constant 1 : index
    %c0_72 = arith.constant 0 : index
    %76 = vector.load %arg15[%c1_71, %c0_72] : memref<5x320xf32, #tpu.memory_space<vmem>>, vector<1x320xf32>
    %77 = arith.truncf %76 : vector<1x320xf32> to vector<1x320xbf16>
    %c1_73 = arith.constant 1 : index
    %c0_74 = arith.constant 0 : index
    %c0_75 = arith.constant 0 : index
    %78 = vector.load %arg8[%c1_73, %c0_74, %c0_75] : memref<5x320x512xbf16, #tpu.memory_space<vmem>>, vector<1x320x512xbf16>
    %79 = vector.shape_cast %78 : vector<1x320x512xbf16> to vector<320x512xbf16>
    %cst_76 = arith.constant dense<0.000000e+00> : vector<1x512xf32>
    %80 = tpu.matmul %77, %79, %cst_76 {dimension_numbers = #tpu.dot_dimension_numbers<[1], [0], [0], [1], [0, 0, 1, 1], [], []>} : vector<1x320xbf16>, vector<320x512xbf16>, vector<1x512xf32> -> vector<1x512xf32>
    %81 = arith.addf %75, %80 : vector<1x512xf32>
    %c2_77 = arith.constant 2 : index
    %c0_78 = arith.constant 0 : index
    %82 = vector.load %arg15[%c2_77, %c0_78] : memref<5x320xf32, #tpu.memory_space<vmem>>, vector<1x320xf32>
    %83 = arith.truncf %82 : vector<1x320xf32> to vector<1x320xbf16>
    %c2_79 = arith.constant 2 : index
    %c0_80 = arith.constant 0 : index
    %c0_81 = arith.constant 0 : index
    %84 = vector.load %arg8[%c2_79, %c0_80, %c0_81] : memref<5x320x512xbf16, #tpu.memory_space<vmem>>, vector<1x320x512xbf16>
    %85 = vector.shape_cast %84 : vector<1x320x512xbf16> to vector<320x512xbf16>
    %cst_82 = arith.constant dense<0.000000e+00> : vector<1x512xf32>
    %86 = tpu.matmul %83, %85, %cst_82 {dimension_numbers = #tpu.dot_dimension_numbers<[1], [0], [0], [1], [0, 0, 1, 1], [], []>} : vector<1x320xbf16>, vector<320x512xbf16>, vector<1x512xf32> -> vector<1x512xf32>
    %87 = arith.addf %81, %86 : vector<1x512xf32>
    %c3_83 = arith.constant 3 : index
    %c0_84 = arith.constant 0 : index
    %88 = vector.load %arg15[%c3_83, %c0_84] : memref<5x320xf32, #tpu.memory_space<vmem>>, vector<1x320xf32>
    %89 = arith.truncf %88 : vector<1x320xf32> to vector<1x320xbf16>
    %c3_85 = arith.constant 3 : index
    %c0_86 = arith.constant 0 : index
    %c0_87 = arith.constant 0 : index
    %90 = vector.load %arg8[%c3_85, %c0_86, %c0_87] : memref<5x320x512xbf16, #tpu.memory_space<vmem>>, vector<1x320x512xbf16>
    %91 = vector.shape_cast %90 : vector<1x320x512xbf16> to vector<320x512xbf16>
    %cst_88 = arith.constant dense<0.000000e+00> : vector<1x512xf32>
    %92 = tpu.matmul %89, %91, %cst_88 {dimension_numbers = #tpu.dot_dimension_numbers<[1], [0], [0], [1], [0, 0, 1, 1], [], []>} : vector<1x320xbf16>, vector<320x512xbf16>, vector<1x512xf32> -> vector<1x512xf32>
    %93 = arith.addf %87, %92 : vector<1x512xf32>
    %c4_89 = arith.constant 4 : index
    %c0_90 = arith.constant 0 : index
    %94 = vector.load %arg15[%c4_89, %c0_90] : memref<5x320xf32, #tpu.memory_space<vmem>>, vector<1x320xf32>
    %95 = arith.truncf %94 : vector<1x320xf32> to vector<1x320xbf16>
    %c4_91 = arith.constant 4 : index
    %c0_92 = arith.constant 0 : index
    %c0_93 = arith.constant 0 : index
    %96 = vector.load %arg8[%c4_91, %c0_92, %c0_93] : memref<5x320x512xbf16, #tpu.memory_space<vmem>>, vector<1x320x512xbf16>
    %97 = vector.shape_cast %96 : vector<1x320x512xbf16> to vector<320x512xbf16>
    %cst_94 = arith.constant dense<0.000000e+00> : vector<1x512xf32>
    %98 = tpu.matmul %95, %97, %cst_94 {dimension_numbers = #tpu.dot_dimension_numbers<[1], [0], [0], [1], [0, 0, 1, 1], [], []>} : vector<1x320xbf16>, vector<320x512xbf16>, vector<1x512xf32> -> vector<1x512xf32>
    %99 = arith.addf %93, %98 : vector<1x512xf32>
    %c0_95 = arith.constant 0 : index
    %c0_96 = arith.constant 0 : index
    %100 = vector.load %arg9[%c0_95, %c0_96] : memref<1x512xf32, #tpu.memory_space<vmem>>, vector<1x512xf32>
    %101 = arith.addf %99, %100 : vector<1x512xf32>
    %cst_97 = arith.constant 0.000000e+00 : f32
    %102 = vector.broadcast %cst_97 : f32 to vector<1x512xf32>
    %103 = arith.maximumf %101, %102 : vector<1x512xf32>
    %104 = arith.truncf %103 : vector<1x512xf32> to vector<1x512xbf16>
    %c0_98 = arith.constant 0 : index
    %c0_99 = arith.constant 0 : index
    %105 = vector.load %arg10[%c0_98, %c0_99] : memref<512x128xbf16, #tpu.memory_space<vmem>>, vector<512x128xbf16>
    %cst_100 = arith.constant dense<0.000000e+00> : vector<1x128xf32>
    %106 = tpu.matmul %104, %105, %cst_100 {dimension_numbers = #tpu.dot_dimension_numbers<[1], [0], [0], [1], [0, 0, 1, 1], [], []>} : vector<1x512xbf16>, vector<512x128xbf16>, vector<1x128xf32> -> vector<1x128xf32>
    %c0_101 = arith.constant 0 : index
    %c0_102 = arith.constant 0 : index
    %107 = vector.load %arg11[%c0_101, %c0_102] : memref<1x128xf32, #tpu.memory_space<vmem>>, vector<1x128xf32>
    %108 = arith.addf %106, %107 : vector<1x128xf32>
    %c0_103 = arith.constant 0 : index
    %c0_104 = arith.constant 0 : index
    %c0_105 = arith.constant 0 : index
    %109 = vector.load %arg12[%c0_103, %c0_104, %c0_105] : memref<1x1x128xf32, #tpu.memory_space<vmem>>, vector<1x1x128xf32>
    %110 = vector.shape_cast %109 : vector<1x1x128xf32> to vector<1x128xf32>
    %111 = vector.shape_cast %108 : vector<1x128xf32> to vector<1x1x128xf32>
    tpu.vector_store %arg12[%c0_103, %c0_104, %c0_105], %111 {strides = array<i32>} : memref<1x1x128xf32, #tpu.memory_space<vmem>>, vector<1x1x128xf32>,
    return
  }
  func.func @transform_0(%arg0: i32) -> (i32, i32, i32) {
    %c0_i32 = arith.constant 0 : i32
    %c0_i32_0 = arith.constant 0 : i32
    %c0_i32_1 = arith.constant 0 : i32
    return %arg0, %c0_i32, %c0_i32_0 : i32, i32, i32
  }
  func.func @transform_1(%arg0: i32) -> (i32, i32, i32) {
    %c0_i32 = arith.constant 0 : i32
    %c0_i32_0 = arith.constant 0 : i32
    %c0_i32_1 = arith.constant 0 : i32
    %c0_i32_2 = arith.constant 0 : i32
    return %c0_i32, %c0_i32_0, %c0_i32_1 : i32, i32, i32
  }
  func.func @transform_2(%arg0: i32) -> (i32, i32) {
    %c0_i32 = arith.constant 0 : i32
    %c0_i32_0 = arith.constant 0 : i32
    %c0_i32_1 = arith.constant 0 : i32
    return %c0_i32, %c0_i32_0 : i32, i32
  }
  func.func @transform_3(%arg0: i32) -> (i32, i32, i32) {
    %c0_i32 = arith.constant 0 : i32
    %c0_i32_0 = arith.constant 0 : i32
    %c0_i32_1 = arith.constant 0 : i32
    %c0_i32_2 = arith.constant 0 : i32
    return %c0_i32, %c0_i32_0, %c0_i32_1 : i32, i32, i32
  }
  func.func @transform_4(%arg0: i32) -> (i32, i32) {
    %c0_i32 = arith.constant 0 : i32
    %c0_i32_0 = arith.constant 0 : i32
    %c0_i32_1 = arith.constant 0 : i32
    return %c0_i32, %c0_i32_0 : i32, i32
  }
  func.func @transform_5(%arg0: i32) -> (i32, i32, i32) {
    %c0_i32 = arith.constant 0 : i32
    %c0_i32_0 = arith.constant 0 : i32
    %c0_i32_1 = arith.constant 0 : i32
    %c0_i32_2 = arith.constant 0 : i32
    return %c0_i32, %c0_i32_0, %c0_i32_1 : i32, i32, i32
  }
  func.func @transform_6(%arg0: i32) -> (i32, i32) {
    %c0_i32 = arith.constant 0 : i32
    %c0_i32_0 = arith.constant 0 : i32
    %c0_i32_1 = arith.constant 0 : i32
    return %c0_i32, %c0_i32_0 : i32, i32
  }
  func.func @transform_7(%arg0: i32) -> (i32, i32, i32) {
    %c0_i32 = arith.constant 0 : i32
    %c0_i32_0 = arith.constant 0 : i32
    %c0_i32_1 = arith.constant 0 : i32
    %c0_i32_2 = arith.constant 0 : i32
    return %c0_i32, %c0_i32_0, %c0_i32_1 : i32, i32, i32
  }
  func.func @transform_8(%arg0: i32) -> (i32, i32) {
    %c0_i32 = arith.constant 0 : i32
    %c0_i32_0 = arith.constant 0 : i32
    %c0_i32_1 = arith.constant 0 : i32
    return %c0_i32, %c0_i32_0 : i32, i32
  }
  func.func @transform_9(%arg0: i32) -> (i32, i32) {
    %c0_i32 = arith.constant 0 : i32
    %c0_i32_0 = arith.constant 0 : i32
    %c0_i32_1 = arith.constant 0 : i32
    return %c0_i32, %c0_i32_0 : i32, i32
  }
  func.func @transform_10(%arg0: i32) -> (i32, i32) {
    %c0_i32 = arith.constant 0 : i32
    %c0_i32_0 = arith.constant 0 : i32
    %c0_i32_1 = arith.constant 0 : i32
    return %c0_i32, %c0_i32_0 : i32, i32
  }
  func.func @transform_11(%arg0: i32) -> (i32, i32, i32) {
    %c0_i32 = arith.constant 0 : i32
    %c0_i32_0 = arith.constant 0 : i32
    %c0_i32_1 = arith.constant 0 : i32
    return %arg0, %c0_i32, %c0_i32_0 : i32, i32, i32
  }
}

</mosaic_0001>

<bundles_post_ra>
// kernel: dqn_forward.1
= control target key start
LH: loop header
LB: loop body
LE: loop exit
PB: predicated region body
PF: predicated region fallthrough
CT: control target
= control target key end

     0   :  { %16 = vsyncpa [#allocation6], 0  ;;  %s25522_s0 = inlined_call_operand.vmem [shape: f32[2,13,832], index: 0, kind: input, shape index: {}]   ;;  %s25523_s1 = inlined_call_operand.vmem [shape: bf16[2,832,384], index: 1, kind: input, shape index: {}]   ;;  %s25524_s2 = inlined_call_operand.vmem [shape: f32[1,384], index: 2, kind: input, shape index: {}]   ;;  %s25525_s3 = inlined_call_operand.vmem [shape: bf16[4,384,576], index: 3, kind: input, shape index: {}]   ;;  %s25526_s4 = inlined_call_operand.vmem [shape: f32[1,576], index: 4, kind: input, shape index: {}]   ;;  %s25527_s5 = inlined_call_operand.vmem [shape: bf16[3,576,320], index: 5, kind: input, shape index: {}]   ;;  %s25528_s6 = inlined_call_operand.vmem [shape: f32[1,320], index: 6, kind: input, shape index: {}]   ;;  %s25529_s7 = inlined_call_operand.vmem [shape: bf16[5,320,512], index: 7, kind: input, shape index: {}]   ;;  %s25530_s8 = inlined_call_operand.vmem [shape: f32[1,512], index: 8, kind: input, shape index: {}]   ;;  %s25531_s9 = inlined_call_operand.vmem [shape: bf16[512,128], index: 9, kind: input, shape index: {}]   ;;  %s25532_s10 = inlined_call_operand.vmem [shape: f32[1,128], index: 10, kind: input, shape index: {}]   ;;  %s25533_s11 = inlined_call_operand.hbm [shape: f32[2,1,128], index: 11, kind: output, shape index: {}]  }
   0x1   :  { %18 = vsyncpa [#allocation6 + $0x1], 0  ;;  %s20072_s17 = smov 0   ;;  %s20074_s18 = smov 0  }
   0x2   :  { %s20076_s19 = smov 0   ;;  %s20078_s20 = smov 0  }
   0x3 LB: > { %25535 = sst [smem:[#allocation8_spill]] %s20002_s19  ;;  %s20093_s21 = sadd.s32 4294967295, %s20006_s20   ;;  %s20006_s20 = sphi %s20078_s20, %s25543_s20   ;;  %s20002_s19 = sphi %s20076_s19, %s25540_s19   ;;  %s19998_s18 = sphi %s20074_s18, %s25542_s18   ;;  %s19994_s17 = sphi %s20072_s17, %s25541_s17  }
   0x4   : > { %s14330_s22 = sadd.s32 4294967294, %s20006_s20   ;;  %s20097_s23 = sadd.s32 1, %s20006_s20  }
   0x5   : > { %s267_s24 = sadd.s32 1, %s20002_s19  ;;  %s264_s25 = ssub.s32 %s20006_s20, %s20097_s23 }
   0x6   : > { %p277_p0 = scmp.ne.s32.totalorder %s20002_s19, %s19998_s18  ;;  %p265_p1 = scmp.eq.s32.totalorder %s264_s25, 0 }
   0x7   : > { %p278_p2 = scmp.eq.s32.totalorder %s20093_s21, 1  ;;  %p283_p3 = scmp.ne.s32.totalorder %s19998_s18, %s19994_s17 }
   0x8   : > { %p284_p4 = scmp.eq.s32.totalorder %s14330_s22, 1  ;;  %p14333_p7 = scmp.ge.s32.totalorder %s20006_s20, 1 }
   0x9   : > { %s20108_s26 = scalar_select %p265_p1, %s20002_s19, %s267_s24  }
   0xa   : > { %p20110_p5 = por %p278_p2, %p277_p0  ;;  %p20114_p6 = por %p284_p4, %p283_p3 }
   0xb   : > { %25536 = sst [smem:[#allocation9_spill]] %s20108_s26  ;;  %p340_p8 = scmp.lt.s32.totalorder %s20006_s20, 3 }
   0xd   : > { %p341_p9 = pnand %p14333_p7, %p340_p8 }
   0xe   : > { %p379_p10 = scmp.lt.s32.totalorder (!%p341_p9), %s20093_s21, 1  ;;  %s377_s26 = sand.u32 (!%p341_p9), 1, %s19998_s18  }
   0xf   : > { %344 = sbr.rel (%p341_p9) target bundleno = 2536 (0x9e8), region = 64  ;;  %s378_s15 = scalar_lea.vmem (!%p341_p9), [#allocation5], %s377_s26 }
  0x10   : > { %s14263_s24 = scalar_lea.sflag (!%p341_p9), [#allocation6], %s377_s26 }
  0x14   : > { %v17794_v0 = vld [vmem:[%s25523_s1 + $0x58c] ss:$12 sps:$4 sm:$0xff]   ;;  %v17798_v2 = vld [vmem:[%s25523_s1 + $0x588] ss:$12 sps:$4 sm:$0xff]   ;;  %v17804_v6 = vld [vmem:[%s25523_s1 + $0x570] ss:$12 sps:$4 sm:$0xff]  }
  0x15   : > { %v17796_v1 = vld [vmem:[%s25523_s1 + $0x70c] ss:$12 sps:$4 sm:$0xff]   ;;  %1735 = vmatprep.subr.bf16.mxu0 %v17794_v0  ;;  %v17799_v3 = vld [vmem:[%s25523_s1 + $0x708] ss:$12 sps:$4 sm:$0xff]   ;;  %v17805_v7 = vld [vmem:[%s25523_s1 + $0x6f0] ss:$12 sps:$4 sm:$0xff]  }
  0x16   : > { %1778 = vmatprep.subr.bf16.mxu1 %v17796_v1  ;;  %v17800_v4 = vld [vmem:[%s25523_s1 + $0x574] ss:$12 sps:$4 sm:$0xff]   ;;  %1736 = vmatpush1.bf16.msra.mxu0 %v17798_v2  ;;  %v17806_v8 = vld [vmem:[%s25523_s1 + $0x55c] ss:$12 sps:$4 sm:$0xff]   ;;  %v17810_v10 = vld [vmem:[%s25523_s1 + $0x558] ss:$12 sps:$4 sm:$0xff]  }
  0x17   : > { %1779 = vmatpush1.bf16.msra.mxu1 %v17799_v3  ;;  %v17802_v5 = vld [vmem:[%s25523_s1 + $0x6f4] ss:$12 sps:$4 sm:$0xff]   ;;  %1737 = vmatprep.subr.bf16.mxu0 %v17800_v4  ;;  %v17808_v9 = vld [vmem:[%s25523_s1 + $0x6dc] ss:$12 sps:$4 sm:$0xff]   ;;  %v17811_v11 = vld [vmem:[%s25523_s1 + $0x6d8] ss:$12 sps:$4 sm:$0xff]  }
  0x18   : > { %1780 = vmatprep.subr.bf16.mxu1 %v17802_v5  ;;  %v17812_v12 = vld [vmem:[%s25523_s1 + $0x544] ss:$12 sps:$4 sm:$0xff]   ;;  %v17816_v14 = vld [vmem:[%s25523_s1 + $0x540] ss:$12 sps:$4 sm:$0xff]   ;;  %v17822_v18 = vld [vmem:[%s25523_s1 + $0x528] ss:$12 sps:$4 sm:$0xff]  }
  0x19   : > { %v17814_v13 = vld [vmem:[%s25523_s1 + $0x6c4] ss:$12 sps:$4 sm:$0xff]   ;;  %v17817_v15 = vld [vmem:[%s25523_s1 + $0x6c0] ss:$12 sps:$4 sm:$0xff]   ;;  %v17823_v19 = vld [vmem:[%s25523_s1 + $0x6a8] ss:$12 sps:$4 sm:$0xff]  }
  0x1a   : > { %1738 = vmatpush1.bf16.msra.mxu0 %v17804_v6  ;;  %v17818_v16 = vld [vmem:[%s25523_s1 + $0x52c] ss:$12 sps:$4 sm:$0xff]   ;;  %v17824_v20 = vld [vmem:[%s25523_s1 + $0x514] ss:$12 sps:$4 sm:$0xff]   ;;  %v17828_v22 = vld [vmem:[%s25523_s1 + $0x510] ss:$12 sps:$4 sm:$0xff]  }
  0x1b   : > { %1781 = vmatpush1.bf16.msra.mxu1 %v17805_v7  ;;  %1739 = vmatprep.subr.bf16.mxu0 %v17806_v8  ;;  %v17820_v17 = vld [vmem:[%s25523_s1 + $0x6ac] ss:$12 sps:$4 sm:$0xff]   ;;  %v17826_v21 = vld [vmem:[%s25523_s1 + $0x694] ss:$12 sps:$4 sm:$0xff]   ;;  %v17829_v23 = vld [vmem:[%s25523_s1 + $0x690] ss:$12 sps:$4 sm:$0xff]  }
  0x1c   : > { %1782 = vmatprep.subr.bf16.mxu1 %v17808_v9  ;;  %v17830_v24 = vld [vmem:[%s25523_s1 + $0x4fc] ss:$12 sps:$4 sm:$0xff]   ;;  %v17834_v26 = vld [vmem:[%s25523_s1 + $0x4f8] ss:$12 sps:$4 sm:$0xff]   ;;  %v17840_v30 = vld [vmem:[%s25523_s1 + $0x4e0] ss:$12 sps:$4 sm:$0xff]  }
  0x1d   : > { %v17832_v25 = vld [vmem:[%s25523_s1 + $0x67c] ss:$12 sps:$4 sm:$0xff]   ;;  %v17835_v27 = vld [vmem:[%s25523_s1 + $0x678] ss:$12 sps:$4 sm:$0xff]   ;;  %v17841_v31 = vld [vmem:[%s25523_s1 + $0x660] ss:$12 sps:$4 sm:$0xff]  }
  0x1e   : > { %1740 = vmatpush1.bf16.msra.mxu0 %v17810_v10  ;;  %v17836_v28 = vld [vmem:[%s25523_s1 + $0x4e4] ss:$12 sps:$4 sm:$0xff]   ;;  %v17842_v32 = vld [vmem:[%s25523_s1 + $0x64c] ss:$12 sps:$4 sm:$0xff]   ;;  %v17846_v34 = vld [vmem:[%s25523_s1 + $0x648] ss:$12 sps:$4 sm:$0xff]  }
  0x1f   : > { %1783 = vmatpush1.bf16.msra.mxu1 %v17811_v11  ;;  %1741 = vmatprep.subr.bf16.mxu0 %v17812_v12  ;;  %v17838_v29 = vld [vmem:[%s25523_s1 + $0x664] ss:$12 sps:$4 sm:$0xff]   ;;  %v17844_v33 = vld [vmem:[%s25523_s1 + $0x7cc] ss:$12 sps:$4 sm:$0xff]   ;;  %v17847_v35 = vld [vmem:[%s25523_s1 + $0x7c8] ss:$12 sps:$4 sm:$0xff]  }
  0x20   : > { %1784 = vmatprep.subr.bf16.mxu1 %v17814_v13  ;;  %s380_s12 = scalar_select %p379_p10, %s20093_s21, 1  ;;  %v17848_v36 = vld [vmem:[%s25523_s1 + $0x634] ss:$12 sps:$4 sm:$0xff]   ;;  %v17852_v38 = vld [vmem:[%s25523_s1 + $0x630] ss:$12 sps:$4 sm:$0xff]   ;;  %vm1731_vm0 = vcmask 523264  }
  0x21   : > { %v17850_v37 = vld [vmem:[%s25523_s1 + $0x7b4] ss:$12 sps:$4 sm:$0xff]   ;;  %v17853_v39 = vld [vmem:[%s25523_s1 + $0x7b0] ss:$12 sps:$4 sm:$0xff]   ;;  %v17858_v42 = vld [vmem:[%s25523_s1 + $0x618] ss:$12 sps:$4 sm:$0xff]  }
  0x22   : > { %1742 = vmatpush1.bf16.msra.mxu0 %v17816_v14  ;;  %s17751_s25 = smul.u32 112, %s380_s12  ;;  %v17854_v40 = vld [vmem:[%s25523_s1 + $0x61c] ss:$12 sps:$4 sm:$0xff]   ;;  %v17859_v43 = vld [vmem:[%s25523_s1 + $0x798] ss:$12 sps:$4 sm:$0xff]   ;;  %vm20010_vm1 = vmmov 0  }
  0x23   : > { %1785 = vmatpush1.bf16.msra.mxu1 %v17817_v15  ;;  %1743 = vmatprep.subr.bf16.mxu0 %v17818_v16  ;;  %v17856_v41 = vld [vmem:[%s25523_s1 + $0x79c] ss:$12 sps:$4 sm:$0xff]   ;;  %v17860_v44 = vld [vmem:[%s25523_s1 + $0x604] ss:$12 sps:$4 sm:$0xff]   ;;  %v17864_v50 = vld [vmem:[%s25523_s1 + $0x600] ss:$12 sps:$4 sm:$0xff]  }
  0x24   : > { %1786 = vmatprep.subr.bf16.mxu1 %v17820_v17  ;;  %s20257_s19 = scalar_lea.vmem %s25522_s0, %s17751_s25  ;;  %v17862_v45 = vld [vmem:[%s25523_s1 + $0x784] ss:$12 sps:$4 sm:$0xff]   ;;  %v17865_v51 = vld [vmem:[%s25523_s1 + $0x780] ss:$12 sps:$4 sm:$0xff]   ;;  %v17870_v56 = vld [vmem:[%s25523_s1 + $0x5e8] ss:$12 sps:$4 sm:$0xff]  }
  0x25   : > { %v615_v46 = vld [vmem:[%s20257_s19 + $0x8] sm:$0xfe]  ;;  %v622_v47 = vld [vmem:[%s20257_s19 + $0x40] sm:$0x1f]  ;;  %v617_v48 = vld [vmem:[%s20257_s19 + $0x18] sm:$0xfe] }
  0x26   : > { %1744 = vmatpush1.bf16.msra.mxu0 %v17822_v18  ;;  %v624_v49 = vld [vmem:[%s20257_s19 + $0x50] sm:$0x1f]  ;;  %v17866_v52 = vld [vmem:[%s25523_s1 + $0x5ec] ss:$12 sps:$4 sm:$0xff]   ;;  %v629_v53 = vpack.c.bf16 %v622_v47, %v615_v46  ;;  %v614_v62 = vld [vmem:[%s20257_s19] sm:$0xfe] }
  0x27   : > { %1787 = vmatpush1.bf16.msra.mxu1 %v17823_v19  ;;  %1745 = vmatprep.subr.bf16.mxu0 %v17824_v20  ;;  %v631_v54 = vpack.c.bf16 %v624_v49, %v617_v48  ;;  %v17868_v55 = vld [vmem:[%s25523_s1 + $0x76c] ss:$12 sps:$4 sm:$0xff]   ;;  %v17871_v57 = vld [vmem:[%s25523_s1 + $0x768] ss:$12 sps:$4 sm:$0xff]   ;;  %v17876_v8 = vld [vmem:[%s25523_s1 + $0x5d0] ss:$12 sps:$4 sm:$0xff]  }
  0x28   : > { %1788 = vmatprep.subr.bf16.mxu1 %v17826_v21  ;;  %v852_v58 = vshrl.u32 %v629_v53, 16  ;;  %v854_v59 = vshll.u32 %v629_v53, 16  ;;  %v17872_v63 = vld [vmem:[%s25523_s1 + $0x5d4] ss:$12 sps:$4 sm:$0xff]   ;;  %v621_v1 = vld [vmem:[%s20257_s19 + $0x38] sm:$0x1f] }
  0x29   : > { %v866_v60 = vshrl.u32 %v631_v54, 16  ;;  %v868_v61 = vshll.u32 %v631_v54, 16  ;;  %v17874_v0 = vld [vmem:[%s25523_s1 + $0x754] ss:$12 sps:$4 sm:$0xff]   ;;  %v623_v5 = vld [vmem:[%s20257_s19 + $0x48] sm:$0x1f]  ;;  %v628_v9 = vpack.c.bf16 %v621_v1, %v614_v62 }
  0x2a   : > { %1746 = vmatpush1.bf16.msra.mxu0 %v17828_v22  ;;  %v856_v2 = vrot.slane %v854_v59, 1  ;;  %v616_v4 = vld [vmem:[%s20257_s19 + $0x10] sm:$0xfe]  ;;  %v17878_v12 = vld [vmem:[%s25523_s1 + $0x5bc] ss:$12 sps:$4 sm:$0xff]   ;;  %vm7540_vm2 = vcmask 516096  }
  0x2b   : > { %1789 = vmatpush1.bf16.msra.mxu1 %v17829_v23  ;;  %1747 = vmatprep.subr.bf16.mxu0 %v17830_v24  ;;  %v870_v3 = vrot.slane %v868_v61, 1  ;;  %v630_v10 = vpack.c.bf16 %v623_v5, %v616_v4  ;;  %v17877_v11 = vld [vmem:[%s25523_s1 + $0x750] ss:$12 sps:$4 sm:$0xff]   ;;  %v17882_v14 = vld [vmem:[%s25523_s1 + $0x5b8] ss:$12 sps:$4 sm:$0xff]   ;;  %v847_v15 = vshll.u32 %v628_v9, 16 }
  0x2c   : > { %1790 = vmatprep.subr.bf16.mxu1 %v17832_v25  ;;  %v20297_v6 = vor.u32 %v856_v2, %v852_v58  ;;  %v17880_v13 = vld [vmem:[%s25523_s1 + $0x73c] ss:$12 sps:$4 sm:$0xff]   ;;  %v17883_v17 = vld [vmem:[%s25523_s1 + $0x738] ss:$12 sps:$4 sm:$0xff]   ;;  %v17888_v20 = vld [vmem:[%s25523_s1 + $0x5a0] ss:$12 sps:$4 sm:$0xff]  }
  0x2d   : > { %v20299_v7 = vor.u32 %v870_v3, %v866_v60  ;;  %v861_v16 = vshll.u32 %v630_v10, 16  ;;  %v17884_v18 = vld [vmem:[%s25523_s1 + $0x5a4] ss:$12 sps:$4 sm:$0xff]   ;;  %v17889_v21 = vld [vmem:[%s25523_s1 + $0x720] ss:$12 sps:$4 sm:$0xff]   ;;  %v845_v22 = vshrl.u32 %v628_v9, 16 }
  0x2e   : > { %1748 = vmatpush1.bf16.msra.mxu0 %v17834_v26  ;;  %1767 = vmatprep.mubr.bf16.mxu0 %v20297_v6  ;;  %v17886_v19 = vld [vmem:[%s25523_s1 + $0x724] ss:$12 sps:$4 sm:$0xff]   ;;  %v849_v23 = vrot.slane %v847_v15, 1  ;;  %v859_v24 = vshrl.u32 %v630_v10, 16  ;;  %v17892_v26 = vld [vmem:[%s25523_s1 + $0x88c] ss:$12 sps:$4 sm:$0xff]  }
  0x2f   : > { %1791 = vmatpush1.bf16.msra.mxu1 %v17835_v27  ;;  %1749 = vmatprep.subr.bf16.mxu0 %v17836_v28  ;;  %v863_v25 = vrot.slane %v861_v16, 1  ;;  %v17895_v27 = vld [vmem:[%s25523_s1 + $0x9ac] ss:$12 sps:$4 sm:$0xff]   ;;  %v17890_v28 = vld [vmem:[%s25523_s1 + $0x888] ss:$12 sps:$4 sm:$0xff]   ;;  %vm10533_vm3 = vcmask 520192  }
  0x30   : > { %1792 = vmatprep.subr.bf16.mxu1 %v17838_v29  ;;  %1810 = vmatprep.mubr.bf16.mxu1 %v20299_v7  ;;  %v17893_v29 = vld [vmem:[%s25523_s1 + $0x9a8] ss:$12 sps:$4 sm:$0xff]   ;;  %v17913_v46 = vld [vmem:[%s25523_s1 + $0x964] ss:$12 sps:$4 sm:$0xff]   ;;  %v17908_v47 = vld [vmem:[%s25523_s1 + $0x840] ss:$12 sps:$4 sm:$0xff]  }
  0x31   : > { %v17911_v48 = vld [vmem:[%s25523_s1 + $0x960] ss:$12 sps:$4 sm:$0xff]   ;;  %v17914_v53 = vld [vmem:[%s25523_s1 + $0x828] ss:$12 sps:$4 sm:$0xff]   ;;  %v17919_v58 = vld [vmem:[%s25523_s1 + $0x810] ss:$12 sps:$4 sm:$0xff]  }
  0x32   : > { %1750 = vmatpush1.bf16.msra.mxu0 %v17840_v30  ;;  %v20345_v30 = vor.u32 %v849_v23, %v845_v22  ;;  %v17923_v59 = vld [vmem:[%s25523_s1 + $0x578] ss:$12 sps:$4 sm:$0xff]   ;;  %v17926_v60 = vld [vmem:[%s25523_s1 + $0x7fc] ss:$12 sps:$4 sm:$0xff]   ;;  %v17927_v61 = vld [vmem:[%s25523_s1 + $0x620] ss:$12 sps:$4 sm:$0xff]  }
  0x33   : > { %1793 = vmatpush1.bf16.msra.mxu1 %v17841_v31  ;;  %1751 = vmatprep.subr.bf16.mxu0 %v17842_v32  ;;  %v20347_v31 = vor.u32 %v863_v25, %v859_v24  ;;  %v620_v32 = vld [vmem:[%s20257_s19 + $0x30] sm:$0xfe]  ;;  %v17924_v62 = vld [vmem:[%s25523_s1 + $0x7f8] ss:$12 sps:$4 sm:$0xff]   ;;  %v17929_v2 = vld [vmem:[%s25523_s1 + $0x7e0] ss:$12 sps:$4 sm:$0xff]  }
  0x34   : > { %1794 = vmatprep.subr.bf16.mxu1 %v17844_v33  ;;  %v627_v33 = vld [vmem:[%s20257_s19 + $0x68] sm:$0x1f]  ;;  %v17937_v5 = vld [vmem:[%s25523_s1 + $0x5f0] ss:$12 sps:$4 sm:$0xff]   ;;  %v17941_v9 = vld [vmem:[%s25523_s1 + $0x934] ss:$12 sps:$4 sm:$0xff]  }
  0x35   : > { %v17932_v1 = vld [vmem:[%s25523_s1 + $0x608] ss:$12 sps:$4 sm:$0xff]   ;;  %v17936_v4 = vld [vmem:[%s25523_s1 + $0x94c] ss:$12 sps:$4 sm:$0xff]   ;;  %v17951_v23 = vld [vmem:[%s25523_s1 + $0x904] ss:$12 sps:$4 sm:$0xff]  }
  0x36   : > { %1752 = vmatpush2.bf16.msra.mxu0 %v17846_v34  ;;  %v17898_v34 = vld [vmem:[%s25523_s1 + $0x874] ss:$12 sps:$4 sm:$0xff]   ;;  %v17942_v10 = vld [vmem:[%s25523_s1 + $0x5d8] ss:$12 sps:$4 sm:$0xff]   ;;  %v17946_v16 = vld [vmem:[%s25523_s1 + $0x91c] ss:$12 sps:$4 sm:$0xff]  }
  0x37   : > { %1795 = vmatpush2.bf16.msra.mxu1 %v17847_v35  ;;  %1753 = vmatprep.subr.bf16.mxu0 %v17848_v36  ;;  %v17901_v35 = vld [vmem:[%s25523_s1 + $0x994] ss:$12 sps:$4 sm:$0xff]   ;;  %v17896_v36 = vld [vmem:[%s25523_s1 + $0x870] ss:$12 sps:$4 sm:$0xff]   ;;  %s14275_s25 = sshll.u32 %s378_s15, 4  ;;  %s14276_s25 = int_to_ptr.vmem [resolvable:$true] %s14275_s25 }
  0x38   : > { %1796 = vmatprep.subr.bf16.mxu1 %v17850_v37  ;;  %v17899_v37 = vld [vmem:[%s25523_s1 + $0x990] ss:$12 sps:$4 sm:$0xff]   ;;  %v17933_v3 = vld [vmem:[%s25523_s1 + $0x548] ss:$12 sps:$4 sm:$0xff]   ;;  %s19946_s29 = scalar_lea.vmem %s14276_s25, 16 }
  0x39   : > { %v17952_v24 = vld [vmem:[%s25523_s1 + $0x5a8] ss:$12 sps:$4 sm:$0xff]   ;;  %p19947_p11 = scmp.ne.s32.totalorder %s14276_s25, %s19946_s29 }
  0x3a   : > { %1754 = vmatpush2.bf16.msra.mxu0 %v17852_v38  ;;  %v634_v38 = vpack.c.bf16 %v627_v33, %v620_v32  ;;  %v17954_v32 = vld [vmem:[%s25523_s1 + $0x8e8] ss:$12 sps:$4 sm:$0xff]   ;;  %v17958_v33 = vld [vmem:[%s25523_s1 + $0x710] ss:$12 sps:$4 sm:$0xff]  }
  0x3b   : > { %1797 = vmatpush2.bf16.msra.mxu1 %v17853_v39  ;;  %1755 = vmatprep.subr.bf16.mxu0 %v17854_v40  ;;  %v17904_v39 = vld [vmem:[%s25523_s1 + $0x85c] ss:$12 sps:$4 sm:$0xff]   ;;  %p19948_p12 = pnand %p19947_p11, %p20110_p5 }
  0x3c   : > { %1798 = vmatprep.subr.bf16.mxu1 %v17856_v41  ;;  %v17907_v40 = vld [vmem:[%s25523_s1 + $0x97c] ss:$12 sps:$4 sm:$0xff]   ;;  %v20008_v41 = vmov 0   ;;  %v887_v49 = vshrl.u32 %v634_v38, 16 }
  0x3d   : > { %p19949_p13 = pneg %p19948_p12 }
  0x3e   : > { %1756 = vmatpush2.bf16.msra.mxu0 %v17858_v42  ;;  %v17902_v42 = vld [vmem:[%s25523_s1 + $0x858] ss:$12 sps:$4 sm:$0xff]  }
  0x3f   : > { %1799 = vmatpush2.bf16.msra.mxu1 %v17859_v43  ;;  %1757 = vmatprep.subr.bf16.mxu0 %v17860_v44  ;;  %v889_v43 = vshll.u32 %v634_v38, 16  ;;  %v17905_v44 = vld [vmem:[%s25523_s1 + $0x978] ss:$12 sps:$4 sm:$0xff]   ;;  %v17959_v38 = vld [vmem:[%s25523_s1 + $0x8d0] ss:$12 sps:$4 sm:$0xff]  }
  0x40   : > { %1800 = vmatprep.subr.bf16.mxu1 %v17862_v45  ;;  %v17910_v45 = vld [vmem:[%s25523_s1 + $0x844] ss:$12 sps:$4 sm:$0xff]  }
  0x42   : > { %1758 = vmatpush2.bf16.msra.mxu0 %v17864_v50  ;;  %v891_v50 = vrot.slane %v889_v43, 1  ;;  %v17967_v43 = vld [vmem:[%s25523_s1 + $0x7a0] ss:$12 sps:$4 sm:$0xff]  }
  0x43   : > { %1801 = vmatpush2.bf16.msra.mxu1 %v17865_v51  ;;  %1759 = vmatprep.subr.bf16.mxu0 %v17866_v52  ;;  %v17916_v51 = vld [vmem:[%s25523_s1 + $0x82c] ss:$12 sps:$4 sm:$0xff]   ;;  %v17917_v52 = vld [vmem:[%s25523_s1 + $0x650] ss:$12 sps:$4 sm:$0xff]  }
  0x44   : > { %1802 = vmatprep.subr.bf16.mxu1 %v17868_v55  ;;  %v20399_v54 = vor.u32 %v891_v50, %v887_v49  ;;  %v17918_v55 = vld [vmem:[%s25523_s1 + $0x590] ss:$12 sps:$4 sm:$0xff]  }
  0x46   : > { %1760 = vmatpush2.bf16.msra.mxu0 %v17870_v56  ;;  %v17921_v56 = vld [vmem:[%s25523_s1 + $0x814] ss:$12 sps:$4 sm:$0xff]  }
  0x47   : > { %1803 = vmatpush2.bf16.msra.mxu1 %v17871_v57  ;;  %1761 = vmatprep.subr.bf16.mxu0 %v17872_v63  ;;  %v17922_v57 = vld [vmem:[%s25523_s1 + $0x638] ss:$12 sps:$4 sm:$0xff]   ;;  %v17928_v63 = vld [vmem:[%s25523_s1 + $0x560] ss:$12 sps:$4 sm:$0xff]  }
  0x48   : > { %1804 = vmatprep.subr.bf16.mxu1 %v17874_v0  ;;  %v17931_v0 = vld [vmem:[%s25523_s1 + $0x7e4] ss:$12 sps:$4 sm:$0xff]  }
  0x4a   : > { %1762 = vmatpush2.bf16.msra.mxu0 %v17876_v8  ;;  %v17938_v8 = vld [vmem:[%s25523_s1 + $0x530] ss:$12 sps:$4 sm:$0xff]  }
  0x4b   : > { %1805 = vmatpush2.bf16.msra.mxu1 %v17877_v11  ;;  %1763 = vmatprep.subr.bf16.mxu0 %v17878_v12  ;;  %v17939_v11 = vld [vmem:[%s25523_s1 + $0x930] ss:$12 sps:$4 sm:$0xff]   ;;  %v619_v12 = vld [vmem:[%s20257_s19 + $0x28] sm:$0xfe] }
  0x4c   : > { %1806 = vmatprep.subr.bf16.mxu1 %v17880_v13  ;;  %v626_v13 = vld [vmem:[%s20257_s19 + $0x60] sm:$0x1f] }
  0x4d   : > { %v633_v15 = vpack.c.bf16 %v626_v13, %v619_v12  ;;  %v17995_v12 = vld [vmem:[%s25523_s1 + $0x998] ss:$12 sps:$4 sm:$0xff]   ;;  %v17996_v13 = vld [vmem:[%s25523_s1 + $0x8c0] ss:$12 sps:$4 sm:$0xff]  }
  0x4e   : > { %1764 = vmatpush2.bf16.msra.mxu0 %v17882_v14  ;;  %v17943_v14 = vld [vmem:[%s25523_s1 + $0x518] ss:$12 sps:$4 sm:$0xff]  }
  0x4f   : > { %1807 = vmatpush2.bf16.msra.mxu1 %v17883_v17  ;;  %1765 = vmatprep.subr.bf16.mxu0 %v17884_v18  ;;  %v17947_v17 = vld [vmem:[%s25523_s1 + $0x5c0] ss:$12 sps:$4 sm:$0xff]   ;;  %v880_v18 = vshrl.u32 %v633_v15, 16 }
  0x50   : > { %1808 = vmatprep.subr.bf16.mxu1 %v17886_v19  ;;  %v882_v19 = vshll.u32 %v633_v15, 16  ;;  %v17999_v15 = vld [vmem:[%s25523_s1 + $0x8a8] ss:$12 sps:$4 sm:$0xff]  }
  0x52   : > { %1766 = vmatpush2.bf16.msra.mxu0 %v17888_v20  ;;  %v17944_v20 = vld [vmem:[%s25523_s1 + $0x918] ss:$12 sps:$4 sm:$0xff]   ;;  %v884_v22 = vrot.slane %v882_v19, 1 }
  0x53   : > { %1809 = vmatpush2.bf16.msra.mxu1 %v17889_v21  ;;  %1821 = vmatprep.subr.bf16.mxu0 %v17892_v26  ;;  %v17948_v21 = vld [vmem:[%s25523_s1 + $0x500] ss:$12 sps:$4 sm:$0xff]  }
  0x54   : > { %1872 = vmatprep.subr.bf16.mxu1 %v17895_v27  ;;  %v20487_v25 = vor.u32 %v884_v22, %v880_v18  ;;  %v17949_v26 = vld [vmem:[%s25523_s1 + $0x900] ss:$12 sps:$4 sm:$0xff]   ;;  %v17953_v27 = vld [vmem:[%s25523_s1 + $0x4e8] ss:$12 sps:$4 sm:$0xff]  }
  0x55   : > { %1768 = vmatmul.mubr.bf16.vlgmr.msra.gmra.mxu0 %v20345_v30  ;;  %v18004_v18 = vld [vmem:[%s25523_s1 + $0xac] ss:$12 sps:$4 sm:$0xff]   ;;  %v18010_v22 = vld [vmem:[%s25523_s1 + $0x94] ss:$12 sps:$4 sm:$0xff]  }
  0x56   : > { %1811 = vmatmul.mubr.bf16.vlgmr.msra.gmra.mxu1 %v20347_v31  ;;  %1822 = vmatpush1.bf16.msra.mxu0 %v17890_v28  ;;  %v17956_v28 = vld [vmem:[%s25523_s1 + $0x8ec] ss:$12 sps:$4 sm:$0xff]  }
  0x57   : > { %1873 = vmatpush1.bf16.msra.mxu1 %v17893_v29  ;;  %1823 = vmatprep.subr.bf16.mxu0 %v17898_v34  ;;  %v17957_v29 = vld [vmem:[%s25523_s1 + $0x7d0] ss:$12 sps:$4 sm:$0xff]   ;;  %v17961_v34 = vld [vmem:[%s25523_s1 + $0x8d4] ss:$12 sps:$4 sm:$0xff]   ;;  %v18007_v19 = vld [vmem:[%s25523_s1 + $0x22c] ss:$12 sps:$4 sm:$0xff]  }
  0x58   : > { %1874 = vmatprep.subr.bf16.mxu1 %v17901_v35  ;;  %1896 = vmatprep.mubr.bf16.mxu1 %v20008_v41  ;;  %v618_v35 = vld [vmem:[%s20257_s19 + $0x20] sm:$0xfe] }
  0x59   : > { %1853 = vmatprep.mubr.bf16.mxu0 %v20487_v25 }
  0x5a   : > { %1824 = vmatpush1.bf16.msra.mxu0 %v17896_v36  ;;  %v625_v36 = vld [vmem:[%s20257_s19 + $0x58] sm:$0x1f] }
  0x5b   : > { %1875 = vmatpush1.bf16.msra.mxu1 %v17899_v37  ;;  %1825 = vmatprep.subr.bf16.mxu0 %v17904_v39  ;;  %v17962_v37 = vld [vmem:[%s25523_s1 + $0x7b8] ss:$12 sps:$4 sm:$0xff]  }
  0x5c   : > { %1876 = vmatprep.subr.bf16.mxu1 %v17907_v40  ;;  %v17963_v39 = vld [vmem:[%s25523_s1 + $0x6f8] ss:$12 sps:$4 sm:$0xff]   ;;  %v632_v40 = vpack.c.bf16 %v625_v36, %v618_v35  ;;  %v18023_v35 = vld [vmem:[%s25523_s1 + $0x1e0] ss:$12 sps:$4 sm:$0xff]  }
  0x5d   : > { %v393_v36 = vld [vmem:[%s20257_s19 + $0x40] sm:$0xf] }
  0x5e   : > { %1826 = vmatpush1.bf16.msra.mxu0 %v17902_v42  ;;  %v17966_v42 = vld [vmem:[%s25523_s1 + $0x8bc] ss:$12 sps:$4 sm:$0xff]   ;;  %v873_v49 = vshrl.u32 %v632_v40, 16 }
  0x5f   : > { %1877 = vmatpush1.bf16.msra.mxu1 %v17905_v44  ;;  %1827 = vmatprep.subr.bf16.mxu0 %v17910_v45  ;;  %v17968_v44 = vld [vmem:[%s25523_s1 + $0x6e0] ss:$12 sps:$4 sm:$0xff]   ;;  %v875_v45 = vshll.u32 %v632_v40, 16 }
  0x60   : > { %1878 = vmatprep.subr.bf16.mxu1 %v17913_v46  ;;  %v17971_v46 = vld [vmem:[%s25523_s1 + $0x8a4] ss:$12 sps:$4 sm:$0xff]   ;;  %v18028_v40 = vld [vmem:[%s25523_s1 + $0x4c] ss:$12 sps:$4 sm:$0xff]  }
  0x61   : > { %v877_v50 = vrot.slane %v875_v45, 1  ;;  %v18034_v45 = vld [vmem:[%s25523_s1 + $0x34] ss:$12 sps:$4 sm:$0xff]  }
  0x62   : > { %1828 = vmatpush1.bf16.msra.mxu0 %v17908_v47  ;;  %v17972_v47 = vld [vmem:[%s25523_s1 + $0x788] ss:$12 sps:$4 sm:$0xff]  }
  0x63   : > { %1879 = vmatpush1.bf16.msra.mxu1 %v17911_v48  ;;  %1829 = vmatprep.subr.bf16.mxu0 %v17916_v51  ;;  %v17969_v48 = vld [vmem:[%s25523_s1 + $0x8a0] ss:$12 sps:$4 sm:$0xff]   ;;  %v17974_v51 = vld [vmem:[%s25523_s1 + $0x770] ss:$12 sps:$4 sm:$0xff]  }
  0x64   : > { %17154 = vmatprep.subr.bf16.mxu1 %v17917_v52  ;;  %v17975_v52 = vld [vmem:[%s25523_s1 + $0x950] ss:$12 sps:$4 sm:$0xff]  }
  0x66   : > { %14699 = vmatmul.mubr.msk.bf16.vlgmr.msra.gmra.mxu1 %vm1731_vm0, %v20399_v54  ;;  %1830 = vmatpush1.bf16.msra.mxu0 %v17914_v53  ;;  %v20554_v53 = vor.u32 %v877_v50, %v873_v49  ;;  %v18043_v49 = vld [vmem:[%s25523_s1 + $0x19c] ss:$12 sps:$4 sm:$0xff]   ;;  %v18038_v50 = vld [vmem:[%s25523_s1 + $0x18] ss:$12 sps:$4 sm:$0xff]  }
  0x67   : > { %17155 = vmatpush3.bf16.msra.mxu1 %v17918_v55  ;;  %1831 = vmatprep.subr.bf16.mxu0 %v17921_v56  ;;  %v17976_v55 = vld [vmem:[%s25523_s1 + $0x6b0] ss:$12 sps:$4 sm:$0xff]  }
  0x68   : > { %17156 = vmatprep.subr.bf16.mxu1 %v17922_v57  ;;  %1939 = vmatprep.mubr.bf16.mxu1 %v20297_v6  ;;  %v17934_v6 = vld [vmem:[%s25523_s1 + $0x948] ss:$12 sps:$4 sm:$0xff]   ;;  %v17977_v56 = vld [vmem:[%s25523_s1 + $0x890] ss:$12 sps:$4 sm:$0xff]   ;;  %v17978_v57 = vld [vmem:[%s25523_s1 + $0x758] ss:$12 sps:$4 sm:$0xff]  }
  0x6a   : > { %1832 = vmatpush1.bf16.msra.mxu0 %v17919_v58  ;;  %v17979_v58 = vld [vmem:[%s25523_s1 + $0x938] ss:$12 sps:$4 sm:$0xff]  }
  0x6b   : > { %17157 = vmatpush3.bf16.msra.mxu1 %v17923_v59  ;;  %1833 = vmatprep.subr.bf16.mxu0 %v17926_v60  ;;  %v17980_v59 = vld [vmem:[%s25523_s1 + $0x698] ss:$12 sps:$4 sm:$0xff]  }
  0x6c   : > { %17158 = vmatprep.subr.bf16.mxu1 %v17927_v61  ;;  %v17981_v60 = vld [vmem:[%s25523_s1 + $0x878] ss:$12 sps:$4 sm:$0xff]   ;;  %v17982_v61 = vld [vmem:[%s25523_s1 + $0x740] ss:$12 sps:$4 sm:$0xff]  }
  0x6e   : > { %1834 = vmatpush1.bf16.msra.mxu0 %v17924_v62  ;;  %v17983_v62 = vld [vmem:[%s25523_s1 + $0x920] ss:$12 sps:$4 sm:$0xff]  }
  0x6f   : > { %17159 = vmatpush3.bf16.msra.mxu1 %v17928_v63  ;;  %1835 = vmatprep.subr.bf16.mxu0 %v17931_v0  ;;  %v17984_v63 = vld [vmem:[%s25523_s1 + $0x680] ss:$12 sps:$4 sm:$0xff]  }
  0x70   : > { %17160 = vmatprep.subr.bf16.mxu1 %v17932_v1  ;;  %v17985_v0 = vld [vmem:[%s25523_s1 + $0x860] ss:$12 sps:$4 sm:$0xff]   ;;  %v17986_v1 = vld [vmem:[%s25523_s1 + $0x728] ss:$12 sps:$4 sm:$0xff]  }
  0x72   : > { %1836 = vmatpush1.bf16.msra.mxu0 %v17929_v2  ;;  %v17987_v2 = vld [vmem:[%s25523_s1 + $0x908] ss:$12 sps:$4 sm:$0xff]  }
  0x73   : > { %17161 = vmatpush3.bf16.msra.mxu1 %v17933_v3  ;;  %1837 = vmatprep.subr.bf16.mxu0 %v17936_v4  ;;  %v17988_v3 = vld [vmem:[%s25523_s1 + $0x668] ss:$12 sps:$4 sm:$0xff]  }
  0x74   : > { %17162 = vmatprep.subr.bf16.mxu1 %v17937_v5  ;;  %v17989_v4 = vld [vmem:[%s25523_s1 + $0x848] ss:$12 sps:$4 sm:$0xff]   ;;  %v17990_v5 = vld [vmem:[%s25523_s1 + $0x8f0] ss:$12 sps:$4 sm:$0xff]  }
  0x76   : > { %1838 = vmatpush2.bf16.msra.mxu0 %v17934_v6  ;;  %v17991_v6 = vld [vmem:[%s25523_s1 + $0x830] ss:$12 sps:$4 sm:$0xff]  }
  0x77   : > { %17163 = vmatpush3.bf16.msra.mxu1 %v17938_v8  ;;  %1839 = vmatprep.subr.bf16.mxu0 %v17941_v9  ;;  %v17992_v8 = vld [vmem:[%s25523_s1 + $0x9b0] ss:$12 sps:$4 sm:$0xff]   ;;  %v20009_v9 = vmov 0.0  }
  0x78   : > { %17164 = vmatprep.subr.bf16.mxu1 %v17942_v10  ;;  %v17993_v10 = vld [vmem:[%s25523_s1 + $0x8d8] ss:$12 sps:$4 sm:$0xff]  }
  0x7a   : > { %1840 = vmatpush2.bf16.msra.mxu0 %v17939_v11  ;;  %v17994_v11 = vld [vmem:[%s25523_s1 + $0x818] ss:$12 sps:$4 sm:$0xff]  }
  0x7b   : > { %17165 = vmatpush3.bf16.msra.mxu1 %v17943_v14  ;;  %1841 = vmatprep.subr.bf16.mxu0 %v17946_v16  ;;  %v17998_v14 = vld [vmem:[%s25523_s1 + $0x980] ss:$12 sps:$4 sm:$0xff]   ;;  %v18000_v16 = vld [vmem:[%s25523_s1 + $0x7e8] ss:$12 sps:$4 sm:$0xff]  }
  0x7c   : > { %17166 = vmatprep.subr.bf16.mxu1 %v17947_v17  ;;  %v18001_v17 = vld [vmem:[%s25523_s1 + $0x968] ss:$12 sps:$4 sm:$0xff]  }
  0x7e   : > { %1842 = vmatpush2.bf16.msra.mxu0 %v17944_v20  ;;  %v18002_v20 = vld [vmem:[%s25523_s1 + $0xa8] ss:$12 sps:$4 sm:$0xff]  }
  0x7f   : > { %17167 = vmatpush3.bf16.msra.mxu1 %v17948_v21  ;;  %1843 = vmatprep.subr.bf16.mxu0 %v17951_v23  ;;  %v18005_v21 = vld [vmem:[%s25523_s1 + $0x228] ss:$12 sps:$4 sm:$0xff]  }
  0x80   : > { %17168 = vmatprep.subr.bf16.mxu1 %v17952_v24  ;;  %v18013_v23 = vld [vmem:[%s25523_s1 + $0x214] ss:$12 sps:$4 sm:$0xff]   ;;  %v18008_v24 = vld [vmem:[%s25523_s1 + $0x90] ss:$12 sps:$4 sm:$0xff]  }
  0x82   : > { %1844 = vmatpush2.bf16.msra.mxu0 %v17949_v26  ;;  %v18016_v26 = vld [vmem:[%s25523_s1 + $0x7c] ss:$12 sps:$4 sm:$0xff]  }
  0x83   : > { %17169 = vmatpush3.bf16.msra.mxu1 %v17953_v27  ;;  %1845 = vmatprep.subr.bf16.mxu0 %v17956_v28  ;;  %v18014_v27 = vld [vmem:[%s25523_s1 + $0x78] ss:$12 sps:$4 sm:$0xff]  }
  0x84   : > { %17176 = vmatprep.subr.bf16.mxu1 %v17957_v29  ;;  %v18017_v28 = vld [vmem:[%s25523_s1 + $0x1f8] ss:$12 sps:$4 sm:$0xff]  }
  0x85   : > { %v18022_v29 = vld [vmem:[%s25523_s1 + $0x64] ss:$12 sps:$4 sm:$0xff]  }
  0x86   : > { %1940 = vmatmul.mubr.bf16.vlgmr.msra.gmra.mxu1 %v20345_v30  ;;  %1846 = vmatpush2.bf16.msra.mxu0 %v17954_v32  ;;  %v17964_v30 = vld [vmem:[%s25523_s1 + $0x8b8] ss:$12 sps:$4 sm:$0xff]  }
  0x87   : > { %17177 = vmatpush3.bf16.msra.mxu1 %v17958_v33  ;;  %1847 = vmatprep.subr.bf16.mxu0 %v17961_v34  ;;  %v18025_v32 = vld [vmem:[%s25523_s1 + $0x1e4] ss:$12 sps:$4 sm:$0xff]   ;;  %v386_v33 = vld [vmem:[%s20257_s19 + $0x8] sm:$0xff] }
  0x88   : > { %17178 = vmatprep.subr.bf16.mxu1 %v17962_v37  ;;  %1980 = vmatprep.mubr.bf16.mxu1 %v20299_v7  ;;  %v17973_v7 = vld [vmem:[%s25523_s1 + $0x6c8] ss:$12 sps:$4 sm:$0xff]   ;;  %v18020_v34 = vld [vmem:[%s25523_s1 + $0x60] ss:$12 sps:$4 sm:$0xff]   ;;  %v20696_v37 = vpack.c.bf16 %v393_v36, %v386_v33 }
  0x89   : > { %v18101_v36 = vld [vmem:[%s25523_s1 + $0x4c8] ss:$12 sps:$4 sm:$0xff]  }
  0x8a   : > { %1848 = vmatpush2.bf16.msra.mxu0 %v17959_v38  ;;  %v388_v38 = vld [vmem:[%s20257_s19 + $0x18] sm:$0xff] }
  0x8b   : > { %17179 = vmatpush3.bf16.msra.mxu1 %v17963_v39  ;;  %1849 = vmatprep.subr.bf16.mxu0 %v17966_v42  ;;  %v395_v39 = vld [vmem:[%s20257_s19 + $0x50] sm:$0xf]  ;;  %v18031_v42 = vld [vmem:[%s25523_s1 + $0x1cc] ss:$12 sps:$4 sm:$0xff]  }
  0x8c   : > { %17180 = vmatprep.subr.bf16.mxu1 %v17967_v43  ;;  %v20706_v43 = vpack.c.bf16 %v395_v39, %v388_v38  ;;  %v390_v38 = vld [vmem:[%s20257_s19 + $0x28] sm:$0xff]  ;;  %v18106_v39 = vld [vmem:[%s25523_s1 + $0x394] ss:$12 sps:$4 sm:$0xff]  }
  0x8e   : > { %1850 = vmatpush2.bf16.msra.mxu0 %v17964_v30  ;;  %v18026_v30 = vld [vmem:[%s25523_s1 + $0x48] ss:$12 sps:$4 sm:$0xff]  }
  0x8f   : > { %17181 = vmatpush3.bf16.msra.mxu1 %v17968_v44  ;;  %1851 = vmatprep.subr.bf16.mxu0 %v17971_v46  ;;  %v18029_v44 = vld [vmem:[%s25523_s1 + $0x1c8] ss:$12 sps:$4 sm:$0xff]  }
  0x90   : > { %17182 = vmatprep.subr.bf16.mxu1 %v17972_v47  ;;  %v18037_v46 = vld [vmem:[%s25523_s1 + $0x1b4] ss:$12 sps:$4 sm:$0xff]   ;;  %v18032_v47 = vld [vmem:[%s25523_s1 + $0x30] ss:$12 sps:$4 sm:$0xff]  }
  0x92   : > { %1852 = vmatpush2.bf16.msra.mxu0 %v17969_v48  ;;  %v18035_v48 = vld [vmem:[%s25523_s1 + $0x1b0] ss:$12 sps:$4 sm:$0xff]  }
  0x93   : > { %17183 = vmatpush3.bf16.msra.mxu1 %v17973_v7  ;;  %17198 = vmatprep.subr.bf16.mxu0 %v17975_v52  ;;  %v18040_v7 = vld [vmem:[%s25523_s1 + $0x1c] ss:$12 sps:$4 sm:$0xff]   ;;  %v18046_v52 = vld [vmem:[%s25523_s1 + $0x4] ss:$12 sps:$4 sm:$0xff]  }
  0x94   : > { %17184 = vmatprep.subr.bf16.mxu1 %v17974_v51  ;;  %v18041_v51 = vld [vmem:[%s25523_s1 + $0x198] ss:$12 sps:$4 sm:$0xff]  }
  0x95   : > { %1854 = vmatmul.mubr.bf16.vlgmr.msra.gmra.mxu0 %v20554_v53 }
  0x96   : > { %17199 = vmatpush3.bf16.msra.mxu0 %v17977_v56  ;;  %2021 = vmatprep.mubr.bf16.mxu0 %v20487_v25  ;;  %v18011_v25 = vld [vmem:[%s25523_s1 + $0x210] ss:$12 sps:$4 sm:$0xff]   ;;  %v18047_v56 = vld [vmem:[%s25523_s1 + $0x180] ss:$12 sps:$4 sm:$0xff]  }
  0x97   : > { %17185 = vmatpush3.bf16.msra.mxu1 %v17976_v55  ;;  %17200 = vmatprep.subr.bf16.mxu0 %v17979_v58  ;;  %v18044_v55 = vld [vmem:[%s25523_s1] ss:$12 sps:$4 sm:$0xff]  }
  0x98   : > { %17186 = vmatprep.subr.bf16.mxu1 %v17978_v57  ;;  %v18052_v57 = vld [vmem:[%s25523_s1 + $0x16c] ss:$12 sps:$4 sm:$0xff]  }
  0x99   : > { %v18055_v58 = vld [vmem:[%s25523_s1 + $0x2ec] ss:$12 sps:$4 sm:$0xff]  }
  0x9a   : > { %17201 = vmatpush3.bf16.msra.mxu0 %v17981_v60  ;;  %v18053_v60 = vld [vmem:[%s25523_s1 + $0x2e8] ss:$12 sps:$4 sm:$0xff]  }
  0x9b   : > { %17187 = vmatpush3.bf16.msra.mxu1 %v17980_v59  ;;  %17202 = vmatprep.subr.bf16.mxu0 %v17983_v62  ;;  %v18050_v59 = vld [vmem:[%s25523_s1 + $0x168] ss:$12 sps:$4 sm:$0xff]  }
  0x9c   : > { %17188 = vmatprep.subr.bf16.mxu1 %v17982_v61  ;;  %v18058_v61 = vld [vmem:[%s25523_s1 + $0x154] ss:$12 sps:$4 sm:$0xff]  }
  0x9d   : > { %v18061_v62 = vld [vmem:[%s25523_s1 + $0x2d4] ss:$12 sps:$4 sm:$0xff]  }
  0x9e   : > { %17203 = vmatpush3.bf16.msra.mxu0 %v17985_v0  ;;  %v18059_v0 = vld [vmem:[%s25523_s1 + $0x2d0] ss:$12 sps:$4 sm:$0xff]  }
  0x9f   : > { %17189 = vmatpush3.bf16.msra.mxu1 %v17984_v63  ;;  %17204 = vmatprep.subr.bf16.mxu0 %v17987_v2  ;;  %v18056_v63 = vld [vmem:[%s25523_s1 + $0x150] ss:$12 sps:$4 sm:$0xff]  }
  0xa0   : > { %17190 = vmatprep.subr.bf16.mxu1 %v17986_v1  ;;  %v18064_v1 = vld [vmem:[%s25523_s1 + $0x13c] ss:$12 sps:$4 sm:$0xff]  }
  0xa1   : > { %v18067_v2 = vld [vmem:[%s25523_s1 + $0x2bc] ss:$12 sps:$4 sm:$0xff]  }
  0xa2   : > { %17205 = vmatpush3.bf16.msra.mxu0 %v17989_v4  ;;  %v18065_v4 = vld [vmem:[%s25523_s1 + $0x2b8] ss:$12 sps:$4 sm:$0xff]  }
  0xa3   : > { %17191 = vmatpush3.bf16.msra.mxu1 %v17988_v3  ;;  %17206 = vmatprep.subr.bf16.mxu0 %v17990_v5  ;;  %v18062_v3 = vld [vmem:[%s25523_s1 + $0x138] ss:$12 sps:$4 sm:$0xff]  }
  0xa4   : > { %17611 = vmatprep.subr.bf16.mxu1 %v20009_v9  ;;  %v18070_v5 = vld [vmem:[%s25523_s1 + $0x124] ss:$12 sps:$4 sm:$0xff]  }
  0xa6   : > { %1981 = vmatmul.mubr.bf16.vlgmr.msra.gmra.mxu1 %v20347_v31  ;;  %17207 = vmatpush3.bf16.msra.mxu0 %v17991_v6  ;;  %v17997_v31 = vld [vmem:[%s25523_s1 + $0x800] ss:$12 sps:$4 sm:$0xff]   ;;  %v18073_v6 = vld [vmem:[%s25523_s1 + $0x2a4] ss:$12 sps:$4 sm:$0xff]  }
  0xa7   : > { %17612 = vmatpush3.bf16.msra.mxu1 %v17992_v8  ;;  %17208 = vmatprep.subr.bf16.mxu0 %v17993_v10  ;;  %v18068_v8 = vld [vmem:[%s25523_s1 + $0x120] ss:$12 sps:$4 sm:$0xff]  }
  0xa8   : > { %17613 = vmatprep.subr.bf16.mxu1 %v20009_v9  ;;  %17619 = vmatprep.mubr.msk.bf16.mxu1 %vm20010_vm1, %v20009_v9  ;;  %v18071_v10 = vld [vmem:[%s25523_s1 + $0x2a0] ss:$12 sps:$4 sm:$0xff]  }
  0xaa   : > { %17209 = vmatpush3.bf16.msra.mxu0 %v17994_v11  ;;  %v18076_v11 = vld [vmem:[%s25523_s1 + $0x10c] ss:$12 sps:$4 sm:$0xff]  }
  0xab   : > { %17614 = vmatpush3.bf16.msra.mxu1 %v17995_v12  ;;  %17210 = vmatprep.subr.bf16.mxu0 %v17996_v13  ;;  %v18079_v12 = vld [vmem:[%s25523_s1 + $0x28c] ss:$12 sps:$4 sm:$0xff]   ;;  %v18074_v13 = vld [vmem:[%s25523_s1 + $0x108] ss:$12 sps:$4 sm:$0xff]  }
  0xac   : > { %17615 = vmatprep.subr.bf16.mxu1 %v20009_v9 }
  0xae   : > { %17211 = vmatpush3.bf16.msra.mxu0 %v17997_v31  ;;  %v18077_v31 = vld [vmem:[%s25523_s1 + $0x288] ss:$12 sps:$4 sm:$0xff]  }
  0xaf   : > { %17616 = vmatpush3.bf16.msra.mxu1 %v17998_v14  ;;  %17212 = vmatprep.subr.bf16.mxu0 %v17999_v15  ;;  %v18082_v14 = vld [vmem:[%s25523_s1 + $0xf4] ss:$12 sps:$4 sm:$0xff]  }
  0xb0   : > { %17617 = vmatprep.subr.bf16.mxu1 %v20009_v9  ;;  %v18085_v15 = vld [vmem:[%s25523_s1 + $0x274] ss:$12 sps:$4 sm:$0xff]  }
  0xb2   : > { %17213 = vmatpush3.bf16.msra.mxu0 %v18000_v16  ;;  %v18080_v16 = vld [vmem:[%s25523_s1 + $0xf0] ss:$12 sps:$4 sm:$0xff]  }
  0xb3   : > { %17618 = vmatpush3.bf16.msra.mxu1 %v18001_v17  ;;  %2906 = vmatprep.subr.bf16.mxu0 %v18004_v18  ;;  %v18083_v17 = vld [vmem:[%s25523_s1 + $0x270] ss:$12 sps:$4 sm:$0xff]  }
  0xb4   : > { %2949 = vmatprep.subr.bf16.mxu1 %v18007_v19  ;;  %v18088_v18 = vld [vmem:[%s25523_s1 + $0xdc] ss:$12 sps:$4 sm:$0xff]  }
  0xb5   : > { %2022 = vmatmul.mubr.bf16.vlgmr.msra.gmra.mxu0 %v20554_v53  ;;  %v18049_v53 = vld [vmem:[%s25523_s1 + $0x184] ss:$12 sps:$4 sm:$0xff]   ;;  %v18091_v19 = vld [vmem:[%s25523_s1 + $0x25c] ss:$12 sps:$4 sm:$0xff]  }
  0xb6   : > { %17620 = vmatmul.mubr.msk.bf16.vlgmr.msra.gmra.mxu1 %vm1731_vm0, %v20399_v54  ;;  %2907 = vmatpush1.bf16.msra.mxu0 %v18002_v20  ;;  %v18019_v54 = vld [vmem:[%s25523_s1 + $0x1fc] ss:$12 sps:$4 sm:$0xff]   ;;  %v18086_v20 = vld [vmem:[%s25523_s1 + $0xd8] ss:$12 sps:$4 sm:$0xff]  }
  0xb7   : > { %2950 = vmatpush1.bf16.msra.mxu1 %v18005_v21  ;;  %2908 = vmatprep.subr.bf16.mxu0 %v18010_v22  ;;  %v18089_v21 = vld [vmem:[%s25523_s1 + $0x258] ss:$12 sps:$4 sm:$0xff]  }
  0xb8   : > { %2951 = vmatprep.subr.bf16.mxu1 %v18013_v23  ;;  %2938 = vmatprep.mubr.bf16.mxu0 %v20696_v37  ;;  %v18094_v22 = vld [vmem:[%s25523_s1 + $0xc4] ss:$12 sps:$4 sm:$0xff]  }
  0xb9   : > { %2981 = vmatprep.mubr.bf16.mxu1 %v20706_v43  ;;  %v18097_v23 = vld [vmem:[%s25523_s1 + $0x244] ss:$12 sps:$4 sm:$0xff]  }
  0xba   : > { %2909 = vmatpush1.bf16.msra.mxu0 %v18008_v24  ;;  %v18092_v24 = vld [vmem:[%s25523_s1 + $0xc0] ss:$12 sps:$4 sm:$0xff]  }
  0xbb   : > { %2952 = vmatpush1.bf16.msra.mxu1 %v18011_v25  ;;  %2910 = vmatprep.subr.bf16.mxu0 %v18016_v26  ;;  %v18095_v25 = vld [vmem:[%s25523_s1 + $0x240] ss:$12 sps:$4 sm:$0xff]  }
  0xbc   : > { %2953 = vmatprep.subr.bf16.mxu1 %v18019_v54  ;;  %v385_v26 = vld [vmem:[%s20257_s19] sm:$0xff]  ;;  %v392_v54 = vld [vmem:[%s20257_s19 + $0x38] sm:$0xf] }
  0xbd   : > { %v20858_v33 = vpack.c.bf16 %v392_v54, %v385_v26  ;;  %v18165_v26 = vld [vmem:[%s25523_s1 + $0x2f0] ss:$12 sps:$4 sm:$0xff]   ;;  %v18162_v54 = vld [vmem:[%s25523_s1 + $0x408] ss:$12 sps:$4 sm:$0xff]  }
  0xbe   : > { %2911 = vmatpush1.bf16.msra.mxu0 %v18014_v27  ;;  %v18100_v27 = vld [vmem:[%s25523_s1 + $0x3ac] ss:$12 sps:$4 sm:$0xff]  }
  0xbf   : > { %2954 = vmatpush1.bf16.msra.mxu1 %v18017_v28  ;;  %2912 = vmatprep.subr.bf16.mxu0 %v18022_v29  ;;  %v387_v28 = vld [vmem:[%s20257_s19 + $0x10] sm:$0xff]  ;;  %v394_v29 = vld [vmem:[%s20257_s19 + $0x48] sm:$0xf] }
  0xc0   : > { %2955 = vmatprep.subr.bf16.mxu1 %v18025_v32  ;;  %v18103_v32 = vld [vmem:[%s25523_s1 + $0x4cc] ss:$12 sps:$4 sm:$0xff]  }
  0xc2   : > { %2913 = vmatpush1.bf16.msra.mxu0 %v18020_v34  ;;  %v18098_v34 = vld [vmem:[%s25523_s1 + $0x3a8] ss:$12 sps:$4 sm:$0xff]  }
  0xc3   : > { %2956 = vmatpush1.bf16.msra.mxu1 %v18023_v35  ;;  %2914 = vmatprep.subr.bf16.mxu0 %v18028_v40  ;;  %v20863_v35 = vpack.c.bf16 %v394_v29, %v387_v28  ;;  %v18109_v40 = vld [vmem:[%s25523_s1 + $0x4b4] ss:$12 sps:$4 sm:$0xff]   ;;  %v18170_v29 = vld [vmem:[%s25523_s1 + $0x2d8] ss:$12 sps:$4 sm:$0xff]  }
  0xc4   : > { %2957 = vmatprep.subr.bf16.mxu1 %v18031_v42  ;;  %v397_v42 = vld [vmem:[%s20257_s19 + $0x60] sm:$0xf] }
  0xc5   : > { %v18169_v28 = vld [vmem:[%s25523_s1 + $0x3f4] ss:$12 sps:$4 sm:$0xff]  }
  0xc6   : > { %2915 = vmatpush1.bf16.msra.mxu0 %v18026_v30  ;;  %v18104_v30 = vld [vmem:[%s25523_s1 + $0x390] ss:$12 sps:$4 sm:$0xff]  }
  0xc7   : > { %2958 = vmatpush1.bf16.msra.mxu1 %v18029_v44  ;;  %2916 = vmatprep.subr.bf16.mxu0 %v18034_v45  ;;  %v20879_v44 = vpack.c.bf16 %v397_v42, %v390_v38  ;;  %v18107_v45 = vld [vmem:[%s25523_s1 + $0x4b0] ss:$12 sps:$4 sm:$0xff]   ;;  %v18175_v38 = vld [vmem:[%s25523_s1 + $0x2c0] ss:$12 sps:$4 sm:$0xff]  }
  0xc8   : > { %2959 = vmatprep.subr.bf16.mxu1 %v18037_v46  ;;  %v18112_v46 = vld [vmem:[%s25523_s1 + $0x37c] ss:$12 sps:$4 sm:$0xff]   ;;  %v18179_v42 = vld [vmem:[%s25523_s1 + $0x3c4] ss:$12 sps:$4 sm:$0xff]  }
  0xca   : > { %2917 = vmatpush1.bf16.msra.mxu0 %v18032_v47  ;;  %v18115_v47 = vld [vmem:[%s25523_s1 + $0x49c] ss:$12 sps:$4 sm:$0xff]  }
  0xcb   : > { %2960 = vmatpush1.bf16.msra.mxu1 %v18035_v48  ;;  %2918 = vmatprep.subr.bf16.mxu0 %v18040_v7  ;;  %v18110_v48 = vld [vmem:[%s25523_s1 + $0x378] ss:$12 sps:$4 sm:$0xff]  }
  0xcc   : > { %2961 = vmatprep.subr.bf16.mxu1 %v18043_v49  ;;  %v18113_v7 = vld [vmem:[%s25523_s1 + $0x498] ss:$12 sps:$4 sm:$0xff]  }
  0xcd   : > { %v18118_v49 = vld [vmem:[%s25523_s1 + $0x364] ss:$12 sps:$4 sm:$0xff]  }
  0xce   : > { %2919 = vmatpush1.bf16.msra.mxu0 %v18038_v50  ;;  %v18121_v50 = vld [vmem:[%s25523_s1 + $0x484] ss:$12 sps:$4 sm:$0xff]  }
  0xcf   : > { %2962 = vmatpush1.bf16.msra.mxu1 %v18041_v51  ;;  %2920 = vmatprep.subr.bf16.mxu0 %v18046_v52  ;;  %v18116_v51 = vld [vmem:[%s25523_s1 + $0x360] ss:$12 sps:$4 sm:$0xff]  }
  0xd0   : > { %2963 = vmatprep.subr.bf16.mxu1 %v18049_v53  ;;  %v18119_v52 = vld [vmem:[%s25523_s1 + $0x480] ss:$12 sps:$4 sm:$0xff]  }
  0xd1   : > { %v18124_v53 = vld [vmem:[%s25523_s1 + $0x34c] ss:$12 sps:$4 sm:$0xff]  }
  0xd2   : > { %2921 = vmatpush1.bf16.msra.mxu0 %v18044_v55  ;;  %v391_v55 = vld [vmem:[%s20257_s19 + $0x30] sm:$0xff] }
  0xd3   : > { %2964 = vmatpush1.bf16.msra.mxu1 %v18047_v56  ;;  %2922 = vmatprep.subr.bf16.mxu0 %v18052_v57  ;;  %v398_v56 = vld [vmem:[%s20257_s19 + $0x68] sm:$0xf]  ;;  %v18125_v57 = vld [vmem:[%s25523_s1 + $0x170] ss:$12 sps:$4 sm:$0xff]  }
  0xd4   : > { %2965 = vmatprep.subr.bf16.mxu1 %v18055_v58  ;;  %v18122_v58 = vld [vmem:[%s25523_s1 + $0x348] ss:$12 sps:$4 sm:$0xff]  }
  0xd6   : > { %2923 = vmatpush2.bf16.msra.mxu0 %v18050_v59  ;;  %v20923_v59 = vpack.c.bf16 %v398_v56, %v391_v55  ;;  %v18186_v55 = vld [vmem:[%s25523_s1 + $0x278] ss:$12 sps:$4 sm:$0xff]  }
  0xd7   : > { %2966 = vmatpush2.bf16.msra.mxu1 %v18053_v60  ;;  %2924 = vmatprep.subr.bf16.mxu0 %v18058_v61  ;;  %v18126_v60 = vld [vmem:[%s25523_s1 + $0xb0] ss:$12 sps:$4 sm:$0xff]   ;;  %v18129_v61 = vld [vmem:[%s25523_s1 + $0x334] ss:$12 sps:$4 sm:$0xff]   ;;  %v18187_v56 = vld [vmem:[%s25523_s1 + $0x458] ss:$12 sps:$4 sm:$0xff]  }
  0xd8   : > { %2967 = vmatprep.subr.bf16.mxu1 %v18061_v62  ;;  %v18130_v62 = vld [vmem:[%s25523_s1 + $0x158] ss:$12 sps:$4 sm:$0xff]  }
  0xda   : > { %2925 = vmatpush2.bf16.msra.mxu0 %v18056_v63  ;;  %v18127_v63 = vld [vmem:[%s25523_s1 + $0x330] ss:$12 sps:$4 sm:$0xff]  }
  0xdb   : > { %2968 = vmatpush2.bf16.msra.mxu1 %v18059_v0  ;;  %2926 = vmatprep.subr.bf16.mxu0 %v18064_v1  ;;  %v18131_v0 = vld [vmem:[%s25523_s1 + $0x98] ss:$12 sps:$4 sm:$0xff]   ;;  %v18134_v1 = vld [vmem:[%s25523_s1 + $0x31c] ss:$12 sps:$4 sm:$0xff]  }
  0xdc   : > { %2969 = vmatprep.subr.bf16.mxu1 %v18067_v2  ;;  %v18135_v2 = vld [vmem:[%s25523_s1 + $0x140] ss:$12 sps:$4 sm:$0xff]  }
  0xde   : > { %2927 = vmatpush2.bf16.msra.mxu0 %v18062_v3  ;;  %v18132_v3 = vld [vmem:[%s25523_s1 + $0x318] ss:$12 sps:$4 sm:$0xff]  }
  0xdf   : > { %2970 = vmatpush2.bf16.msra.mxu1 %v18065_v4  ;;  %2928 = vmatprep.subr.bf16.mxu0 %v18070_v5  ;;  %v18136_v4 = vld [vmem:[%s25523_s1 + $0x80] ss:$12 sps:$4 sm:$0xff]   ;;  %v18139_v5 = vld [vmem:[%s25523_s1 + $0x304] ss:$12 sps:$4 sm:$0xff]  }
  0xe0   : > { %2971 = vmatprep.subr.bf16.mxu1 %v18073_v6  ;;  %v18140_v6 = vld [vmem:[%s25523_s1 + $0x128] ss:$12 sps:$4 sm:$0xff]  }
  0xe2   : > { %2929 = vmatpush2.bf16.msra.mxu0 %v18068_v8  ;;  %v18141_v8 = vld [vmem:[%s25523_s1 + $0x68] ss:$12 sps:$4 sm:$0xff]  }
  0xe3   : > { %2972 = vmatpush2.bf16.msra.mxu1 %v18071_v10  ;;  %2930 = vmatprep.subr.bf16.mxu0 %v18076_v11  ;;  %v18144_v10 = vld [vmem:[%s25523_s1 + $0x46c] ss:$12 sps:$4 sm:$0xff]   ;;  %v18145_v11 = vld [vmem:[%s25523_s1 + $0x110] ss:$12 sps:$4 sm:$0xff]  }
  0xe4   : > { %2973 = vmatprep.subr.bf16.mxu1 %v18079_v12  ;;  %v18142_v12 = vld [vmem:[%s25523_s1 + $0x468] ss:$12 sps:$4 sm:$0xff]  }
  0xe6   : > { %2931 = vmatpush2.bf16.msra.mxu0 %v18074_v13  ;;  %v18146_v13 = vld [vmem:[%s25523_s1 + $0x50] ss:$12 sps:$4 sm:$0xff]  }
  0xe7   : > { %2974 = vmatpush2.bf16.msra.mxu1 %v18077_v31  ;;  %2932 = vmatprep.subr.bf16.mxu0 %v18082_v14  ;;  %v18149_v31 = vld [vmem:[%s25523_s1 + $0x454] ss:$12 sps:$4 sm:$0xff]   ;;  %v18150_v14 = vld [vmem:[%s25523_s1 + $0xf8] ss:$12 sps:$4 sm:$0xff]  }
  0xe8   : > { %2975 = vmatprep.subr.bf16.mxu1 %v18085_v15  ;;  %v18147_v15 = vld [vmem:[%s25523_s1 + $0x450] ss:$12 sps:$4 sm:$0xff]  }
  0xea   : > { %2933 = vmatpush2.bf16.msra.mxu0 %v18080_v16  ;;  %v18151_v16 = vld [vmem:[%s25523_s1 + $0x38] ss:$12 sps:$4 sm:$0xff]  }
  0xeb   : > { %2976 = vmatpush2.bf16.msra.mxu1 %v18083_v17  ;;  %2934 = vmatprep.subr.bf16.mxu0 %v18088_v18  ;;  %v18154_v17 = vld [vmem:[%s25523_s1 + $0x43c] ss:$12 sps:$4 sm:$0xff]   ;;  %v18155_v18 = vld [vmem:[%s25523_s1 + $0xe0] ss:$12 sps:$4 sm:$0xff]  }
  0xec   : > { %2977 = vmatprep.subr.bf16.mxu1 %v18091_v19  ;;  %v18152_v19 = vld [vmem:[%s25523_s1 + $0x438] ss:$12 sps:$4 sm:$0xff]  }
  0xee   : > { %2935 = vmatpush2.bf16.msra.mxu0 %v18086_v20  ;;  %v18156_v20 = vld [vmem:[%s25523_s1 + $0x20] ss:$12 sps:$4 sm:$0xff]  }
  0xef   : > { %2978 = vmatpush2.bf16.msra.mxu1 %v18089_v21  ;;  %2936 = vmatprep.subr.bf16.mxu0 %v18094_v22  ;;  %v18159_v21 = vld [vmem:[%s25523_s1 + $0x424] ss:$12 sps:$4 sm:$0xff]   ;;  %v18160_v22 = vld [vmem:[%s25523_s1 + $0xc8] ss:$12 sps:$4 sm:$0xff]  }
  0xf0   : > { %2979 = vmatprep.subr.bf16.mxu1 %v18097_v23  ;;  %v18157_v23 = vld [vmem:[%s25523_s1 + $0x420] ss:$12 sps:$4 sm:$0xff]  }
  0xf2   : > { %2937 = vmatpush2.bf16.msra.mxu0 %v18092_v24  ;;  %v18161_v24 = vld [vmem:[%s25523_s1 + $0x8] ss:$12 sps:$4 sm:$0xff]  }
  0xf3   : > { %2980 = vmatpush2.bf16.msra.mxu1 %v18095_v25  ;;  %2992 = vmatprep.subr.bf16.mxu0 %v18100_v27  ;;  %v18164_v25 = vld [vmem:[%s25523_s1 + $0x40c] ss:$12 sps:$4 sm:$0xff]   ;;  %v18166_v27 = vld [vmem:[%s25523_s1 + $0x230] ss:$12 sps:$4 sm:$0xff]  }
  0xf4   : > { %3043 = vmatprep.subr.bf16.mxu1 %v18103_v32  ;;  %v18167_v32 = vld [vmem:[%s25523_s1 + $0x3f0] ss:$12 sps:$4 sm:$0xff]  }
  0xf5   : > { %2939 = vmatmul.mubr.bf16.vlgmr.msra.gmra.mxu0 %v20858_v33 }
  0xf6   : > { %2982 = vmatmul.mubr.bf16.vlgmr.msra.gmra.mxu1 %v20863_v35  ;;  %2993 = vmatpush1.bf16.msra.mxu0 %v18098_v34  ;;  %v18171_v34 = vld [vmem:[%s25523_s1 + $0x218] ss:$12 sps:$4 sm:$0xff]  }
  0xf7   : > { %3044 = vmatpush1.bf16.msra.mxu1 %v18101_v36  ;;  %2994 = vmatprep.subr.bf16.mxu0 %v18106_v39  ;;  %v18174_v36 = vld [vmem:[%s25523_s1 + $0x3dc] ss:$12 sps:$4 sm:$0xff]   ;;  %v18172_v39 = vld [vmem:[%s25523_s1 + $0x3d8] ss:$12 sps:$4 sm:$0xff]  }
  0xf8   : > { %3045 = vmatprep.subr.bf16.mxu1 %v18109_v40  ;;  %3067 = vmatprep.mubr.bf16.mxu1 %v20008_v41 }
  0xf9   : > { %3024 = vmatprep.mubr.bf16.mxu0 %v20879_v44 }
  0xfa   : > { %2995 = vmatpush1.bf16.msra.mxu0 %v18104_v30  ;;  %v18180_v30 = vld [vmem:[%s25523_s1 + $0x2a8] ss:$12 sps:$4 sm:$0xff]  }
  0xfb   : > { %3046 = vmatpush1.bf16.msra.mxu1 %v18107_v45  ;;  %2996 = vmatprep.subr.bf16.mxu0 %v18112_v46  ;;  %v18177_v45 = vld [vmem:[%s25523_s1 + $0x3c0] ss:$12 sps:$4 sm:$0xff]  }
  0xfc   : > { %3047 = vmatprep.subr.bf16.mxu1 %v18115_v47  ;;  %v389_v46 = vld [vmem:[%s20257_s19 + $0x20] sm:$0xff]  ;;  %v396_v47 = vld [vmem:[%s20257_s19 + $0x58] sm:$0xf]  ;;  %s17151_s19 = sshll.u32 %s20093_s21, 4  ;;  %s20011_s21 = smov [#allocation5]  }
  0xfd   : > { %s25487_s12 = scalar_lea.hbm %s25533_s11, %s17151_s19  ;;  %s19950_s30 = sshll.u32 %s20011_s21, 4  ;;  %s19951_s30 = int_to_ptr.vmem [resolvable:$false] %s19950_s30 }
  0xfe   : > { %2997 = vmatpush1.bf16.msra.mxu0 %v18110_v48  ;;  %s19952_s13 = scalar_lea.vmem %s19951_s30, 32  ;;  %p19953_p0 = scmp.lt.s32.totalorder %s14276_s25, %s19951_s30 }
  0xff   : > { %3048 = vmatpush1.bf16.msra.mxu1 %v18113_v7  ;;  %2998 = vmatprep.subr.bf16.mxu0 %v18118_v49  ;;  %v18182_v7 = vld [vmem:[%s25523_s1 + $0x290] ss:$12 sps:$4 sm:$0xff]   ;;  %p19954_p1 = scmp.lt.s32.totalorder %s19952_s13, %s19946_s29 }
 0x100   : > { %3049 = vmatprep.subr.bf16.mxu1 %v18121_v50  ;;  %v18183_v49 = vld [vmem:[%s25523_s1 + $0x470] ss:$12 sps:$4 sm:$0xff]  }
 0x101   : > { %v18184_v50 = vld [vmem:[%s25523_s1 + $0x1d0] ss:$12 sps:$4 sm:$0xff]   ;;  %p19955_p2 = por %p19954_p1, %p19953_p0 }
 0x102   : > { %2999 = vmatpush1.bf16.msra.mxu0 %v18116_v51  ;;  %v18185_v51 = vld [vmem:[%s25523_s1 + $0x3b0] ss:$12 sps:$4 sm:$0xff]  }
 0x103   : > { %3050 = vmatpush1.bf16.msra.mxu1 %v18119_v52  ;;  %3000 = vmatprep.subr.bf16.mxu0 %v18124_v53  ;;  %v21085_v53 = vpack.c.bf16 %v396_v47, %v389_v46  ;;  %p19956_p3 = pnand %p19955_p2, %p19949_p13 }
 0x104   : > { %17225 = vmatprep.subr.bf16.mxu1 %v18125_v57  ;;  %v18188_v57 = vld [vmem:[%s25523_s1 + $0x1b8] ss:$12 sps:$4 sm:$0xff]  }
 0x106   : > { %14857 = vmatmul.mubr.msk.bf16.vlgmr.msra.gmra.mxu1 %vm1731_vm0, %v20923_v59  ;;  %3001 = vmatpush1.bf16.msra.mxu0 %v18122_v58  ;;  %v18189_v58 = vld [vmem:[%s25523_s1 + $0x398] ss:$12 sps:$4 sm:$0xff]  }
 0x107   : > { %17226 = vmatpush3.bf16.msra.mxu1 %v18126_v60  ;;  %3002 = vmatprep.subr.bf16.mxu0 %v18129_v61  ;;  %v18190_v61 = vld [vmem:[%s25523_s1 + $0x260] ss:$12 sps:$4 sm:$0xff]  }
 0x108   : > { %17227 = vmatprep.subr.bf16.mxu1 %v18130_v62  ;;  %3110 = vmatprep.mubr.bf16.mxu1 %v20696_v37  ;;  %v18137_v37 = vld [vmem:[%s25523_s1 + $0x300] ss:$12 sps:$4 sm:$0xff]  }
 0x109   : > { %v18191_v62 = vld [vmem:[%s25523_s1 + $0x440] ss:$12 sps:$4 sm:$0xff]  }
 0x10a   : > { %3003 = vmatpush1.bf16.msra.mxu0 %v18127_v63 }
 0x10b   : > { %17228 = vmatpush3.bf16.msra.mxu1 %v18131_v0  ;;  %3004 = vmatprep.subr.bf16.mxu0 %v18134_v1  ;;  %v18192_v0 = vld [vmem:[%s25523_s1 + $0x1a0] ss:$12 sps:$4 sm:$0xff]  }
 0x10c   : > { %17229 = vmatprep.subr.bf16.mxu1 %v18135_v2  ;;  %v18193_v1 = vld [vmem:[%s25523_s1 + $0x380] ss:$12 sps:$4 sm:$0xff]   ;;  %v18194_v2 = vld [vmem:[%s25523_s1 + $0x248] ss:$12 sps:$4 sm:$0xff]  }
 0x10e   : > { %3005 = vmatpush1.bf16.msra.mxu0 %v18132_v3  ;;  %v18195_v3 = vld [vmem:[%s25523_s1 + $0x428] ss:$12 sps:$4 sm:$0xff]  }
 0x10f   : > { %17230 = vmatpush3.bf16.msra.mxu1 %v18136_v4  ;;  %3006 = vmatprep.subr.bf16.mxu0 %v18139_v5  ;;  %v18196_v5 = vld [vmem:[%s25523_s1 + $0x188] ss:$12 sps:$4 sm:$0xff]  }
 0x110   : > { %17231 = vmatprep.subr.bf16.mxu1 %v18140_v6  ;;  %v18198_v6 = vld [vmem:[%s25523_s1 + $0x410] ss:$12 sps:$4 sm:$0xff]  }
 0x112   : > { %3007 = vmatpush1.bf16.msra.mxu0 %v18137_v37 }
 0x113   : > { %17232 = vmatpush3.bf16.msra.mxu1 %v18141_v8  ;;  %3008 = vmatprep.subr.bf16.mxu0 %v18144_v10  ;;  %v18199_v8 = vld [vmem:[%s25523_s1 + $0x350] ss:$12 sps:$4 sm:$0xff]  }
 0x114   : > { %17233 = vmatprep.subr.bf16.mxu1 %v18145_v11  ;;  %v18200_v10 = vld [vmem:[%s25523_s1 + $0x4d0] ss:$12 sps:$4 sm:$0xff]   ;;  %v18201_v11 = vld [vmem:[%s25523_s1 + $0x3f8] ss:$12 sps:$4 sm:$0xff]  }
 0x116   : > { %3009 = vmatpush2.bf16.msra.mxu0 %v18142_v12  ;;  %v21053_v40 = vpop.f32.mrf.mxu1 }
 0x117   : > { %17234 = vmatpush3.bf16.msra.mxu1 %v18146_v13  ;;  %3010 = vmatprep.subr.bf16.mxu0 %v18149_v31  ;;  %v18202_v13 = vld [vmem:[%s25523_s1 + $0x338] ss:$12 sps:$4 sm:$0xff]  }
 0x118   : > { %17235 = vmatprep.subr.bf16.mxu1 %v18150_v14  ;;  %v21069_v48 = vpop.f32.mrf.mxu1  ;;  %v18203_v31 = vld [vmem:[%s25523_s1 + $0x4b8] ss:$12 sps:$4 sm:$0xff]  }
 0x11a   : > { %3011 = vmatpush2.bf16.msra.mxu0 %v18147_v15  ;;  %v21083_v52 = vpop.f32.mrf.mxu1  ;;  %v18204_v15 = vld [vmem:[%s25523_s1 + $0x3e0] ss:$12 sps:$4 sm:$0xff]  }
 0x11b   : > { %17236 = vmatpush3.bf16.msra.mxu1 %v18151_v16  ;;  %3012 = vmatprep.subr.bf16.mxu0 %v18154_v17  ;;  %v1769_v16 = vpop.f32.mrf.mxu0 }
 0x11c   : > { %17237 = vmatprep.subr.bf16.mxu1 %v18155_v18  ;;  %v21099_v60 = vpop.f32.mrf.mxu1 }
 0x11e   : > { %3013 = vmatpush2.bf16.msra.mxu0 %v18152_v19  ;;  %v18205_v19 = vld [vmem:[%s25523_s1 + $0x320] ss:$12 sps:$4 sm:$0xff]  }
 0x11f   : > { %17238 = vmatpush3.bf16.msra.mxu1 %v18156_v20  ;;  %3014 = vmatprep.subr.bf16.mxu0 %v18159_v21  ;;  %v1771_v20 = vpop.f32.mrf.mxu0  ;;  %v18207_v21 = vld [vmem:[%s25523_s1 + $0x3c8] ss:$12 sps:$4 sm:$0xff]  }
 0x120   : > { %17239 = vmatprep.subr.bf16.mxu1 %v18160_v22  ;;  %v18208_v22 = vld [vmem:[%s25523_s1 + $0x308] ss:$12 sps:$4 sm:$0xff]  }
 0x122   : > { %3015 = vmatpush2.bf16.msra.mxu0 %v18157_v23  ;;  %v18209_v23 = vld [vmem:[%s25523_s1 + $0x488] ss:$12 sps:$4 sm:$0xff]  }
 0x123   : > { %17240 = vmatpush3.bf16.msra.mxu1 %v18161_v24  ;;  %3016 = vmatprep.subr.bf16.mxu0 %v18164_v25  ;;  %v18212_v24 = vld [vmem:[%s25525_s3 + $0x4dc] ss:$20 sps:$4 sm:$0xff]   ;;  %v1773_v25 = vpop.f32.mrf.mxu0 }
 0x124   : > { %17247 = vmatprep.subr.bf16.mxu1 %v18165_v26  ;;  %v18210_v26 = vld [vmem:[%s25525_s3 + $0x4d8] ss:$20 sps:$4 sm:$0xff]  }
 0x126   : > { %3111 = vmatmul.mubr.bf16.vlgmr.msra.gmra.mxu1 %v20858_v33  ;;  %3017 = vmatpush2.bf16.msra.mxu0 %v18162_v54  ;;  %v18176_v33 = vld [vmem:[%s25523_s1 + $0x200] ss:$12 sps:$4 sm:$0xff]   ;;  %v21108_v63 = vpop.f32.mrf.mxu1  ;;  %v18215_v54 = vld [vmem:[%s25525_s3 + $0x4b4] ss:$20 sps:$4 sm:$0xff]  }
 0x127   : > { %17248 = vmatpush3.bf16.msra.mxu1 %v18166_v27  ;;  %3018 = vmatprep.subr.bf16.mxu0 %v18169_v28  ;;  %v21189_v27 = vpop.f32.mrf.mxu0  ;;  %v1813_v28 = vadd.f32 %v21053_v40, %v1769_v16 }
 0x128   : > { %17249 = vmatprep.subr.bf16.mxu1 %v18170_v29  ;;  %3151 = vmatprep.mubr.bf16.mxu1 %v20706_v43  ;;  %v18181_v43 = vld [vmem:[%s25523_s1 + $0x1e8] ss:$12 sps:$4 sm:$0xff]   ;;  %v21123_v4 = vpop.f32.mrf.mxu1  ;;  %v18213_v29 = vld [vmem:[%s25525_s3 + $0x4b0] ss:$20 sps:$4 sm:$0xff]  }
 0x12a   : > { %3019 = vmatpush2.bf16.msra.mxu0 %v18167_v32  ;;  %v21134_v37 = vpop.f32.mrf.mxu1 }
 0x12b   : > { %17250 = vmatpush3.bf16.msra.mxu1 %v18171_v34  ;;  %3020 = vmatprep.subr.bf16.mxu0 %v18174_v36  ;;  %v18218_v34 = vld [vmem:[%s25525_s3 + $0x48c] ss:$20 sps:$4 sm:$0xff]   ;;  %v1815_v36 = vadd.f32 %v21069_v48, %v1771_v20 }
 0x12c   : > { %17251 = vmatprep.subr.bf16.mxu1 %v18175_v38  ;;  %v21145_v12 = vpop.f32.mrf.mxu1  ;;  %v18219_v48 = vld [vmem:[%s25525_s3 + $0x460] ss:$20 sps:$4 sm:$0xff]  }
 0x12d   : > { %v18242_v20 = vld [vmem:[%s25525_s3 + $0x5cc] ss:$20 sps:$4 sm:$0xff]  }
 0x12e   : > { %3021 = vmatpush2.bf16.msra.mxu0 %v18172_v39 }
 0x12f   : > { %17252 = vmatpush3.bf16.msra.mxu1 %v18176_v33  ;;  %3022 = vmatprep.subr.bf16.mxu0 %v18179_v42  ;;  %v1817_v33 = vadd.f32 %v21083_v52, %v1773_v25  ;;  %v18245_v25 = vld [vmem:[%s25525_s3 + $0x5a4] ss:$20 sps:$4 sm:$0xff]  }
 0x130   : > { %17253 = vmatprep.subr.bf16.mxu1 %v18180_v30 }
 0x132   : > { %3023 = vmatpush2.bf16.msra.mxu0 %v18177_v45  ;;  %v18221_v45 = vld [vmem:[%s25525_s3 + $0x464] ss:$20 sps:$4 sm:$0xff]  }
 0x133   : > { %17254 = vmatpush3.bf16.msra.mxu1 %v18181_v43  ;;  %17269 = vmatprep.subr.bf16.mxu0 %v18183_v49 }
 0x134   : > { %17255 = vmatprep.subr.bf16.mxu1 %v18182_v7 }
 0x135   : > { %3025 = vmatmul.mubr.bf16.vlgmr.msra.gmra.mxu0 %v21085_v53 }
 0x136   : > { %17270 = vmatpush3.bf16.msra.mxu0 %v18185_v51  ;;  %3192 = vmatprep.mubr.bf16.mxu0 %v20879_v44  ;;  %v18197_v44 = vld [vmem:[%s25523_s1 + $0x368] ss:$12 sps:$4 sm:$0xff]   ;;  %v18222_v51 = vld [vmem:[%s25525_s3 + $0x438] ss:$20 sps:$4 sm:$0xff]  }
 0x137   : > { %17256 = vmatpush3.bf16.msra.mxu1 %v18184_v50  ;;  %17271 = vmatprep.subr.bf16.mxu0 %v18187_v56  ;;  %v18224_v50 = vld [vmem:[%s25525_s3 + $0x43c] ss:$20 sps:$4 sm:$0xff]  }
 0x138   : > { %17257 = vmatprep.subr.bf16.mxu1 %v18186_v55  ;;  %v18227_v55 = vld [vmem:[%s25525_s3 + $0x414] ss:$20 sps:$4 sm:$0xff]  }
 0x13a   : > { %17272 = vmatpush3.bf16.msra.mxu0 %v18189_v58 }
 0x13b   : > { %17258 = vmatpush3.bf16.msra.mxu1 %v18188_v57  ;;  %17273 = vmatprep.subr.bf16.mxu0 %v18191_v62  ;;  %v18225_v57 = vld [vmem:[%s25525_s3 + $0x410] ss:$20 sps:$4 sm:$0xff]  }
 0x13c   : > { %17259 = vmatprep.subr.bf16.mxu1 %v18190_v61 }
 0x13e   : > { %17274 = vmatpush3.bf16.msra.mxu0 %v18193_v1 }
 0x13f   : > { %17260 = vmatpush3.bf16.msra.mxu1 %v18192_v0  ;;  %17275 = vmatprep.subr.bf16.mxu0 %v18195_v3 }
 0x140   : > { %17261 = vmatprep.subr.bf16.mxu1 %v18194_v2  ;;  %v18228_v2 = vld [vmem:[%s25525_s3 + $0x3e8] ss:$20 sps:$4 sm:$0xff]  }
 0x142   : > { %17276 = vmatpush3.bf16.msra.mxu0 %v18197_v44 }
 0x143   : > { %17262 = vmatpush3.bf16.msra.mxu1 %v18196_v5  ;;  %17277 = vmatprep.subr.bf16.mxu0 %v18198_v6  ;;  %v18233_v5 = vld [vmem:[%s25525_s3 + $0x3c4] ss:$20 sps:$4 sm:$0xff]   ;;  %v18236_v6 = vld [vmem:[%s25525_s3 + $0x61c] ss:$20 sps:$4 sm:$0xff]  }
 0x144   : > { %17623 = vmatprep.subr.bf16.mxu1 %v20009_v9 }
 0x146   : > { %3152 = vmatmul.mubr.bf16.vlgmr.msra.gmra.mxu1 %v20863_v35  ;;  %v17170_v14 = vpop.f32.mrf.mxu1  ;;  %17278 = vmatpush3.bf16.msra.mxu0 %v18199_v8  ;;  %v18206_v35 = vld [vmem:[%s25523_s1 + $0x4a0] ss:$12 sps:$4 sm:$0xff]  }
 0x147   : > { %17624 = vmatpush3.bf16.msra.mxu1 %v18200_v10  ;;  %17279 = vmatprep.subr.bf16.mxu0 %v18201_v11 }
 0x148   : > { %v17171_v17 = vpop.f32.mrf.mxu1  ;;  %17625 = vmatprep.subr.bf16.mxu1 %v20009_v9  ;;  %17631 = vmatprep.mubr.msk.bf16.mxu1 %vm20010_vm1, %v20009_v9 }
 0x149   : > { %v21159_v18 = vadd.f32 %v17171_v17, %v17170_v14 }
 0x14a   : > { %17280 = vmatpush3.bf16.msra.mxu0 %v18202_v13  ;;  %v17173_v7 = vpop.f32.mrf.mxu1 }
 0x14b   : > { %17626 = vmatpush3.bf16.msra.mxu1 %v18203_v31  ;;  %17281 = vmatprep.subr.bf16.mxu0 %v18204_v15  ;;  %v18239_v31 = vld [vmem:[%s25525_s3 + $0x5f4] ss:$20 sps:$4 sm:$0xff]   ;;  %v18237_v15 = vld [vmem:[%s25525_s3 + $0x5f0] ss:$20 sps:$4 sm:$0xff]  }
 0x14c   : > { %17627 = vmatprep.subr.bf16.mxu1 %v20009_v9  ;;  %v17174_v49 = vpop.f32.mrf.mxu1 }
 0x14d   : > { %v17175_v0 = vadd.f32 %v17174_v49, %v17173_v7  ;;  %v18270_v7 = vld [vmem:[%s25525_s3 + $0x708] ss:$20 sps:$4 sm:$0xff]   ;;  %v18278_v49 = vld [vmem:[%s25525_s3 + $0x6e4] ss:$20 sps:$4 sm:$0xff]  }
 0x14e   : > { %17282 = vmatpush3.bf16.msra.mxu0 %v18205_v19 }
 0x14f   : > { %17628 = vmatpush3.bf16.msra.mxu1 %v18206_v35  ;;  %17283 = vmatprep.subr.bf16.mxu0 %v18207_v21 }
 0x150   : > { %17629 = vmatprep.subr.bf16.mxu1 %v20009_v9 }
 0x152   : > { %17284 = vmatpush3.bf16.msra.mxu0 %v18208_v22 }
 0x153   : > { %17630 = vmatpush3.bf16.msra.mxu1 %v18209_v23  ;;  %4232 = vmatprep.subr.bf16.mxu0 %v18212_v24  ;;  %v18240_v23 = vld [vmem:[%s25525_s3 + $0x5c8] ss:$20 sps:$4 sm:$0xff]  }
 0x155   : > { %v1855_v32 = vpop.f32.mrf.mxu0  ;;  %3193 = vmatmul.mubr.bf16.vlgmr.msra.gmra.mxu0 %v21085_v53 }
 0x156   : > { %17632 = vmatmul.mubr.msk.bf16.vlgmr.msra.gmra.mxu1 %vm1731_vm0, %v20923_v59  ;;  %v1856_v38 = vadd.f32 %v1855_v32, %v1813_v28  ;;  %4233 = vmatpush1.bf16.msra.mxu0 %v18210_v26  ;;  %v18216_v59 = vld [vmem:[%s25525_s3 + $0x488] ss:$20 sps:$4 sm:$0xff]  }
 0x157   : > { %4307 = vmatprep.mubr.bf16.mxu1 %v20008_v41  ;;  %v1857_v39 = vpop.f32.mrf.mxu0  ;;  %4234 = vmatprep.subr.bf16.mxu0 %v18215_v54  ;;  %v18243_v54 = vld [vmem:[%s25525_s3 + $0x5a0] ss:$20 sps:$4 sm:$0xff]   ;;  %v18248_v28 = vld [vmem:[%s25525_s3 + $0x57c] ss:$20 sps:$4 sm:$0xff]  }
 0x158   : > { %v1858_v40 = vadd.f32 %v1857_v39, %v1815_v36  ;;  %v21205_v42 = vadd.f32 %v21108_v63, %v1856_v38  ;;  %v18230_v63 = vld [vmem:[%s25525_s3 + $0x3ec] ss:$20 sps:$4 sm:$0xff]   ;;  %v18251_v32 = vld [vmem:[%s25525_s3 + $0x554] ss:$20 sps:$4 sm:$0xff]  }
 0x159   : > { %v1859_v30 = vpop.f32.mrf.mxu0  ;;  %v18254_v36 = vld [vmem:[%s25525_s3 + $0x52c] ss:$20 sps:$4 sm:$0xff]   ;;  %v18252_v38 = vld [vmem:[%s25525_s3 + $0x528] ss:$20 sps:$4 sm:$0xff]  }
 0x15a   : > { %v1860_v43 = vadd.f32 %v1859_v30, %v1817_v33  ;;  %v21214_v46 = vadd.f32 %v21123_v4, %v1858_v40  ;;  %4235 = vmatpush1.bf16.msra.mxu0 %v18213_v29  ;;  %v18231_v4 = vld [vmem:[%s25525_s3 + $0x3c0] ss:$20 sps:$4 sm:$0xff]   ;;  %v18246_v29 = vld [vmem:[%s25525_s3 + $0x578] ss:$20 sps:$4 sm:$0xff]   ;;  %v18260_v40 = vld [vmem:[%s25525_s3 + $0x75c] ss:$20 sps:$4 sm:$0xff]  }
 0x15b   : > { %4236 = vmatprep.subr.bf16.mxu0 %v18218_v34  ;;  %v21247_v44 = vpop.f32.mrf.mxu0  ;;  %v18249_v34 = vld [vmem:[%s25525_s3 + $0x550] ss:$20 sps:$4 sm:$0xff]   ;;  %v18255_v39 = vld [vmem:[%s25525_s3 + $0x500] ss:$20 sps:$4 sm:$0xff]   ;;  %v18258_v30 = vld [vmem:[%s25525_s3 + $0x758] ss:$20 sps:$4 sm:$0xff]   ;;  %4275 = vmatprep.subr.bf16.mxu1 %v18260_v40 }
 0x15c   : > { %v21217_v47 = vadd.f32 %v21134_v37, %v1860_v43  ;;  %v18234_v37 = vld [vmem:[%s25525_s3 + $0x618] ss:$20 sps:$4 sm:$0xff]   ;;  %4276 = vmatpush1.bf16.msra.mxu1 %v18258_v30  ;;  %v18264_v43 = vld [vmem:[%s25525_s3 + $0x730] ss:$20 sps:$4 sm:$0xff]  }
 0x15d   : > { %v18257_v33 = vld [vmem:[%s25525_s3 + $0x504] ss:$20 sps:$4 sm:$0xff]  }
 0x15e   : > { %4237 = vmatpush1.bf16.msra.mxu0 %v18216_v59  ;;  %v18263_v59 = vld [vmem:[%s25525_s3 + $0x764] ss:$20 sps:$4 sm:$0xff]  }
 0x15f   : > { %4238 = vmatprep.subr.bf16.mxu0 %v18221_v45  ;;  %v18266_v45 = vld [vmem:[%s25525_s3 + $0x734] ss:$20 sps:$4 sm:$0xff]  }
 0x160   : > { %4277 = vmatprep.subr.bf16.mxu1 %v18266_v45 }
 0x161   : > { %4278 = vmatpush1.bf16.msra.mxu1 %v18264_v43 }
 0x162   : > { %4239 = vmatpush1.bf16.msra.mxu0 %v18219_v48  ;;  %v18272_v48 = vld [vmem:[%s25525_s3 + $0x70c] ss:$20 sps:$4 sm:$0xff]  }
 0x163   : > { %4240 = vmatprep.subr.bf16.mxu0 %v18224_v50  ;;  %4279 = vmatprep.subr.bf16.mxu1 %v18272_v48  ;;  %v18276_v50 = vld [vmem:[%s25525_s3 + $0x6e0] ss:$20 sps:$4 sm:$0xff]  }
 0x165   : > { %4280 = vmatpush1.bf16.msra.mxu1 %v18270_v7 }
 0x166   : > { %v17192_v52 = vpop.f32.mrf.mxu1  ;;  %4241 = vmatpush1.bf16.msra.mxu0 %v18222_v51  ;;  %4281 = vmatprep.subr.bf16.mxu1 %v18278_v49  ;;  %v18284_v51 = vld [vmem:[%s25525_s3 + $0x6bc] ss:$20 sps:$4 sm:$0xff]  }
 0x167   : > { %4242 = vmatprep.subr.bf16.mxu0 %v18227_v55  ;;  %v18290_v55 = vld [vmem:[%s25525_s3 + $0x694] ss:$20 sps:$4 sm:$0xff]  }
 0x168   : > { %v17193_v53 = vpop.f32.mrf.mxu1 }
 0x169   : > { %v17194_v56 = vadd.f32 %v17193_v53, %v17192_v52  ;;  %4282 = vmatpush1.bf16.msra.mxu1 %v18276_v50  ;;  %v18282_v52 = vld [vmem:[%s25525_s3 + $0x6b8] ss:$20 sps:$4 sm:$0xff]   ;;  %v18288_v53 = vld [vmem:[%s25525_s3 + $0x690] ss:$20 sps:$4 sm:$0xff]  }
 0x16a   : > { %v17195_v58 = vpop.f32.mrf.mxu1  ;;  %4243 = vmatpush1.bf16.msra.mxu0 %v18225_v57  ;;  %4283 = vmatprep.subr.bf16.mxu1 %v18284_v51  ;;  %v18296_v57 = vld [vmem:[%s25525_s3 + $0x66c] ss:$20 sps:$4 sm:$0xff]  }
 0x16b   : > { %v1983_v61 = vadd.f32 %v17194_v56, %v21159_v18  ;;  %4244 = vmatprep.subr.bf16.mxu0 %v18230_v63  ;;  %v18294_v56 = vld [vmem:[%s25525_s3 + $0x668] ss:$20 sps:$4 sm:$0xff]  }
 0x16c   : > { %v17196_v62 = vpop.f32.mrf.mxu1 }
 0x16d   : > { %v17197_v1 = vadd.f32 %v17196_v62, %v17195_v58  ;;  %4284 = vmatpush1.bf16.msra.mxu1 %v18282_v52  ;;  %v18300_v58 = vld [vmem:[%s25525_s3 + $0x640] ss:$20 sps:$4 sm:$0xff]   ;;  %v18308_v62 = vld [vmem:[%s25525_s3 + $0x4e4] ss:$20 sps:$4 sm:$0xff]  }
 0x16e   : > { %4245 = vmatpush1.bf16.msra.mxu0 %v18228_v2  ;;  %4285 = vmatprep.subr.bf16.mxu1 %v18290_v55 }
 0x16f   : > { %v1986_v3 = vadd.f32 %v17197_v1, %v17175_v0  ;;  %4246 = vmatprep.subr.bf16.mxu0 %v18233_v5 }
 0x171   : > { %4286 = vmatpush1.bf16.msra.mxu1 %v18288_v53 }
 0x172   : > { %4247 = vmatpush1.bf16.msra.mxu0 %v18231_v4  ;;  %4287 = vmatprep.subr.bf16.mxu1 %v18296_v57  ;;  %v3244_v4 = vlaneseq }
 0x173   : > { %4248 = vmatprep.subr.bf16.mxu0 %v18236_v6 }
 0x175   : > { %v17214_v8 = vpop.f32.mrf.mxu0  ;;  %4288 = vmatpush1.bf16.msra.mxu1 %v18294_v56 }
 0x176   : > { %v2064_v10 = vpop.f32.mrf.mxu1  ;;  %4249 = vmatpush2.bf16.msra.mxu0 %v18234_v37  ;;  %v21355_v37 = vshrl.u32 %v3244_v4, 7 }
 0x177   : > { %v17215_v11 = vpop.f32.mrf.mxu0  ;;  %4250 = vmatprep.subr.bf16.mxu0 %v18239_v31 }
 0x178   : > { %v17621_v13 = vpop.f32.mrf.mxu1  ;;  %v17216_v14 = vadd.f32 %v17215_v11, %v17214_v8  ;;  %v1819_v8 = vadd.f32 %v21099_v60, %v21189_v27 }
 0x179   : > { %v17217_v16 = vpop.f32.mrf.mxu0 }
 0x17a   : > { %v2067_v17 = vpop.f32.mrf.mxu1  ;;  %v2024_v18 = vadd.f32 %v17216_v14, %v1983_v61  ;;  %4251 = vmatpush2.bf16.msra.mxu0 %v18237_v15  ;;  %v18302_v61 = vld [vmem:[%s25525_s3 + $0x644] ss:$20 sps:$4 sm:$0xff]   ;;  %v1862_v13 = vadd.f32 %v21247_v44, %v1819_v8  ;;  %v21364_v14 = vld [vmem:[%s25524_s2] sm:$0x7]  ;;  %v21373_v44 = vsub.s32 1, %v21355_v37 }
 0x17b   : > { %v17218_v19 = vpop.f32.mrf.mxu0  ;;  %4252 = vmatprep.subr.bf16.mxu0 %v18242_v20  ;;  %4289 = vmatprep.subr.bf16.mxu1 %v18302_v61 }
 0x17c   : > { %v17622_v35 = vpop.f32.mrf.mxu1  ;;  %v17219_v21 = vadd.f32 %v17218_v19, %v17217_v16  ;;  %v21264_v22 = vadd.f32 %v2064_v10, %v2024_v18  ;;  %4290 = vmatpush1.bf16.msra.mxu1 %v18300_v58  ;;  %v21368_v16 = vsub.s32 0, %v21355_v37  ;;  %v1905_v27 = vadd.f32 %v21145_v12, %v1862_v13 }
 0x17d   : > { %4318 = vmatprep.subr.bf16.mxu1 %v18308_v62 }
 0x17e   : > { %v2027_v24 = vadd.f32 %v17219_v21, %v1986_v3  ;;  %4253 = vmatpush2.bf16.msra.mxu0 %v18240_v23 }
 0x17f   : > { %4254 = vmatprep.subr.bf16.mxu0 %v18245_v25 }
 0x180   : > { %v21272_v26 = vadd.f32 %v2067_v17, %v2027_v24 }
 0x182   : > { %4255 = vmatpush2.bf16.msra.mxu0 %v18243_v54 }
 0x183   : > { %4256 = vmatprep.subr.bf16.mxu0 %v18248_v28 }
 0x186   : > { %4257 = vmatpush2.bf16.msra.mxu0 %v18246_v29 }
 0x187   : > { %4258 = vmatprep.subr.bf16.mxu0 %v18251_v32 }
 0x18a   : > { %4259 = vmatpush2.bf16.msra.mxu0 %v18249_v34 }
 0x18b   : > { %4260 = vmatprep.subr.bf16.mxu0 %v18254_v36 }
 0x18e   : > { %4261 = vmatpush2.bf16.msra.mxu0 %v18252_v38 }
 0x18f   : > { %4262 = vmatprep.subr.bf16.mxu0 %v18257_v33 }
 0x192   : > { %4263 = vmatpush2.bf16.msra.mxu0 %v18255_v39 }
 0x193   : > { %4361 = vmatprep.subr.bf16.mxu0 %v18263_v59 }
 0x1b5   : > { %v2940_v2 = vpop.f32.mrf.mxu0 }
 0x1b6   : > { %v2983_v63 = vpop.f32.mrf.mxu1  ;;  %v2941_v31 = vadd.f32 %v2940_v2, %v21205_v42 }
 0x1b7   : > { %v2942_v5 = vpop.f32.mrf.mxu0 }
 0x1b8   : > { %v2985_v0 = vpop.f32.mrf.mxu1  ;;  %v2943_v15 = vadd.f32 %v2942_v5, %v21214_v46  ;;  %v2984_v19 = vadd.f32 %v2983_v63, %v2941_v31  ;;  %v3247_v46 = vrot.slane %v21364_v14, %v21368_v16 }
 0x1b9   : > { %v2944_v10 = vpop.f32.mrf.mxu0 }
 0x1ba   : > { %v2987_v1 = vpop.f32.mrf.mxu1  ;;  %v2945_v60 = vadd.f32 %v2944_v10, %v21217_v47  ;;  %v2986_v35 = vadd.f32 %v2985_v0, %v2943_v15  ;;  %v3251_v47 = vrot.slane %v21364_v14, %v21373_v44  ;;  %v18261_v10 = vld [vmem:[%s25525_s3 + $0x760] ss:$20 sps:$4 sm:$0xff]  }
 0x1bb   : > { %v2946_v17 = vpop.f32.mrf.mxu0 }
 0x1bc   : > { %v2989_v3 = vpop.f32.mrf.mxu1  ;;  %v2947_v20 = vadd.f32 %v2946_v17, %v1905_v27  ;;  %v2988_v25 = vadd.f32 %v2987_v1, %v2945_v60 }
 0x1be   : > { %v2990_v32 = vadd.f32 %v2989_v3, %v2947_v20  ;;  %v18267_v20 = vld [vmem:[%s25525_s3 + $0x738] ss:$20 sps:$4 sm:$0xff]  }
 0x1c6   : > { %v3069_v6 = vpop.f32.mrf.mxu1 }
 0x1c8   : > { %v3071_v11 = vpop.f32.mrf.mxu1 }
 0x1ca   : > { %v3073_v18 = vpop.f32.mrf.mxu1 }
 0x1cc   : > { %v3075_v23 = vpop.f32.mrf.mxu1 }
 0x1e6   : > { %v17241_v29 = vpop.f32.mrf.mxu1 }
 0x1e8   : > { %v17242_v45 = vpop.f32.mrf.mxu1 }
 0x1e9   : > { %v17243_v13 = vadd.f32 %v17242_v45, %v17241_v29 }
 0x1ea   : > { %v17244_v51 = vpop.f32.mrf.mxu1 }
 0x1eb   : > { %v3113_v27 = vadd.f32 %v17243_v13, %v21264_v22  ;;  %v18315_v13 = vld [vmem:[%s25525_s3 + $0x4c0] ss:$20 sps:$4 sm:$0xff]  }
 0x1ec   : > { %v17245_v53 = vpop.f32.mrf.mxu1 }
 0x1f5   : > { %v3026_v42 = vpop.f32.mrf.mxu0 }
 0x1f6   : > { %v3027_v21 = vadd.f32 %v3026_v42, %v2984_v19  ;;  %v17246_v42 = vadd.f32 %v17245_v53, %v17244_v51  ;;  %v18293_v51 = vld [vmem:[%s25525_s3 + $0x69c] ss:$20 sps:$4 sm:$0xff]   ;;  %v18291_v53 = vld [vmem:[%s25525_s3 + $0x698] ss:$20 sps:$4 sm:$0xff]  }
 0x1f7   : > { %v3028_v24 = vpop.f32.mrf.mxu0 }
 0x1f8   : > { %v3070_v54 = vadd.f32 %v3069_v6, %v3027_v21  ;;  %v3029_v28 = vadd.f32 %v3028_v24, %v2986_v35  ;;  %v21398_v35 = vsub.s32 2, %v21355_v37  ;;  %v3116_v29 = vadd.f32 %v17246_v42, %v21272_v26  ;;  %v18321_v42 = vld [vmem:[%s25525_s3 + $0x468] ss:$20 sps:$4 sm:$0xff]  }
 0x1f9   : > { %v3030_v12 = vpop.f32.mrf.mxu0 }
 0x1fa   : > { %v3259_v34 = vadd.f32 %v3247_v46, %v3070_v54  ;;  %v3072_v36 = vadd.f32 %v3071_v11, %v3029_v28  ;;  %v3031_v38 = vadd.f32 %v3030_v12, %v2988_v25  ;;  %v18269_v11 = vld [vmem:[%s25525_s3 + $0x73c] ss:$20 sps:$4 sm:$0xff]  }
 0x1fb   : > { %v3032_v39 = vpop.f32.mrf.mxu0  ;;  %v18273_v54 = vld [vmem:[%s25525_s3 + $0x710] ss:$20 sps:$4 sm:$0xff]  }
 0x1fc   : > { %v3265_v33 = vmax.f32 %v3259_v34, 0.0  ;;  %v21379_v40 = vadd.f32 %v3251_v47, %v3072_v36  ;;  %v3074_v59 = vadd.f32 %v3073_v18, %v3031_v38  ;;  %v3033_v30 = vadd.f32 %v3032_v39, %v2990_v32  ;;  %v18281_v38 = vld [vmem:[%s25525_s3 + $0x6ec] ss:$20 sps:$4 sm:$0xff]  }
 0x1fd   : > { %v3255_v32 = vrot.slane %v21364_v14, %v21398_v35  ;;  %v18287_v14 = vld [vmem:[%s25525_s3 + $0x6c4] ss:$20 sps:$4 sm:$0xff]  }
 0x1fe   : > { %3271 = vst [vmem:[#allocation2 + $0x28] sm:$0xff] %v3265_v33  ;;  %v3266_v43 = vmax.f32 %v21379_v40, 0.0  ;;  %v3262_v48 = vadd.f32 %v3247_v46, %v3074_v59  ;;  %v3076_v7 = vadd.f32 %v3075_v23, %v3033_v30  ;;  %v18275_v23 = vld [vmem:[%s25525_s3 + $0x714] ss:$20 sps:$4 sm:$0xff]   ;;  %v18358_v40 = vld [vmem:[%s25525_s3 + $0x5d0] ss:$20 sps:$4 sm:$0xff]  }
 0x1ff   : > { %v18279_v30 = vld [vmem:[%s25525_s3 + $0x6e8] ss:$20 sps:$4 sm:$0xff]  }
 0x200   : > { %3272 = vst [vmem:[#allocation2 + $0x10] sm:$0xff] %v3266_v43  ;;  %v3268_v49 = vmax.f32 %v3262_v48, 0.0  ;;  %v3263_v50 = vadd.f32 %v3251_v47, %v3076_v7 }
 0x202   : > { %3274 = vst [vmem:[#allocation2] sm:$0xf] %v3268_v49  ;;  %v3269_v52 = vmax.f32 %v3263_v50, 0.0  ;;  %v18285_v49 = vld [vmem:[%s25525_s3 + $0x6c0] ss:$20 sps:$4 sm:$0xff]  }
 0x204   : > { %3275 = vst [vmem:[#allocation2 + $0x18] sm:$0xf] %v3269_v52 }
 0x205   : > { %v3430_v56 = vld [vmem:[#allocation2 + $0x28] sm:$0xfe] }
 0x206   : > { %v17263_v55 = vpop.f32.mrf.mxu1 }
 0x207   : > { %v3431_v62 = vld [vmem:[#allocation2 + $0x10] sm:$0xfe] }
 0x208   : > { %v17264_v61 = vpop.f32.mrf.mxu1 }
 0x209   : > { %v3433_v57 = vld [vmem:[#allocation2] sm:$0x3]  ;;  %v17265_v18 = vadd.f32 %v17264_v61, %v17263_v55  ;;  %v18299_v55 = vld [vmem:[%s25525_s3 + $0x674] ss:$20 sps:$4 sm:$0xff]  }
 0x20a   : > { %v3436_v58 = vpack.c.bf16 %v3433_v57, %v3430_v56  ;;  %v17266_v3 = vpop.f32.mrf.mxu1  ;;  %v18297_v56 = vld [vmem:[%s25525_s3 + $0x670] ss:$20 sps:$4 sm:$0xff]   ;;  %v18305_v57 = vld [vmem:[%s25525_s3 + $0x64c] ss:$20 sps:$4 sm:$0xff]  }
 0x20b   : > { %v3434_v63 = vld [vmem:[#allocation2 + $0x18] sm:$0x3]  ;;  %v3154_v24 = vadd.f32 %v17265_v18, %v3113_v27  ;;  %v18324_v27 = vld [vmem:[%s25525_s3 + $0x5b0] ss:$20 sps:$4 sm:$0xff]  }
 0x20c   : > { %v3437_v0 = vpack.c.bf16 %v3434_v63, %v3431_v62  ;;  %v3587_v1 = vshll.u32 %v3436_v58, 16  ;;  %v3585_v8 = vshrl.u32 %v3436_v58, 16  ;;  %v17267_v15 = vpop.f32.mrf.mxu1  ;;  %v18303_v62 = vld [vmem:[%s25525_s3 + $0x648] ss:$20 sps:$4 sm:$0xff]   ;;  %v18319_v18 = vld [vmem:[%s25525_s3 + $0x5d8] ss:$20 sps:$4 sm:$0xff]  }
 0x20d   : > { %v17268_v22 = vadd.f32 %v17267_v15, %v17266_v3  ;;  %v18318_v15 = vld [vmem:[%s25525_s3 + $0x494] ss:$20 sps:$4 sm:$0xff]  }
 0x20e   : > { %v3594_v2 = vshll.u32 %v3437_v0, 16  ;;  %v3589_v4 = vrot.slane %v3587_v1, 1  ;;  %v3592_v5 = vshrl.u32 %v3437_v0, 16  ;;  %v18309_v0 = vld [vmem:[%s25525_s3 + $0x628] ss:$20 sps:$4 sm:$0xff]  }
 0x20f   : > { %v3157_v39 = vadd.f32 %v17268_v22, %v3116_v29  ;;  %v18333_v22 = vld [vmem:[%s25525_s3 + $0x41c] ss:$20 sps:$4 sm:$0xff]   ;;  %v18339_v29 = vld [vmem:[%s25525_s3 + $0x538] ss:$20 sps:$4 sm:$0xff]  }
 0x210   : > { %v3596_v6 = vrot.slane %v3594_v2, 1  ;;  %v21392_v17 = vor.u32 %v3589_v4, %v3585_v8  ;;  %v18306_v2 = vld [vmem:[%s25525_s3 + $0x4e0] ss:$20 sps:$4 sm:$0xff]   ;;  %v18310_v4 = vld [vmem:[%s25525_s3 + $0x4e8] ss:$20 sps:$4 sm:$0xff]  }
 0x211   : > { %v18313_v8 = vld [vmem:[%s25525_s3 + $0x4bc] ss:$20 sps:$4 sm:$0xff]  }
 0x212   : > { %v21390_v31 = vor.u32 %v3596_v6, %v3592_v5 }
 0x214   : > { %4264 = vmatprep.mubr.bf16.mxu0 %v21390_v31 }
 0x215   : > { %v17285_v19 = vpop.f32.mrf.mxu0  ;;  %4265 = vmatmul.mubr.bf16.vlgmr.msra.gmra.mxu0 %v21392_v17 }
 0x216   : > { %v3235_v60 = vpop.f32.mrf.mxu1  ;;  %4362 = vmatpush1.bf16.msra.mxu0 %v18261_v10  ;;  %4393 = vmatprep.mubr.bf16.mxu0 %v20008_v41  ;;  %v18314_v10 = vld [vmem:[%s25525_s3 + $0x600] ss:$20 sps:$4 sm:$0xff]  }
 0x217   : > { %v17286_v21 = vpop.f32.mrf.mxu0  ;;  %4363 = vmatprep.subr.bf16.mxu0 %v18269_v11  ;;  %v18311_v11 = vld [vmem:[%s25525_s3 + $0x4b8] ss:$20 sps:$4 sm:$0xff]  }
 0x218   : > { %v17633_v46 = vpop.f32.mrf.mxu1  ;;  %v17287_v25 = vadd.f32 %v17286_v21, %v17285_v19  ;;  %v18316_v19 = vld [vmem:[%s25525_s3 + $0x490] ss:$20 sps:$4 sm:$0xff]  }
 0x219   : > { %v17288_v28 = vpop.f32.mrf.mxu0  ;;  %v18328_v21 = vld [vmem:[%s25525_s3 + $0x444] ss:$20 sps:$4 sm:$0xff]   ;;  %v18329_v46 = vld [vmem:[%s25525_s3 + $0x588] ss:$20 sps:$4 sm:$0xff]  }
 0x21a   : > { %v3238_v47 = vpop.f32.mrf.mxu1  ;;  %v3195_v12 = vadd.f32 %v17287_v25, %v3154_v24  ;;  %4364 = vmatpush1.bf16.msra.mxu0 %v18267_v20  ;;  %v18325_v20 = vld [vmem:[%s25525_s3 + $0x470] ss:$20 sps:$4 sm:$0xff]   ;;  %v18330_v24 = vld [vmem:[%s25525_s3 + $0x448] ss:$20 sps:$4 sm:$0xff]   ;;  %v18334_v25 = vld [vmem:[%s25525_s3 + $0x560] ss:$20 sps:$4 sm:$0xff]  }
 0x21b   : > { %v17289_v34 = vpop.f32.mrf.mxu0  ;;  %4365 = vmatprep.subr.bf16.mxu0 %v18275_v23  ;;  %v18326_v23 = vld [vmem:[%s25525_s3 + $0x440] ss:$20 sps:$4 sm:$0xff]  }
 0x21c   : > { %v17634_v36 = vpop.f32.mrf.mxu1  ;;  %v3236_v33 = vadd.f32 %v3235_v60, %v3195_v12  ;;  %v17290_v59 = vadd.f32 %v17289_v34, %v17288_v28  ;;  %v18320_v60 = vld [vmem:[%s25525_s3 + $0x498] ss:$20 sps:$4 sm:$0xff]   ;;  %v18335_v28 = vld [vmem:[%s25525_s3 + $0x420] ss:$20 sps:$4 sm:$0xff]   ;;  %v18336_v12 = vld [vmem:[%s25525_s3 + $0x3f0] ss:$20 sps:$4 sm:$0xff]  }
 0x21d   : > { %v18343_v34 = vld [vmem:[%s25525_s3 + $0x3cc] ss:$20 sps:$4 sm:$0xff]   ;;  %v18344_v36 = vld [vmem:[%s25525_s3 + $0x510] ss:$20 sps:$4 sm:$0xff]  }
 0x21e   : > { %v3261_v26 = vadd.f32 %v3255_v32, %v3236_v33  ;;  %v3198_v45 = vadd.f32 %v17290_v59, %v3157_v39  ;;  %4366 = vmatpush1.bf16.msra.mxu0 %v18273_v54  ;;  %v18331_v54 = vld [vmem:[%s25525_s3 + $0x418] ss:$20 sps:$4 sm:$0xff]   ;;  %v18345_v39 = vld [vmem:[%s25525_s3 + $0x3d0] ss:$20 sps:$4 sm:$0xff]  }
 0x21f   : > { %4367 = vmatprep.subr.bf16.mxu0 %v18281_v38  ;;  %v18341_v38 = vld [vmem:[%s25525_s3 + $0x3c8] ss:$20 sps:$4 sm:$0xff]   ;;  %v18348_v33 = vld [vmem:[%s25525_s3 + $0x624] ss:$20 sps:$4 sm:$0xff]  }
 0x220   : > { %v3267_v48 = vmax.f32 %v3261_v26, 0.0  ;;  %v3239_v7 = vadd.f32 %v3238_v47, %v3198_v45  ;;  %v18338_v47 = vld [vmem:[%s25525_s3 + $0x3f4] ss:$20 sps:$4 sm:$0xff]   ;;  %v18351_v59 = vld [vmem:[%s25525_s3 + $0x11c] ss:$20 sps:$4 sm:$0xff]  }
 0x221   : > { %v18349_v26 = vld [vmem:[%s25525_s3 + $0x118] ss:$20 sps:$4 sm:$0xff]  }
 0x222   : > { %3273 = vst [vmem:[#allocation2 + $0x8] sm:$0xff] %v3267_v48  ;;  %v3264_v50 = vadd.f32 %v3255_v32, %v3239_v7  ;;  %4368 = vmatpush1.bf16.msra.mxu0 %v18279_v30  ;;  %v18340_v32 = vld [vmem:[%s25525_s3 + $0x3f8] ss:$20 sps:$4 sm:$0xff]   ;;  %v18346_v30 = vld [vmem:[%s25525_s3 + $0x620] ss:$20 sps:$4 sm:$0xff]  }
 0x223   : > { %4369 = vmatprep.subr.bf16.mxu0 %v18287_v14  ;;  %v3281_v45 = vld [vmem:[#allocation2 + $0x18] sm:$0x1]  ;;  %v18354_v14 = vld [vmem:[%s25525_s3 + $0x5fc] ss:$20 sps:$4 sm:$0xff]  }
 0x224   : > { %v3270_v52 = vmax.f32 %v3264_v50, 0.0  ;;  %v18352_v48 = vld [vmem:[%s25525_s3 + $0x5f8] ss:$20 sps:$4 sm:$0xff]   ;;  %v18355_v7 = vld [vmem:[%s25525_s3 + $0xf0] ss:$20 sps:$4 sm:$0xff]   ;;  %v21569_v50 = vpack.c.bf16 %v3281_v45, %v3266_v43 }
 0x225   : > { %v18361_v43 = vld [vmem:[%s25525_s3 + $0xc8] ss:$20 sps:$4 sm:$0xff]  }
 0x226   : > { %3276 = vst [vmem:[#allocation2 + $0x20] sm:$0xf] %v3270_v52  ;;  %4370 = vmatpush1.bf16.msra.mxu0 %v18285_v49  ;;  %v18357_v49 = vld [vmem:[%s25525_s3 + $0xf4] ss:$20 sps:$4 sm:$0xff]   ;;  %v18363_v52 = vld [vmem:[%s25525_s3 + $0xcc] ss:$20 sps:$4 sm:$0xff]  }
 0x227   : > { %4371 = vmatprep.subr.bf16.mxu0 %v18293_v51  ;;  %v18360_v51 = vld [vmem:[%s25525_s3 + $0x5d4] ss:$20 sps:$4 sm:$0xff]  }
 0x228   : > { %v3277_v45 = vld [vmem:[#allocation2 + $0x28] sm:$0xff] }
 0x229   : > { %v3432_v58 = vld [vmem:[#allocation2 + $0x8] sm:$0xfe] }
 0x22a   : > { %4372 = vmatpush1.bf16.msra.mxu0 %v18291_v53  ;;  %v18366_v53 = vld [vmem:[%s25525_s3 + $0x5ac] ss:$20 sps:$4 sm:$0xff]  }
 0x22b   : > { %4373 = vmatprep.subr.bf16.mxu0 %v18299_v55  ;;  %v18369_v55 = vld [vmem:[%s25525_s3 + $0xa4] ss:$20 sps:$4 sm:$0xff]  }
 0x22d   : > { %v3435_v61 = vld [vmem:[#allocation2 + $0x20] sm:$0x3] }
 0x22e   : > { %4374 = vmatpush1.bf16.msra.mxu0 %v18297_v56  ;;  %v3438_v63 = vpack.c.bf16 %v3435_v61, %v3432_v58  ;;  %v18364_v56 = vld [vmem:[%s25525_s3 + $0x5a8] ss:$20 sps:$4 sm:$0xff]   ;;  %v18372_v58 = vld [vmem:[%s25525_s3 + $0x584] ss:$20 sps:$4 sm:$0xff]  }
 0x22f   : > { %4375 = vmatprep.subr.bf16.mxu0 %v18305_v57  ;;  %v18367_v57 = vld [vmem:[%s25525_s3 + $0xa0] ss:$20 sps:$4 sm:$0xff]   ;;  %v18375_v61 = vld [vmem:[%s25525_s3 + $0x7c] ss:$20 sps:$4 sm:$0xff]  }
 0x230   : > { %v3601_v1 = vshll.u32 %v3438_v63, 16  ;;  %v3599_v3 = vshrl.u32 %v3438_v63, 16  ;;  %v18373_v63 = vld [vmem:[%s25525_s3 + $0x78] ss:$20 sps:$4 sm:$0xff]  }
 0x232   : > { %4376 = vmatpush1.bf16.msra.mxu0 %v18303_v62  ;;  %v3603_v5 = vrot.slane %v3601_v1, 1  ;;  %v18370_v62 = vld [vmem:[%s25525_s3 + $0x580] ss:$20 sps:$4 sm:$0xff]  }
 0x233   : > { %17296 = vmatprep.subr.bf16.mxu0 %v18309_v0  ;;  %v18378_v0 = vld [vmem:[%s25525_s3 + $0x55c] ss:$20 sps:$4 sm:$0xff]   ;;  %v18381_v1 = vld [vmem:[%s25525_s3 + $0x54] ss:$20 sps:$4 sm:$0xff]  }
 0x234   : > { %v21452_v6 = vor.u32 %v3603_v5, %v3599_v3  ;;  %v18379_v3 = vld [vmem:[%s25525_s3 + $0x50] ss:$20 sps:$4 sm:$0xff]   ;;  %v18387_v5 = vld [vmem:[%s25525_s3 + $0x2c] ss:$20 sps:$4 sm:$0xff]  }
 0x236   : > { %4308 = vmatmul.mubr.bf16.vlgmr.msra.gmra.mxu1 %v21452_v6  ;;  %4394 = vmatmul.mubr.bf16.vlgmr.msra.gmra.mxu0 %v21452_v6 }
 0x237   : > { %4319 = vmatpush1.bf16.msra.mxu1 %v18306_v2  ;;  %17297 = vmatpush3.bf16.msra.mxu0 %v18310_v4  ;;  %v18376_v2 = vld [vmem:[%s25525_s3 + $0x558] ss:$20 sps:$4 sm:$0xff]   ;;  %v18384_v4 = vld [vmem:[%s25525_s3 + $0x534] ss:$20 sps:$4 sm:$0xff]  }
 0x238   : > { %4350 = vmatprep.mubr.bf16.mxu1 %v21390_v31  ;;  %4436 = vmatprep.mubr.bf16.mxu0 %v21390_v31  ;;  %v18323_v31 = vld [vmem:[%s25525_s3 + $0x46c] ss:$20 sps:$4 sm:$0xff]  }
 0x239   : > { %4320 = vmatprep.subr.bf16.mxu1 %v18313_v8  ;;  %17298 = vmatprep.subr.bf16.mxu0 %v18314_v10  ;;  %v18382_v8 = vld [vmem:[%s25525_s3 + $0x530] ss:$20 sps:$4 sm:$0xff]   ;;  %v18385_v10 = vld [vmem:[%s25525_s3 + $0x28] ss:$20 sps:$4 sm:$0xff]  }
 0x23b   : > { %4321 = vmatpush1.bf16.msra.mxu1 %v18311_v11  ;;  %17299 = vmatpush3.bf16.msra.mxu0 %v18315_v13  ;;  %v18390_v11 = vld [vmem:[%s25525_s3 + $0x50c] ss:$20 sps:$4 sm:$0xff]   ;;  %v18393_v13 = vld [vmem:[%s25525_s3 + $0x4] ss:$20 sps:$4 sm:$0xff]  }
 0x23c   : > { %4322 = vmatprep.subr.bf16.mxu1 %v18318_v15  ;;  %17300 = vmatprep.subr.bf16.mxu0 %v18319_v18  ;;  %v18388_v15 = vld [vmem:[%s25525_s3 + $0x508] ss:$20 sps:$4 sm:$0xff]   ;;  %v18391_v18 = vld [vmem:[%s25525_s3] ss:$20 sps:$4 sm:$0xff]  }
 0x23f   : > { %4323 = vmatpush1.bf16.msra.mxu1 %v18316_v19  ;;  %17301 = vmatpush3.bf16.msra.mxu0 %v18320_v60  ;;  %v18396_v19 = vld [vmem:[%s25525_s3 + $0x25c] ss:$20 sps:$4 sm:$0xff]   ;;  %v18394_v60 = vld [vmem:[%s25525_s3 + $0x258] ss:$20 sps:$4 sm:$0xff]  }
 0x240   : > { %4324 = vmatprep.subr.bf16.mxu1 %v18323_v31  ;;  %17302 = vmatprep.subr.bf16.mxu0 %v18324_v27  ;;  %v18397_v31 = vld [vmem:[%s25525_s3 + $0x768] ss:$20 sps:$4 sm:$0xff]  }
 0x241   : > { %v18400_v27 = vld [vmem:[%s25525_s3 + $0x234] ss:$20 sps:$4 sm:$0xff]  }
 0x243   : > { %4325 = vmatpush1.bf16.msra.mxu1 %v18321_v42  ;;  %17303 = vmatpush3.bf16.msra.mxu0 %v18325_v20  ;;  %v18398_v42 = vld [vmem:[%s25525_s3 + $0x230] ss:$20 sps:$4 sm:$0xff]   ;;  %v18401_v20 = vld [vmem:[%s25525_s3 + $0x740] ss:$20 sps:$4 sm:$0xff]  }
 0x244   : > { %4326 = vmatprep.subr.bf16.mxu1 %v18328_v21  ;;  %17304 = vmatprep.subr.bf16.mxu0 %v18329_v46  ;;  %v18404_v21 = vld [vmem:[%s25525_s3 + $0x20c] ss:$20 sps:$4 sm:$0xff]   ;;  %v18402_v46 = vld [vmem:[%s25525_s3 + $0x208] ss:$20 sps:$4 sm:$0xff]  }
 0x247   : > { %4327 = vmatpush1.bf16.msra.mxu1 %v18326_v23  ;;  %17305 = vmatpush3.bf16.msra.mxu0 %v18330_v24  ;;  %v18408_v23 = vld [vmem:[%s25525_s3 + $0x1e4] ss:$20 sps:$4 sm:$0xff]   ;;  %v18406_v24 = vld [vmem:[%s25525_s3 + $0x1e0] ss:$20 sps:$4 sm:$0xff]  }
 0x248   : > { %4328 = vmatprep.subr.bf16.mxu1 %v18333_v22  ;;  %17306 = vmatprep.subr.bf16.mxu0 %v18334_v25  ;;  %v18409_v22 = vld [vmem:[%s25525_s3 + $0x6f0] ss:$20 sps:$4 sm:$0xff]  }
 0x249   : > { %v18412_v25 = vld [vmem:[%s25525_s3 + $0x1bc] ss:$20 sps:$4 sm:$0xff]  }
 0x24b   : > { %4329 = vmatpush1.bf16.msra.mxu1 %v18331_v54  ;;  %17307 = vmatpush3.bf16.msra.mxu0 %v18335_v28  ;;  %v18410_v54 = vld [vmem:[%s25525_s3 + $0x1b8] ss:$20 sps:$4 sm:$0xff]   ;;  %v18413_v28 = vld [vmem:[%s25525_s3 + $0x6c8] ss:$20 sps:$4 sm:$0xff]  }
 0x24c   : > { %4330 = vmatprep.subr.bf16.mxu1 %v18338_v47  ;;  %17308 = vmatprep.subr.bf16.mxu0 %v18339_v29  ;;  %v18416_v47 = vld [vmem:[%s25525_s3 + $0x194] ss:$20 sps:$4 sm:$0xff]   ;;  %v18414_v29 = vld [vmem:[%s25525_s3 + $0x190] ss:$20 sps:$4 sm:$0xff]  }
 0x24f   : > { %4331 = vmatpush1.bf16.msra.mxu1 %v18336_v12  ;;  %17309 = vmatpush3.bf16.msra.mxu0 %v18340_v32  ;;  %v18417_v12 = vld [vmem:[%s25525_s3 + $0x6a0] ss:$20 sps:$4 sm:$0xff]  }
 0x250   : > { %4332 = vmatprep.subr.bf16.mxu1 %v18343_v34  ;;  %17310 = vmatprep.subr.bf16.mxu0 %v18344_v36  ;;  %v18420_v32 = vld [vmem:[%s25525_s3 + $0x16c] ss:$20 sps:$4 sm:$0xff]   ;;  %v18418_v34 = vld [vmem:[%s25525_s3 + $0x168] ss:$20 sps:$4 sm:$0xff]  }
 0x251   : > { %v18421_v36 = vld [vmem:[%s25525_s3 + $0x678] ss:$20 sps:$4 sm:$0xff]  }
 0x253   : > { %4333 = vmatpush1.bf16.msra.mxu1 %v18341_v38  ;;  %17311 = vmatpush3.bf16.msra.mxu0 %v18345_v39  ;;  %v18424_v38 = vld [vmem:[%s25525_s3 + $0x144] ss:$20 sps:$4 sm:$0xff]   ;;  %v18422_v39 = vld [vmem:[%s25525_s3 + $0x140] ss:$20 sps:$4 sm:$0xff]  }
 0x254   : > { %4334 = vmatprep.subr.bf16.mxu1 %v18348_v33  ;;  %5110 = vmatprep.subr.bf16.mxu0 %v18351_v59  ;;  %v18425_v33 = vld [vmem:[%s25525_s3 + $0x650] ss:$20 sps:$4 sm:$0xff]   ;;  %v3280_v59 = vld [vmem:[#allocation2] sm:$0x1] }
 0x256   : > { %4437 = vmatmul.mubr.bf16.vlgmr.msra.gmra.mxu0 %v21392_v17 }
 0x257   : > { %4335 = vmatpush2.bf16.msra.mxu1 %v18346_v30  ;;  %5111 = vmatpush1.bf16.msra.mxu0 %v18349_v26  ;;  %v18428_v30 = vld [vmem:[%s25525_s3 + $0x39c] ss:$20 sps:$4 sm:$0xff]   ;;  %v18431_v26 = vld [vmem:[%s25525_s3 + $0x3a4] ss:$20 sps:$4 sm:$0xff]  }
 0x258   : > { %5142 = vmatprep.mubr.bf16.mxu0 %v21569_v50  ;;  %4336 = vmatprep.subr.bf16.mxu1 %v18354_v14  ;;  %v18426_v14 = vld [vmem:[%s25525_s3 + $0x398] ss:$20 sps:$4 sm:$0xff]  }
 0x259   : > { %5112 = vmatprep.subr.bf16.mxu0 %v18357_v49  ;;  %v18437_v49 = vld [vmem:[%s25525_s3 + $0x37c] ss:$20 sps:$4 sm:$0xff]  }
 0x25b   : > { %4337 = vmatpush2.bf16.msra.mxu1 %v18352_v48  ;;  %5113 = vmatpush1.bf16.msra.mxu0 %v18355_v7  ;;  %v18429_v48 = vld [vmem:[%s25525_s3 + $0x3a0] ss:$20 sps:$4 sm:$0xff]  }
 0x25c   : > { %4338 = vmatprep.subr.bf16.mxu1 %v18360_v51  ;;  %5114 = vmatprep.subr.bf16.mxu0 %v18363_v52  ;;  %v18434_v7 = vld [vmem:[%s25525_s3 + $0x374] ss:$20 sps:$4 sm:$0xff]   ;;  %v21745_v51 = vpack.c.bf16 %v3280_v59, %v3277_v45  ;;  %v18432_v52 = vld [vmem:[%s25525_s3 + $0x370] ss:$20 sps:$4 sm:$0xff]  }
 0x25d   : > { %v18501_v45 = vld [vmem:[%s25525_s3 + $0x5c] ss:$20 sps:$4 sm:$0xff]  }
 0x25f   : > { %4339 = vmatpush2.bf16.msra.mxu1 %v18358_v40  ;;  %5115 = vmatpush1.bf16.msra.mxu0 %v18361_v43  ;;  %v18435_v40 = vld [vmem:[%s25525_s3 + $0x378] ss:$20 sps:$4 sm:$0xff]  }
 0x260   : > { %4340 = vmatprep.subr.bf16.mxu1 %v18366_v53  ;;  %5116 = vmatprep.subr.bf16.mxu0 %v18369_v55  ;;  %v18440_v43 = vld [vmem:[%s25525_s3 + $0x34c] ss:$20 sps:$4 sm:$0xff]   ;;  %v18443_v53 = vld [vmem:[%s25525_s3 + $0x354] ss:$20 sps:$4 sm:$0xff]  }
 0x261   : > { %v18438_v55 = vld [vmem:[%s25525_s3 + $0x348] ss:$20 sps:$4 sm:$0xff]  }
 0x263   : > { %4341 = vmatpush2.bf16.msra.mxu1 %v18364_v56  ;;  %5117 = vmatpush1.bf16.msra.mxu0 %v18367_v57  ;;  %v18446_v56 = vld [vmem:[%s25525_s3 + $0x324] ss:$20 sps:$4 sm:$0xff]   ;;  %v18449_v57 = vld [vmem:[%s25525_s3 + $0x32c] ss:$20 sps:$4 sm:$0xff]  }
 0x264   : > { %4342 = vmatprep.subr.bf16.mxu1 %v18372_v58  ;;  %5118 = vmatprep.subr.bf16.mxu0 %v18375_v61  ;;  %v18444_v58 = vld [vmem:[%s25525_s3 + $0x320] ss:$20 sps:$4 sm:$0xff]   ;;  %v18447_v61 = vld [vmem:[%s25525_s3 + $0x328] ss:$20 sps:$4 sm:$0xff]  }
 0x267   : > { %4343 = vmatpush2.bf16.msra.mxu1 %v18370_v62  ;;  %5119 = vmatpush1.bf16.msra.mxu0 %v18373_v63  ;;  %v18452_v62 = vld [vmem:[%s25525_s3 + $0x2fc] ss:$20 sps:$4 sm:$0xff]   ;;  %v18455_v63 = vld [vmem:[%s25525_s3 + $0x304] ss:$20 sps:$4 sm:$0xff]  }
 0x268   : > { %4344 = vmatprep.subr.bf16.mxu1 %v18378_v0  ;;  %5120 = vmatprep.subr.bf16.mxu0 %v18381_v1  ;;  %v18450_v0 = vld [vmem:[%s25525_s3 + $0x2f8] ss:$20 sps:$4 sm:$0xff]   ;;  %v18453_v1 = vld [vmem:[%s25525_s3 + $0x300] ss:$20 sps:$4 sm:$0xff]  }
 0x26b   : > { %4345 = vmatpush2.bf16.msra.mxu1 %v18376_v2  ;;  %5121 = vmatpush1.bf16.msra.mxu0 %v18379_v3  ;;  %v18458_v2 = vld [vmem:[%s25525_s3 + $0x2d4] ss:$20 sps:$4 sm:$0xff]   ;;  %v18461_v3 = vld [vmem:[%s25525_s3 + $0x2dc] ss:$20 sps:$4 sm:$0xff]  }
 0x26c   : > { %4346 = vmatprep.subr.bf16.mxu1 %v18384_v4  ;;  %5122 = vmatprep.subr.bf16.mxu0 %v18387_v5  ;;  %v18456_v4 = vld [vmem:[%s25525_s3 + $0x2d0] ss:$20 sps:$4 sm:$0xff]   ;;  %v18459_v5 = vld [vmem:[%s25525_s3 + $0x2d8] ss:$20 sps:$4 sm:$0xff]  }
 0x26f   : > { %4347 = vmatpush2.bf16.msra.mxu1 %v18382_v8  ;;  %5123 = vmatpush1.bf16.msra.mxu0 %v18385_v10  ;;  %v18464_v8 = vld [vmem:[%s25525_s3 + $0x2ac] ss:$20 sps:$4 sm:$0xff]   ;;  %v18467_v10 = vld [vmem:[%s25525_s3 + $0x2b4] ss:$20 sps:$4 sm:$0xff]  }
 0x270   : > { %4348 = vmatprep.subr.bf16.mxu1 %v18390_v11  ;;  %5124 = vmatprep.subr.bf16.mxu0 %v18393_v13  ;;  %v18462_v11 = vld [vmem:[%s25525_s3 + $0x2a8] ss:$20 sps:$4 sm:$0xff]   ;;  %v18465_v13 = vld [vmem:[%s25525_s3 + $0x2b0] ss:$20 sps:$4 sm:$0xff]  }
 0x273   : > { %4349 = vmatpush2.bf16.msra.mxu1 %v18388_v15  ;;  %5125 = vmatpush1.bf16.msra.mxu0 %v18391_v18  ;;  %v18470_v15 = vld [vmem:[%s25525_s3 + $0x284] ss:$20 sps:$4 sm:$0xff]   ;;  %v18473_v18 = vld [vmem:[%s25525_s3 + $0x28c] ss:$20 sps:$4 sm:$0xff]  }
 0x274   : > { %17635 = vmatprep.subr.bf16.mxu1 %v20009_v9  ;;  %5126 = vmatprep.subr.bf16.mxu0 %v18396_v19  ;;  %v18468_v19 = vld [vmem:[%s25525_s3 + $0x280] ss:$20 sps:$4 sm:$0xff]  }
 0x276   : > { %4351 = vmatmul.mubr.bf16.vlgmr.msra.gmra.mxu1 %v21392_v17  ;;  %v18405_v17 = vld [vmem:[%s25525_s3 + $0x718] ss:$20 sps:$4 sm:$0xff]  }
 0x277   : > { %17636 = vmatpush3.bf16.msra.mxu1 %v18397_v31  ;;  %5127 = vmatpush2.bf16.msra.mxu0 %v18394_v60  ;;  %v18471_v60 = vld [vmem:[%s25525_s3 + $0x288] ss:$20 sps:$4 sm:$0xff]   ;;  %v3282_v31 = vld [vmem:[#allocation2 + $0x20] sm:$0x1] }
 0x278   : > { %17637 = vmatprep.subr.bf16.mxu1 %v20009_v9  ;;  %5128 = vmatprep.subr.bf16.mxu0 %v18400_v27  ;;  %v18476_v27 = vld [vmem:[%s25525_s3 + $0x124] ss:$20 sps:$4 sm:$0xff]  }
 0x279   : > { %17651 = vmatprep.mubr.msk.bf16.mxu1 %vm20010_vm1, %v20009_v9 }
 0x27b   : > { %17638 = vmatpush3.bf16.msra.mxu1 %v18401_v20  ;;  %5129 = vmatpush2.bf16.msra.mxu0 %v18398_v42  ;;  %v18477_v42 = vld [vmem:[%s25525_s3 + $0x268] ss:$20 sps:$4 sm:$0xff]  }
 0x27c   : > { %17639 = vmatprep.subr.bf16.mxu1 %v20009_v9  ;;  %5130 = vmatprep.subr.bf16.mxu0 %v18404_v21  ;;  %v3279_v20 = vld [vmem:[#allocation2 + $0x8] sm:$0xff]  ;;  %v18474_v21 = vld [vmem:[%s25525_s3 + $0x120] ss:$20 sps:$4 sm:$0xff]  }
 0x27f   : > { %17640 = vmatpush3.bf16.msra.mxu1 %v18405_v17  ;;  %5131 = vmatpush2.bf16.msra.mxu0 %v18402_v46  ;;  %v18478_v46 = vld [vmem:[%s25525_s3 + $0x128] ss:$20 sps:$4 sm:$0xff]   ;;  %v21841_v17 = vpack.c.bf16 %v3282_v31, %v3279_v20  ;;  %v18544_v20 = vld [vmem:[%s25525_s3 + $0x198] ss:$20 sps:$4 sm:$0xff]  }
 0x280   : > { %17641 = vmatprep.subr.bf16.mxu1 %v20009_v9  ;;  %5132 = vmatprep.subr.bf16.mxu0 %v18408_v23  ;;  %v18479_v23 = vld [vmem:[%s25525_s3 + $0xf8] ss:$20 sps:$4 sm:$0xff]   ;;  %v18543_v31 = vld [vmem:[%s25525_s3 + $0x7fc] ss:$20 sps:$4 sm:$0xff]  }
 0x283   : > { %17642 = vmatpush3.bf16.msra.mxu1 %v18409_v22  ;;  %5133 = vmatpush2.bf16.msra.mxu0 %v18406_v24  ;;  %v18481_v24 = vld [vmem:[%s25525_s3 + $0xfc] ss:$20 sps:$4 sm:$0xff]   ;;  %v18482_v22 = vld [vmem:[%s25525_s3 + $0x240] ss:$20 sps:$4 sm:$0xff]  }
 0x284   : > { %17643 = vmatprep.subr.bf16.mxu1 %v20009_v9  ;;  %5134 = vmatprep.subr.bf16.mxu0 %v18412_v25  ;;  %v18483_v25 = vld [vmem:[%s25525_s3 + $0x100] ss:$20 sps:$4 sm:$0xff]  }
 0x287   : > { %17644 = vmatpush3.bf16.msra.mxu1 %v18413_v28  ;;  %5135 = vmatpush2.bf16.msra.mxu0 %v18410_v54  ;;  %v18486_v54 = vld [vmem:[%s25525_s3 + $0xd4] ss:$20 sps:$4 sm:$0xff]   ;;  %v18487_v28 = vld [vmem:[%s25525_s3 + $0x218] ss:$20 sps:$4 sm:$0xff]  }
 0x288   : > { %17645 = vmatprep.subr.bf16.mxu1 %v20009_v9  ;;  %5136 = vmatprep.subr.bf16.mxu0 %v18416_v47  ;;  %v18484_v47 = vld [vmem:[%s25525_s3 + $0xd0] ss:$20 sps:$4 sm:$0xff]  }
 0x28b   : > { %17646 = vmatpush3.bf16.msra.mxu1 %v18417_v12  ;;  %5137 = vmatpush2.bf16.msra.mxu0 %v18414_v29  ;;  %v18488_v29 = vld [vmem:[%s25525_s3 + $0xd8] ss:$20 sps:$4 sm:$0xff]  }
 0x28c   : > { %17647 = vmatprep.subr.bf16.mxu1 %v20009_v9  ;;  %5138 = vmatprep.subr.bf16.mxu0 %v18420_v32  ;;  %v18491_v12 = vld [vmem:[%s25525_s3 + $0xac] ss:$20 sps:$4 sm:$0xff]   ;;  %v5368_v32 = vld [vmem:[#allocation2 + $0x18] sm:$0x7] }
 0x28f   : > { %17648 = vmatpush3.bf16.msra.mxu1 %v18421_v36  ;;  %5139 = vmatpush2.bf16.msra.mxu0 %v18418_v34  ;;  %v5365_v34 = vld [vmem:[#allocation2 + $0x10] sm:$0xfc]  ;;  %v18489_v36 = vld [vmem:[%s25525_s3 + $0xa8] ss:$20 sps:$4 sm:$0xff]  }
 0x290   : > { %17649 = vmatprep.subr.bf16.mxu1 %v20009_v9  ;;  %5140 = vmatprep.subr.bf16.mxu0 %v18424_v38  ;;  %v18493_v38 = vld [vmem:[%s25525_s3 + $0xb0] ss:$20 sps:$4 sm:$0xff]   ;;  %v5371_v59 = vpack.c.bf16 %v5368_v32, %v5365_v34  ;;  %v18562_v34 = vld [vmem:[%s25525_s3 + $0x9d8] ss:$20 sps:$4 sm:$0xff]  }
 0x293   : > { %17650 = vmatpush3.bf16.msra.mxu1 %v18425_v33  ;;  %5141 = vmatpush2.bf16.msra.mxu0 %v18422_v39  ;;  %v18496_v39 = vld [vmem:[%s25525_s3 + $0x84] ss:$20 sps:$4 sm:$0xff]   ;;  %v18497_v33 = vld [vmem:[%s25525_s3 + $0x1c8] ss:$20 sps:$4 sm:$0xff]  }
 0x294   : > { %5153 = vmatprep.subr.bf16.mxu1 %v18428_v30  ;;  %5239 = vmatprep.subr.bf16.mxu0 %v18431_v26  ;;  %v18494_v30 = vld [vmem:[%s25525_s3 + $0x80] ss:$20 sps:$4 sm:$0xff]   ;;  %v18498_v26 = vld [vmem:[%s25525_s3 + $0x88] ss:$20 sps:$4 sm:$0xff]  }
 0x296   : > { %17652 = vmatmul.mubr.bf16.vlgmr.msra.gmra.mxu1 %v21452_v6  ;;  %5143 = vmatmul.mubr.bf16.vlgmr.msra.gmra.mxu0 %v21745_v51  ;;  %v18441_v6 = vld [vmem:[%s25525_s3 + $0x350] ss:$20 sps:$4 sm:$0xff]  }
 0x297   : > { %5154 = vmatpush1.bf16.msra.mxu1 %v18426_v14  ;;  %5240 = vmatpush1.bf16.msra.mxu0 %v18429_v48  ;;  %v18502_v14 = vld [vmem:[%s25525_s3 + $0x1a0] ss:$20 sps:$4 sm:$0xff]   ;;  %v21901_v48 = vrot.slane %v5371_v59, 1 }
 0x298   : > { %5155 = vmatprep.subr.bf16.mxu1 %v18434_v7  ;;  %5241 = vmatprep.subr.bf16.mxu0 %v18437_v49  ;;  %v18499_v7 = vld [vmem:[%s25525_s3 + $0x58] ss:$20 sps:$4 sm:$0xff]   ;;  %v18503_v49 = vld [vmem:[%s25525_s3 + $0x60] ss:$20 sps:$4 sm:$0xff]  }
 0x299   : > { %5185 = vmatprep.mubr.bf16.mxu1 %v20008_v41  ;;  %5271 = vmatprep.mubr.bf16.mxu0 %v20008_v41 }
 0x29b   : > { %5156 = vmatpush1.bf16.msra.mxu1 %v18432_v52  ;;  %5242 = vmatpush1.bf16.msra.mxu0 %v18435_v40  ;;  %v18506_v52 = vld [vmem:[%s25525_s3 + $0x34] ss:$20 sps:$4 sm:$0xff]   ;;  %v18507_v40 = vld [vmem:[%s25525_s3 + $0x178] ss:$20 sps:$4 sm:$0xff]  }
 0x29c   : > { %5157 = vmatprep.subr.bf16.mxu1 %v18440_v43  ;;  %5243 = vmatprep.subr.bf16.mxu0 %v18443_v53  ;;  %v18504_v43 = vld [vmem:[%s25525_s3 + $0x30] ss:$20 sps:$4 sm:$0xff]   ;;  %v18508_v53 = vld [vmem:[%s25525_s3 + $0x38] ss:$20 sps:$4 sm:$0xff]  }
 0x29f   : > { %5158 = vmatpush1.bf16.msra.mxu1 %v18438_v55  ;;  %5244 = vmatpush1.bf16.msra.mxu0 %v18441_v6  ;;  %v18511_v55 = vld [vmem:[%s25525_s3 + $0xc] ss:$20 sps:$4 sm:$0xff]   ;;  %v18512_v6 = vld [vmem:[%s25525_s3 + $0x150] ss:$20 sps:$4 sm:$0xff]  }
 0x2a0   : > { %5159 = vmatprep.subr.bf16.mxu1 %v18446_v56  ;;  %5245 = vmatprep.subr.bf16.mxu0 %v18449_v57  ;;  %v18509_v56 = vld [vmem:[%s25525_s3 + $0x8] ss:$20 sps:$4 sm:$0xff]   ;;  %v18513_v57 = vld [vmem:[%s25525_s3 + $0x10] ss:$20 sps:$4 sm:$0xff]  }
 0x2a3   : > { %5160 = vmatpush1.bf16.msra.mxu1 %v18444_v58  ;;  %5246 = vmatpush1.bf16.msra.mxu0 %v18447_v61  ;;  %v18516_v58 = vld [vmem:[%s25525_s3 + $0x264] ss:$20 sps:$4 sm:$0xff]   ;;  %v18519_v61 = vld [vmem:[%s25525_s3 + $0x89c] ss:$20 sps:$4 sm:$0xff]  }
 0x2a4   : > { %5161 = vmatprep.subr.bf16.mxu1 %v18452_v62  ;;  %5247 = vmatprep.subr.bf16.mxu0 %v18455_v63  ;;  %v18514_v62 = vld [vmem:[%s25525_s3 + $0x260] ss:$20 sps:$4 sm:$0xff]   ;;  %v18517_v63 = vld [vmem:[%s25525_s3 + $0x898] ss:$20 sps:$4 sm:$0xff]  }
 0x2a7   : > { %5162 = vmatpush1.bf16.msra.mxu1 %v18450_v0  ;;  %5248 = vmatpush1.bf16.msra.mxu0 %v18453_v1  ;;  %v18522_v0 = vld [vmem:[%s25525_s3 + $0x23c] ss:$20 sps:$4 sm:$0xff]   ;;  %v18525_v1 = vld [vmem:[%s25525_s3 + $0x874] ss:$20 sps:$4 sm:$0xff]  }
 0x2a8   : > { %5163 = vmatprep.subr.bf16.mxu1 %v18458_v2  ;;  %5249 = vmatprep.subr.bf16.mxu0 %v18461_v3  ;;  %v18520_v2 = vld [vmem:[%s25525_s3 + $0x238] ss:$20 sps:$4 sm:$0xff]   ;;  %v18523_v3 = vld [vmem:[%s25525_s3 + $0x870] ss:$20 sps:$4 sm:$0xff]  }
 0x2ab   : > { %5164 = vmatpush1.bf16.msra.mxu1 %v18456_v4  ;;  %5250 = vmatpush1.bf16.msra.mxu0 %v18459_v5  ;;  %v18528_v4 = vld [vmem:[%s25525_s3 + $0x214] ss:$20 sps:$4 sm:$0xff]   ;;  %v18531_v5 = vld [vmem:[%s25525_s3 + $0x84c] ss:$20 sps:$4 sm:$0xff]  }
 0x2ac   : > { %5165 = vmatprep.subr.bf16.mxu1 %v18464_v8  ;;  %5251 = vmatprep.subr.bf16.mxu0 %v18467_v10  ;;  %v18526_v8 = vld [vmem:[%s25525_s3 + $0x210] ss:$20 sps:$4 sm:$0xff]   ;;  %v18529_v10 = vld [vmem:[%s25525_s3 + $0x848] ss:$20 sps:$4 sm:$0xff]  }
 0x2af   : > { %5166 = vmatpush1.bf16.msra.mxu1 %v18462_v11  ;;  %5252 = vmatpush1.bf16.msra.mxu0 %v18465_v13  ;;  %v18534_v11 = vld [vmem:[%s25525_s3 + $0x1ec] ss:$20 sps:$4 sm:$0xff]   ;;  %v18537_v13 = vld [vmem:[%s25525_s3 + $0x824] ss:$20 sps:$4 sm:$0xff]  }
 0x2b0   : > { %5167 = vmatprep.subr.bf16.mxu1 %v18470_v15  ;;  %5253 = vmatprep.subr.bf16.mxu0 %v18473_v18  ;;  %v18532_v15 = vld [vmem:[%s25525_s3 + $0x1e8] ss:$20 sps:$4 sm:$0xff]   ;;  %v18535_v18 = vld [vmem:[%s25525_s3 + $0x820] ss:$20 sps:$4 sm:$0xff]  }
 0x2b3   : > { %5168 = vmatpush1.bf16.msra.mxu1 %v18468_v19  ;;  %5254 = vmatpush1.bf16.msra.mxu0 %v18471_v60  ;;  %v18540_v19 = vld [vmem:[%s25525_s3 + $0x1c4] ss:$20 sps:$4 sm:$0xff]   ;;  %v18538_v60 = vld [vmem:[%s25525_s3 + $0x1c0] ss:$20 sps:$4 sm:$0xff]  }
 0x2b4   : > { %5196 = vmatprep.subr.bf16.mxu1 %v18476_v27  ;;  %17327 = vmatprep.subr.bf16.mxu0 %v18477_v42  ;;  %v18541_v27 = vld [vmem:[%s25525_s3 + $0x7f8] ss:$20 sps:$4 sm:$0xff]   ;;  %v18546_v42 = vld [vmem:[%s25525_s3 + $0x19c] ss:$20 sps:$4 sm:$0xff]  }
 0x2b6   : > { %5186 = vmatmul.mubr.bf16.vlgmr.msra.gmra.mxu1 %v21841_v17  ;;  %5272 = vmatmul.mubr.bf16.vlgmr.msra.gmra.mxu0 %v21841_v17 }
 0x2b7   : > { %5197 = vmatpush1.bf16.msra.mxu1 %v18474_v21  ;;  %5228 = vmatprep.mubr.bf16.mxu1 %v21569_v50  ;;  %v18549_v21 = vld [vmem:[%s25525_s3 + $0x7d4] ss:$20 sps:$4 sm:$0xff]  }
 0x2b8   : > { %17328 = vmatpush3.bf16.msra.mxu0 %v18478_v46  ;;  %5314 = vmatprep.mubr.bf16.mxu0 %v21569_v50  ;;  %v18492_v50 = vld [vmem:[%s25525_s3 + $0x1f0] ss:$20 sps:$4 sm:$0xff]  }
 0x2b9   : > { %5198 = vmatprep.subr.bf16.mxu1 %v18481_v24  ;;  %17329 = vmatprep.subr.bf16.mxu0 %v18482_v22  ;;  %v18547_v46 = vld [vmem:[%s25525_s3 + $0x7d0] ss:$20 sps:$4 sm:$0xff]   ;;  %v18555_v22 = vld [vmem:[%s25525_s3 + $0x7ac] ss:$20 sps:$4 sm:$0xff]  }
 0x2ba   : > { %v18550_v24 = vld [vmem:[%s25525_s3 + $0x170] ss:$20 sps:$4 sm:$0xff]  }
 0x2bb   : > { %5199 = vmatpush1.bf16.msra.mxu1 %v18479_v23  ;;  %v18552_v23 = vld [vmem:[%s25525_s3 + $0x174] ss:$20 sps:$4 sm:$0xff]  }
 0x2bc   : > { %17330 = vmatpush3.bf16.msra.mxu0 %v18483_v25  ;;  %5200 = vmatprep.subr.bf16.mxu1 %v18486_v54  ;;  %v18553_v25 = vld [vmem:[%s25525_s3 + $0x7a8] ss:$20 sps:$4 sm:$0xff]   ;;  %v18558_v54 = vld [vmem:[%s25525_s3 + $0x14c] ss:$20 sps:$4 sm:$0xff]  }
 0x2bd   : > { %17331 = vmatprep.subr.bf16.mxu0 %v18487_v28  ;;  %v18556_v28 = vld [vmem:[%s25525_s3 + $0x148] ss:$20 sps:$4 sm:$0xff]  }
 0x2bf   : > { %5201 = vmatpush1.bf16.msra.mxu1 %v18484_v47  ;;  %v18561_v47 = vld [vmem:[%s25525_s3 + $0x784] ss:$20 sps:$4 sm:$0xff]  }
 0x2c0   : > { %17332 = vmatpush3.bf16.msra.mxu0 %v18488_v29  ;;  %5202 = vmatprep.subr.bf16.mxu1 %v18491_v12  ;;  %v18559_v29 = vld [vmem:[%s25525_s3 + $0x780] ss:$20 sps:$4 sm:$0xff]   ;;  %v18564_v12 = vld [vmem:[%s25525_s3 + $0x9dc] ss:$20 sps:$4 sm:$0xff]  }
 0x2c1   : > { %17333 = vmatprep.subr.bf16.mxu0 %v18492_v50  ;;  %v18565_v50 = vld [vmem:[%s25525_s3 + $0x3a8] ss:$20 sps:$4 sm:$0xff]  }
 0x2c3   : > { %5203 = vmatpush1.bf16.msra.mxu1 %v18489_v36  ;;  %v18568_v36 = vld [vmem:[%s25525_s3 + $0x9b4] ss:$20 sps:$4 sm:$0xff]  }
 0x2c4   : > { %17334 = vmatpush3.bf16.msra.mxu0 %v18493_v38  ;;  %5204 = vmatprep.subr.bf16.mxu1 %v18496_v39 }
 0x2c5   : > { %17335 = vmatprep.subr.bf16.mxu0 %v18497_v33  ;;  %v18566_v33 = vld [vmem:[%s25525_s3 + $0x9b0] ss:$20 sps:$4 sm:$0xff]  }
 0x2c7   : > { %5205 = vmatpush1.bf16.msra.mxu1 %v18494_v30  ;;  %v18569_v30 = vld [vmem:[%s25525_s3 + $0x380] ss:$20 sps:$4 sm:$0xff]  }
 0x2c8   : > { %17336 = vmatpush3.bf16.msra.mxu0 %v18498_v26  ;;  %5206 = vmatprep.subr.bf16.mxu1 %v18501_v45  ;;  %v18572_v26 = vld [vmem:[%s25525_s3 + $0x98c] ss:$20 sps:$4 sm:$0xff]  }
 0x2c9   : > { %17337 = vmatprep.subr.bf16.mxu0 %v18502_v14 }
 0x2cb   : > { %5207 = vmatpush1.bf16.msra.mxu1 %v18499_v7 }
 0x2cc   : > { %17338 = vmatpush3.bf16.msra.mxu0 %v18503_v49  ;;  %5208 = vmatprep.subr.bf16.mxu1 %v18506_v52  ;;  %v18570_v52 = vld [vmem:[%s25525_s3 + $0x988] ss:$20 sps:$4 sm:$0xff]  }
 0x2cd   : > { %17339 = vmatprep.subr.bf16.mxu0 %v18507_v40  ;;  %v18573_v40 = vld [vmem:[%s25525_s3 + $0x358] ss:$20 sps:$4 sm:$0xff]  }
 0x2cf   : > { %5209 = vmatpush1.bf16.msra.mxu1 %v18504_v43  ;;  %v18576_v43 = vld [vmem:[%s25525_s3 + $0x964] ss:$20 sps:$4 sm:$0xff]  }
 0x2d0   : > { %17340 = vmatpush3.bf16.msra.mxu0 %v18508_v53  ;;  %5210 = vmatprep.subr.bf16.mxu1 %v18511_v55  ;;  %v18577_v53 = vld [vmem:[%s25525_s3 + $0x330] ss:$20 sps:$4 sm:$0xff]   ;;  %v18574_v55 = vld [vmem:[%s25525_s3 + $0x960] ss:$20 sps:$4 sm:$0xff]  }
 0x2d1   : > { %17341 = vmatprep.subr.bf16.mxu0 %v18512_v6  ;;  %v18580_v6 = vld [vmem:[%s25525_s3 + $0x93c] ss:$20 sps:$4 sm:$0xff]  }
 0x2d3   : > { %5211 = vmatpush1.bf16.msra.mxu1 %v18509_v56  ;;  %v18581_v56 = vld [vmem:[%s25525_s3 + $0x308] ss:$20 sps:$4 sm:$0xff]  }
 0x2d4   : > { %17342 = vmatpush3.bf16.msra.mxu0 %v18513_v57  ;;  %5212 = vmatprep.subr.bf16.mxu1 %v18516_v58  ;;  %v18578_v57 = vld [vmem:[%s25525_s3 + $0x938] ss:$20 sps:$4 sm:$0xff]   ;;  %v18584_v58 = vld [vmem:[%s25525_s3 + $0x914] ss:$20 sps:$4 sm:$0xff]  }
 0x2d5   : > { %6151 = vmatprep.subr.bf16.mxu0 %v18519_v61  ;;  %v4266_v32 = vpop.f32.mrf.mxu0  ;;  %v18585_v61 = vld [vmem:[%s25525_s3 + $0x2e0] ss:$20 sps:$4 sm:$0xff]  }
 0x2d7   : > { %5315 = vmatmul.mubr.bf16.vlgmr.msra.gmra.mxu0 %v21745_v51  ;;  %5213 = vmatpush2.bf16.msra.mxu1 %v18514_v62  ;;  %v4268_v38 = vpop.f32.mrf.mxu0 }
 0x2d8   : > { %6152 = vmatpush1.bf16.msra.mxu0 %v18517_v63  ;;  %6183 = vmatprep.mubr.bf16.mxu0 %v21901_v48 }
 0x2d9   : > { %5214 = vmatprep.subr.bf16.mxu1 %v18522_v0  ;;  %6153 = vmatprep.subr.bf16.mxu0 %v18525_v1  ;;  %v4270_v14 = vpop.f32.mrf.mxu0  ;;  %v18582_v0 = vld [vmem:[%s25525_s3 + $0x910] ss:$20 sps:$4 sm:$0xff]   ;;  %v18588_v1 = vld [vmem:[%s25525_s3 + $0x8ec] ss:$20 sps:$4 sm:$0xff]  }
 0x2db   : > { %5215 = vmatpush2.bf16.msra.mxu1 %v18520_v2  ;;  %v22096_v62 = vpop.f32.mrf.mxu0  ;;  %v18589_v2 = vld [vmem:[%s25525_s3 + $0x2b8] ss:$20 sps:$4 sm:$0xff]  }
 0x2dc   : > { %6154 = vmatpush1.bf16.msra.mxu0 %v18523_v3  ;;  %5216 = vmatprep.subr.bf16.mxu1 %v18528_v4  ;;  %v18586_v4 = vld [vmem:[%s25525_s3 + $0x8e8] ss:$20 sps:$4 sm:$0xff]  }
 0x2dd   : > { %6155 = vmatprep.subr.bf16.mxu0 %v18531_v5  ;;  %v18592_v5 = vld [vmem:[%s25525_s3 + $0x8c4] ss:$20 sps:$4 sm:$0xff]  }
 0x2df   : > { %5217 = vmatpush2.bf16.msra.mxu1 %v18526_v8  ;;  %v5367_v8 = vld [vmem:[#allocation2] sm:$0x7] }
 0x2e0   : > { %6156 = vmatpush1.bf16.msra.mxu0 %v18529_v10  ;;  %5218 = vmatprep.subr.bf16.mxu1 %v18534_v11  ;;  %v18593_v10 = vld [vmem:[%s25525_s3 + $0x290] ss:$20 sps:$4 sm:$0xff]   ;;  %v18590_v11 = vld [vmem:[%s25525_s3 + $0x8c0] ss:$20 sps:$4 sm:$0xff]  }
 0x2e1   : > { %6157 = vmatprep.subr.bf16.mxu0 %v18537_v13  ;;  %v5364_v13 = vld [vmem:[#allocation2 + $0x28] sm:$0xfc] }
 0x2e3   : > { %5219 = vmatpush2.bf16.msra.mxu1 %v18532_v15 }
 0x2e4   : > { %6158 = vmatpush1.bf16.msra.mxu0 %v18535_v18  ;;  %5220 = vmatprep.subr.bf16.mxu1 %v18540_v19  ;;  %v18596_v18 = vld [vmem:[%s25525_s3 + $0xb1c] ss:$20 sps:$4 sm:$0xff]   ;;  %v18599_v19 = vld [vmem:[%s25525_s3 + $0xb24] ss:$20 sps:$4 sm:$0xff]  }
 0x2e5   : > { %6159 = vmatprep.subr.bf16.mxu0 %v18543_v31  ;;  %v18594_v31 = vld [vmem:[%s25525_s3 + $0xb18] ss:$20 sps:$4 sm:$0xff]  }
 0x2e7   : > { %5221 = vmatpush2.bf16.msra.mxu1 %v18538_v60  ;;  %v5370_v60 = vpack.c.bf16 %v5367_v8, %v5364_v13 }
 0x2e8   : > { %6160 = vmatpush1.bf16.msra.mxu0 %v18541_v27  ;;  %5222 = vmatprep.subr.bf16.mxu1 %v18546_v42  ;;  %v18597_v27 = vld [vmem:[%s25525_s3 + $0xb20] ss:$20 sps:$4 sm:$0xff]  }
 0x2e9   : > { %6161 = vmatprep.subr.bf16.mxu0 %v18549_v21  ;;  %v18602_v42 = vld [vmem:[%s25525_s3 + $0xaf4] ss:$20 sps:$4 sm:$0xff]  }
 0x2eb   : > { %5223 = vmatpush2.bf16.msra.mxu1 %v18544_v20  ;;  %v18605_v20 = vld [vmem:[%s25525_s3 + $0xafc] ss:$20 sps:$4 sm:$0xff]  }
 0x2ec   : > { %6162 = vmatpush1.bf16.msra.mxu0 %v18547_v46  ;;  %5224 = vmatprep.subr.bf16.mxu1 %v18552_v23  ;;  %v22148_v46 = vrot.slane %v5370_v60, 1 }
 0x2ed   : > { %6163 = vmatprep.subr.bf16.mxu0 %v18555_v22  ;;  %v18603_v22 = vld [vmem:[%s25525_s3 + $0xaf8] ss:$20 sps:$4 sm:$0xff]  }
 0x2ef   : > { %5225 = vmatpush2.bf16.msra.mxu1 %v18550_v24  ;;  %v18600_v24 = vld [vmem:[%s25525_s3 + $0xaf0] ss:$20 sps:$4 sm:$0xff]  }
 0x2f0   : > { %6164 = vmatpush1.bf16.msra.mxu0 %v18553_v25  ;;  %5226 = vmatprep.subr.bf16.mxu1 %v18558_v54  ;;  %v18608_v25 = vld [vmem:[%s25525_s3 + $0xacc] ss:$20 sps:$4 sm:$0xff]   ;;  %v18611_v54 = vld [vmem:[%s25525_s3 + $0xad4] ss:$20 sps:$4 sm:$0xff]  }
 0x2f1   : > { %6165 = vmatprep.subr.bf16.mxu0 %v18561_v47  ;;  %v18606_v47 = vld [vmem:[%s25525_s3 + $0xac8] ss:$20 sps:$4 sm:$0xff]  }
 0x2f3   : > { %5227 = vmatpush2.bf16.msra.mxu1 %v18556_v28 }
 0x2f4   : > { %6166 = vmatpush1.bf16.msra.mxu0 %v18559_v29  ;;  %17655 = vmatprep.subr.bf16.mxu1 %v20009_v9  ;;  %v18609_v29 = vld [vmem:[%s25525_s3 + $0xad0] ss:$20 sps:$4 sm:$0xff]  }
 0x2f5   : > { %6167 = vmatprep.subr.bf16.mxu0 %v18564_v12  ;;  %v18614_v12 = vld [vmem:[%s25525_s3 + $0xaa4] ss:$20 sps:$4 sm:$0xff]  }
 0x2f6   : > { %5229 = vmatmul.mubr.bf16.vlgmr.msra.gmra.mxu1 %v21745_v51  ;;  %v4309_v39 = vpop.f32.mrf.mxu1  ;;  %v22098_v63 = vpop.f32.mrf.mxu0 }
 0x2f7   : > { %v22048_v59 = vadd.f32 %v4309_v39, %v4266_v32  ;;  %17656 = vmatpush3.bf16.msra.mxu1 %v18565_v50  ;;  %17671 = vmatprep.mubr.msk.bf16.mxu1 %vm20010_vm1, %v20009_v9  ;;  %v18617_v50 = vld [vmem:[%s25525_s3 + $0xaac] ss:$20 sps:$4 sm:$0xff]   ;;  %v18623_v39 = vld [vmem:[%s25525_s3 + $0xa84] ss:$20 sps:$4 sm:$0xff]  }
 0x2f8   : > { %6168 = vmatpush2.bf16.msra.mxu0 %v18562_v34  ;;  %v4311_v51 = vpop.f32.mrf.mxu1  ;;  %17657 = vmatprep.subr.bf16.mxu1 %v20009_v9  ;;  %v22110_v3 = vpop.f32.mrf.mxu0  ;;  %v18612_v32 = vld [vmem:[%s25525_s3 + $0xaa0] ss:$20 sps:$4 sm:$0xff]   ;;  %v18615_v34 = vld [vmem:[%s25525_s3 + $0xaa8] ss:$20 sps:$4 sm:$0xff]  }
 0x2f9   : > { %v22059_v45 = vadd.f32 %v4311_v51, %v4268_v38  ;;  %6169 = vmatprep.subr.bf16.mxu0 %v18568_v36  ;;  %v18620_v36 = vld [vmem:[%s25525_s3 + $0xa7c] ss:$20 sps:$4 sm:$0xff]   ;;  %v18618_v38 = vld [vmem:[%s25525_s3 + $0xa78] ss:$20 sps:$4 sm:$0xff]  }
 0x2fa   : > { %v4313_v7 = vpop.f32.mrf.mxu1  ;;  %v22125_v15 = vpop.f32.mrf.mxu0  ;;  %v18629_v51 = vld [vmem:[%s25525_s3 + $0xa5c] ss:$20 sps:$4 sm:$0xff]  }
 0x2fb   : > { %v22061_v49 = vadd.f32 %v4313_v7, %v4270_v14  ;;  %17658 = vmatpush3.bf16.msra.mxu1 %v18569_v30  ;;  %v18626_v30 = vld [vmem:[%s25525_s3 + $0xa54] ss:$20 sps:$4 sm:$0xff]   ;;  %v18627_v14 = vld [vmem:[%s25525_s3 + $0xa58] ss:$20 sps:$4 sm:$0xff]  }
 0x2fc   : > { %6170 = vmatpush2.bf16.msra.mxu0 %v18566_v33  ;;  %17659 = vmatprep.subr.bf16.mxu1 %v20009_v9  ;;  %v22146_v21 = vpop.f32.mrf.mxu0  ;;  %v18621_v33 = vld [vmem:[%s25525_s3 + $0xa80] ss:$20 sps:$4 sm:$0xff]   ;;  %v22249_v8 = vpop.f32.mrf.mxu1 }
 0x2fd   : > { %6171 = vmatprep.subr.bf16.mxu0 %v18572_v26  ;;  %v18624_v26 = vld [vmem:[%s25525_s3 + $0xa50] ss:$20 sps:$4 sm:$0xff]   ;;  %v18632_v7 = vld [vmem:[%s25525_s3 + $0xa2c] ss:$20 sps:$4 sm:$0xff]  }
 0x2ff   : > { %17660 = vmatpush3.bf16.msra.mxu1 %v18573_v40  ;;  %v18635_v40 = vld [vmem:[%s25525_s3 + $0xa34] ss:$20 sps:$4 sm:$0xff]  }
 0x300   : > { %6172 = vmatpush2.bf16.msra.mxu0 %v18570_v52  ;;  %17661 = vmatprep.subr.bf16.mxu1 %v20009_v9  ;;  %v18630_v52 = vld [vmem:[%s25525_s3 + $0xa28] ss:$20 sps:$4 sm:$0xff]  }
 0x301   : > { %6173 = vmatprep.subr.bf16.mxu0 %v18576_v43  ;;  %v18633_v43 = vld [vmem:[%s25525_s3 + $0xa30] ss:$20 sps:$4 sm:$0xff]  }
 0x303   : > { %17662 = vmatpush3.bf16.msra.mxu1 %v18577_v53  ;;  %v18638_v53 = vld [vmem:[%s25525_s3 + $0xa04] ss:$20 sps:$4 sm:$0xff]  }
 0x304   : > { %6174 = vmatpush2.bf16.msra.mxu0 %v18574_v55  ;;  %17663 = vmatprep.subr.bf16.mxu1 %v20009_v9  ;;  %v5369_v55 = vld [vmem:[#allocation2 + $0x20] sm:$0x7] }
 0x305   : > { %6175 = vmatprep.subr.bf16.mxu0 %v18580_v6  ;;  %v18636_v6 = vld [vmem:[%s25525_s3 + $0xa00] ss:$20 sps:$4 sm:$0xff]  }
 0x307   : > { %17664 = vmatpush3.bf16.msra.mxu1 %v18581_v56  ;;  %v18641_v56 = vld [vmem:[%s25525_s3 + $0xa0c] ss:$20 sps:$4 sm:$0xff]  }
 0x308   : > { %6176 = vmatpush2.bf16.msra.mxu0 %v18578_v57  ;;  %17665 = vmatprep.subr.bf16.mxu1 %v20009_v9  ;;  %v5366_v57 = vld [vmem:[#allocation2 + $0x8] sm:$0xfc] }
 0x309   : > { %6177 = vmatprep.subr.bf16.mxu0 %v18584_v58  ;;  %v18639_v58 = vld [vmem:[%s25525_s3 + $0xa08] ss:$20 sps:$4 sm:$0xff]  }
 0x30b   : > { %17666 = vmatpush3.bf16.msra.mxu1 %v18585_v61  ;;  %v5372_v61 = vpack.c.bf16 %v5369_v55, %v5366_v57  ;;  %v18684_v55 = vld [vmem:[%s25525_s3 + $0x9e4] ss:$20 sps:$4 sm:$0xff]  }
 0x30c   : > { %6178 = vmatpush2.bf16.msra.mxu0 %v18582_v0  ;;  %17667 = vmatprep.subr.bf16.mxu1 %v20009_v9  ;;  %v18644_v0 = vld [vmem:[%s25525_s3 + $0x8a4] ss:$20 sps:$4 sm:$0xff]  }
 0x30d   : > { %6179 = vmatprep.subr.bf16.mxu0 %v18588_v1  ;;  %v18645_v1 = vld [vmem:[%s25525_s3 + $0x9e8] ss:$20 sps:$4 sm:$0xff]  }
 0x30f   : > { %17668 = vmatpush3.bf16.msra.mxu1 %v18589_v2  ;;  %v18642_v2 = vld [vmem:[%s25525_s3 + $0x8a0] ss:$20 sps:$4 sm:$0xff]  }
 0x310   : > { %6180 = vmatpush2.bf16.msra.mxu0 %v18586_v4  ;;  %17669 = vmatprep.subr.bf16.mxu1 %v20009_v9  ;;  %v18646_v4 = vld [vmem:[%s25525_s3 + $0x8a8] ss:$20 sps:$4 sm:$0xff]  }
 0x311   : > { %6181 = vmatprep.subr.bf16.mxu0 %v18592_v5  ;;  %v18649_v5 = vld [vmem:[%s25525_s3 + $0x87c] ss:$20 sps:$4 sm:$0xff]  }
 0x313   : > { %17670 = vmatpush3.bf16.msra.mxu1 %v18593_v10  ;;  %v22251_v10 = vrot.slane %v5372_v61, 1 }
 0x314   : > { %6182 = vmatpush2.bf16.msra.mxu0 %v18590_v11  ;;  %6194 = vmatprep.subr.bf16.mxu1 %v18596_v18  ;;  %v18650_v11 = vld [vmem:[%s25525_s3 + $0x9c0] ss:$20 sps:$4 sm:$0xff]   ;;  %v18647_v18 = vld [vmem:[%s25525_s3 + $0x878] ss:$20 sps:$4 sm:$0xff]  }
 0x315   : > { %6280 = vmatprep.subr.bf16.mxu0 %v18599_v19  ;;  %v18651_v19 = vld [vmem:[%s25525_s3 + $0x880] ss:$20 sps:$4 sm:$0xff]  }
 0x316   : > { %v17312_v23 = vpop.f32.mrf.mxu0  ;;  %17672 = vmatmul.mubr.bf16.vlgmr.msra.gmra.mxu1 %v21841_v17 }
 0x317   : > { %6184 = vmatmul.mubr.bf16.vlgmr.msra.gmra.mxu0 %v22148_v46  ;;  %6195 = vmatpush1.bf16.msra.mxu1 %v18594_v31  ;;  %v18654_v31 = vld [vmem:[%s25525_s3 + $0x854] ss:$20 sps:$4 sm:$0xff]  }
 0x318   : > { %6281 = vmatpush1.bf16.msra.mxu0 %v18597_v27  ;;  %v17313_v17 = vpop.f32.mrf.mxu0  ;;  %6196 = vmatprep.subr.bf16.mxu1 %v18602_v42  ;;  %v18655_v27 = vld [vmem:[%s25525_s3 + $0x998] ss:$20 sps:$4 sm:$0xff]  }
 0x319   : > { %v22164_v28 = vadd.f32 %v17313_v17, %v17312_v23  ;;  %6282 = vmatprep.subr.bf16.mxu0 %v18605_v20  ;;  %6226 = vmatprep.mubr.bf16.mxu1 %v20008_v41  ;;  %v18652_v23 = vld [vmem:[%s25525_s3 + $0x850] ss:$20 sps:$4 sm:$0xff]   ;;  %v18665_v17 = vld [vmem:[%s25525_s3 + $0x948] ss:$20 sps:$4 sm:$0xff]  }
 0x31a   : > { %6312 = vmatprep.mubr.bf16.mxu0 %v20008_v41  ;;  %v17315_v57 = vpop.f32.mrf.mxu0 }
 0x31b   : > { %6197 = vmatpush1.bf16.msra.mxu1 %v18600_v24  ;;  %v18656_v24 = vld [vmem:[%s25525_s3 + $0x858] ss:$20 sps:$4 sm:$0xff]  }
 0x31c   : > { %6283 = vmatpush1.bf16.msra.mxu0 %v18603_v22  ;;  %6198 = vmatprep.subr.bf16.mxu1 %v18608_v25  ;;  %v18657_v25 = vld [vmem:[%s25525_s3 + $0x828] ss:$20 sps:$4 sm:$0xff]  }
 0x31d   : > { %6284 = vmatprep.subr.bf16.mxu0 %v18611_v54  ;;  %v18664_v54 = vld [vmem:[%s25525_s3 + $0x804] ss:$20 sps:$4 sm:$0xff]  }
 0x31f   : > { %6199 = vmatpush1.bf16.msra.mxu1 %v18606_v47  ;;  %v18662_v47 = vld [vmem:[%s25525_s3 + $0x800] ss:$20 sps:$4 sm:$0xff]  }
 0x320   : > { %6285 = vmatpush1.bf16.msra.mxu0 %v18609_v29  ;;  %6200 = vmatprep.subr.bf16.mxu1 %v18614_v12  ;;  %v18666_v29 = vld [vmem:[%s25525_s3 + $0x808] ss:$20 sps:$4 sm:$0xff]  }
 0x321   : > { %6286 = vmatprep.subr.bf16.mxu0 %v18617_v50  ;;  %v18669_v12 = vld [vmem:[%s25525_s3 + $0x7dc] ss:$20 sps:$4 sm:$0xff]   ;;  %v18670_v50 = vld [vmem:[%s25525_s3 + $0x920] ss:$20 sps:$4 sm:$0xff]  }
 0x323   : > { %6201 = vmatpush1.bf16.msra.mxu1 %v18612_v32  ;;  %v6419_v32 = vld [vmem:[#allocation2 + $0x18] sm:$0xf] }
 0x324   : > { %6287 = vmatpush1.bf16.msra.mxu0 %v18615_v34  ;;  %6202 = vmatprep.subr.bf16.mxu1 %v18620_v36  ;;  %v18667_v34 = vld [vmem:[%s25525_s3 + $0x7d8] ss:$20 sps:$4 sm:$0xff]   ;;  %v6416_v36 = vld [vmem:[#allocation2 + $0x10] sm:$0xf8] }
 0x325   : > { %6288 = vmatprep.subr.bf16.mxu0 %v18623_v39  ;;  %v18674_v39 = vld [vmem:[%s25525_s3 + $0x7b4] ss:$20 sps:$4 sm:$0xff]  }
 0x327   : > { %6203 = vmatpush1.bf16.msra.mxu1 %v18618_v38  ;;  %v18671_v38 = vld [vmem:[%s25525_s3 + $0x7e0] ss:$20 sps:$4 sm:$0xff]  }
 0x328   : > { %6289 = vmatpush1.bf16.msra.mxu0 %v18621_v33  ;;  %6204 = vmatprep.subr.bf16.mxu1 %v18626_v30  ;;  %v18675_v33 = vld [vmem:[%s25525_s3 + $0x8f8] ss:$20 sps:$4 sm:$0xff]   ;;  %v6422_v30 = vpack.c.bf16 %v6419_v32, %v6416_v36  ;;  %v18717_v36 = vld [vmem:[%s25525_s3 + $0xb94] ss:$20 sps:$4 sm:$0xff]  }
 0x329   : > { %6290 = vmatprep.subr.bf16.mxu0 %v18629_v51  ;;  %v18676_v51 = vld [vmem:[%s25525_s3 + $0x7b8] ss:$20 sps:$4 sm:$0xff]  }
 0x32a   : > { %v18709_v32 = vld [vmem:[%s25525_s3 + $0xbb8] ss:$20 sps:$4 sm:$0xff]  }
 0x32b   : > { %6205 = vmatpush1.bf16.msra.mxu1 %v18624_v26  ;;  %v18672_v26 = vld [vmem:[%s25525_s3 + $0x7b0] ss:$20 sps:$4 sm:$0xff]  }
 0x32c   : > { %6291 = vmatpush1.bf16.msra.mxu0 %v18627_v14  ;;  %6206 = vmatprep.subr.bf16.mxu1 %v18632_v7  ;;  %v18679_v14 = vld [vmem:[%s25525_s3 + $0x78c] ss:$20 sps:$4 sm:$0xff]   ;;  %v18680_v7 = vld [vmem:[%s25525_s3 + $0x8d0] ss:$20 sps:$4 sm:$0xff]  }
 0x32d   : > { %6292 = vmatprep.subr.bf16.mxu0 %v18635_v40  ;;  %v6581_v40 = vshll.u32 %v6422_v30, 16 }
 0x32f   : > { %6207 = vmatpush1.bf16.msra.mxu1 %v18630_v52  ;;  %v6578_v52 = vshrl.u32 %v6422_v30, 16  ;;  %v18723_v30 = vld [vmem:[%s25525_s3 + $0xb6c] ss:$20 sps:$4 sm:$0xff]  }
 0x330   : > { %6293 = vmatpush1.bf16.msra.mxu0 %v18633_v43  ;;  %6208 = vmatprep.subr.bf16.mxu1 %v18638_v53  ;;  %v18677_v43 = vld [vmem:[%s25525_s3 + $0x788] ss:$20 sps:$4 sm:$0xff]   ;;  %v18681_v53 = vld [vmem:[%s25525_s3 + $0x790] ss:$20 sps:$4 sm:$0xff]  }
 0x331   : > { %6294 = vmatprep.subr.bf16.mxu0 %v18641_v56  ;;  %v18682_v56 = vld [vmem:[%s25525_s3 + $0x9e0] ss:$20 sps:$4 sm:$0xff]   ;;  %v6580_v61 = vrot.slane %v6578_v52, 1  ;;  %v18724_v52 = vld [vmem:[%s25525_s3 + $0x8c8] ss:$20 sps:$4 sm:$0xff]  }
 0x333   : > { %6209 = vmatpush1.bf16.msra.mxu1 %v18636_v6  ;;  %v18687_v6 = vld [vmem:[%s25525_s3 + $0xc5c] ss:$20 sps:$4 sm:$0xff]  }
 0x334   : > { %6295 = vmatpush1.bf16.msra.mxu0 %v18639_v58  ;;  %6237 = vmatprep.subr.bf16.mxu1 %v18644_v0  ;;  %v18685_v58 = vld [vmem:[%s25525_s3 + $0xc58] ss:$20 sps:$4 sm:$0xff]   ;;  %v6583_v0 = vrot.slane %v6581_v40, 2 }
 0x335   : > { %17358 = vmatprep.subr.bf16.mxu0 %v18645_v1  ;;  %v18690_v1 = vld [vmem:[%s25525_s3 + $0x9bc] ss:$20 sps:$4 sm:$0xff]  }
 0x336   : > { %v4352_v13 = vpop.f32.mrf.mxu1  ;;  %6227 = vmatmul.mubr.bf16.vlgmr.msra.gmra.mxu1 %v22251_v10 }
 0x337   : > { %v22264_v60 = vadd.f32 %v22098_v63, %v4352_v13  ;;  %6313 = vmatmul.mubr.bf16.vlgmr.msra.gmra.mxu0 %v22251_v10  ;;  %6238 = vmatpush1.bf16.msra.mxu1 %v18642_v2  ;;  %v18693_v2 = vld [vmem:[%s25525_s3 + $0xc34] ss:$20 sps:$4 sm:$0xff]  }
 0x338   : > { %6269 = vmatprep.mubr.bf16.mxu1 %v21901_v48  ;;  %17359 = vmatpush3.bf16.msra.mxu0 %v18646_v4  ;;  %v4354_v42 = vpop.f32.mrf.mxu1 }
 0x339   : > { %6355 = vmatprep.mubr.bf16.mxu0 %v21901_v48  ;;  %v22276_v63 = vadd.f32 %v22110_v3, %v4354_v42  ;;  %6239 = vmatprep.subr.bf16.mxu1 %v18649_v5  ;;  %v18659_v48 = vld [vmem:[%s25525_s3 + $0x82c] ss:$20 sps:$4 sm:$0xff]   ;;  %v18660_v3 = vld [vmem:[%s25525_s3 + $0x970] ss:$20 sps:$4 sm:$0xff]  }
 0x33a   : > { %v4356_v20 = vpop.f32.mrf.mxu1  ;;  %17360 = vmatprep.subr.bf16.mxu0 %v18650_v11  ;;  %v18688_v5 = vld [vmem:[%s25525_s3 + $0x9b8] ss:$20 sps:$4 sm:$0xff]   ;;  %v17316_v11 = vpop.f32.mrf.mxu0 }
 0x33b   : > { %v22285_v22 = vadd.f32 %v22125_v15, %v4356_v20  ;;  %6240 = vmatpush1.bf16.msra.mxu1 %v18647_v18  ;;  %v18661_v15 = vld [vmem:[%s25525_s3 + $0x830] ss:$20 sps:$4 sm:$0xff]   ;;  %v22370_v18 = vor.u32 %v6583_v0, %v6580_v61  ;;  %v18699_v42 = vld [vmem:[%s25525_s3 + $0xc0c] ss:$20 sps:$4 sm:$0xff]  }
 0x33c   : > { %17361 = vmatpush3.bf16.msra.mxu0 %v18651_v19  ;;  %6241 = vmatprep.subr.bf16.mxu1 %v18654_v31  ;;  %v22365_v4 = vpop.f32.mrf.mxu1  ;;  %v18691_v19 = vld [vmem:[%s25525_s3 + $0xc30] ss:$20 sps:$4 sm:$0xff]   ;;  %v18696_v31 = vld [vmem:[%s25525_s3 + $0x994] ss:$20 sps:$4 sm:$0xff]  }
 0x33d   : > { %17362 = vmatprep.subr.bf16.mxu0 %v18655_v27  ;;  %v18737_v61 = vld [vmem:[%s25525_s3 + $0xb00] ss:$20 sps:$4 sm:$0xff]  }
 0x33f   : > { %6242 = vmatpush1.bf16.msra.mxu1 %v18652_v23  ;;  %v17317_v23 = vadd.f32 %v17316_v11, %v17315_v57  ;;  %v18736_v57 = vld [vmem:[%s25525_s3 + $0xd74] ss:$20 sps:$4 sm:$0xff]  }
 0x340   : > { %17363 = vmatpush3.bf16.msra.mxu0 %v18656_v24  ;;  %6243 = vmatprep.subr.bf16.mxu1 %v18659_v48  ;;  %v18694_v24 = vld [vmem:[%s25525_s3 + $0x990] ss:$20 sps:$4 sm:$0xff]   ;;  %v18697_v48 = vld [vmem:[%s25525_s3 + $0xc08] ss:$20 sps:$4 sm:$0xff]  }
 0x341   : > { %17364 = vmatprep.subr.bf16.mxu0 %v18660_v3 }
 0x343   : > { %6244 = vmatpush1.bf16.msra.mxu1 %v18657_v25  ;;  %v18702_v25 = vld [vmem:[%s25525_s3 + $0x96c] ss:$20 sps:$4 sm:$0xff]  }
 0x344   : > { %17365 = vmatpush3.bf16.msra.mxu0 %v18661_v15  ;;  %6245 = vmatprep.subr.bf16.mxu1 %v18664_v54  ;;  %v18700_v54 = vld [vmem:[%s25525_s3 + $0x968] ss:$20 sps:$4 sm:$0xff]  }
 0x345   : > { %17366 = vmatprep.subr.bf16.mxu0 %v18665_v17  ;;  %v18705_v17 = vld [vmem:[%s25525_s3 + $0xbe4] ss:$20 sps:$4 sm:$0xff]  }
 0x347   : > { %6246 = vmatpush1.bf16.msra.mxu1 %v18662_v47  ;;  %v18703_v47 = vld [vmem:[%s25525_s3 + $0xbe0] ss:$20 sps:$4 sm:$0xff]  }
 0x348   : > { %17367 = vmatpush3.bf16.msra.mxu0 %v18666_v29  ;;  %6247 = vmatprep.subr.bf16.mxu1 %v18669_v12  ;;  %v18708_v29 = vld [vmem:[%s25525_s3 + $0x944] ss:$20 sps:$4 sm:$0xff]   ;;  %v18711_v12 = vld [vmem:[%s25525_s3 + $0xbbc] ss:$20 sps:$4 sm:$0xff]  }
 0x349   : > { %17368 = vmatprep.subr.bf16.mxu0 %v18670_v50  ;;  %v18706_v50 = vld [vmem:[%s25525_s3 + $0x940] ss:$20 sps:$4 sm:$0xff]  }
 0x34b   : > { %6248 = vmatpush1.bf16.msra.mxu1 %v18667_v34  ;;  %v18714_v34 = vld [vmem:[%s25525_s3 + $0x91c] ss:$20 sps:$4 sm:$0xff]  }
 0x34c   : > { %17369 = vmatpush3.bf16.msra.mxu0 %v18671_v38  ;;  %6249 = vmatprep.subr.bf16.mxu1 %v18674_v39  ;;  %v18712_v38 = vld [vmem:[%s25525_s3 + $0x918] ss:$20 sps:$4 sm:$0xff]   ;;  %v18715_v39 = vld [vmem:[%s25525_s3 + $0xb90] ss:$20 sps:$4 sm:$0xff]  }
 0x34d   : > { %17370 = vmatprep.subr.bf16.mxu0 %v18675_v33  ;;  %v18720_v33 = vld [vmem:[%s25525_s3 + $0x8f4] ss:$20 sps:$4 sm:$0xff]  }
 0x34f   : > { %6250 = vmatpush1.bf16.msra.mxu1 %v18672_v26  ;;  %v18718_v26 = vld [vmem:[%s25525_s3 + $0x8f0] ss:$20 sps:$4 sm:$0xff]  }
 0x350   : > { %17371 = vmatpush3.bf16.msra.mxu0 %v18676_v51  ;;  %6251 = vmatprep.subr.bf16.mxu1 %v18679_v14  ;;  %v18721_v51 = vld [vmem:[%s25525_s3 + $0xb68] ss:$20 sps:$4 sm:$0xff]   ;;  %v18726_v14 = vld [vmem:[%s25525_s3 + $0x8cc] ss:$20 sps:$4 sm:$0xff]  }
 0x351   : > { %17372 = vmatprep.subr.bf16.mxu0 %v18680_v7  ;;  %v18729_v7 = vld [vmem:[%s25525_s3 + $0xb44] ss:$20 sps:$4 sm:$0xff]  }
 0x353   : > { %6252 = vmatpush1.bf16.msra.mxu1 %v18677_v43  ;;  %v18727_v43 = vld [vmem:[%s25525_s3 + $0xb40] ss:$20 sps:$4 sm:$0xff]  }
 0x354   : > { %17373 = vmatpush3.bf16.msra.mxu0 %v18681_v53  ;;  %6253 = vmatprep.subr.bf16.mxu1 %v18684_v55  ;;  %v18732_v53 = vld [vmem:[%s25525_s3 + $0xd9c] ss:$20 sps:$4 sm:$0xff]  }
 0x355   : > { %7220 = vmatprep.subr.bf16.mxu0 %v18687_v6  ;;  %v18733_v55 = vld [vmem:[%s25525_s3 + $0xb28] ss:$20 sps:$4 sm:$0xff]  }
 0x356   : > { %v4479_v13 = vpop.f32.mrf.mxu1  ;;  %v5144_v40 = vpop.f32.mrf.mxu0 }
 0x357   : > { %v22379_v27 = vadd.f32 %v22164_v28, %v4479_v13  ;;  %6356 = vmatmul.mubr.bf16.vlgmr.msra.gmra.mxu0 %v22148_v46  ;;  %6254 = vmatpush2.bf16.msra.mxu1 %v18682_v56  ;;  %v18730_v56 = vld [vmem:[%s25525_s3 + $0xd98] ss:$20 sps:$4 sm:$0xff]  }
 0x358   : > { %7221 = vmatpush1.bf16.msra.mxu0 %v18685_v58  ;;  %7252 = vmatprep.mubr.bf16.mxu0 %v22370_v18  ;;  %v17653_v20 = vpop.f32.mrf.mxu1  ;;  %v5146_v6 = vpop.f32.mrf.mxu0  ;;  %v5145_v58 = vadd.f32 %v5144_v40, %v22048_v59  ;;  %v18740_v59 = vld [vmem:[%s25525_s3 + $0xd4c] ss:$20 sps:$4 sm:$0xff]   ;;  %v18764_v40 = vld [vmem:[%s25525_s3 + $0xedc] ss:$20 sps:$4 sm:$0xff]  }
 0x359   : > { %6255 = vmatprep.subr.bf16.mxu1 %v18690_v1  ;;  %7222 = vmatprep.subr.bf16.mxu0 %v18693_v2  ;;  %v18734_v2 = vld [vmem:[%s25525_s3 + $0xd70] ss:$20 sps:$4 sm:$0xff]  }
 0x35a   : > { %v4482_v28 = vpop.f32.mrf.mxu1  ;;  %v5148_v0 = vpop.f32.mrf.mxu0 }
 0x35b   : > { %v22392_v3 = vadd.f32 %v17317_v23, %v4482_v28  ;;  %6256 = vmatpush2.bf16.msra.mxu1 %v18688_v5  ;;  %v5147_v5 = vadd.f32 %v5146_v6, %v22059_v45  ;;  %v18741_v45 = vld [vmem:[%s25525_s3 + $0xad8] ss:$20 sps:$4 sm:$0xff]   ;;  %v18748_v28 = vld [vmem:[%s25525_s3 + $0xcfc] ss:$20 sps:$4 sm:$0xff]   ;;  %v18765_v6 = vld [vmem:[%s25525_s3 + $0xee0] ss:$20 sps:$4 sm:$0xff]  }
 0x35c   : > { %7223 = vmatpush1.bf16.msra.mxu0 %v18691_v19  ;;  %v17654_v15 = vpop.f32.mrf.mxu1  ;;  %6257 = vmatprep.subr.bf16.mxu1 %v18696_v31  ;;  %v18744_v23 = vld [vmem:[%s25525_s3 + $0xd24] ss:$20 sps:$4 sm:$0xff]  }
 0x35d   : > { %7224 = vmatprep.subr.bf16.mxu0 %v18699_v42  ;;  %v18738_v42 = vld [vmem:[%s25525_s3 + $0xd48] ss:$20 sps:$4 sm:$0xff]   ;;  %v18746_v15 = vld [vmem:[%s25525_s3 + $0xcf8] ss:$20 sps:$4 sm:$0xff]  }
 0x35f   : > { %6258 = vmatpush2.bf16.msra.mxu1 %v18694_v24  ;;  %v18745_v24 = vld [vmem:[%s25525_s3 + $0xab0] ss:$20 sps:$4 sm:$0xff]  }
 0x360   : > { %7225 = vmatpush1.bf16.msra.mxu0 %v18697_v48  ;;  %6259 = vmatprep.subr.bf16.mxu1 %v18702_v25  ;;  %v18749_v48 = vld [vmem:[%s25525_s3 + $0xa88] ss:$20 sps:$4 sm:$0xff]   ;;  %v6418_v25 = vld [vmem:[#allocation2] sm:$0xf] }
 0x361   : > { %7226 = vmatprep.subr.bf16.mxu0 %v18705_v17  ;;  %v18752_v17 = vld [vmem:[%s25525_s3 + $0xcd4] ss:$20 sps:$4 sm:$0xff]  }
 0x363   : > { %6260 = vmatpush2.bf16.msra.mxu1 %v18700_v54  ;;  %v6415_v54 = vld [vmem:[#allocation2 + $0x28] sm:$0xf8] }
 0x364   : > { %7227 = vmatpush1.bf16.msra.mxu0 %v18703_v47  ;;  %6261 = vmatprep.subr.bf16.mxu1 %v18708_v29  ;;  %v18753_v47 = vld [vmem:[%s25525_s3 + $0xa60] ss:$20 sps:$4 sm:$0xff]   ;;  %v18750_v29 = vld [vmem:[%s25525_s3 + $0xcd0] ss:$20 sps:$4 sm:$0xff]  }
 0x365   : > { %7228 = vmatprep.subr.bf16.mxu0 %v18711_v12  ;;  %v6421_v12 = vpack.c.bf16 %v6418_v25, %v6415_v54  ;;  %v18783_v25 = vld [vmem:[%s25525_s3 + $0xe68] ss:$20 sps:$4 sm:$0xff]  }
 0x367   : > { %6262 = vmatpush2.bf16.msra.mxu1 %v18706_v50  ;;  %v22525_v50 = vpop.f32.mrf.mxu0 }
 0x368   : > { %7229 = vmatpush1.bf16.msra.mxu0 %v18709_v32  ;;  %6263 = vmatprep.subr.bf16.mxu1 %v18714_v34  ;;  %v18756_v32 = vld [vmem:[%s25525_s3 + $0xcac] ss:$20 sps:$4 sm:$0xff]  }
 0x369   : > { %7230 = vmatprep.subr.bf16.mxu0 %v18717_v36  ;;  %v18757_v36 = vld [vmem:[%s25525_s3 + $0xa38] ss:$20 sps:$4 sm:$0xff]  }
 0x36b   : > { %6264 = vmatpush2.bf16.msra.mxu1 %v18712_v38  ;;  %v18754_v38 = vld [vmem:[%s25525_s3 + $0xca8] ss:$20 sps:$4 sm:$0xff]  }
 0x36c   : > { %7231 = vmatpush1.bf16.msra.mxu0 %v18715_v39  ;;  %6265 = vmatprep.subr.bf16.mxu1 %v18720_v33  ;;  %v6570_v39 = vshrl.u32 %v6421_v12, 16  ;;  %v6573_v33 = vshll.u32 %v6421_v12, 16  ;;  %v6420_v12 = vld [vmem:[#allocation2 + $0x20] sm:$0xf] }
 0x36d   : > { %7232 = vmatprep.subr.bf16.mxu0 %v18723_v30  ;;  %v18760_v30 = vld [vmem:[%s25525_s3 + $0xc84] ss:$20 sps:$4 sm:$0xff]  }
 0x36f   : > { %6266 = vmatpush2.bf16.msra.mxu1 %v18718_v26 }
 0x370   : > { %7233 = vmatpush1.bf16.msra.mxu0 %v18721_v51  ;;  %6267 = vmatprep.subr.bf16.mxu1 %v18726_v14  ;;  %v18761_v51 = vld [vmem:[%s25525_s3 + $0xa10] ss:$20 sps:$4 sm:$0xff]   ;;  %v18758_v14 = vld [vmem:[%s25525_s3 + $0xc80] ss:$20 sps:$4 sm:$0xff]  }
 0x371   : > { %7234 = vmatprep.subr.bf16.mxu0 %v18729_v7  ;;  %v6572_v7 = vrot.slane %v6570_v39, 1  ;;  %v18800_v39 = vld [vmem:[%s25525_s3 + $0xdec] ss:$20 sps:$4 sm:$0xff]  }
 0x373   : > { %6268 = vmatpush2.bf16.msra.mxu1 %v18724_v52  ;;  %v6575_v52 = vrot.slane %v6573_v33, 2 }
 0x374   : > { %7235 = vmatpush1.bf16.msra.mxu0 %v18727_v43  ;;  %17675 = vmatprep.subr.bf16.mxu1 %v20009_v9  ;;  %v18767_v43 = vld [vmem:[%s25525_s3 + $0xee4] ss:$20 sps:$4 sm:$0xff]  }
 0x375   : > { %7236 = vmatprep.subr.bf16.mxu0 %v18732_v53 }
 0x376   : > { %v5187_v1 = vpop.f32.mrf.mxu1  ;;  %6270 = vmatmul.mubr.bf16.vlgmr.msra.gmra.mxu1 %v22148_v46  ;;  %v5149_v46 = vadd.f32 %v5148_v0, %v22061_v49  ;;  %v18742_v49 = vld [vmem:[%s25525_s3 + $0xd20] ss:$20 sps:$4 sm:$0xff]   ;;  %v22531_v34 = vpop.f32.mrf.mxu0  ;;  %v18768_v0 = vld [vmem:[%s25525_s3 + $0xeb0] ss:$20 sps:$4 sm:$0xff]  }
 0x377   : > { %v22476_v11 = vadd.f32 %v5187_v1, %v5145_v58  ;;  %17676 = vmatpush3.bf16.msra.mxu1 %v18733_v55  ;;  %17691 = vmatprep.mubr.msk.bf16.mxu1 %vm20010_vm1, %v20009_v9  ;;  %v18762_v55 = vld [vmem:[%s25525_s3 + $0xed8] ss:$20 sps:$4 sm:$0xff]  }
 0x378   : > { %7237 = vmatpush2.bf16.msra.mxu0 %v18730_v56  ;;  %v5189_v13 = vpop.f32.mrf.mxu1  ;;  %17677 = vmatprep.subr.bf16.mxu1 %v20009_v9  ;;  %v22543_v26 = vpop.f32.mrf.mxu0  ;;  %v18770_v56 = vld [vmem:[%s25525_s3 + $0xeb4] ss:$20 sps:$4 sm:$0xff]   ;;  %v18771_v1 = vld [vmem:[%s25525_s3 + $0xeb8] ss:$20 sps:$4 sm:$0xff]  }
 0x379   : > { %v22485_v19 = vadd.f32 %v5189_v13, %v5147_v5  ;;  %7238 = vmatprep.subr.bf16.mxu0 %v18736_v57  ;;  %v18773_v57 = vld [vmem:[%s25525_s3 + $0xebc] ss:$20 sps:$4 sm:$0xff]  }
 0x37a   : > { %v5191_v31 = vpop.f32.mrf.mxu1  ;;  %v22558_v53 = vpop.f32.mrf.mxu0 }
 0x37b   : > { %v22493_v20 = vadd.f32 %v5191_v31, %v5149_v46  ;;  %17678 = vmatpush3.bf16.msra.mxu1 %v18737_v61  ;;  %v22574_v61 = vor.u32 %v6575_v52, %v6572_v7  ;;  %v18782_v31 = vld [vmem:[%s25525_s3 + $0xe64] ss:$20 sps:$4 sm:$0xff]  }
 0x37c   : > { %7239 = vmatpush2.bf16.msra.mxu0 %v18734_v2  ;;  %17679 = vmatprep.subr.bf16.mxu1 %v20009_v9  ;;  %v22572_v58 = vpop.f32.mrf.mxu0  ;;  %v18776_v2 = vld [vmem:[%s25525_s3 + $0xe8c] ss:$20 sps:$4 sm:$0xff]   ;;  %v18806_v7 = vld [vmem:[%s25525_s3 + $0xdc4] ss:$20 sps:$4 sm:$0xff]  }
 0x37d   : > { %7240 = vmatprep.subr.bf16.mxu0 %v18740_v59  ;;  %v18779_v59 = vld [vmem:[%s25525_s3 + $0xe94] ss:$20 sps:$4 sm:$0xff]  }
 0x37f   : > { %17680 = vmatpush3.bf16.msra.mxu1 %v18741_v45  ;;  %v18777_v45 = vld [vmem:[%s25525_s3 + $0xe90] ss:$20 sps:$4 sm:$0xff]  }
 0x380   : > { %7241 = vmatpush2.bf16.msra.mxu0 %v18738_v42  ;;  %17681 = vmatprep.subr.bf16.mxu1 %v20009_v9 }
 0x381   : > { %7242 = vmatprep.subr.bf16.mxu0 %v18744_v23  ;;  %v18785_v23 = vld [vmem:[%s25525_s3 + $0xe6c] ss:$20 sps:$4 sm:$0xff]  }
 0x383   : > { %17682 = vmatpush3.bf16.msra.mxu1 %v18745_v24 }
 0x384   : > { %7243 = vmatpush2.bf16.msra.mxu0 %v18742_v49  ;;  %17683 = vmatprep.subr.bf16.mxu1 %v20009_v9 }
 0x385   : > { %7244 = vmatprep.subr.bf16.mxu0 %v18748_v28  ;;  %v18780_v28 = vld [vmem:[%s25525_s3 + $0xe60] ss:$20 sps:$4 sm:$0xff]  }
 0x387   : > { %17684 = vmatpush3.bf16.msra.mxu1 %v18749_v48 }
 0x388   : > { %7245 = vmatpush2.bf16.msra.mxu0 %v18746_v15  ;;  %17685 = vmatprep.subr.bf16.mxu1 %v20009_v9  ;;  %v18788_v15 = vld [vmem:[%s25525_s3 + $0xe3c] ss:$20 sps:$4 sm:$0xff]  }
 0x389   : > { %7246 = vmatprep.subr.bf16.mxu0 %v18752_v17  ;;  %v18786_v17 = vld [vmem:[%s25525_s3 + $0xe38] ss:$20 sps:$4 sm:$0xff]  }
 0x38b   : > { %17686 = vmatpush3.bf16.msra.mxu1 %v18753_v47  ;;  %v18789_v47 = vld [vmem:[%s25525_s3 + $0xe40] ss:$20 sps:$4 sm:$0xff]  }
 0x38c   : > { %7247 = vmatpush2.bf16.msra.mxu0 %v18750_v29  ;;  %17687 = vmatprep.subr.bf16.mxu1 %v20009_v9  ;;  %v18794_v29 = vld [vmem:[%s25525_s3 + $0xe14] ss:$20 sps:$4 sm:$0xff]  }
 0x38d   : > { %7248 = vmatprep.subr.bf16.mxu0 %v18756_v32  ;;  %v18792_v32 = vld [vmem:[%s25525_s3 + $0xe10] ss:$20 sps:$4 sm:$0xff]  }
 0x38f   : > { %17688 = vmatpush3.bf16.msra.mxu1 %v18757_v36  ;;  %v6417_v36 = vld [vmem:[#allocation2 + $0x8] sm:$0xf8] }
 0x390   : > { %7249 = vmatpush2.bf16.msra.mxu0 %v18754_v38  ;;  %17689 = vmatprep.subr.bf16.mxu1 %v20009_v9  ;;  %v18795_v38 = vld [vmem:[%s25525_s3 + $0xe18] ss:$20 sps:$4 sm:$0xff]   ;;  %v6423_v33 = vpack.c.bf16 %v6420_v12, %v6417_v36  ;;  %v18834_v36 = vld [vmem:[%s25525_s3 + $0xbc8] ss:$20 sps:$4 sm:$0xff]  }
 0x391   : > { %7250 = vmatprep.subr.bf16.mxu0 %v18760_v30  ;;  %v18803_v30 = vld [vmem:[%s25525_s3 + $0xdf4] ss:$20 sps:$4 sm:$0xff]   ;;  %v18832_v12 = vld [vmem:[%s25525_s3 + $0xbc4] ss:$20 sps:$4 sm:$0xff]  }
 0x392   : > { %v6586_v52 = vshrl.u32 %v6423_v33, 16 }
 0x393   : > { %17690 = vmatpush3.bf16.msra.mxu1 %v18761_v51  ;;  %v18798_v51 = vld [vmem:[%s25525_s3 + $0xde8] ss:$20 sps:$4 sm:$0xff]  }
 0x394   : > { %7251 = vmatpush2.bf16.msra.mxu0 %v18758_v14  ;;  %7263 = vmatprep.subr.bf16.mxu1 %v18764_v40  ;;  %v18801_v14 = vld [vmem:[%s25525_s3 + $0xdf0] ss:$20 sps:$4 sm:$0xff]   ;;  %v6589_v40 = vshll.u32 %v6423_v33, 16  ;;  %v18835_v33 = vld [vmem:[%s25525_s3 + $0xb98] ss:$20 sps:$4 sm:$0xff]  }
 0x395   : > { %7349 = vmatprep.subr.bf16.mxu0 %v18767_v43  ;;  %v18809_v43 = vld [vmem:[%s25525_s3 + $0xdcc] ss:$20 sps:$4 sm:$0xff]  }
 0x396   : > { %17692 = vmatmul.mubr.bf16.vlgmr.msra.gmra.mxu1 %v22251_v10  ;;  %v18774_v10 = vld [vmem:[%s25525_s3 + $0xe88] ss:$20 sps:$4 sm:$0xff]  }
 0x397   : > { %v17343_v5 = vpop.f32.mrf.mxu0  ;;  %7253 = vmatmul.mubr.bf16.vlgmr.msra.gmra.mxu0 %v22574_v61  ;;  %7264 = vmatpush1.bf16.msra.mxu1 %v18762_v55  ;;  %v18804_v55 = vld [vmem:[%s25525_s3 + $0xdc0] ss:$20 sps:$4 sm:$0xff]  }
 0x398   : > { %7350 = vmatpush1.bf16.msra.mxu0 %v18765_v6  ;;  %7265 = vmatprep.subr.bf16.mxu1 %v18770_v56  ;;  %v18807_v6 = vld [vmem:[%s25525_s3 + $0xdc8] ss:$20 sps:$4 sm:$0xff]   ;;  %v6588_v56 = vrot.slane %v6586_v52, 1  ;;  %v18844_v52 = vld [vmem:[%s25525_s3 + $0xb78] ss:$20 sps:$4 sm:$0xff]  }
 0x399   : > { %v17344_v13 = vpop.f32.mrf.mxu0  ;;  %7351 = vmatprep.subr.bf16.mxu0 %v18773_v57  ;;  %7295 = vmatprep.mubr.bf16.mxu1 %v20008_v41  ;;  %v6591_v57 = vrot.slane %v6589_v40, 2  ;;  %v18847_v40 = vld [vmem:[%s25525_s3 + $0xb4c] ss:$20 sps:$4 sm:$0xff]  }
 0x39a   : > { %v17345_v46 = vadd.f32 %v17344_v13, %v17343_v5  ;;  %7381 = vmatprep.mubr.bf16.mxu0 %v20008_v41  ;;  %v22673_v5 = vpop.f32.mrf.mxu1  ;;  %v18814_v13 = vld [vmem:[%s25525_s3 + $0xc68] ss:$20 sps:$4 sm:$0xff]  }
 0x39b   : > { %v17346_v42 = vpop.f32.mrf.mxu0  ;;  %7266 = vmatpush1.bf16.msra.mxu1 %v18768_v0  ;;  %v18812_v0 = vld [vmem:[%s25525_s3 + $0xc64] ss:$20 sps:$4 sm:$0xff]  }
 0x39c   : > { %7352 = vmatpush1.bf16.msra.mxu0 %v18771_v1  ;;  %7267 = vmatprep.subr.bf16.mxu1 %v18776_v2  ;;  %v22605_v49 = vadd.f32 %v17345_v46, %v22379_v27  ;;  %v18791_v27 = vld [vmem:[%s25525_s3 + $0xe44] ss:$20 sps:$4 sm:$0xff]   ;;  %v18813_v1 = vld [vmem:[%s25525_s3 + $0xda8] ss:$20 sps:$4 sm:$0xff]   ;;  %v18810_v2 = vld [vmem:[%s25525_s3 + $0xc60] ss:$20 sps:$4 sm:$0xff]  }
 0x39d   : > { %v17347_v24 = vpop.f32.mrf.mxu0  ;;  %7353 = vmatprep.subr.bf16.mxu0 %v18779_v59  ;;  %v22675_v59 = vor.u32 %v6591_v57, %v6588_v56  ;;  %v18852_v56 = vld [vmem:[%s25525_s3 + $0xda4] ss:$20 sps:$4 sm:$0xff]  }
 0x39e   : > { %v17348_v48 = vadd.f32 %v17347_v24, %v17346_v42  ;;  %v18815_v42 = vld [vmem:[%s25525_s3 + $0xc38] ss:$20 sps:$4 sm:$0xff]   ;;  %v18819_v24 = vld [vmem:[%s25525_s3 + $0xc40] ss:$20 sps:$4 sm:$0xff]  }
 0x39f   : > { %7268 = vmatpush1.bf16.msra.mxu1 %v18774_v10  ;;  %v18817_v10 = vld [vmem:[%s25525_s3 + $0xc3c] ss:$20 sps:$4 sm:$0xff]   ;;  %v18884_v57 = vld [vmem:[%s25527_s5 + $0x40c] ss:$12 sps:$4 sm:$0xff]  }
 0x3a0   : > { %7354 = vmatpush1.bf16.msra.mxu0 %v18777_v45  ;;  %7269 = vmatprep.subr.bf16.mxu1 %v18782_v31  ;;  %v22620_v54 = vadd.f32 %v17348_v48, %v22392_v3  ;;  %v18797_v3 = vld [vmem:[%s25525_s3 + $0xe1c] ss:$20 sps:$4 sm:$0xff]   ;;  %v18818_v45 = vld [vmem:[%s25525_s3 + $0xd80] ss:$20 sps:$4 sm:$0xff]   ;;  %v18823_v48 = vld [vmem:[%s25525_s3 + $0xd58] ss:$20 sps:$4 sm:$0xff]  }
 0x3a1   : > { %7355 = vmatprep.subr.bf16.mxu0 %v18785_v23 }
 0x3a3   : > { %7270 = vmatpush1.bf16.msra.mxu1 %v18780_v28 }
 0x3a4   : > { %7356 = vmatpush1.bf16.msra.mxu0 %v18783_v25  ;;  %7271 = vmatprep.subr.bf16.mxu1 %v18788_v15  ;;  %v4402_v15 = vadd.f32 %v22146_v21, %v22365_v4 }
 0x3a5   : > { %7357 = vmatprep.subr.bf16.mxu0 %v18791_v27 }
 0x3a7   : > { %7272 = vmatpush1.bf16.msra.mxu1 %v18786_v17  ;;  %v18824_v17 = vld [vmem:[%s25525_s3 + $0xc18] ss:$20 sps:$4 sm:$0xff]  }
 0x3a8   : > { %7358 = vmatpush1.bf16.msra.mxu0 %v18789_v47  ;;  %7273 = vmatprep.subr.bf16.mxu1 %v18794_v29  ;;  %v18827_v47 = vld [vmem:[%s25525_s3 + $0xbec] ss:$20 sps:$4 sm:$0xff]   ;;  %v18825_v29 = vld [vmem:[%s25525_s3 + $0xbe8] ss:$20 sps:$4 sm:$0xff]  }
 0x3a9   : > { %7359 = vmatprep.subr.bf16.mxu0 %v18797_v3  ;;  %v18829_v3 = vld [vmem:[%s25525_s3 + $0xbf0] ss:$20 sps:$4 sm:$0xff]  }
 0x3ab   : > { %7274 = vmatpush1.bf16.msra.mxu1 %v18792_v32  ;;  %v18830_v32 = vld [vmem:[%s25525_s3 + $0xbc0] ss:$20 sps:$4 sm:$0xff]  }
 0x3ac   : > { %7360 = vmatpush1.bf16.msra.mxu0 %v18795_v38  ;;  %7275 = vmatprep.subr.bf16.mxu1 %v18800_v39  ;;  %v18837_v38 = vld [vmem:[%s25525_s3 + $0xb9c] ss:$20 sps:$4 sm:$0xff]   ;;  %v18838_v39 = vld [vmem:[%s25525_s3 + $0xce0] ss:$20 sps:$4 sm:$0xff]  }
 0x3ad   : > { %7361 = vmatprep.subr.bf16.mxu0 %v18803_v30  ;;  %v18839_v30 = vld [vmem:[%s25525_s3 + $0xba0] ss:$20 sps:$4 sm:$0xff]  }
 0x3af   : > { %7276 = vmatpush1.bf16.msra.mxu1 %v18798_v51  ;;  %v18842_v51 = vld [vmem:[%s25525_s3 + $0xb74] ss:$20 sps:$4 sm:$0xff]  }
 0x3b0   : > { %7362 = vmatpush1.bf16.msra.mxu0 %v18801_v14  ;;  %7277 = vmatprep.subr.bf16.mxu1 %v18806_v7  ;;  %v18843_v14 = vld [vmem:[%s25525_s3 + $0xcb8] ss:$20 sps:$4 sm:$0xff]   ;;  %v18840_v7 = vld [vmem:[%s25525_s3 + $0xb70] ss:$20 sps:$4 sm:$0xff]  }
 0x3b1   : > { %7363 = vmatprep.subr.bf16.mxu0 %v18809_v43  ;;  %v18848_v43 = vld [vmem:[%s25525_s3 + $0xc90] ss:$20 sps:$4 sm:$0xff]  }
 0x3b3   : > { %7278 = vmatpush1.bf16.msra.mxu1 %v18804_v55  ;;  %v18845_v55 = vld [vmem:[%s25525_s3 + $0xb48] ss:$20 sps:$4 sm:$0xff]  }
 0x3b4   : > { %7364 = vmatpush1.bf16.msra.mxu0 %v18807_v6  ;;  %7306 = vmatprep.subr.bf16.mxu1 %v18812_v0  ;;  %v18849_v6 = vld [vmem:[%s25525_s3 + $0xb50] ss:$20 sps:$4 sm:$0xff]   ;;  %v18850_v0 = vld [vmem:[%s25525_s3 + $0xda0] ss:$20 sps:$4 sm:$0xff]  }
 0x3b5   : > { %17389 = vmatprep.subr.bf16.mxu0 %v18813_v1  ;;  %v18855_v1 = vld [vmem:[%s25525_s3 + $0xd7c] ss:$20 sps:$4 sm:$0xff]  }
 0x3b6   : > { %v5230_v46 = vpop.f32.mrf.mxu1  ;;  %7296 = vmatmul.mubr.bf16.vlgmr.msra.gmra.mxu1 %v22675_v59 }
 0x3b7   : > { %v22688_v31 = vadd.f32 %v5230_v46, %v22264_v60  ;;  %7382 = vmatmul.mubr.bf16.vlgmr.msra.gmra.mxu0 %v22675_v59  ;;  %7307 = vmatpush1.bf16.msra.mxu1 %v18810_v2  ;;  %v18822_v60 = vld [vmem:[%s25525_s3 + $0xc14] ss:$20 sps:$4 sm:$0xff]  }
 0x3b8   : > { %7338 = vmatprep.mubr.bf16.mxu1 %v22370_v18  ;;  %17390 = vmatpush3.bf16.msra.mxu0 %v18814_v13  ;;  %v5232_v23 = vpop.f32.mrf.mxu1  ;;  %v18882_v2 = vld [vmem:[%s25527_s5 + $0x408] ss:$12 sps:$4 sm:$0xff]  }
 0x3b9   : > { %7424 = vmatprep.mubr.bf16.mxu0 %v22370_v18  ;;  %v22703_v28 = vadd.f32 %v5232_v23, %v22276_v63  ;;  %7308 = vmatprep.subr.bf16.mxu1 %v18817_v10  ;;  %v18820_v18 = vld [vmem:[%s25525_s3 + $0xc10] ss:$20 sps:$4 sm:$0xff]   ;;  %v18887_v13 = vld [vmem:[%s25527_s5 + $0x3f4] ss:$12 sps:$4 sm:$0xff]  }
 0x3ba   : > { %v5234_v25 = vpop.f32.mrf.mxu1  ;;  %17391 = vmatprep.subr.bf16.mxu0 %v18818_v45  ;;  %v18853_v45 = vld [vmem:[%s25525_s3 + $0xd78] ss:$20 sps:$4 sm:$0xff]   ;;  %v18858_v23 = vld [vmem:[%s25525_s3 + $0xd54] ss:$20 sps:$4 sm:$0xff]  }
 0x3bb   : > { %v22711_v27 = vadd.f32 %v5234_v25, %v22285_v22  ;;  %7309 = vmatpush1.bf16.msra.mxu1 %v18815_v42  ;;  %v18828_v22 = vld [vmem:[%s25525_s3 + $0xd30] ss:$20 sps:$4 sm:$0xff]  }
 0x3bc   : > { %17392 = vmatpush3.bf16.msra.mxu0 %v18819_v24  ;;  %v5236_v63 = vpop.f32.mrf.mxu1  ;;  %7310 = vmatprep.subr.bf16.mxu1 %v18822_v60  ;;  %v18885_v24 = vld [vmem:[%s25527_s5 + $0x3f0] ss:$12 sps:$4 sm:$0xff]  }
 0x3bd   : > { %v5237_v21 = vadd.f32 %v5236_v63, %v4402_v15  ;;  %17393 = vmatprep.subr.bf16.mxu0 %v18823_v48  ;;  %v18856_v25 = vld [vmem:[%s25525_s3 + $0xd50] ss:$20 sps:$4 sm:$0xff]  }
 0x3be   : > { %v18888_v63 = vld [vmem:[%s25527_s5 + $0x3d8] ss:$12 sps:$4 sm:$0xff]  }
 0x3bf   : > { %v22726_v4 = vadd.f32 %v22572_v58, %v5237_v21  ;;  %7311 = vmatpush1.bf16.msra.mxu1 %v18820_v18  ;;  %v18833_v58 = vld [vmem:[%s25525_s3 + $0xd08] ss:$20 sps:$4 sm:$0xff]   ;;  %v18861_v18 = vld [vmem:[%s25525_s3 + $0xd2c] ss:$20 sps:$4 sm:$0xff]  }
 0x3c0   : > { %17394 = vmatpush3.bf16.msra.mxu0 %v18824_v17  ;;  %7312 = vmatprep.subr.bf16.mxu1 %v18827_v47  ;;  %v18859_v17 = vld [vmem:[%s25525_s3 + $0xd28] ss:$20 sps:$4 sm:$0xff]   ;;  %v18864_v47 = vld [vmem:[%s25525_s3 + $0xd04] ss:$20 sps:$4 sm:$0xff]   ;;  %v18891_v21 = vld [vmem:[%s25527_s5 + $0x3c0] ss:$12 sps:$4 sm:$0xff]  }
 0x3c1   : > { %17395 = vmatprep.subr.bf16.mxu0 %v18828_v22  ;;  %v18896_v22 = vld [vmem:[%s25527_s5 + $0x3ac] ss:$12 sps:$4 sm:$0xff]  }
 0x3c3   : > { %7313 = vmatpush1.bf16.msra.mxu1 %v18825_v29  ;;  %v18862_v29 = vld [vmem:[%s25525_s3 + $0xd00] ss:$20 sps:$4 sm:$0xff]  }
 0x3c4   : > { %17396 = vmatpush3.bf16.msra.mxu0 %v18829_v3  ;;  %7314 = vmatprep.subr.bf16.mxu1 %v18832_v12  ;;  %v18867_v3 = vld [vmem:[%s25525_s3 + $0xcdc] ss:$20 sps:$4 sm:$0xff]   ;;  %v18894_v12 = vld [vmem:[%s25527_s5 + $0x3a8] ss:$12 sps:$4 sm:$0xff]  }
 0x3c5   : > { %17397 = vmatprep.subr.bf16.mxu0 %v18833_v58  ;;  %v18899_v58 = vld [vmem:[%s25527_s5 + $0x394] ss:$12 sps:$4 sm:$0xff]  }
 0x3c7   : > { %7315 = vmatpush1.bf16.msra.mxu1 %v18830_v32  ;;  %v18865_v32 = vld [vmem:[%s25525_s3 + $0xcd8] ss:$20 sps:$4 sm:$0xff]  }
 0x3c8   : > { %17398 = vmatpush3.bf16.msra.mxu0 %v18834_v36  ;;  %7316 = vmatprep.subr.bf16.mxu1 %v18837_v38  ;;  %v18870_v36 = vld [vmem:[%s25525_s3 + $0xcb4] ss:$20 sps:$4 sm:$0xff]   ;;  %v18897_v38 = vld [vmem:[%s25527_s5 + $0x390] ss:$12 sps:$4 sm:$0xff]  }
 0x3c9   : > { %17399 = vmatprep.subr.bf16.mxu0 %v18838_v39  ;;  %v18902_v39 = vld [vmem:[%s25527_s5 + $0x37c] ss:$12 sps:$4 sm:$0xff]  }
 0x3cb   : > { %7317 = vmatpush1.bf16.msra.mxu1 %v18835_v33  ;;  %v18868_v33 = vld [vmem:[%s25525_s3 + $0xcb0] ss:$20 sps:$4 sm:$0xff]  }
 0x3cc   : > { %17400 = vmatpush3.bf16.msra.mxu0 %v18839_v30  ;;  %7318 = vmatprep.subr.bf16.mxu1 %v18842_v51  ;;  %v18873_v30 = vld [vmem:[%s25525_s3 + $0xc8c] ss:$20 sps:$4 sm:$0xff]   ;;  %v18900_v51 = vld [vmem:[%s25527_s5 + $0x378] ss:$12 sps:$4 sm:$0xff]  }
 0x3cd   : > { %17401 = vmatprep.subr.bf16.mxu0 %v18843_v14  ;;  %v18905_v14 = vld [vmem:[%s25527_s5 + $0x364] ss:$12 sps:$4 sm:$0xff]  }
 0x3cf   : > { %7319 = vmatpush1.bf16.msra.mxu1 %v18840_v7  ;;  %v18871_v7 = vld [vmem:[%s25525_s3 + $0xc88] ss:$20 sps:$4 sm:$0xff]  }
 0x3d0   : > { %17402 = vmatpush3.bf16.msra.mxu0 %v18844_v52  ;;  %7320 = vmatprep.subr.bf16.mxu1 %v18847_v40  ;;  %v18903_v52 = vld [vmem:[%s25527_s5 + $0x360] ss:$12 sps:$4 sm:$0xff]  }
 0x3d1   : > { %17403 = vmatprep.subr.bf16.mxu0 %v18848_v43  ;;  %v18908_v40 = vld [vmem:[%s25527_s5 + $0x4cc] ss:$12 sps:$4 sm:$0xff]   ;;  %v18874_v43 = vld [vmem:[%s25525_s3 + $0xee8] ss:$20 sps:$4 sm:$0xff]  }
 0x3d3   : > { %7321 = vmatpush1.bf16.msra.mxu1 %v18845_v55  ;;  %v18906_v55 = vld [vmem:[%s25527_s5 + $0x4c8] ss:$12 sps:$4 sm:$0xff]  }
 0x3d4   : > { %17404 = vmatpush3.bf16.msra.mxu0 %v18849_v6  ;;  %7322 = vmatprep.subr.bf16.mxu1 %v18852_v56  ;;  %v18911_v6 = vld [vmem:[%s25527_s5 + $0x4b4] ss:$12 sps:$4 sm:$0xff]  }
 0x3d5   : > { %8444 = vmatprep.subr.bf16.mxu0 %v18884_v57  ;;  %v18875_v56 = vld [vmem:[%s25525_s3 + $0xec0] ss:$20 sps:$4 sm:$0xff]   ;;  %v18909_v57 = vld [vmem:[%s25527_s5 + $0x4b0] ss:$12 sps:$4 sm:$0xff]  }
 0x3d6   : > { %v5357_v10 = vpop.f32.mrf.mxu1 }
 0x3d7   : > { %v22801_v46 = vadd.f32 %v5357_v10, %v22605_v49  ;;  %7425 = vmatmul.mubr.bf16.vlgmr.msra.gmra.mxu0 %v22574_v61  ;;  %7323 = vmatpush2.bf16.msra.mxu1 %v18850_v0  ;;  %v18890_v49 = vld [vmem:[%s25527_s5 + $0x3dc] ss:$12 sps:$4 sm:$0xff]   ;;  %v22911_v0 = vpop.f32.mrf.mxu0 }
 0x3d8   : > { %v17673_v42 = vpop.f32.mrf.mxu1  ;;  %7324 = vmatprep.subr.bf16.mxu1 %v18855_v1  ;;  %8445 = vmatpush1.bf16.msra.mxu0 %v18882_v2  ;;  %v18876_v1 = vld [vmem:[%s25525_s3 + $0xe98] ss:$20 sps:$4 sm:$0xff]  }
 0x3d9   : > { %8446 = vmatprep.subr.bf16.mxu0 %v18887_v13  ;;  %v18912_v2 = vld [vmem:[%s25527_s5 + $0x498] ss:$12 sps:$4 sm:$0xff]   ;;  %v22923_v10 = vpop.f32.mrf.mxu0  ;;  %v18915_v42 = vld [vmem:[%s25527_s5 + $0x480] ss:$12 sps:$4 sm:$0xff]  }
 0x3da   : > { %v5360_v60 = vpop.f32.mrf.mxu1  ;;  %v18917_v13 = vld [vmem:[%s25527_s5 + $0x484] ss:$12 sps:$4 sm:$0xff]  }
 0x3db   : > { %v22817_v48 = vadd.f32 %v5360_v60, %v22620_v54  ;;  %7325 = vmatpush2.bf16.msra.mxu1 %v18853_v45  ;;  %v18893_v54 = vld [vmem:[%s25527_s5 + $0x3c4] ss:$12 sps:$4 sm:$0xff]   ;;  %v18918_v60 = vld [vmem:[%s25527_s5 + $0x468] ss:$12 sps:$4 sm:$0xff]  }
 0x3dc   : > { %v17674_v15 = vpop.f32.mrf.mxu1  ;;  %7326 = vmatprep.subr.bf16.mxu1 %v18858_v23  ;;  %8447 = vmatpush1.bf16.msra.mxu0 %v18885_v24  ;;  %v18877_v45 = vld [vmem:[%s25525_s3 + $0xe70] ss:$20 sps:$4 sm:$0xff]   ;;  %v18920_v23 = vld [vmem:[%s25527_s5 + $0x46c] ss:$12 sps:$4 sm:$0xff]   ;;  %v22935_v24 = vpop.f32.mrf.mxu0 }
 0x3dd   : > { %8448 = vmatprep.subr.bf16.mxu0 %v18890_v49  ;;  %v18878_v49 = vld [vmem:[%s25525_s3 + $0xe48] ss:$20 sps:$4 sm:$0xff]  }
 0x3de   : > { %v22947_v15 = vpop.f32.mrf.mxu0 }
 0x3df   : > { %7327 = vmatpush2.bf16.msra.mxu1 %v18856_v25  ;;  %v18923_v25 = vld [vmem:[%s25527_s5 + $0x454] ss:$12 sps:$4 sm:$0xff]  }
 0x3e0   : > { %7328 = vmatprep.subr.bf16.mxu1 %v18861_v18  ;;  %8449 = vmatpush1.bf16.msra.mxu0 %v18888_v63  ;;  %v18879_v18 = vld [vmem:[%s25525_s3 + $0xe20] ss:$20 sps:$4 sm:$0xff]   ;;  %v18921_v63 = vld [vmem:[%s25527_s5 + $0x450] ss:$12 sps:$4 sm:$0xff]  }
 0x3e1   : > { %8450 = vmatprep.subr.bf16.mxu0 %v18893_v54 }
 0x3e3   : > { %7329 = vmatpush2.bf16.msra.mxu1 %v18859_v17  ;;  %v18926_v17 = vld [vmem:[%s25527_s5 + $0x43c] ss:$12 sps:$4 sm:$0xff]  }
 0x3e4   : > { %7330 = vmatprep.subr.bf16.mxu1 %v18864_v47  ;;  %8451 = vmatpush1.bf16.msra.mxu0 %v18891_v21  ;;  %v18880_v47 = vld [vmem:[%s25525_s3 + $0xdf8] ss:$20 sps:$4 sm:$0xff]  }
 0x3e5   : > { %8452 = vmatprep.subr.bf16.mxu0 %v18896_v22  ;;  %v18924_v21 = vld [vmem:[%s25527_s5 + $0x438] ss:$12 sps:$4 sm:$0xff]  }
 0x3e7   : > { %7331 = vmatpush2.bf16.msra.mxu1 %v18862_v29  ;;  %v18929_v29 = vld [vmem:[%s25527_s5 + $0x424] ss:$12 sps:$4 sm:$0xff]  }
 0x3e8   : > { %7332 = vmatprep.subr.bf16.mxu1 %v18867_v3  ;;  %8453 = vmatpush1.bf16.msra.mxu0 %v18894_v12  ;;  %v18881_v3 = vld [vmem:[%s25525_s3 + $0xdd0] ss:$20 sps:$4 sm:$0xff]   ;;  %v18927_v12 = vld [vmem:[%s25527_s5 + $0x420] ss:$12 sps:$4 sm:$0xff]  }
 0x3e9   : > { %8454 = vmatprep.subr.bf16.mxu0 %v18899_v58  ;;  %v18932_v58 = vld [vmem:[%s25527_s5 + $0x58c] ss:$12 sps:$4 sm:$0xff]  }
 0x3eb   : > { %7333 = vmatpush2.bf16.msra.mxu1 %v18865_v32 }
 0x3ec   : > { %7334 = vmatprep.subr.bf16.mxu1 %v18870_v36  ;;  %8455 = vmatpush1.bf16.msra.mxu0 %v18897_v38  ;;  %v18930_v36 = vld [vmem:[%s25527_s5 + $0x588] ss:$12 sps:$4 sm:$0xff]  }
 0x3ed   : > { %8456 = vmatprep.subr.bf16.mxu0 %v18902_v39  ;;  %v18935_v38 = vld [vmem:[%s25527_s5 + $0x574] ss:$12 sps:$4 sm:$0xff]  }
 0x3ef   : > { %7335 = vmatpush2.bf16.msra.mxu1 %v18868_v33 }
 0x3f0   : > { %7336 = vmatprep.subr.bf16.mxu1 %v18873_v30  ;;  %8457 = vmatpush1.bf16.msra.mxu0 %v18900_v51  ;;  %v18933_v30 = vld [vmem:[%s25527_s5 + $0x570] ss:$12 sps:$4 sm:$0xff]  }
 0x3f1   : > { %8458 = vmatprep.subr.bf16.mxu0 %v18905_v14  ;;  %v18938_v51 = vld [vmem:[%s25527_s5 + $0x55c] ss:$12 sps:$4 sm:$0xff]  }
 0x3f3   : > { %7337 = vmatpush2.bf16.msra.mxu1 %v18871_v7 }
 0x3f4   : > { %17695 = vmatprep.subr.bf16.mxu1 %v20009_v9  ;;  %8459 = vmatpush1.bf16.msra.mxu0 %v18903_v52 }
 0x3f5   : > { %8460 = vmatprep.subr.bf16.mxu0 %v18908_v40  ;;  %v18941_v40 = vld [vmem:[%s25527_s5 + $0x544] ss:$12 sps:$4 sm:$0xff]  }
 0x3f6   : > { %7339 = vmatmul.mubr.bf16.vlgmr.msra.gmra.mxu1 %v22574_v61  ;;  %v18914_v61 = vld [vmem:[%s25527_s5 + $0x49c] ss:$12 sps:$4 sm:$0xff]  }
 0x3f7   : > { %17696 = vmatpush3.bf16.msra.mxu1 %v18874_v43  ;;  %17711 = vmatprep.mubr.msk.bf16.mxu1 %vm20010_vm1, %v20009_v9  ;;  %v22956_v54 = vpop.f32.mrf.mxu0 }
 0x3f8   : > { %17697 = vmatprep.subr.bf16.mxu1 %v20009_v9  ;;  %8461 = vmatpush2.bf16.msra.mxu0 %v18906_v55 }
 0x3f9   : > { %8462 = vmatprep.subr.bf16.mxu0 %v18911_v6  ;;  %v22968_v22 = vpop.f32.mrf.mxu0  ;;  %v18939_v6 = vld [vmem:[%s25527_s5 + $0x540] ss:$12 sps:$4 sm:$0xff]  }
 0x3fb   : > { %17698 = vmatpush3.bf16.msra.mxu1 %v18875_v56  ;;  %v22983_v32 = vpop.f32.mrf.mxu0  ;;  %v18944_v56 = vld [vmem:[%s25527_s5 + $0x52c] ss:$12 sps:$4 sm:$0xff]  }
 0x3fc   : > { %17699 = vmatprep.subr.bf16.mxu1 %v20009_v9  ;;  %8463 = vmatpush2.bf16.msra.mxu0 %v18909_v57  ;;  %v18942_v57 = vld [vmem:[%s25527_s5 + $0x528] ss:$12 sps:$4 sm:$0xff]  }
 0x3fd   : > { %8464 = vmatprep.subr.bf16.mxu0 %v18914_v61  ;;  %v22991_v39 = vpop.f32.mrf.mxu0  ;;  %v18947_v61 = vld [vmem:[%s25527_s5 + $0x514] ss:$12 sps:$4 sm:$0xff]  }
 0x3ff   : > { %17700 = vmatpush3.bf16.msra.mxu1 %v18876_v1  ;;  %v18945_v1 = vld [vmem:[%s25527_s5 + $0x510] ss:$12 sps:$4 sm:$0xff]  }
 0x400   : > { %17701 = vmatprep.subr.bf16.mxu1 %v20009_v9  ;;  %8465 = vmatpush2.bf16.msra.mxu0 %v18912_v2  ;;  %v23025_v2 = vpop.f32.mrf.mxu1 }
 0x401   : > { %8466 = vmatprep.subr.bf16.mxu0 %v18917_v13  ;;  %v18950_v13 = vld [vmem:[%s25527_s5 + $0x4fc] ss:$12 sps:$4 sm:$0xff]  }
 0x403   : > { %17702 = vmatpush3.bf16.msra.mxu1 %v18877_v45  ;;  %v18948_v45 = vld [vmem:[%s25527_s5 + $0x4f8] ss:$12 sps:$4 sm:$0xff]  }
 0x404   : > { %17703 = vmatprep.subr.bf16.mxu1 %v20009_v9  ;;  %8467 = vmatpush2.bf16.msra.mxu0 %v18915_v42  ;;  %v23033_v42 = vpop.f32.mrf.mxu1 }
 0x405   : > { %8468 = vmatprep.subr.bf16.mxu0 %v18920_v23  ;;  %v18953_v23 = vld [vmem:[%s25527_s5 + $0x4e4] ss:$12 sps:$4 sm:$0xff]  }
 0x407   : > { %17704 = vmatpush3.bf16.msra.mxu1 %v18878_v49  ;;  %v18951_v49 = vld [vmem:[%s25527_s5 + $0x4e0] ss:$12 sps:$4 sm:$0xff]  }
 0x408   : > { %17705 = vmatprep.subr.bf16.mxu1 %v20009_v9  ;;  %8469 = vmatpush2.bf16.msra.mxu0 %v18918_v60  ;;  %v23041_v60 = vpop.f32.mrf.mxu1 }
 0x409   : > { %8470 = vmatprep.subr.bf16.mxu0 %v18923_v25  ;;  %v18956_v25 = vld [vmem:[%s25527_s5 + $0x64c] ss:$12 sps:$4 sm:$0xff]  }
 0x40b   : > { %17706 = vmatpush3.bf16.msra.mxu1 %v18879_v18  ;;  %v18954_v18 = vld [vmem:[%s25527_s5 + $0x648] ss:$12 sps:$4 sm:$0xff]  }
 0x40c   : > { %17707 = vmatprep.subr.bf16.mxu1 %v20009_v9  ;;  %8471 = vmatpush2.bf16.msra.mxu0 %v18921_v63  ;;  %v23049_v63 = vpop.f32.mrf.mxu1 }
 0x40d   : > { %8472 = vmatprep.subr.bf16.mxu0 %v18926_v17  ;;  %v18959_v17 = vld [vmem:[%s25527_s5 + $0x634] ss:$12 sps:$4 sm:$0xff]  }
 0x40f   : > { %17708 = vmatpush3.bf16.msra.mxu1 %v18880_v47 }
 0x410   : > { %17709 = vmatprep.subr.bf16.mxu1 %v20009_v9  ;;  %8473 = vmatpush2.bf16.msra.mxu0 %v18924_v21  ;;  %v5274_v21 = vadd.f32 %v22531_v34, %v22688_v31 }
 0x411   : > { %8474 = vmatprep.subr.bf16.mxu0 %v18929_v29 }
 0x413   : > { %17710 = vmatpush3.bf16.msra.mxu1 %v18881_v3  ;;  %v18957_v3 = vld [vmem:[%s25527_s5 + $0x630] ss:$12 sps:$4 sm:$0xff]  }
 0x414   : > { %8475 = vmatpush2.bf16.msra.mxu0 %v18927_v12  ;;  %8485 = vmatprep.subr.bf16.mxu1 %v18932_v58  ;;  %v18962_v58 = vld [vmem:[%s25527_s5 + $0x61c] ss:$12 sps:$4 sm:$0xff]  }
 0x416   : > { %17712 = vmatmul.mubr.bf16.vlgmr.msra.gmra.mxu1 %v22675_v59  ;;  %v18936_v59 = vld [vmem:[%s25527_s5 + $0x558] ss:$12 sps:$4 sm:$0xff]  }
 0x417   : > { %v17374_v33 = vpop.f32.mrf.mxu0  ;;  %8486 = vmatpush1.bf16.msra.mxu1 %v18930_v36  ;;  %v5276_v36 = vadd.f32 %v22543_v26, %v22703_v28  ;;  %v18965_v26 = vld [vmem:[%s25527_s5 + $0x604] ss:$12 sps:$4 sm:$0xff]  }
 0x418   : > { %8487 = vmatprep.subr.bf16.mxu1 %v18935_v38 }
 0x419   : > { %v17375_v14 = vpop.f32.mrf.mxu0 }
 0x41a   : > { %v23000_v7 = vadd.f32 %v17375_v14, %v17374_v33 }
 0x41b   : > { %v17377_v52 = vpop.f32.mrf.mxu0  ;;  %8488 = vmatpush1.bf16.msra.mxu1 %v18933_v30 }
 0x41c   : > { %8489 = vmatprep.subr.bf16.mxu1 %v18938_v51  ;;  %v18960_v51 = vld [vmem:[%s25527_s5 + $0x618] ss:$12 sps:$4 sm:$0xff]  }
 0x41d   : > { %v17378_v43 = vpop.f32.mrf.mxu0 }
 0x41e   : > { %v23008_v55 = vadd.f32 %v17378_v43, %v17377_v52  ;;  %v18966_v52 = vld [vmem:[%s25527_s5 + $0x5e8] ss:$12 sps:$4 sm:$0xff]   ;;  %v18977_v43 = vld [vmem:[%s25527_s5 + $0x5a4] ss:$12 sps:$4 sm:$0xff]  }
 0x41f   : > { %8490 = vmatpush1.bf16.msra.mxu1 %v18936_v59  ;;  %v18974_v59 = vld [vmem:[%s25527_s5 + $0x5bc] ss:$12 sps:$4 sm:$0xff]  }
 0x420   : > { %8491 = vmatprep.subr.bf16.mxu1 %v18941_v40  ;;  %v18972_v40 = vld [vmem:[%s25527_s5 + $0x5b8] ss:$12 sps:$4 sm:$0xff]  }
 0x423   : > { %8492 = vmatpush1.bf16.msra.mxu1 %v18939_v6  ;;  %v18975_v6 = vld [vmem:[%s25527_s5 + $0x5a0] ss:$12 sps:$4 sm:$0xff]  }
 0x424   : > { %8493 = vmatprep.subr.bf16.mxu1 %v18944_v56  ;;  %v18978_v56 = vld [vmem:[%s25527_s5 + $0x4d0] ss:$12 sps:$4 sm:$0xff]  }
 0x427   : > { %8494 = vmatpush1.bf16.msra.mxu1 %v18942_v57 }
 0x428   : > { %8495 = vmatprep.subr.bf16.mxu1 %v18947_v61 }
 0x42b   : > { %8496 = vmatpush1.bf16.msra.mxu1 %v18945_v1 }
 0x42c   : > { %8497 = vmatprep.subr.bf16.mxu1 %v18950_v13 }
 0x42f   : > { %8498 = vmatpush1.bf16.msra.mxu1 %v18948_v45 }
 0x430   : > { %8499 = vmatprep.subr.bf16.mxu1 %v18953_v23  ;;  %v18987_v23 = vld [vmem:[%s25527_s5 + $0x6ac] ss:$12 sps:$4 sm:$0xff]  }
 0x431   : > { %8534 = vmatprep.subr.bf16.mxu0 %v18987_v23  ;;  %v19002_v23 = vld [vmem:[%s25527_s5 + $0x664] ss:$12 sps:$4 sm:$0xff]  }
 0x433   : > { %8500 = vmatpush1.bf16.msra.mxu1 %v18951_v49 }
 0x434   : > { %8501 = vmatprep.subr.bf16.mxu1 %v18956_v25 }
 0x436   : > { %v6271_v47 = vpop.f32.mrf.mxu1 }
 0x437   : > { %v6315_v29 = vadd.f32 %v22956_v54, %v6271_v47  ;;  %8502 = vmatpush2.bf16.msra.mxu1 %v18954_v18  ;;  %v5278_v54 = vadd.f32 %v22558_v53, %v22711_v27  ;;  %v18963_v27 = vld [vmem:[%s25527_s5 + $0x600] ss:$12 sps:$4 sm:$0xff]  }
 0x438   : > { %v6273_v12 = vpop.f32.mrf.mxu1  ;;  %8503 = vmatprep.subr.bf16.mxu1 %v18959_v17 }
 0x439   : > { %v23065_v38 = vadd.f32 %v6315_v29, %v5274_v21  ;;  %v6317_v34 = vadd.f32 %v22968_v22, %v6273_v12  ;;  %v6231_v21 = vadd.f32 %v23033_v42, %v22923_v10 }
 0x43a   : > { %v6275_v31 = vpop.f32.mrf.mxu1 }
 0x43b   : > { %v23070_v33 = vadd.f32 %v6317_v34, %v5276_v36  ;;  %v6319_v30 = vadd.f32 %v22983_v32, %v6275_v31  ;;  %8504 = vmatpush2.bf16.msra.mxu1 %v18957_v3  ;;  %v18968_v32 = vld [vmem:[%s25527_s5 + $0x5ec] ss:$12 sps:$4 sm:$0xff]   ;;  %v6233_v3 = vadd.f32 %v23041_v60, %v22935_v24  ;;  %v6406_v42 = vadd.f32 %v6231_v21, %v22485_v19 }
 0x43c   : > { %v6277_v14 = vpop.f32.mrf.mxu1  ;;  %8505 = vmatprep.subr.bf16.mxu1 %v18962_v58  ;;  %v6235_v58 = vadd.f32 %v23049_v63, %v22947_v15 }
 0x43d   : > { %v23079_v28 = vadd.f32 %v6319_v30, %v5278_v54  ;;  %v6321_v22 = vadd.f32 %v22991_v39, %v6277_v14  ;;  %v18969_v39 = vld [vmem:[%s25527_s5 + $0x5d0] ss:$12 sps:$4 sm:$0xff]   ;;  %v6410_v34 = vadd.f32 %v6233_v3, %v22493_v20 }
 0x43f   : > { %v23083_v53 = vadd.f32 %v6321_v22, %v22726_v4  ;;  %8506 = vmatpush2.bf16.msra.mxu1 %v18960_v51  ;;  %v18971_v4 = vld [vmem:[%s25527_s5 + $0x5d4] ss:$12 sps:$4 sm:$0xff]  }
 0x440   : > { %8507 = vmatprep.subr.bf16.mxu1 %v18965_v26 }
 0x443   : > { %8508 = vmatpush2.bf16.msra.mxu1 %v18963_v27 }
 0x444   : > { %8509 = vmatprep.subr.bf16.mxu1 %v18968_v32 }
 0x447   : > { %8510 = vmatpush2.bf16.msra.mxu1 %v18966_v52 }
 0x448   : > { %8511 = vmatprep.subr.bf16.mxu1 %v18971_v4 }
 0x44b   : > { %8512 = vmatpush2.bf16.msra.mxu1 %v18969_v39 }
 0x44c   : > { %8513 = vmatprep.subr.bf16.mxu1 %v18974_v59 }
 0x44f   : > { %8514 = vmatpush2.bf16.msra.mxu1 %v18972_v40 }
 0x450   : > { %8515 = vmatprep.subr.bf16.mxu1 %v18977_v43 }
 0x453   : > { %8516 = vmatpush2.bf16.msra.mxu1 %v18975_v6  ;;  %v18985_v6 = vld [vmem:[%s25527_s5 + $0x6a8] ss:$12 sps:$4 sm:$0xff]  }
 0x454   : > { %17420 = vmatprep.subr.bf16.mxu1 %v18978_v56 }
 0x456   : > { %v6398_v57 = vpop.f32.mrf.mxu1 }
 0x457   : > { %v6399_v61 = vadd.f32 %v23000_v7, %v6398_v57  ;;  %v7254_v17 = vpop.f32.mrf.mxu0  ;;  %v6229_v7 = vadd.f32 %v23025_v2, %v22911_v0  ;;  %v18992_v57 = vld [vmem:[%s25527_s5 + $0x694] ss:$12 sps:$4 sm:$0xff]  }
 0x458   : > { %v17693_v1 = vpop.f32.mrf.mxu1 }
 0x459   : > { %v23117_v13 = vadd.f32 %v6399_v61, %v22801_v46  ;;  %v7256_v47 = vpop.f32.mrf.mxu0  ;;  %v23131_v46 = vld [vmem:[%s25526_s4] sm:$0x1f]  ;;  %v18990_v61 = vld [vmem:[%s25527_s5 + $0x690] ss:$12 sps:$4 sm:$0xff]  }
 0x45a   : > { %v6401_v45 = vpop.f32.mrf.mxu1  ;;  %v7489_v0 = vrot.slane %v23131_v46, %v21368_v16  ;;  %v18997_v1 = vld [vmem:[%s25527_s5 + $0x67c] ss:$12 sps:$4 sm:$0xff]  }
 0x45b   : > { %v6402_v49 = vadd.f32 %v23008_v55, %v6401_v45  ;;  %v4316_v55 = vadd.f32 %v22249_v8, %v22096_v62  ;;  %v7258_v36 = vpop.f32.mrf.mxu0  ;;  %v18995_v45 = vld [vmem:[%s25527_s5 + $0x678] ss:$12 sps:$4 sm:$0xff]  }
 0x45c   : > { %v17694_v25 = vpop.f32.mrf.mxu1 }
 0x45d   : > { %v23124_v18 = vadd.f32 %v6402_v49, %v22817_v48  ;;  %v6405_v48 = vadd.f32 %v6229_v7, %v22476_v11  ;;  %v5151_v2 = vadd.f32 %v22525_v50, %v4316_v55  ;;  %v7493_v11 = vrot.slane %v23131_v46, %v21373_v44  ;;  %v7260_v51 = vpop.f32.mrf.mxu0  ;;  %v19000_v49 = vld [vmem:[%s25527_s5 + $0x660] ss:$12 sps:$4 sm:$0xff]   ;;  %v19006_v25 = vld [vmem:[%s25527_s5 + $0x650] ss:$12 sps:$4 sm:$0xff]  }
 0x45f   : > { %v5194_v24 = vadd.f32 %v22673_v5, %v5151_v2 }
 0x461   : > { %v6411_v30 = vadd.f32 %v6235_v58, %v5194_v24 }
 0x476   : > { %v7297_v29 = vpop.f32.mrf.mxu1 }
 0x477   : > { %v7298_v12 = vadd.f32 %v7297_v29, %v7254_v17  ;;  %v7383_v17 = vpop.f32.mrf.mxu0  ;;  %v7497_v29 = vrot.slane %v23131_v46, %v21398_v35 }
 0x478   : > { %v7299_v10 = vpop.f32.mrf.mxu1 }
 0x479   : > { %v7474_v62 = vadd.f32 %v7298_v12, %v6405_v48  ;;  %v7300_v8 = vadd.f32 %v7299_v10, %v7256_v47  ;;  %v7385_v7 = vpop.f32.mrf.mxu0  ;;  %v7500_v47 = vsub.s32 3, %v21355_v37 }
 0x47a   : > { %v7301_v60 = vpop.f32.mrf.mxu1 }
 0x47b   : > { %v7511_v31 = vadd.f32 %v7489_v0, %v7474_v62  ;;  %v7475_v54 = vadd.f32 %v7300_v8, %v6406_v42  ;;  %v7302_v50 = vadd.f32 %v7301_v60, %v7258_v36  ;;  %v7387_v48 = vpop.f32.mrf.mxu0  ;;  %v7501_v2 = vrot.slane %v23131_v46, %v7500_v47 }
 0x47c   : > { %v7303_v15 = vpop.f32.mrf.mxu1 }
 0x47d   : > { %v7521_v63 = vmax.f32 %v7511_v31, 0.0  ;;  %v7512_v14 = vadd.f32 %v7493_v11, %v7475_v54  ;;  %v7479_v26 = vadd.f32 %v7302_v50, %v6410_v34  ;;  %v7304_v19 = vadd.f32 %v7303_v15, %v7260_v51  ;;  %v7389_v62 = vpop.f32.mrf.mxu0 }
 0x47f   : > { %7531 = vst [vmem:[#allocation3] sm:$0xff] %v7521_v63  ;;  %v7522_v22 = vmax.f32 %v7512_v14, 0.0  ;;  %v7516_v27 = vadd.f32 %v7489_v0, %v7479_v26  ;;  %v7480_v32 = vadd.f32 %v7304_v19, %v6411_v30 }
 0x481   : > { %7532 = vst [vmem:[#allocation3 + $0x8] sm:$0xff] %v7522_v22  ;;  %v7526_v52 = vmax.f32 %v7516_v27, 0.0  ;;  %v7517_v5 = vadd.f32 %v7493_v11, %v7480_v32  ;;  %v18981_v32 = vld [vmem:[%s25527_s5 + $0x3f8] ss:$12 sps:$4 sm:$0xff]  }
 0x483   : > { %7536 = vst [vmem:[#allocation3 + $0x28] sm:$0x1] %v7526_v52  ;;  %v7527_v4 = vmax.f32 %v7517_v5, 0.0  ;;  %v18982_v52 = vld [vmem:[%s25527_s5 + $0x4a0] ss:$12 sps:$4 sm:$0xff]  }
 0x485   : > { %7537 = vst [vmem:[#allocation3 + $0x30] sm:$0x1] %v7527_v4  ;;  %v7504_v4 = vsub.s32 4, %v21355_v37 }
 0x486   : > { %v7696_v20 = vld [vmem:[#allocation3] sm:$0x7c] }
 0x487   : > { %v7701_v59 = vpack.c.bf16 %v7696_v20, %v7696_v20  ;;  %v18983_v20 = vld [vmem:[%s25527_s5 + $0x3e0] ss:$12 sps:$4 sm:$0xff]  }
 0x488   : > { %v7697_v39 = vld [vmem:[#allocation3 + $0x8] sm:$0x7c] }
 0x489   : > { %v7702_v40 = vpack.c.bf16 %v7697_v39, %v7697_v39  ;;  %v23155_v56 = vrot.slane %v7701_v59, 1  ;;  %v18984_v39 = vld [vmem:[%s25527_s5 + $0x488] ss:$12 sps:$4 sm:$0xff]  }
 0x48b   : > { %v23150_v43 = vrot.slane %v7702_v40, 1 }
 0x48d   : > { %8476 = vmatprep.mubr.bf16.mxu0 %v23150_v43 }
 0x48e   : > { %8477 = vmatmul.mubr.bf16.vlgmr.msra.gmra.mxu0 %v23155_v56 }
 0x48f   : > { %8535 = vmatpush1.bf16.msra.mxu0 %v18985_v6  ;;  %8558 = vmatprep.mubr.bf16.mxu0 %v20008_v41 }
 0x490   : > { %8536 = vmatprep.subr.bf16.mxu0 %v18992_v57  ;;  %v7505_v57 = vrot.slane %v23131_v46, %v7504_v4  ;;  %v18993_v46 = vld [vmem:[%s25527_s5 + $0x3b0] ss:$12 sps:$4 sm:$0xff]   ;;  %v19030_v4 = vld [vmem:[%s25527_s5 + $0x1f8] ss:$12 sps:$4 sm:$0xff]  }
 0x493   : > { %8537 = vmatpush1.bf16.msra.mxu0 %v18990_v61  ;;  %v18988_v61 = vld [vmem:[%s25527_s5 + $0x3c8] ss:$12 sps:$4 sm:$0xff]  }
 0x494   : > { %8538 = vmatprep.subr.bf16.mxu0 %v18997_v1 }
 0x497   : > { %8539 = vmatpush1.bf16.msra.mxu0 %v18995_v45  ;;  %v17405_v26 = vpop.f32.mrf.mxu0  ;;  %v18989_v45 = vld [vmem:[%s25527_s5 + $0x470] ss:$12 sps:$4 sm:$0xff]  }
 0x498   : > { %8540 = vmatprep.subr.bf16.mxu0 %v19002_v23 }
 0x499   : > { %v17406_v27 = vpop.f32.mrf.mxu0 }
 0x49a   : > { %v17407_v59 = vadd.f32 %v17406_v27, %v17405_v26  ;;  %v19024_v26 = vld [vmem:[%s25527_s5 + $0x518] ss:$12 sps:$4 sm:$0xff]   ;;  %v19025_v27 = vld [vmem:[%s25527_s5 + $0x210] ss:$12 sps:$4 sm:$0xff]  }
 0x49b   : > { %8541 = vmatpush1.bf16.msra.mxu0 %v19000_v49  ;;  %v17408_v5 = vpop.f32.mrf.mxu0 }
 0x49c   : > { %17442 = vmatprep.subr.bf16.mxu0 %v19006_v25 }
 0x49d   : > { %v17409_v40 = vpop.f32.mrf.mxu0 }
 0x49e   : > { %v17410_v23 = vadd.f32 %v17409_v40, %v17408_v5  ;;  %v19033_v5 = vld [vmem:[%s25527_s5 + $0x5a8] ss:$12 sps:$4 sm:$0xff]   ;;  %v19035_v40 = vld [vmem:[%s25527_s5 + $0x1e0] ss:$12 sps:$4 sm:$0xff]  }
 0x4b6   : > { %v7340_v21 = vpop.f32.mrf.mxu1 }
 0x4b7   : > { %v7384_v55 = vadd.f32 %v7383_v17, %v7340_v21 }
 0x4b8   : > { %v7342_v3 = vpop.f32.mrf.mxu1 }
 0x4b9   : > { %v7476_v12 = vadd.f32 %v7384_v55, %v23065_v38  ;;  %v7386_v0 = vadd.f32 %v7385_v7, %v7342_v3  ;;  %v18994_v55 = vld [vmem:[%s25527_s5 + $0x458] ss:$12 sps:$4 sm:$0xff]  }
 0x4ba   : > { %v7344_v58 = vpop.f32.mrf.mxu1  ;;  %v18998_v3 = vld [vmem:[%s25527_s5 + $0x398] ss:$12 sps:$4 sm:$0xff]  }
 0x4bb   : > { %v7513_v36 = vadd.f32 %v7497_v29, %v7476_v12  ;;  %v7477_v10 = vadd.f32 %v7386_v0, %v23070_v33  ;;  %v7388_v42 = vadd.f32 %v7387_v48, %v7344_v58  ;;  %v18999_v12 = vld [vmem:[%s25527_s5 + $0x440] ss:$12 sps:$4 sm:$0xff]  }
 0x4bc   : > { %v7346_v8 = vpop.f32.mrf.mxu1 }
 0x4bd   : > { %v7523_v11 = vmax.f32 %v7513_v36, 0.0  ;;  %v7514_v24 = vadd.f32 %v7501_v2, %v7477_v10  ;;  %v7481_v60 = vadd.f32 %v7388_v42, %v23079_v28  ;;  %v7390_v34 = vadd.f32 %v7389_v62, %v7346_v8  ;;  %v18979_v28 = vld [vmem:[%s25527_s5 + $0x410] ss:$12 sps:$4 sm:$0xff]   ;;  %v19005_v36 = vld [vmem:[%s25527_s5 + $0x368] ss:$12 sps:$4 sm:$0xff]  }
 0x4be   : > { %v19007_v42 = vld [vmem:[%s25527_s5 + $0x590] ss:$12 sps:$4 sm:$0xff]   ;;  %v19008_v8 = vld [vmem:[%s25527_s5 + $0x638] ss:$12 sps:$4 sm:$0xff]  }
 0x4bf   : > { %7533 = vst [vmem:[#allocation3 + $0x10] sm:$0xff] %v7523_v11  ;;  %v7524_v31 = vmax.f32 %v7514_v24, 0.0  ;;  %v7518_v38 = vadd.f32 %v7497_v29, %v7481_v60  ;;  %v7482_v54 = vadd.f32 %v7390_v34, %v23083_v53  ;;  %v18980_v53 = vld [vmem:[%s25527_s5 + $0x4b8] ss:$12 sps:$4 sm:$0xff]   ;;  %v19009_v11 = vld [vmem:[%s25527_s5 + $0x6b0] ss:$12 sps:$4 sm:$0xff]  }
 0x4c0   : > { %v19010_v24 = vld [vmem:[%s25527_s5 + $0x578] ss:$12 sps:$4 sm:$0xff]   ;;  %v19011_v60 = vld [vmem:[%s25527_s5 + $0x620] ss:$12 sps:$4 sm:$0xff]  }
 0x4c1   : > { %7534 = vst [vmem:[#allocation3 + $0x18] sm:$0xff] %v7524_v31  ;;  %v7528_v50 = vmax.f32 %v7518_v38, 0.0  ;;  %v7519_v30 = vadd.f32 %v7501_v2, %v7482_v54  ;;  %v19004_v2 = vld [vmem:[%s25527_s5 + $0x428] ss:$12 sps:$4 sm:$0xff]   ;;  %v19012_v34 = vld [vmem:[%s25527_s5 + $0x698] ss:$12 sps:$4 sm:$0xff]  }
 0x4c2   : > { %v19013_v31 = vld [vmem:[%s25527_s5 + $0x560] ss:$12 sps:$4 sm:$0xff]   ;;  %v19016_v54 = vld [vmem:[%s25527_s5 + $0x548] ss:$12 sps:$4 sm:$0xff]  }
 0x4c3   : > { %7538 = vst [vmem:[#allocation3 + $0x38] sm:$0x1] %v7528_v50  ;;  %v7529_v51 = vmax.f32 %v7519_v30, 0.0  ;;  %v19015_v38 = vld [vmem:[%s25527_s5 + $0x680] ss:$12 sps:$4 sm:$0xff]  }
 0x4c4   : > { %v19017_v50 = vld [vmem:[%s25527_s5 + $0x5f0] ss:$12 sps:$4 sm:$0xff]   ;;  %v19018_v30 = vld [vmem:[%s25527_s5 + $0x668] ss:$12 sps:$4 sm:$0xff]  }
 0x4c5   : > { %7539 = vst [vmem:[#allocation3 + $0x40] sm:$0x1] %v7529_v51  ;;  %v19019_v51 = vld [vmem:[%s25527_s5 + $0x530] ss:$12 sps:$4 sm:$0xff]  }
 0x4c6   : > { %v7698_v33 = vld [vmem:[#allocation3 + $0x10] sm:$0x7c] }
 0x4c7   : > { %v7703_v63 = vpack.c.bf16 %v7698_v33, %v7698_v33  ;;  %v19022_v33 = vld [vmem:[%s25527_s5 + $0x22c] ss:$12 sps:$4 sm:$0xff]  }
 0x4c8   : > { %v7699_v15 = vld [vmem:[#allocation3 + $0x18] sm:$0x7c] }
 0x4c9   : > { %v7704_v14 = vpack.c.bf16 %v7699_v15, %v7699_v15  ;;  %v23196_v22 = vrot.slane %v7703_v63, 1  ;;  %v19023_v15 = vld [vmem:[%s25527_s5 + $0x5d8] ss:$12 sps:$4 sm:$0xff]   ;;  %v7545_v63 = vld [vmem:[#allocation3 + $0x18] sm:$0x1f] }
 0x4cb   : > { %v23191_v19 = vrot.slane %v7704_v14, 1  ;;  %v19020_v14 = vld [vmem:[%s25527_s5 + $0x228] ss:$12 sps:$4 sm:$0xff]  }
 0x4cd   : > { %8517 = vmatprep.mubr.bf16.mxu1 %v23191_v19 }
 0x4ce   : > { %8518 = vmatmul.mubr.bf16.vlgmr.msra.gmra.mxu1 %v23196_v22 }
 0x4cf   : > { %17421 = vmatpush3.bf16.msra.mxu1 %v18979_v28  ;;  %8599 = vmatprep.mubr.bf16.mxu1 %v23150_v43  ;;  %v23311_v28 = vpack.c.bf16 %v7545_v63, %v7545_v63  ;;  %v19098_v63 = vld [vmem:[%s25527_s5 + $0x138] ss:$12 sps:$4 sm:$0xff]  }
 0x4d0   : > { %17422 = vmatprep.subr.bf16.mxu1 %v18980_v53  ;;  %v19028_v53 = vld [vmem:[%s25527_s5 + $0x5c0] ss:$12 sps:$4 sm:$0xff]  }
 0x4d3   : > { %17423 = vmatpush3.bf16.msra.mxu1 %v18981_v32  ;;  %v19029_v32 = vld [vmem:[%s25527_s5 + $0x500] ss:$12 sps:$4 sm:$0xff]  }
 0x4d4   : > { %17424 = vmatprep.subr.bf16.mxu1 %v18982_v52  ;;  %v19032_v52 = vld [vmem:[%s25527_s5 + $0x1fc] ss:$12 sps:$4 sm:$0xff]  }
 0x4d6   : > { %v7467_v43 = vpop.f32.mrf.mxu1 }
 0x4d7   : > { %v7468_v6 = vadd.f32 %v17407_v59, %v7467_v43  ;;  %17425 = vmatpush3.bf16.msra.mxu1 %v18983_v20  ;;  %v19034_v20 = vld [vmem:[%s25527_s5 + $0x4e8] ss:$12 sps:$4 sm:$0xff]   ;;  %v19040_v59 = vld [vmem:[%s25527_s5 + $0xac] ss:$12 sps:$4 sm:$0xff]  }
 0x4d8   : > { %v17713_v1 = vpop.f32.mrf.mxu1  ;;  %17426 = vmatprep.subr.bf16.mxu1 %v18984_v39  ;;  %v19037_v39 = vld [vmem:[%s25527_s5 + $0x1e4] ss:$12 sps:$4 sm:$0xff]   ;;  %v7543_v43 = vld [vmem:[#allocation3 + $0x8] sm:$0x1f] }
 0x4d9   : > { %v7478_v49 = vadd.f32 %v7468_v6, %v23117_v13  ;;  %v19038_v6 = vld [vmem:[%s25527_s5 + $0xa8] ss:$12 sps:$4 sm:$0xff]   ;;  %v23354_v1 = vpack.c.bf16 %v7543_v43, %v7543_v43  ;;  %v19114_v43 = vld [vmem:[%s25527_s5 + $0xf0] ss:$12 sps:$4 sm:$0xff]  }
 0x4da   : > { %v7470_v25 = vpop.f32.mrf.mxu1 }
 0x4db   : > { %v7515_v17 = vadd.f32 %v7505_v57, %v7478_v49  ;;  %v7471_v7 = vadd.f32 %v17410_v23, %v7470_v25  ;;  %17427 = vmatpush3.bf16.msra.mxu1 %v18988_v61  ;;  %v19046_v61 = vld [vmem:[%s25527_s5 + $0x94] ss:$12 sps:$4 sm:$0xff]   ;;  %v19044_v23 = vld [vmem:[%s25527_s5 + $0x90] ss:$12 sps:$4 sm:$0xff]  }
 0x4dc   : > { %v17714_v21 = vpop.f32.mrf.mxu1  ;;  %17428 = vmatprep.subr.bf16.mxu1 %v18989_v45  ;;  %v19041_v45 = vld [vmem:[%s25527_s5 + $0x1c8] ss:$12 sps:$4 sm:$0xff]   ;;  %v19047_v25 = vld [vmem:[%s25527_s5 + $0x1b0] ss:$12 sps:$4 sm:$0xff]  }
 0x4dd   : > { %v7525_v29 = vmax.f32 %v7515_v17, 0.0  ;;  %v7483_v48 = vadd.f32 %v7471_v7, %v23124_v18  ;;  %v19003_v18 = vld [vmem:[%s25527_s5 + $0x380] ss:$12 sps:$4 sm:$0xff]   ;;  %v19050_v17 = vld [vmem:[%s25527_s5 + $0x78] ss:$12 sps:$4 sm:$0xff]  }
 0x4de   : > { %v19049_v49 = vld [vmem:[%s25527_s5 + $0x1b4] ss:$12 sps:$4 sm:$0xff]   ;;  %v19055_v7 = vld [vmem:[%s25527_s5 + $0x19c] ss:$12 sps:$4 sm:$0xff]   ;;  %v19053_v21 = vld [vmem:[%s25527_s5 + $0x198] ss:$12 sps:$4 sm:$0xff]  }
 0x4df   : > { %7535 = vst.msk [vmem:[#allocation3 + $0x20] sm:$0xff] %vm1731_vm0, %v7525_v29  ;;  %v7520_v13 = vadd.f32 %v7505_v57, %v7483_v48  ;;  %17429 = vmatpush3.bf16.msra.mxu1 %v18993_v46  ;;  %v19043_v57 = vld [vmem:[%s25527_s5 + $0x1cc] ss:$12 sps:$4 sm:$0xff]   ;;  %v19058_v46 = vld [vmem:[%s25527_s5 + $0x64] ss:$12 sps:$4 sm:$0xff]  }
 0x4e0   : > { %17430 = vmatprep.subr.bf16.mxu1 %v18994_v55  ;;  %v19056_v55 = vld [vmem:[%s25527_s5 + $0x60] ss:$12 sps:$4 sm:$0xff]   ;;  %v19061_v29 = vld [vmem:[%s25527_s5 + $0x184] ss:$12 sps:$4 sm:$0xff]  }
 0x4e1   : > { %v7530_v0 = vmax.f32 %v7520_v13, 0.0  ;;  %v19064_v48 = vld [vmem:[%s25527_s5 + $0x4c] ss:$12 sps:$4 sm:$0xff]  }
 0x4e2   : > { %v19059_v13 = vld [vmem:[%s25527_s5 + $0x180] ss:$12 sps:$4 sm:$0xff]  }
 0x4e3   : > { %7541 = vst.msk [vmem:[#allocation3 + $0x48] sm:$0x1] %vm7540_vm2, %v7530_v0  ;;  %17431 = vmatpush3.bf16.msra.mxu1 %v18998_v3  ;;  %v19062_v3 = vld [vmem:[%s25527_s5 + $0x48] ss:$12 sps:$4 sm:$0xff]  }
 0x4e4   : > { %17432 = vmatprep.subr.bf16.mxu1 %v18999_v12  ;;  %v19067_v12 = vld [vmem:[%s25527_s5 + $0x2ec] ss:$12 sps:$4 sm:$0xff]   ;;  %v19070_v0 = vld [vmem:[%s25527_s5 + $0x34] ss:$12 sps:$4 sm:$0xff]  }
 0x4e6   : > { %v7700_v58 = vld [vmem:[#allocation3 + $0x20] sm:$0x7c] }
 0x4e7   : > { %17433 = vmatpush3.bf16.msra.mxu1 %v19003_v18  ;;  %v7705_v10 = vpack.c.bf16 %v7700_v58, %v7700_v58  ;;  %v19065_v18 = vld [vmem:[%s25527_s5 + $0x2e8] ss:$12 sps:$4 sm:$0xff]  }
 0x4e8   : > { %17434 = vmatprep.subr.bf16.mxu1 %v19004_v2  ;;  %v19068_v2 = vld [vmem:[%s25527_s5 + $0x30] ss:$12 sps:$4 sm:$0xff]   ;;  %v19073_v58 = vld [vmem:[%s25527_s5 + $0x2d4] ss:$12 sps:$4 sm:$0xff]  }
 0x4e9   : > { %v7860_v62 = vrot.slane %v7705_v10, 1  ;;  %v19071_v10 = vld [vmem:[%s25527_s5 + $0x2d0] ss:$12 sps:$4 sm:$0xff]  }
 0x4eb   : > { %17435 = vmatpush3.bf16.msra.mxu1 %v19005_v36  ;;  %16023 = vmatmul.mubr.msk.bf16.vlgmr.msra.gmra.mxu0 %vm1731_vm0, %v7860_v62  ;;  %v19076_v36 = vld [vmem:[%s25527_s5 + $0x1c] ss:$12 sps:$4 sm:$0xff]  }
 0x4ec   : > { %17443 = vmatpush3.bf16.msra.mxu0 %v19007_v42  ;;  %8639 = vmatprep.mubr.bf16.mxu0 %v23191_v19  ;;  %v19027_v19 = vld [vmem:[%s25527_s5 + $0x214] ss:$12 sps:$4 sm:$0xff]   ;;  %v19074_v42 = vld [vmem:[%s25527_s5 + $0x18] ss:$12 sps:$4 sm:$0xff]  }
 0x4ed   : > { %17715 = vmatprep.subr.bf16.mxu1 %v20009_v9  ;;  %17444 = vmatprep.subr.bf16.mxu0 %v19008_v8  ;;  %v19082_v8 = vld [vmem:[%s25527_s5 + $0x4] ss:$12 sps:$4 sm:$0xff]  }
 0x4ee   : > { %8600 = vmatmul.mubr.bf16.vlgmr.msra.gmra.mxu1 %v23155_v56  ;;  %v19014_v56 = vld [vmem:[%s25527_s5 + $0x608] ss:$12 sps:$4 sm:$0xff]  }
 0x4ef   : > { %17716 = vmatpush3.bf16.msra.mxu1 %v19009_v11  ;;  %17723 = vmatprep.mubr.msk.bf16.mxu1 %vm20010_vm1, %v20009_v9  ;;  %v19077_v11 = vld [vmem:[%s25527_s5 + $0x2b8] ss:$12 sps:$4 sm:$0xff]  }
 0x4f0   : > { %17445 = vmatpush3.bf16.msra.mxu0 %v19010_v24  ;;  %17717 = vmatprep.subr.bf16.mxu1 %v20009_v9  ;;  %v19080_v24 = vld [vmem:[%s25527_s5] ss:$12 sps:$4 sm:$0xff]  }
 0x4f1   : > { %17446 = vmatprep.subr.bf16.mxu0 %v19011_v60  ;;  %v19085_v60 = vld [vmem:[%s25527_s5 + $0x2a4] ss:$12 sps:$4 sm:$0xff]  }
 0x4f3   : > { %17718 = vmatpush3.bf16.msra.mxu1 %v19012_v34  ;;  %v19088_v34 = vld [vmem:[%s25527_s5 + $0x16c] ss:$12 sps:$4 sm:$0xff]  }
 0x4f4   : > { %17447 = vmatpush3.bf16.msra.mxu0 %v19013_v31  ;;  %17719 = vmatprep.subr.bf16.mxu1 %v20009_v9  ;;  %v19083_v31 = vld [vmem:[%s25527_s5 + $0x2a0] ss:$12 sps:$4 sm:$0xff]  }
 0x4f5   : > { %17448 = vmatprep.subr.bf16.mxu0 %v19014_v56  ;;  %v19086_v56 = vld [vmem:[%s25527_s5 + $0x168] ss:$12 sps:$4 sm:$0xff]  }
 0x4f7   : > { %17720 = vmatpush3.bf16.msra.mxu1 %v19015_v38  ;;  %v19091_v38 = vld [vmem:[%s25527_s5 + $0x28c] ss:$12 sps:$4 sm:$0xff]  }
 0x4f8   : > { %17449 = vmatpush3.bf16.msra.mxu0 %v19016_v54  ;;  %17721 = vmatprep.subr.bf16.mxu1 %v20009_v9  ;;  %v19094_v54 = vld [vmem:[%s25527_s5 + $0x154] ss:$12 sps:$4 sm:$0xff]  }
 0x4f9   : > { %17450 = vmatprep.subr.bf16.mxu0 %v19017_v50  ;;  %v19089_v50 = vld [vmem:[%s25527_s5 + $0x288] ss:$12 sps:$4 sm:$0xff]  }
 0x4fb   : > { %17722 = vmatpush3.bf16.msra.mxu1 %v19018_v30  ;;  %v19092_v30 = vld [vmem:[%s25527_s5 + $0x150] ss:$12 sps:$4 sm:$0xff]  }
 0x4fc   : > { %17451 = vmatpush3.bf16.msra.mxu0 %v19019_v51  ;;  %9307 = vmatprep.subr.bf16.mxu1 %v19022_v33  ;;  %v19097_v51 = vld [vmem:[%s25527_s5 + $0x274] ss:$12 sps:$4 sm:$0xff]   ;;  %v19100_v33 = vld [vmem:[%s25527_s5 + $0x13c] ss:$12 sps:$4 sm:$0xff]  }
 0x4fd   : > { %17452 = vmatprep.subr.bf16.mxu0 %v19023_v15  ;;  %v19095_v15 = vld [vmem:[%s25527_s5 + $0x270] ss:$12 sps:$4 sm:$0xff]  }
 0x4fe   : > { %17724 = vmatmul.mubr.msk.bf16.vlgmr.msra.gmra.mxu1 %vm1731_vm0, %v7860_v62  ;;  %v19079_v62 = vld [vmem:[%s25527_s5 + $0x2bc] ss:$12 sps:$4 sm:$0xff]  }
 0x4ff   : > { %9308 = vmatpush1.bf16.msra.mxu1 %v19020_v14  ;;  %9339 = vmatprep.mubr.bf16.mxu1 %v23311_v28  ;;  %v19103_v14 = vld [vmem:[%s25527_s5 + $0x25c] ss:$12 sps:$4 sm:$0xff]  }
 0x500   : > { %17453 = vmatpush3.bf16.msra.mxu0 %v19024_v26  ;;  %9309 = vmatprep.subr.bf16.mxu1 %v19027_v19  ;;  %v19106_v26 = vld [vmem:[%s25527_s5 + $0x124] ss:$12 sps:$4 sm:$0xff]  }
 0x501   : > { %17454 = vmatprep.subr.bf16.mxu0 %v19028_v53  ;;  %v19101_v19 = vld [vmem:[%s25527_s5 + $0x258] ss:$12 sps:$4 sm:$0xff]   ;;  %v19104_v53 = vld [vmem:[%s25527_s5 + $0x120] ss:$12 sps:$4 sm:$0xff]  }
 0x503   : > { %9310 = vmatpush1.bf16.msra.mxu1 %v19025_v27  ;;  %v19109_v27 = vld [vmem:[%s25527_s5 + $0x244] ss:$12 sps:$4 sm:$0xff]  }
 0x504   : > { %17455 = vmatpush3.bf16.msra.mxu0 %v19029_v32  ;;  %9311 = vmatprep.subr.bf16.mxu1 %v19032_v52  ;;  %v19112_v32 = vld [vmem:[%s25527_s5 + $0x10c] ss:$12 sps:$4 sm:$0xff]  }
 0x505   : > { %17456 = vmatprep.subr.bf16.mxu0 %v19033_v5  ;;  %v19107_v52 = vld [vmem:[%s25527_s5 + $0x240] ss:$12 sps:$4 sm:$0xff]   ;;  %v19110_v5 = vld [vmem:[%s25527_s5 + $0x108] ss:$12 sps:$4 sm:$0xff]  }
 0x507   : > { %9312 = vmatpush1.bf16.msra.mxu1 %v19030_v4  ;;  %v19113_v4 = vld [vmem:[%s25527_s5 + $0x170] ss:$12 sps:$4 sm:$0xff]  }
 0x508   : > { %17457 = vmatpush3.bf16.msra.mxu0 %v19034_v20  ;;  %9313 = vmatprep.subr.bf16.mxu1 %v19037_v39  ;;  %v7544_v20 = vld [vmem:[#allocation3 + $0x10] sm:$0x1f] }
 0x509   : > { %9266 = vmatprep.subr.bf16.mxu0 %v19040_v59  ;;  %v19116_v39 = vld [vmem:[%s25527_s5 + $0xf4] ss:$12 sps:$4 sm:$0xff]   ;;  %v19117_v59 = vld [vmem:[%s25527_s5 + $0xb0] ss:$12 sps:$4 sm:$0xff]  }
 0x50b   : > { %8640 = vmatmul.mubr.bf16.vlgmr.msra.gmra.mxu0 %v23196_v22  ;;  %9314 = vmatpush1.bf16.msra.mxu1 %v19035_v40  ;;  %v19052_v22 = vld [vmem:[%s25527_s5 + $0x7c] ss:$12 sps:$4 sm:$0xff]   ;;  %v23505_v40 = vpack.c.bf16 %v7544_v20, %v7544_v20 }
 0x50c   : > { %9267 = vmatpush1.bf16.msra.mxu0 %v19038_v6  ;;  %9298 = vmatprep.mubr.bf16.mxu0 %v23354_v1  ;;  %v19118_v6 = vld [vmem:[%s25527_s5 + $0x158] ss:$12 sps:$4 sm:$0xff]  }
 0x50d   : > { %9315 = vmatprep.subr.bf16.mxu1 %v19043_v57  ;;  %9268 = vmatprep.subr.bf16.mxu0 %v19046_v61  ;;  %v19121_v57 = vld [vmem:[%s25527_s5 + $0xdc] ss:$12 sps:$4 sm:$0xff]   ;;  %v19122_v61 = vld [vmem:[%s25527_s5 + $0x98] ss:$12 sps:$4 sm:$0xff]  }
 0x50f   : > { %9316 = vmatpush1.bf16.msra.mxu1 %v19041_v45  ;;  %v19119_v45 = vld [vmem:[%s25527_s5 + $0xd8] ss:$12 sps:$4 sm:$0xff]  }
 0x510   : > { %9269 = vmatpush1.bf16.msra.mxu0 %v19044_v23  ;;  %9317 = vmatprep.subr.bf16.mxu1 %v19049_v49  ;;  %v19123_v23 = vld [vmem:[%s25527_s5 + $0x140] ss:$12 sps:$4 sm:$0xff]   ;;  %v19126_v49 = vld [vmem:[%s25527_s5 + $0xc4] ss:$12 sps:$4 sm:$0xff]  }
 0x511   : > { %9270 = vmatprep.subr.bf16.mxu0 %v19052_v22  ;;  %v19124_v22 = vld [vmem:[%s25527_s5 + $0xc0] ss:$12 sps:$4 sm:$0xff]  }
 0x513   : > { %9318 = vmatpush1.bf16.msra.mxu1 %v19047_v25  ;;  %v19128_v25 = vld [vmem:[%s25527_s5 + $0x128] ss:$12 sps:$4 sm:$0xff]  }
 0x514   : > { %9271 = vmatpush1.bf16.msra.mxu0 %v19050_v17  ;;  %9319 = vmatprep.subr.bf16.mxu1 %v19055_v7  ;;  %v19131_v17 = vld [vmem:[%s25527_s5 + $0x34c] ss:$12 sps:$4 sm:$0xff]   ;;  %v7542_v7 = vld [vmem:[#allocation3] sm:$0x1f] }
 0x515   : > { %9272 = vmatprep.subr.bf16.mxu0 %v19058_v46  ;;  %v19132_v46 = vld [vmem:[%s25527_s5 + $0x68] ss:$12 sps:$4 sm:$0xff]  }
 0x517   : > { %9320 = vmatpush1.bf16.msra.mxu1 %v19053_v21  ;;  %v19129_v21 = vld [vmem:[%s25527_s5 + $0x348] ss:$12 sps:$4 sm:$0xff]  }
 0x518   : > { %9273 = vmatpush1.bf16.msra.mxu0 %v19056_v55  ;;  %9321 = vmatprep.subr.bf16.mxu1 %v19061_v29  ;;  %v19133_v55 = vld [vmem:[%s25527_s5 + $0x110] ss:$12 sps:$4 sm:$0xff]   ;;  %v7547_v29 = vpack.c.bf16 %v7542_v7, %v7542_v7  ;;  %v19184_v7 = vld [vmem:[%s25527_s5 + $0x76c] ss:$12 sps:$4 sm:$0xff]  }
 0x519   : > { %9274 = vmatprep.subr.bf16.mxu0 %v19064_v48  ;;  %v19136_v48 = vld [vmem:[%s25527_s5 + $0x334] ss:$12 sps:$4 sm:$0xff]  }
 0x51b   : > { %9322 = vmatpush1.bf16.msra.mxu1 %v19059_v13  ;;  %v19137_v13 = vld [vmem:[%s25527_s5 + $0x50] ss:$12 sps:$4 sm:$0xff]  }
 0x51c   : > { %9275 = vmatpush1.bf16.msra.mxu0 %v19062_v3  ;;  %9323 = vmatprep.subr.bf16.mxu1 %v19067_v12  ;;  %v19134_v3 = vld [vmem:[%s25527_s5 + $0x330] ss:$12 sps:$4 sm:$0xff]   ;;  %v19138_v12 = vld [vmem:[%s25527_s5 + $0xf8] ss:$12 sps:$4 sm:$0xff]  }
 0x51d   : > { %9276 = vmatprep.subr.bf16.mxu0 %v19070_v0  ;;  %v19141_v0 = vld [vmem:[%s25527_s5 + $0x31c] ss:$12 sps:$4 sm:$0xff]  }
 0x51f   : > { %9324 = vmatpush2.bf16.msra.mxu1 %v19065_v18 }
 0x520   : > { %9277 = vmatpush1.bf16.msra.mxu0 %v19068_v2  ;;  %9325 = vmatprep.subr.bf16.mxu1 %v19073_v58  ;;  %v19142_v2 = vld [vmem:[%s25527_s5 + $0x38] ss:$12 sps:$4 sm:$0xff]  }
 0x521   : > { %9278 = vmatprep.subr.bf16.mxu0 %v19076_v36  ;;  %v19139_v36 = vld [vmem:[%s25527_s5 + $0x318] ss:$12 sps:$4 sm:$0xff]  }
 0x523   : > { %9326 = vmatpush2.bf16.msra.mxu1 %v19071_v10  ;;  %v19143_v10 = vld [vmem:[%s25527_s5 + $0xe0] ss:$12 sps:$4 sm:$0xff]  }
 0x524   : > { %9279 = vmatpush1.bf16.msra.mxu0 %v19074_v42  ;;  %9327 = vmatprep.subr.bf16.mxu1 %v19079_v62  ;;  %v19146_v42 = vld [vmem:[%s25527_s5 + $0x304] ss:$12 sps:$4 sm:$0xff]  }
 0x525   : > { %9280 = vmatprep.subr.bf16.mxu0 %v19082_v8  ;;  %v19147_v8 = vld [vmem:[%s25527_s5 + $0x20] ss:$12 sps:$4 sm:$0xff]  }
 0x527   : > { %9328 = vmatpush2.bf16.msra.mxu1 %v19077_v11 }
 0x528   : > { %9281 = vmatpush1.bf16.msra.mxu0 %v19080_v24  ;;  %9329 = vmatprep.subr.bf16.mxu1 %v19085_v60  ;;  %v19144_v24 = vld [vmem:[%s25527_s5 + $0x300] ss:$12 sps:$4 sm:$0xff]   ;;  %v19148_v60 = vld [vmem:[%s25527_s5 + $0xc8] ss:$12 sps:$4 sm:$0xff]  }
 0x529   : > { %9282 = vmatprep.subr.bf16.mxu0 %v19088_v34  ;;  %v19150_v34 = vld [vmem:[%s25527_s5 + $0x2f0] ss:$12 sps:$4 sm:$0xff]  }
 0x52b   : > { %9330 = vmatpush2.bf16.msra.mxu1 %v19083_v31  ;;  %v7546_v31 = vld [vmem:[#allocation3 + $0x20] sm:$0x1f] }
 0x52c   : > { %9283 = vmatpush2.bf16.msra.mxu0 %v19086_v56  ;;  %9331 = vmatprep.subr.bf16.mxu1 %v19091_v38  ;;  %v19149_v56 = vld [vmem:[%s25527_s5 + $0x8] ss:$12 sps:$4 sm:$0xff]   ;;  %v19151_v38 = vld [vmem:[%s25527_s5 + $0x230] ss:$12 sps:$4 sm:$0xff]  }
 0x52d   : > { %9284 = vmatprep.subr.bf16.mxu0 %v19094_v54  ;;  %v7551_v54 = vpack.c.bf16 %v7546_v31, %v7546_v31  ;;  %v19206_v31 = vld [vmem:[%s25527_s5 + $0x708] ss:$12 sps:$4 sm:$0xff]  }
 0x52f   : > { %9332 = vmatpush2.bf16.msra.mxu1 %v19089_v50  ;;  %v19152_v50 = vld [vmem:[%s25527_s5 + $0x2d8] ss:$12 sps:$4 sm:$0xff]  }
 0x530   : > { %9285 = vmatpush2.bf16.msra.mxu0 %v19092_v30  ;;  %9333 = vmatprep.subr.bf16.mxu1 %v19097_v51  ;;  %v19153_v30 = vld [vmem:[%s25527_s5 + $0x350] ss:$12 sps:$4 sm:$0xff]   ;;  %v19154_v51 = vld [vmem:[%s25527_s5 + $0x218] ss:$12 sps:$4 sm:$0xff]  }
 0x531   : > { %9286 = vmatprep.subr.bf16.mxu0 %v19100_v33  ;;  %v19155_v33 = vld [vmem:[%s25527_s5 + $0x2c0] ss:$12 sps:$4 sm:$0xff]  }
 0x533   : > { %9334 = vmatpush2.bf16.msra.mxu1 %v19095_v15  ;;  %v19156_v15 = vld [vmem:[%s25527_s5 + $0x338] ss:$12 sps:$4 sm:$0xff]  }
 0x534   : > { %9287 = vmatpush2.bf16.msra.mxu0 %v19098_v63  ;;  %9335 = vmatprep.subr.bf16.mxu1 %v19103_v14  ;;  %v19158_v63 = vld [vmem:[%s25527_s5 + $0x2a8] ss:$12 sps:$4 sm:$0xff]   ;;  %v19159_v14 = vld [vmem:[%s25527_s5 + $0x320] ss:$12 sps:$4 sm:$0xff]  }
 0x535   : > { %9288 = vmatprep.subr.bf16.mxu0 %v19106_v26  ;;  %v19160_v26 = vld [vmem:[%s25527_s5 + $0x1e8] ss:$12 sps:$4 sm:$0xff]  }
 0x537   : > { %9336 = vmatpush2.bf16.msra.mxu1 %v19101_v19  ;;  %v19161_v19 = vld [vmem:[%s25527_s5 + $0x290] ss:$12 sps:$4 sm:$0xff]  }
 0x538   : > { %9289 = vmatpush2.bf16.msra.mxu0 %v19104_v53  ;;  %9337 = vmatprep.subr.bf16.mxu1 %v19109_v27  ;;  %v9517_v53 = vld [vmem:[#allocation3 + $0x40] sm:$0x1]  ;;  %v19162_v27 = vld [vmem:[%s25527_s5 + $0x308] ss:$12 sps:$4 sm:$0xff]  }
 0x539   : > { %9290 = vmatprep.subr.bf16.mxu0 %v19112_v32  ;;  %v19163_v32 = vld [vmem:[%s25527_s5 + $0x1d0] ss:$12 sps:$4 sm:$0xff]  }
 0x53b   : > { %9338 = vmatpush2.bf16.msra.mxu1 %v19107_v52  ;;  %v19166_v52 = vld [vmem:[%s25527_s5 + $0x8ec] ss:$12 sps:$4 sm:$0xff]  }
 0x53c   : > { %9291 = vmatpush2.bf16.msra.mxu0 %v19110_v5  ;;  %17469 = vmatprep.subr.bf16.mxu1 %v19113_v4  ;;  %v9512_v5 = vld [vmem:[#allocation3 + $0x18] sm:$0xf0]  ;;  %v19167_v4 = vld [vmem:[%s25527_s5 + $0x278] ss:$12 sps:$4 sm:$0xff]  }
 0x53d   : > { %9292 = vmatprep.subr.bf16.mxu0 %v19116_v39  ;;  %v9522_v20 = vpack.c.bf16 %v9517_v53, %v9512_v5  ;;  %v19164_v39 = vld [vmem:[%s25527_s5 + $0x8e8] ss:$12 sps:$4 sm:$0xff]   ;;  %v19232_v5 = vld [vmem:[%s25527_s5 + $0x82c] ss:$12 sps:$4 sm:$0xff]  }
 0x53e   : > { %9340 = vmatmul.mubr.bf16.vlgmr.msra.gmra.mxu1 %v23505_v40 }
 0x53f   : > { %17470 = vmatpush3.bf16.msra.mxu1 %v19117_v59  ;;  %9421 = vmatprep.mubr.bf16.mxu1 %v23354_v1  ;;  %v19127_v1 = vld [vmem:[%s25527_s5 + $0x80] ss:$12 sps:$4 sm:$0xff]   ;;  %v19168_v59 = vld [vmem:[%s25527_s5 + $0x1b8] ss:$12 sps:$4 sm:$0xff]  }
 0x540   : > { %9293 = vmatpush2.bf16.msra.mxu0 %v19114_v43  ;;  %17471 = vmatprep.subr.bf16.mxu1 %v19118_v6  ;;  %v19171_v43 = vld [vmem:[%s25527_s5 + $0x8d4] ss:$12 sps:$4 sm:$0xff]   ;;  %v23660_v6 = vrot.slane %v9522_v20, 2 }
 0x541   : > { %9294 = vmatprep.subr.bf16.mxu0 %v19121_v57  ;;  %v19172_v57 = vld [vmem:[%s25527_s5 + $0x260] ss:$12 sps:$4 sm:$0xff]   ;;  %v19230_v20 = vld [vmem:[%s25527_s5 + $0x828] ss:$12 sps:$4 sm:$0xff]  }
 0x543   : > { %17472 = vmatpush3.bf16.msra.mxu1 %v19122_v61  ;;  %v19169_v61 = vld [vmem:[%s25527_s5 + $0x8d0] ss:$12 sps:$4 sm:$0xff]  }
 0x544   : > { %9295 = vmatpush2.bf16.msra.mxu0 %v19119_v45  ;;  %17473 = vmatprep.subr.bf16.mxu1 %v19123_v23  ;;  %v19173_v45 = vld [vmem:[%s25527_s5 + $0x1a0] ss:$12 sps:$4 sm:$0xff]   ;;  %v19176_v23 = vld [vmem:[%s25527_s5 + $0x8bc] ss:$12 sps:$4 sm:$0xff]  }
 0x545   : > { %9296 = vmatprep.subr.bf16.mxu0 %v19126_v49  ;;  %v19177_v49 = vld [vmem:[%s25527_s5 + $0x248] ss:$12 sps:$4 sm:$0xff]  }
 0x547   : > { %17474 = vmatpush3.bf16.msra.mxu1 %v19127_v1  ;;  %v19174_v1 = vld [vmem:[%s25527_s5 + $0x8b8] ss:$12 sps:$4 sm:$0xff]  }
 0x548   : > { %9297 = vmatpush2.bf16.msra.mxu0 %v19124_v22  ;;  %17475 = vmatprep.subr.bf16.mxu1 %v19128_v25  ;;  %v9515_v22 = vld [vmem:[#allocation3 + $0x30] sm:$0x1]  ;;  %v19178_v25 = vld [vmem:[%s25527_s5 + $0x188] ss:$12 sps:$4 sm:$0xff]  }
 0x549   : > { %9356 = vmatprep.subr.bf16.mxu0 %v19131_v17  ;;  %v19181_v17 = vld [vmem:[%s25527_s5 + $0x8a4] ss:$12 sps:$4 sm:$0xff]  }
 0x54b   : > { %9299 = vmatmul.mubr.bf16.vlgmr.msra.gmra.mxu0 %v7547_v29  ;;  %17476 = vmatpush3.bf16.msra.mxu1 %v19132_v46  ;;  %v9510_v46 = vld [vmem:[#allocation3 + $0x8] sm:$0xf0] }
 0x54c   : > { %9357 = vmatpush1.bf16.msra.mxu0 %v19129_v21  ;;  %17477 = vmatprep.subr.bf16.mxu1 %v19133_v55  ;;  %v9520_v21 = vpack.c.bf16 %v9515_v22, %v9510_v46  ;;  %v19179_v55 = vld [vmem:[%s25527_s5 + $0x8a0] ss:$12 sps:$4 sm:$0xff]   ;;  %v19250_v22 = vld [vmem:[%s25527_s5 + $0x7e4] ss:$12 sps:$4 sm:$0xff]  }
 0x54d   : > { %9358 = vmatprep.subr.bf16.mxu0 %v19136_v48  ;;  %9380 = vmatprep.mubr.bf16.mxu0 %v20008_v41  ;;  %v19187_v48 = vld [vmem:[%s25527_s5 + $0x88c] ss:$12 sps:$4 sm:$0xff]  }
 0x54e   : > { %v23567_v18 = vpop.f32.mrf.mxu0  ;;  %v19256_v46 = vld [vmem:[%s25527_s5 + $0x7cc] ss:$12 sps:$4 sm:$0xff]  }
 0x54f   : > { %17478 = vmatpush3.bf16.msra.mxu1 %v19137_v13  ;;  %v19190_v13 = vld [vmem:[%s25527_s5 + $0x754] ss:$12 sps:$4 sm:$0xff]  }
 0x550   : > { %9359 = vmatpush1.bf16.msra.mxu0 %v19134_v3  ;;  %v23572_v58 = vpop.f32.mrf.mxu0  ;;  %17479 = vmatprep.subr.bf16.mxu1 %v19138_v12  ;;  %v23703_v3 = vrot.slane %v9520_v21, 2  ;;  %v19185_v12 = vld [vmem:[%s25527_s5 + $0x888] ss:$12 sps:$4 sm:$0xff]  }
 0x551   : > { %9360 = vmatprep.subr.bf16.mxu0 %v19141_v0  ;;  %v19188_v0 = vld [vmem:[%s25527_s5 + $0x750] ss:$12 sps:$4 sm:$0xff]   ;;  %v9516_v21 = vld [vmem:[#allocation3 + $0x38] sm:$0x1] }
 0x552   : > { %v8482_v62 = vpop.f32.mrf.mxu0 }
 0x553   : > { %17480 = vmatpush3.bf16.msra.mxu1 %v19142_v2  ;;  %v19193_v2 = vld [vmem:[%s25527_s5 + $0x874] ss:$12 sps:$4 sm:$0xff]   ;;  %v19202_v62 = vld [vmem:[%s25527_s5 + $0x724] ss:$12 sps:$4 sm:$0xff]  }
 0x554   : > { %9361 = vmatpush1.bf16.msra.mxu0 %v19139_v36  ;;  %v8483_v11 = vpop.f32.mrf.mxu0  ;;  %17481 = vmatprep.subr.bf16.mxu1 %v19143_v10  ;;  %v19191_v36 = vld [vmem:[%s25527_s5 + $0x870] ss:$12 sps:$4 sm:$0xff]   ;;  %v19194_v10 = vld [vmem:[%s25527_s5 + $0x738] ss:$12 sps:$4 sm:$0xff]  }
 0x555   : > { %9362 = vmatprep.subr.bf16.mxu0 %v19146_v42  ;;  %v19199_v42 = vld [vmem:[%s25527_s5 + $0x85c] ss:$12 sps:$4 sm:$0xff]   ;;  %v19200_v11 = vld [vmem:[%s25527_s5 + $0x720] ss:$12 sps:$4 sm:$0xff]  }
 0x557   : > { %17482 = vmatpush3.bf16.msra.mxu1 %v19147_v8  ;;  %v19197_v8 = vld [vmem:[%s25527_s5 + $0x858] ss:$12 sps:$4 sm:$0xff]  }
 0x558   : > { %9363 = vmatpush1.bf16.msra.mxu0 %v19144_v24  ;;  %17483 = vmatprep.subr.bf16.mxu1 %v19148_v60  ;;  %v19205_v24 = vld [vmem:[%s25527_s5 + $0x844] ss:$12 sps:$4 sm:$0xff]   ;;  %v19208_v60 = vld [vmem:[%s25527_s5 + $0x70c] ss:$12 sps:$4 sm:$0xff]  }
 0x559   : > { %17491 = vmatprep.subr.bf16.mxu0 %v19150_v34  ;;  %v19203_v34 = vld [vmem:[%s25527_s5 + $0x840] ss:$12 sps:$4 sm:$0xff]  }
 0x55b   : > { %16133 = vmatmul.mubr.msk.bf16.vlgmr.msra.gmra.mxu0 %vm1731_vm0, %v7551_v54  ;;  %17484 = vmatpush3.bf16.msra.mxu1 %v19149_v56  ;;  %v19211_v56 = vld [vmem:[%s25527_s5 + $0x9ac] ss:$12 sps:$4 sm:$0xff]  }
 0x55c   : > { %17492 = vmatpush3.bf16.msra.mxu0 %v19151_v38  ;;  %9461 = vmatprep.mubr.bf16.mxu0 %v23311_v28  ;;  %v19157_v28 = vld [vmem:[%s25527_s5 + $0x200] ss:$12 sps:$4 sm:$0xff]  }
 0x55d   : > { %17727 = vmatprep.subr.bf16.mxu1 %v20009_v9  ;;  %17493 = vmatprep.subr.bf16.mxu0 %v19152_v50  ;;  %v19214_v38 = vld [vmem:[%s25527_s5 + $0x6f4] ss:$12 sps:$4 sm:$0xff]   ;;  %v19212_v50 = vld [vmem:[%s25527_s5 + $0x6f0] ss:$12 sps:$4 sm:$0xff]  }
 0x55e   : > { %9422 = vmatmul.mubr.bf16.vlgmr.msra.gmra.mxu1 %v7547_v29  ;;  %v19182_v29 = vld [vmem:[%s25527_s5 + $0x768] ss:$12 sps:$4 sm:$0xff]  }
 0x55f   : > { %17728 = vmatpush3.bf16.msra.mxu1 %v19153_v30  ;;  %17735 = vmatprep.mubr.msk.bf16.mxu1 %vm20010_vm1, %v20009_v9  ;;  %v19217_v30 = vld [vmem:[%s25527_s5 + $0x994] ss:$12 sps:$4 sm:$0xff]  }
 0x560   : > { %17494 = vmatpush3.bf16.msra.mxu0 %v19154_v51  ;;  %17729 = vmatprep.subr.bf16.mxu1 %v20009_v9  ;;  %v19220_v51 = vld [vmem:[%s25527_s5 + $0x6dc] ss:$12 sps:$4 sm:$0xff]  }
 0x561   : > { %17495 = vmatprep.subr.bf16.mxu0 %v19155_v33 }
 0x563   : > { %17730 = vmatpush3.bf16.msra.mxu1 %v19156_v15 }
 0x564   : > { %17496 = vmatpush3.bf16.msra.mxu0 %v19157_v28  ;;  %17731 = vmatprep.subr.bf16.mxu1 %v20009_v9  ;;  %v19215_v28 = vld [vmem:[%s25527_s5 + $0x990] ss:$12 sps:$4 sm:$0xff]  }
 0x565   : > { %17497 = vmatprep.subr.bf16.mxu0 %v19158_v63 }
 0x567   : > { %17732 = vmatpush3.bf16.msra.mxu1 %v19159_v14  ;;  %v19218_v14 = vld [vmem:[%s25527_s5 + $0x6d8] ss:$12 sps:$4 sm:$0xff]  }
 0x568   : > { %17498 = vmatpush3.bf16.msra.mxu0 %v19160_v26  ;;  %17733 = vmatprep.subr.bf16.mxu1 %v20009_v9  ;;  %v19223_v26 = vld [vmem:[%s25527_s5 + $0x97c] ss:$12 sps:$4 sm:$0xff]  }
 0x569   : > { %17499 = vmatprep.subr.bf16.mxu0 %v19161_v19 }
 0x56b   : > { %17734 = vmatpush3.bf16.msra.mxu1 %v19162_v27  ;;  %v19221_v27 = vld [vmem:[%s25527_s5 + $0x978] ss:$12 sps:$4 sm:$0xff]  }
 0x56c   : > { %17500 = vmatpush3.bf16.msra.mxu0 %v19163_v32  ;;  %10303 = vmatprep.subr.bf16.mxu1 %v19166_v52  ;;  %v19224_v52 = vld [vmem:[%s25527_s5 + $0x6c0] ss:$12 sps:$4 sm:$0xff]  }
 0x56d   : > { %17501 = vmatprep.subr.bf16.mxu0 %v19167_v4  ;;  %v19227_v4 = vld [vmem:[%s25527_s5 + $0x960] ss:$12 sps:$4 sm:$0xff]  }
 0x56e   : > { %17736 = vmatmul.mubr.msk.bf16.vlgmr.msra.gmra.mxu1 %vm1731_vm0, %v7551_v54  ;;  %v19209_v54 = vld [vmem:[%s25527_s5 + $0x9a8] ss:$12 sps:$4 sm:$0xff]  }
 0x56f   : > { %10304 = vmatpush1.bf16.msra.mxu1 %v19164_v39  ;;  %10335 = vmatprep.mubr.bf16.mxu1 %v23660_v6  ;;  %v19235_v39 = vld [vmem:[%s25527_s5 + $0x94c] ss:$12 sps:$4 sm:$0xff]  }
 0x570   : > { %17502 = vmatpush3.bf16.msra.mxu0 %v19168_v59  ;;  %10305 = vmatprep.subr.bf16.mxu1 %v19171_v43  ;;  %v19238_v59 = vld [vmem:[%s25527_s5 + $0x814] ss:$12 sps:$4 sm:$0xff]  }
 0x571   : > { %17503 = vmatprep.subr.bf16.mxu0 %v19172_v57  ;;  %v19233_v43 = vld [vmem:[%s25527_s5 + $0x948] ss:$12 sps:$4 sm:$0xff]   ;;  %v19236_v57 = vld [vmem:[%s25527_s5 + $0x810] ss:$12 sps:$4 sm:$0xff]  }
 0x573   : > { %10306 = vmatpush1.bf16.msra.mxu1 %v19169_v61  ;;  %v19241_v61 = vld [vmem:[%s25527_s5 + $0x934] ss:$12 sps:$4 sm:$0xff]  }
 0x574   : > { %17504 = vmatpush3.bf16.msra.mxu0 %v19173_v45  ;;  %10307 = vmatprep.subr.bf16.mxu1 %v19176_v23  ;;  %v19244_v45 = vld [vmem:[%s25527_s5 + $0x7fc] ss:$12 sps:$4 sm:$0xff]  }
 0x575   : > { %17505 = vmatprep.subr.bf16.mxu0 %v19177_v49  ;;  %v19239_v23 = vld [vmem:[%s25527_s5 + $0x930] ss:$12 sps:$4 sm:$0xff]   ;;  %v19242_v49 = vld [vmem:[%s25527_s5 + $0x7f8] ss:$12 sps:$4 sm:$0xff]  }
 0x577   : > { %10308 = vmatpush1.bf16.msra.mxu1 %v19174_v1  ;;  %v19247_v1 = vld [vmem:[%s25527_s5 + $0x91c] ss:$12 sps:$4 sm:$0xff]  }
 0x578   : > { %17506 = vmatpush3.bf16.msra.mxu0 %v19178_v25  ;;  %10309 = vmatprep.subr.bf16.mxu1 %v19181_v17  ;;  %v19245_v25 = vld [vmem:[%s25527_s5 + $0x918] ss:$12 sps:$4 sm:$0xff]   ;;  %v19248_v17 = vld [vmem:[%s25527_s5 + $0x7e0] ss:$12 sps:$4 sm:$0xff]  }
 0x579   : > { %10262 = vmatprep.subr.bf16.mxu0 %v19184_v7  ;;  %v19253_v7 = vld [vmem:[%s25527_s5 + $0x904] ss:$12 sps:$4 sm:$0xff]  }
 0x57b   : > { %9462 = vmatmul.mubr.bf16.vlgmr.msra.gmra.mxu0 %v23505_v40  ;;  %10310 = vmatpush1.bf16.msra.mxu1 %v19179_v55  ;;  %v19196_v40 = vld [vmem:[%s25527_s5 + $0x73c] ss:$12 sps:$4 sm:$0xff]   ;;  %v19251_v55 = vld [vmem:[%s25527_s5 + $0x900] ss:$12 sps:$4 sm:$0xff]  }
 0x57c   : > { %10263 = vmatpush1.bf16.msra.mxu0 %v19182_v29  ;;  %10294 = vmatprep.mubr.bf16.mxu0 %v23703_v3  ;;  %v9511_v29 = vld [vmem:[#allocation3 + $0x10] sm:$0xf0] }
 0x57d   : > { %10311 = vmatprep.subr.bf16.mxu1 %v19187_v48  ;;  %10264 = vmatprep.subr.bf16.mxu0 %v19190_v13  ;;  %v19254_v48 = vld [vmem:[%s25527_s5 + $0x7c8] ss:$12 sps:$4 sm:$0xff]   ;;  %v9521_v13 = vpack.c.bf16 %v9516_v21, %v9511_v29 }
 0x57e   : > { %v19293_v29 = vld [vmem:[%s25527_s5 + $0x6c8] ss:$12 sps:$4 sm:$0xff]  }
 0x57f   : > { %10312 = vmatpush1.bf16.msra.mxu1 %v19185_v12  ;;  %v19257_v12 = vld [vmem:[%s25527_s5 + $0x830] ss:$12 sps:$4 sm:$0xff]  }
 0x580   : > { %10265 = vmatpush1.bf16.msra.mxu0 %v19188_v0  ;;  %10313 = vmatprep.subr.bf16.mxu1 %v19193_v2  ;;  %v19260_v0 = vld [vmem:[%s25527_s5 + $0x7b4] ss:$12 sps:$4 sm:$0xff]  }
 0x581   : > { %10266 = vmatprep.subr.bf16.mxu0 %v19196_v40  ;;  %v19261_v40 = vld [vmem:[%s25527_s5 + $0x770] ss:$12 sps:$4 sm:$0xff]  }
 0x583   : > { %10314 = vmatpush1.bf16.msra.mxu1 %v19191_v36 }
 0x584   : > { %10267 = vmatpush1.bf16.msra.mxu0 %v19194_v10  ;;  %10315 = vmatprep.subr.bf16.mxu1 %v19199_v42  ;;  %v23863_v10 = vrot.slane %v9521_v13, 2  ;;  %v19258_v42 = vld [vmem:[%s25527_s5 + $0x7b0] ss:$12 sps:$4 sm:$0xff]  }
 0x585   : > { %10268 = vmatprep.subr.bf16.mxu0 %v19202_v62  ;;  %v19262_v62 = vld [vmem:[%s25527_s5 + $0x818] ss:$12 sps:$4 sm:$0xff]  }
 0x587   : > { %10316 = vmatpush1.bf16.msra.mxu1 %v19197_v8 }
 0x588   : > { %10269 = vmatpush1.bf16.msra.mxu0 %v19200_v11  ;;  %10317 = vmatprep.subr.bf16.mxu1 %v19205_v24  ;;  %v19265_v11 = vld [vmem:[%s25527_s5 + $0x79c] ss:$12 sps:$4 sm:$0xff]  }
 0x589   : > { %10270 = vmatprep.subr.bf16.mxu0 %v19208_v60 }
 0x58b   : > { %10318 = vmatpush1.bf16.msra.mxu1 %v19203_v34 }
 0x58c   : > { %10271 = vmatpush1.bf16.msra.mxu0 %v19206_v31  ;;  %10319 = vmatprep.subr.bf16.mxu1 %v19211_v56  ;;  %v19266_v31 = vld [vmem:[%s25527_s5 + $0x758] ss:$12 sps:$4 sm:$0xff]  }
 0x58d   : > { %10272 = vmatprep.subr.bf16.mxu0 %v19214_v38  ;;  %v19263_v38 = vld [vmem:[%s25527_s5 + $0x798] ss:$12 sps:$4 sm:$0xff]  }
 0x58e   : > { %v8519_v33 = vpop.f32.mrf.mxu1 }
 0x58f   : > { %v23768_v15 = vadd.f32 %v8519_v33, %v23567_v18  ;;  %10320 = vmatpush2.bf16.msra.mxu1 %v19209_v54  ;;  %v19226_v18 = vld [vmem:[%s25527_s5 + $0x6c4] ss:$12 sps:$4 sm:$0xff]   ;;  %v19267_v54 = vld [vmem:[%s25527_s5 + $0x800] ss:$12 sps:$4 sm:$0xff]   ;;  %v9514_v33 = vld [vmem:[#allocation3 + $0x28] sm:$0x1] }
 0x590   : > { %10273 = vmatpush1.bf16.msra.mxu0 %v19212_v50  ;;  %v8521_v63 = vpop.f32.mrf.mxu1  ;;  %10321 = vmatprep.subr.bf16.mxu1 %v19217_v30 }
 0x591   : > { %v23780_v19 = vadd.f32 %v8521_v63, %v23572_v58  ;;  %10274 = vmatprep.subr.bf16.mxu0 %v19220_v51  ;;  %v19229_v58 = vld [vmem:[%s25527_s5 + $0x964] ss:$12 sps:$4 sm:$0xff]   ;;  %v19268_v63 = vld [vmem:[%s25527_s5 + $0x780] ss:$12 sps:$4 sm:$0xff]  }
 0x592   : > { %v8523_v53 = vpop.f32.mrf.mxu1 }
 0x593   : > { %10322 = vmatpush2.bf16.msra.mxu1 %v19215_v28  ;;  %v19276_v53 = vld [vmem:[%s25527_s5 + $0x728] ss:$12 sps:$4 sm:$0xff]  }
 0x594   : > { %10275 = vmatpush1.bf16.msra.mxu0 %v19218_v14  ;;  %v8524_v32 = vpop.f32.mrf.mxu1  ;;  %10323 = vmatprep.subr.bf16.mxu1 %v19223_v26  ;;  %v19272_v14 = vld [vmem:[%s25527_s5 + $0x7e8] ss:$12 sps:$4 sm:$0xff]  }
 0x595   : > { %10276 = vmatprep.subr.bf16.mxu0 %v19226_v18  ;;  %v9509_v26 = vld [vmem:[#allocation3] sm:$0xf0]  ;;  %v19275_v18 = vld [vmem:[%s25527_s5 + $0xa0c] ss:$12 sps:$4 sm:$0xff]   ;;  %v19277_v32 = vld [vmem:[%s25527_s5 + $0x7d0] ss:$12 sps:$4 sm:$0xff]  }
 0x597   : > { %10324 = vmatpush2.bf16.msra.mxu1 %v19221_v27  ;;  %v19273_v27 = vld [vmem:[%s25527_s5 + $0xa08] ss:$12 sps:$4 sm:$0xff]  }
 0x598   : > { %10277 = vmatpush1.bf16.msra.mxu0 %v19224_v52  ;;  %10325 = vmatprep.subr.bf16.mxu1 %v19229_v58  ;;  %v19280_v58 = vld [vmem:[%s25527_s5 + $0x9f4] ss:$12 sps:$4 sm:$0xff]  }
 0x599   : > { %10278 = vmatprep.subr.bf16.mxu0 %v19232_v5  ;;  %v19281_v5 = vld [vmem:[%s25527_s5 + $0x710] ss:$12 sps:$4 sm:$0xff]  }
 0x59b   : > { %10326 = vmatpush2.bf16.msra.mxu1 %v19227_v4  ;;  %v19278_v4 = vld [vmem:[%s25527_s5 + $0x9f0] ss:$12 sps:$4 sm:$0xff]  }
 0x59c   : > { %10279 = vmatpush2.bf16.msra.mxu0 %v19230_v20  ;;  %10327 = vmatprep.subr.bf16.mxu1 %v19235_v39  ;;  %v19282_v20 = vld [vmem:[%s25527_s5 + $0x7b8] ss:$12 sps:$4 sm:$0xff]   ;;  %v19285_v39 = vld [vmem:[%s25527_s5 + $0x9dc] ss:$12 sps:$4 sm:$0xff]  }
 0x59d   : > { %10280 = vmatprep.subr.bf16.mxu0 %v19238_v59 }
 0x59f   : > { %10328 = vmatpush2.bf16.msra.mxu1 %v19233_v43  ;;  %v19286_v43 = vld [vmem:[%s25527_s5 + $0x6f8] ss:$12 sps:$4 sm:$0xff]  }
 0x5a0   : > { %10281 = vmatpush2.bf16.msra.mxu0 %v19236_v57  ;;  %10329 = vmatprep.subr.bf16.mxu1 %v19241_v61  ;;  %v19283_v61 = vld [vmem:[%s25527_s5 + $0x9d8] ss:$12 sps:$4 sm:$0xff]  }
 0x5a1   : > { %10282 = vmatprep.subr.bf16.mxu0 %v19244_v45  ;;  %v19287_v45 = vld [vmem:[%s25527_s5 + $0x7a0] ss:$12 sps:$4 sm:$0xff]  }
 0x5a3   : > { %10330 = vmatpush2.bf16.msra.mxu1 %v19239_v23  ;;  %v19290_v23 = vld [vmem:[%s25527_s5 + $0x9c4] ss:$12 sps:$4 sm:$0xff]  }
 0x5a4   : > { %10283 = vmatpush2.bf16.msra.mxu0 %v19242_v49  ;;  %10331 = vmatprep.subr.bf16.mxu1 %v19247_v1  ;;  %v9518_v1 = vld [vmem:[#allocation3 + $0x48] sm:$0x1] }
 0x5a5   : > { %10284 = vmatprep.subr.bf16.mxu0 %v19250_v22  ;;  %v19291_v22 = vld [vmem:[%s25527_s5 + $0x6e0] ss:$12 sps:$4 sm:$0xff]  }
 0x5a7   : > { %10332 = vmatpush2.bf16.msra.mxu1 %v19245_v25 }
 0x5a8   : > { %10285 = vmatpush2.bf16.msra.mxu0 %v19248_v17  ;;  %10333 = vmatprep.subr.bf16.mxu1 %v19253_v7  ;;  %v19288_v17 = vld [vmem:[%s25527_s5 + $0x9c0] ss:$12 sps:$4 sm:$0xff]   ;;  %v19292_v7 = vld [vmem:[%s25527_s5 + $0x788] ss:$12 sps:$4 sm:$0xff]  }
 0x5a9   : > { %10286 = vmatprep.subr.bf16.mxu0 %v19256_v46  ;;  %v9513_v46 = vld [vmem:[#allocation3 + $0x20] sm:$0xf0] }
 0x5aa   : > { %v9523_v21 = vpack.c.bf16 %v9518_v1, %v9513_v46  ;;  %v19331_v1 = vld [vmem:[%s25529_s7 + $0x2c4] ss:$16 sps:$4 sm:$0xff]  }
 0x5ab   : > { %10334 = vmatpush2.bf16.msra.mxu1 %v19251_v55  ;;  %v8560_v2 = vpop.f32.mrf.mxu0  ;;  %v19294_v55 = vld [vmem:[%s25527_s5 + $0x9b0] ss:$12 sps:$4 sm:$0xff]   ;;  %v19334_v46 = vld [vmem:[%s25529_s7 + $0x2a4] ss:$16 sps:$4 sm:$0xff]  }
 0x5ac   : > { %v23861_v36 = vadd.f32 %v8560_v2, %v23768_v15  ;;  %10287 = vmatpush2.bf16.msra.mxu0 %v19254_v48  ;;  %17518 = vmatprep.subr.bf16.mxu1 %v19257_v12  ;;  %v19271_v15 = vld [vmem:[%s25527_s5 + $0x740] ss:$12 sps:$4 sm:$0xff]   ;;  %v19295_v48 = vld [vmem:[%s25527_s5 + $0x8f0] ss:$12 sps:$4 sm:$0xff]   ;;  %v9678_v13 = vrot.slane %v9523_v21, 2 }
 0x5ad   : > { %v8562_v8 = vpop.f32.mrf.mxu0  ;;  %10288 = vmatprep.subr.bf16.mxu0 %v19260_v0  ;;  %v19296_v12 = vld [vmem:[%s25527_s5 + $0x998] ss:$12 sps:$4 sm:$0xff]   ;;  %v19297_v2 = vld [vmem:[%s25527_s5 + $0xa10] ss:$12 sps:$4 sm:$0xff]  }
 0x5ae   : > { %v23875_v24 = vadd.f32 %v8562_v8, %v23780_v19  ;;  %v17436_v60 = vpop.f32.mrf.mxu1  ;;  %10336 = vmatmul.mubr.bf16.vlgmr.msra.gmra.mxu1 %v23863_v10  ;;  %v9519_v19 = vpack.c.bf16 %v9514_v33, %v9509_v26  ;;  %v19308_v33 = vld [vmem:[%s25527_s5 + $0x938] ss:$12 sps:$4 sm:$0xff]  }
 0x5af   : > { %17519 = vmatpush3.bf16.msra.mxu1 %v19261_v40  ;;  %10417 = vmatprep.mubr.bf16.mxu1 %v23703_v3  ;;  %v8564_v34 = vpop.f32.mrf.mxu0  ;;  %v19270_v3 = vld [vmem:[%s25527_s5 + $0x784] ss:$12 sps:$4 sm:$0xff]  }
 0x5b0   : > { %v17437_v56 = vpop.f32.mrf.mxu1  ;;  %10289 = vmatpush2.bf16.msra.mxu0 %v19258_v42  ;;  %17520 = vmatprep.subr.bf16.mxu1 %v19262_v62  ;;  %v9674_v52 = vrot.slane %v9519_v19, 2  ;;  %v19298_v40 = vld [vmem:[%s25527_s5 + $0x8d8] ss:$12 sps:$4 sm:$0xff]   ;;  %v19299_v62 = vld [vmem:[%s25527_s5 + $0x980] ss:$12 sps:$4 sm:$0xff]  }
 0x5b1   : > { %v23888_v50 = vadd.f32 %v17437_v56, %v17436_v60  ;;  %v8565_v30 = vpop.f32.mrf.mxu0  ;;  %10290 = vmatprep.subr.bf16.mxu0 %v19265_v11  ;;  %v19301_v34 = vld [vmem:[%s25527_s5 + $0x8c0] ss:$12 sps:$4 sm:$0xff]   ;;  %v19302_v56 = vld [vmem:[%s25527_s5 + $0x968] ss:$12 sps:$4 sm:$0xff]  }
 0x5b2   : > { %v17439_v51 = vpop.f32.mrf.mxu1  ;;  %v19305_v30 = vld [vmem:[%s25527_s5 + $0x950] ss:$12 sps:$4 sm:$0xff]  }
 0x5b3   : > { %17521 = vmatpush3.bf16.msra.mxu1 %v19266_v31  ;;  %v19307_v51 = vld [vmem:[%s25527_s5 + $0x890] ss:$12 sps:$4 sm:$0xff]  }
 0x5b4   : > { %v17440_v28 = vpop.f32.mrf.mxu1  ;;  %10291 = vmatpush2.bf16.msra.mxu0 %v19263_v38  ;;  %17522 = vmatprep.subr.bf16.mxu1 %v19267_v54  ;;  %v19303_v54 = vld [vmem:[%s25527_s5 + $0x9e0] ss:$12 sps:$4 sm:$0xff]  }
 0x5b5   : > { %10292 = vmatprep.subr.bf16.mxu0 %v19270_v3  ;;  %v19306_v3 = vld [vmem:[%s25527_s5 + $0x9c8] ss:$12 sps:$4 sm:$0xff]   ;;  %v19311_v28 = vld [vmem:[%s25527_s5 + $0x860] ss:$12 sps:$4 sm:$0xff]  }
 0x5b7   : > { %17523 = vmatpush3.bf16.msra.mxu1 %v19271_v15  ;;  %v19309_v15 = vld [vmem:[%s25527_s5 + $0x878] ss:$12 sps:$4 sm:$0xff]  }
 0x5b8   : > { %10293 = vmatpush2.bf16.msra.mxu0 %v19268_v63  ;;  %17524 = vmatprep.subr.bf16.mxu1 %v19272_v14  ;;  %v19312_v63 = vld [vmem:[%s25527_s5 + $0x908] ss:$12 sps:$4 sm:$0xff]  }
 0x5b9   : > { %10352 = vmatprep.subr.bf16.mxu0 %v19275_v18  ;;  %v19313_v14 = vld [vmem:[%s25527_s5 + $0x848] ss:$12 sps:$4 sm:$0xff]   ;;  %v19314_v18 = vld [vmem:[%s25529_s7 + $0x360] ss:$16 sps:$4 sm:$0xff]  }
 0x5bb   : > { %10295 = vmatmul.mubr.bf16.vlgmr.msra.gmra.mxu0 %v9674_v52  ;;  %17525 = vmatpush3.bf16.msra.mxu1 %v19276_v53  ;;  %v19316_v53 = vld [vmem:[%s25529_s7 + $0x364] ss:$16 sps:$4 sm:$0xff]  }
 0x5bc   : > { %10353 = vmatpush1.bf16.msra.mxu0 %v19273_v27  ;;  %17526 = vmatprep.subr.bf16.mxu1 %v19277_v32  ;;  %v19319_v32 = vld [vmem:[%s25529_s7 + $0x344] ss:$16 sps:$4 sm:$0xff]  }
 0x5bd   : > { %10354 = vmatprep.subr.bf16.mxu0 %v19280_v58  ;;  %10376 = vmatprep.mubr.bf16.mxu0 %v20008_v41 }
 0x5be   : > { %v8681_v59 = vpop.f32.mrf.mxu1 }
 0x5bf   : > { %17527 = vmatpush3.bf16.msra.mxu1 %v19281_v5 }
 0x5c0   : > { %v17725_v57 = vpop.f32.mrf.mxu1  ;;  %10355 = vmatpush1.bf16.msra.mxu0 %v19278_v4  ;;  %17528 = vmatprep.subr.bf16.mxu1 %v19282_v20  ;;  %v19322_v20 = vld [vmem:[%s25529_s7 + $0x324] ss:$16 sps:$4 sm:$0xff]  }
 0x5c1   : > { %10356 = vmatprep.subr.bf16.mxu0 %v19285_v39 }
 0x5c2   : > { %v8684_v49 = vpop.f32.mrf.mxu1 }
 0x5c3   : > { %17529 = vmatpush3.bf16.msra.mxu1 %v19286_v43  ;;  %v19320_v43 = vld [vmem:[%s25529_s7 + $0x320] ss:$16 sps:$4 sm:$0xff]  }
 0x5c4   : > { %v17726_v25 = vpop.f32.mrf.mxu1  ;;  %10357 = vmatpush1.bf16.msra.mxu0 %v19283_v61  ;;  %17530 = vmatprep.subr.bf16.mxu1 %v19287_v45  ;;  %v19326_v49 = vld [vmem:[%s25529_s7 + $0x2e0] ss:$16 sps:$4 sm:$0xff]  }
 0x5c5   : > { %10358 = vmatprep.subr.bf16.mxu0 %v19290_v23  ;;  %v19323_v23 = vld [vmem:[%s25529_s7 + $0x300] ss:$16 sps:$4 sm:$0xff]  }
 0x5c7   : > { %17531 = vmatpush3.bf16.msra.mxu1 %v19291_v22  ;;  %v19329_v22 = vld [vmem:[%s25529_s7 + $0x2c0] ss:$16 sps:$4 sm:$0xff]  }
 0x5c8   : > { %10359 = vmatpush1.bf16.msra.mxu0 %v19288_v17  ;;  %17532 = vmatprep.subr.bf16.mxu1 %v19292_v7 }
 0x5c9   : > { %17540 = vmatprep.subr.bf16.mxu0 %v19294_v55 }
 0x5cb   : > { %v17458_v0 = vpop.f32.mrf.mxu0  ;;  %16387 = vmatmul.mubr.msk.bf16.vlgmr.msra.gmra.mxu0 %vm1731_vm0, %v9678_v13  ;;  %17533 = vmatpush3.bf16.msra.mxu1 %v19293_v29  ;;  %v19332_v29 = vld [vmem:[%s25529_s7 + $0x2a0] ss:$16 sps:$4 sm:$0xff]  }
 0x5cc   : > { %17541 = vmatpush3.bf16.msra.mxu0 %v19295_v48  ;;  %10457 = vmatprep.mubr.bf16.mxu0 %v23660_v6  ;;  %v19300_v6 = vld [vmem:[%s25527_s5 + $0x9f8] ss:$12 sps:$4 sm:$0xff]  }
 0x5cd   : > { %v17459_v42 = vpop.f32.mrf.mxu0  ;;  %17739 = vmatprep.subr.bf16.mxu1 %v20009_v9  ;;  %17542 = vmatprep.subr.bf16.mxu0 %v19296_v12 }
 0x5ce   : > { %v17460_v8 = vadd.f32 %v17459_v42, %v17458_v0  ;;  %10418 = vmatmul.mubr.bf16.vlgmr.msra.gmra.mxu1 %v9674_v52  ;;  %v19335_v42 = vld [vmem:[%s25529_s7 + $0x280] ss:$16 sps:$4 sm:$0xff]  }
 0x5cf   : > { %v17461_v11 = vpop.f32.mrf.mxu0  ;;  %17740 = vmatpush3.bf16.msra.mxu1 %v19297_v2  ;;  %17747 = vmatprep.mubr.msk.bf16.mxu1 %vm20010_vm1, %v20009_v9  ;;  %v19337_v2 = vld [vmem:[%s25529_s7 + $0x284] ss:$16 sps:$4 sm:$0xff]  }
 0x5d0   : > { %v8642_v60 = vadd.f32 %v17460_v8, %v23888_v50  ;;  %17543 = vmatpush3.bf16.msra.mxu0 %v19298_v40  ;;  %17741 = vmatprep.subr.bf16.mxu1 %v20009_v9  ;;  %v19304_v50 = vld [vmem:[%s25527_s5 + $0x8a8] ss:$12 sps:$4 sm:$0xff]   ;;  %v19338_v11 = vld [vmem:[%s25529_s7 + $0x460] ss:$16 sps:$4 sm:$0xff]  }
 0x5d1   : > { %v17462_v31 = vpop.f32.mrf.mxu0  ;;  %17544 = vmatprep.subr.bf16.mxu0 %v19299_v62 }
 0x5d2   : > { %v23988_v38 = vadd.f32 %v8681_v59, %v8642_v60  ;;  %v19343_v60 = vld [vmem:[%s25529_s7 + $0x444] ss:$16 sps:$4 sm:$0xff]  }
 0x5d3   : > { %17742 = vmatpush3.bf16.msra.mxu1 %v19300_v6  ;;  %v19340_v6 = vld [vmem:[%s25529_s7 + $0x464] ss:$16 sps:$4 sm:$0xff]  }
 0x5d4   : > { %17545 = vmatpush3.bf16.msra.mxu0 %v19301_v34  ;;  %17743 = vmatprep.subr.bf16.mxu1 %v20009_v9  ;;  %v19341_v34 = vld [vmem:[%s25529_s7 + $0x440] ss:$16 sps:$4 sm:$0xff]   ;;  %v19346_v31 = vld [vmem:[%s25529_s7 + $0x424] ss:$16 sps:$4 sm:$0xff]  }
 0x5d5   : > { %17546 = vmatprep.subr.bf16.mxu0 %v19302_v56 }
 0x5d7   : > { %17744 = vmatpush3.bf16.msra.mxu1 %v19303_v54 }
 0x5d8   : > { %17547 = vmatpush3.bf16.msra.mxu0 %v19304_v50  ;;  %17745 = vmatprep.subr.bf16.mxu1 %v20009_v9  ;;  %v19310_v9 = vld [vmem:[%s25527_s5 + $0x920] ss:$12 sps:$4 sm:$0xff]   ;;  %v19349_v50 = vld [vmem:[%s25529_s7 + $0x404] ss:$16 sps:$4 sm:$0xff]  }
 0x5d9   : > { %17548 = vmatprep.subr.bf16.mxu0 %v19305_v30 }
 0x5db   : > { %17746 = vmatpush3.bf16.msra.mxu1 %v19306_v3  ;;  %v19347_v3 = vld [vmem:[%s25529_s7 + $0x400] ss:$16 sps:$4 sm:$0xff]  }
 0x5dc   : > { %17549 = vmatpush3.bf16.msra.mxu0 %v19307_v51 }
 0x5dd   : > { %17550 = vmatprep.subr.bf16.mxu0 %v19308_v33  ;;  %v19352_v33 = vld [vmem:[%s25529_s7 + $0x4e4] ss:$16 sps:$4 sm:$0xff]  }
 0x5de   : > { %17748 = vmatmul.mubr.msk.bf16.vlgmr.msra.gmra.mxu1 %vm1731_vm0, %v9678_v13  ;;  %11189 = vmatprep.subr.bf16.mxu1 %v19352_v33 }
 0x5df   : > { %11213 = vmatprep.mubr.bf16.mxu1 %v20008_v41 }
 0x5e0   : > { %17551 = vmatpush3.bf16.msra.mxu0 %v19309_v15  ;;  %v19350_v15 = vld [vmem:[%s25529_s7 + $0x4e0] ss:$16 sps:$4 sm:$0xff]  }
 0x5e1   : > { %17552 = vmatprep.subr.bf16.mxu0 %v19310_v9  ;;  %v19355_v9 = vld [vmem:[%s25529_s7 + $0x3e4] ss:$16 sps:$4 sm:$0xff]   ;;  %11190 = vmatpush1.bf16.msra.mxu1 %v19350_v15 }
 0x5e4   : > { %17553 = vmatpush3.bf16.msra.mxu0 %v19311_v28  ;;  %v19353_v28 = vld [vmem:[%s25529_s7 + $0x3e0] ss:$16 sps:$4 sm:$0xff]  }
 0x5e5   : > { %17554 = vmatprep.subr.bf16.mxu0 %v19312_v63  ;;  %v19358_v63 = vld [vmem:[%s25529_s7 + $0x4c4] ss:$16 sps:$4 sm:$0xff]  }
 0x5e6   : > { %11191 = vmatprep.subr.bf16.mxu1 %v19358_v63 }
 0x5e8   : > { %17555 = vmatpush3.bf16.msra.mxu0 %v19313_v14  ;;  %v19356_v14 = vld [vmem:[%s25529_s7 + $0x4c0] ss:$16 sps:$4 sm:$0xff]  }
 0x5e9   : > { %11140 = vmatprep.subr.bf16.mxu0 %v19316_v53  ;;  %11192 = vmatpush1.bf16.msra.mxu1 %v19356_v14 }
 0x5eb   : > { %10458 = vmatmul.mubr.bf16.vlgmr.msra.gmra.mxu0 %v23863_v10  ;;  %v19317_v10 = vld [vmem:[%s25529_s7 + $0x340] ss:$16 sps:$4 sm:$0xff]  }
 0x5ec   : > { %11141 = vmatpush1.bf16.msra.mxu0 %v19314_v18  ;;  %v19364_v18 = vld [vmem:[%s25529_s7 + $0x4a4] ss:$16 sps:$4 sm:$0xff]  }
 0x5ed   : > { %11142 = vmatprep.subr.bf16.mxu0 %v19319_v32  ;;  %v19367_v32 = vld [vmem:[%s25529_s7 + $0x3a4] ss:$16 sps:$4 sm:$0xff]   ;;  %11193 = vmatprep.subr.bf16.mxu1 %v19364_v18 }
 0x5f0   : > { %11143 = vmatpush1.bf16.msra.mxu0 %v19317_v10  ;;  %v19370_v10 = vld [vmem:[%s25529_s7 + $0x484] ss:$16 sps:$4 sm:$0xff]  }
 0x5f1   : > { %11144 = vmatprep.subr.bf16.mxu0 %v19322_v20 }
 0x5f4   : > { %11145 = vmatpush1.bf16.msra.mxu0 %v19320_v43  ;;  %v19371_v43 = vld [vmem:[%s25529_s7 + $0x380] ss:$16 sps:$4 sm:$0xff]  }
 0x5fe   : > { %v9341_v26 = vpop.f32.mrf.mxu1 }
 0x600   : > { %v9343_v19 = vpop.f32.mrf.mxu1 }
 0x602   : > { %v9345_v27 = vpop.f32.mrf.mxu1 }
 0x603   : > { %v19362_v27 = vld [vmem:[%s25529_s7 + $0x4a0] ss:$16 sps:$4 sm:$0xff]  }
 0x604   : > { %v9346_v52 = vpop.f32.mrf.mxu1  ;;  %11194 = vmatpush1.bf16.msra.mxu1 %v19362_v27 }
 0x605   : > { %v19365_v52 = vld [vmem:[%s25529_s7 + $0x3a0] ss:$16 sps:$4 sm:$0xff]   ;;  %11195 = vmatprep.subr.bf16.mxu1 %v19370_v10 }
 0x60b   : > { %v9300_v58 = vpop.f32.mrf.mxu0 }
 0x60c   : > { %v9301_v5 = vadd.f32 %v9300_v58, %v23861_v36  ;;  %v19325_v36 = vld [vmem:[%s25529_s7 + $0x304] ss:$16 sps:$4 sm:$0xff]  }
 0x60d   : > { %v9302_v4 = vpop.f32.mrf.mxu0  ;;  %11146 = vmatprep.subr.bf16.mxu0 %v19325_v36  ;;  %v19379_v36 = vld [vmem:[%s25529_s7 + $0x4ec] ss:$16 sps:$4 sm:$0xff]  }
 0x60e   : > { %v9303_v39 = vadd.f32 %v9302_v4, %v23875_v24  ;;  %v9342_v59 = vadd.f32 %v9341_v26, %v9301_v5  ;;  %11147 = vmatpush1.bf16.msra.mxu0 %v19323_v23  ;;  %v19328_v24 = vld [vmem:[%s25529_s7 + $0x2e4] ss:$16 sps:$4 sm:$0xff]  }
 0x60f   : > { %v9304_v57 = vpop.f32.mrf.mxu0  ;;  %11148 = vmatprep.subr.bf16.mxu0 %v19328_v24  ;;  %v19361_v26 = vld [vmem:[%s25529_s7 + $0x3c4] ss:$16 sps:$4 sm:$0xff]  }
 0x610   : > { %v9344_v61 = vadd.f32 %v9343_v19, %v9303_v39  ;;  %v19359_v19 = vld [vmem:[%s25529_s7 + $0x3c0] ss:$16 sps:$4 sm:$0xff]   ;;  %v19373_v5 = vld [vmem:[%s25529_s7 + $0x384] ss:$16 sps:$4 sm:$0xff]   ;;  %v19376_v57 = vld [vmem:[%s25529_s7 + $0x36c] ss:$16 sps:$4 sm:$0xff]  }
 0x611   : > { %v9305_v45 = vpop.f32.mrf.mxu0  ;;  %v19368_v39 = vld [vmem:[%s25529_s7 + $0x480] ss:$16 sps:$4 sm:$0xff]  }
 0x612   : > { %11149 = vmatpush1.bf16.msra.mxu0 %v19326_v49  ;;  %11196 = vmatpush1.bf16.msra.mxu1 %v19368_v39 }
 0x613   : > { %11150 = vmatprep.subr.bf16.mxu0 %v19331_v1  ;;  %11222 = vmatprep.subr.bf16.mxu1 %v19376_v57  ;;  %v19382_v57 = vld [vmem:[%s25529_s7 + $0x34c] ss:$16 sps:$4 sm:$0xff]  }
 0x616   : > { %11151 = vmatpush1.bf16.msra.mxu0 %v19329_v22 }
 0x617   : > { %11152 = vmatprep.subr.bf16.mxu0 %v19334_v46 }
 0x61a   : > { %11153 = vmatpush1.bf16.msra.mxu0 %v19332_v29 }
 0x61b   : > { %v9382_v25 = vpop.f32.mrf.mxu0  ;;  %11154 = vmatprep.subr.bf16.mxu0 %v19337_v2 }
 0x61c   : > { %v24066_v17 = vadd.f32 %v9382_v25, %v9342_v59 }
 0x61d   : > { %v9384_v7 = vpop.f32.mrf.mxu0 }
 0x61e   : > { %v24071_v21 = vadd.f32 %v9384_v7, %v9344_v61  ;;  %v17485_v55 = vpop.f32.mrf.mxu1  ;;  %11155 = vmatpush1.bf16.msra.mxu0 %v19335_v42 }
 0x61f   : > { %v9386_v48 = vpop.f32.mrf.mxu0  ;;  %11156 = vmatprep.subr.bf16.mxu0 %v19340_v6 }
 0x620   : > { %v17486_v13 = vpop.f32.mrf.mxu1 }
 0x621   : > { %v17487_v12 = vadd.f32 %v17486_v13, %v17485_v55  ;;  %v9387_v0 = vpop.f32.mrf.mxu0  ;;  %v10508_v55 = vld [vmem:[%s25528_s6] sm:$0x7] }
 0x622   : > { %v17488_v40 = vpop.f32.mrf.mxu1  ;;  %11157 = vmatpush2.bf16.msra.mxu0 %v19338_v11  ;;  %v10513_v0 = vrot.slane %v10508_v55, %v21368_v16  ;;  %v10521_v18 = vrot.slane %v10508_v55, %v21398_v35 }
 0x623   : > { %v9424_v62 = vadd.f32 %v17487_v12, %v23988_v38  ;;  %11158 = vmatprep.subr.bf16.mxu0 %v19343_v60  ;;  %v19344_v38 = vld [vmem:[%s25529_s7 + $0x420] ss:$16 sps:$4 sm:$0xff]  }
 0x624   : > { %v17489_v8 = vpop.f32.mrf.mxu1 }
 0x626   : > { %11159 = vmatpush2.bf16.msra.mxu0 %v19341_v34 }
 0x627   : > { %11160 = vmatprep.subr.bf16.mxu0 %v19346_v31 }
 0x62a   : > { %11161 = vmatpush2.bf16.msra.mxu0 %v19344_v38 }
 0x62b   : > { %11162 = vmatprep.subr.bf16.mxu0 %v19349_v50 }
 0x62e   : > { %v9503_v56 = vpop.f32.mrf.mxu1  ;;  %11163 = vmatpush2.bf16.msra.mxu0 %v19347_v3 }
 0x62f   : > { %11164 = vmatprep.subr.bf16.mxu0 %v19355_v9 }
 0x630   : > { %v17737_v54 = vpop.f32.mrf.mxu1 }
 0x632   : > { %v9506_v30 = vpop.f32.mrf.mxu1  ;;  %11165 = vmatpush2.bf16.msra.mxu0 %v19353_v28 }
 0x633   : > { %11166 = vmatprep.subr.bf16.mxu0 %v19361_v26 }
 0x634   : > { %v17738_v51 = vpop.f32.mrf.mxu1 }
 0x636   : > { %11167 = vmatpush2.bf16.msra.mxu0 %v19359_v19 }
 0x637   : > { %11168 = vmatprep.subr.bf16.mxu0 %v19367_v32 }
 0x63a   : > { %11169 = vmatpush2.bf16.msra.mxu0 %v19365_v52 }
 0x63b   : > { %v17507_v53 = vpop.f32.mrf.mxu0  ;;  %11170 = vmatprep.subr.bf16.mxu0 %v19373_v5 }
 0x63d   : > { %v17508_v58 = vpop.f32.mrf.mxu0 }
 0x63e   : > { %v17509_v4 = vadd.f32 %v17508_v58, %v17507_v53  ;;  %11171 = vmatpush2.bf16.msra.mxu0 %v19371_v43 }
 0x63f   : > { %v17510_v20 = vpop.f32.mrf.mxu0  ;;  %11271 = vmatprep.subr.bf16.mxu0 %v19379_v36  ;;  %v19383_v36 = vld [vmem:[%s25529_s7 + $0x4c8] ss:$16 sps:$4 sm:$0xff]  }
 0x640   : > { %v9464_v59 = vadd.f32 %v17509_v4, %v9424_v62  ;;  %v10517_v62 = vrot.slane %v10508_v55, %v21373_v44  ;;  %v19374_v4 = vld [vmem:[%s25529_s7 + $0x368] ss:$16 sps:$4 sm:$0xff]  }
 0x641   : > { %v17511_v61 = vpop.f32.mrf.mxu0  ;;  %v19395_v55 = vld [vmem:[%s25529_s7 + $0x488] ss:$16 sps:$4 sm:$0xff]  }
 0x642   : > { %v9504_v45 = vadd.f32 %v9503_v56, %v9464_v59  ;;  %v19377_v59 = vld [vmem:[%s25529_s7 + $0x4e8] ss:$16 sps:$4 sm:$0xff]   ;;  %v19385_v61 = vld [vmem:[%s25529_s7 + $0x4cc] ss:$16 sps:$4 sm:$0xff]  }
 0x66e   : > { %v10337_v23 = vpop.f32.mrf.mxu1 }
 0x670   : > { %v10339_v24 = vpop.f32.mrf.mxu1 }
 0x672   : > { %v10341_v49 = vpop.f32.mrf.mxu1 }
 0x673   : > { %v19386_v49 = vld [vmem:[%s25529_s7 + $0x328] ss:$16 sps:$4 sm:$0xff]  }
 0x674   : > { %v10342_v1 = vpop.f32.mrf.mxu1 }
 0x675   : > { %v19389_v1 = vld [vmem:[%s25529_s7 + $0x4a8] ss:$16 sps:$4 sm:$0xff]  }
 0x67b   : > { %v10296_v22 = vpop.f32.mrf.mxu0 }
 0x67c   : > { %v10338_v29 = vadd.f32 %v10337_v23, %v10296_v22  ;;  %v19388_v23 = vld [vmem:[%s25529_s7 + $0x32c] ss:$16 sps:$4 sm:$0xff]  }
 0x67d   : > { %v10298_v25 = vpop.f32.mrf.mxu0  ;;  %v19394_v22 = vld [vmem:[%s25529_s7 + $0x30c] ss:$16 sps:$4 sm:$0xff]  }
 0x67e   : > { %v10340_v13 = vadd.f32 %v10339_v24, %v10298_v25  ;;  %v19391_v24 = vld [vmem:[%s25529_s7 + $0x4ac] ss:$16 sps:$4 sm:$0xff]  }
 0x67f   : > { %v10300_v7 = vpop.f32.mrf.mxu0  ;;  %v19397_v25 = vld [vmem:[%s25529_s7 + $0x48c] ss:$16 sps:$4 sm:$0xff]  }
 0x680   : > { %v19392_v7 = vld [vmem:[%s25529_s7 + $0x308] ss:$16 sps:$4 sm:$0xff]  }
 0x681   : > { %v10301_v46 = vpop.f32.mrf.mxu0 }
 0x68b   : > { %v10378_v48 = vpop.f32.mrf.mxu0 }
 0x68c   : > { %v10379_v12 = vadd.f32 %v10378_v48, %v10338_v29  ;;  %v19400_v29 = vld [vmem:[%s25529_s7 + $0x2ec] ss:$16 sps:$4 sm:$0xff]   ;;  %v19403_v48 = vld [vmem:[%s25529_s7 + $0xe4] ss:$16 sps:$4 sm:$0xff]  }
 0x68d   : > { %v10380_v2 = vpop.f32.mrf.mxu0 }
 0x68e   : > { %v10505_v40 = vadd.f32 %v10379_v12, %v24066_v17  ;;  %v10381_v42 = vadd.f32 %v10380_v2, %v10340_v13  ;;  %v17534_v8 = vpop.f32.mrf.mxu1  ;;  %v19398_v12 = vld [vmem:[%s25529_s7 + $0x2e8] ss:$16 sps:$4 sm:$0xff]   ;;  %v19406_v2 = vld [vmem:[%s25529_s7 + $0x2cc] ss:$16 sps:$4 sm:$0xff]  }
 0x68f   : > { %v10382_v11 = vpop.f32.mrf.mxu0 }
 0x690   : > { %v10525_v6 = vadd.f32 %v10513_v0, %v10505_v40  ;;  %v10506_v60 = vadd.f32 %v10381_v42, %v24071_v21  ;;  %v17535_v34 = vpop.f32.mrf.mxu1  ;;  %v19401_v0 = vld [vmem:[%s25529_s7 + $0xe0] ss:$16 sps:$4 sm:$0xff]   ;;  %v19409_v40 = vld [vmem:[%s25529_s7 + $0xc4] ss:$16 sps:$4 sm:$0xff]   ;;  %v19412_v11 = vld [vmem:[%s25529_s7 + $0x2ac] ss:$16 sps:$4 sm:$0xff]  }
 0x691   : > { %v10383_v31 = vpop.f32.mrf.mxu0  ;;  %v17536_v28 = vadd.f32 %v17535_v34, %v17534_v8  ;;  %v19407_v8 = vld [vmem:[%s25529_s7 + $0xc0] ss:$16 sps:$4 sm:$0xff]  }
 0x692   : > { %v10528_v56 = vmax.f32 %v10525_v6, 0.0  ;;  %v10526_v38 = vadd.f32 %v10517_v62, %v10506_v60  ;;  %v17537_v54 = vpop.f32.mrf.mxu1  ;;  %v19404_v62 = vld [vmem:[%s25529_s7 + $0x2c8] ss:$16 sps:$4 sm:$0xff]   ;;  %v19415_v6 = vld [vmem:[%s25529_s7 + $0xa4] ss:$16 sps:$4 sm:$0xff]  }
 0x693   : > { %v19410_v60 = vld [vmem:[%s25529_s7 + $0x2a8] ss:$16 sps:$4 sm:$0xff]   ;;  %v19413_v34 = vld [vmem:[%s25529_s7 + $0xa0] ss:$16 sps:$4 sm:$0xff]   ;;  %v19418_v31 = vld [vmem:[%s25529_s7 + $0x28c] ss:$16 sps:$4 sm:$0xff]  }
 0x694   : > { %10531 = vst [vmem:[#allocation4] sm:$0x1f] %v10528_v56  ;;  %v10529_v50 = vmax.f32 %v10526_v38, 0.0  ;;  %v17538_v30 = vpop.f32.mrf.mxu1  ;;  %v19421_v56 = vld [vmem:[%s25529_s7 + $0x84] ss:$16 sps:$4 sm:$0xff]  }
 0x695   : > { %v19416_v38 = vld [vmem:[%s25529_s7 + $0x288] ss:$16 sps:$4 sm:$0xff]   ;;  %v19419_v54 = vld [vmem:[%s25529_s7 + $0x80] ss:$16 sps:$4 sm:$0xff]   ;;  %v19427_v30 = vld [vmem:[%s25529_s7 + $0x64] ss:$16 sps:$4 sm:$0xff]  }
 0x696   : > { %10532 = vst [vmem:[#allocation4 + $0x8] sm:$0x1f] %v10529_v50  ;;  %v19424_v50 = vld [vmem:[%s25529_s7 + $0x46c] ss:$16 sps:$4 sm:$0xff]  }
 0x69e   : > { %v10499_v3 = vpop.f32.mrf.mxu1 }
 0x6a0   : > { %v17749_v51 = vpop.f32.mrf.mxu1 }
 0x6a1   : > { %v19425_v51 = vld [vmem:[%s25529_s7 + $0x60] ss:$16 sps:$4 sm:$0xff]  }
 0x6a2   : > { %v10502_v17 = vpop.f32.mrf.mxu1 }
 0x6a3   : > { %v19430_v17 = vld [vmem:[%s25529_s7 + $0x44c] ss:$16 sps:$4 sm:$0xff]  }
 0x6a4   : > { %v17750_v33 = vpop.f32.mrf.mxu1 }
 0x6a5   : > { %v19433_v33 = vld [vmem:[%s25529_s7 + $0x44] ss:$16 sps:$4 sm:$0xff]  }
 0x6ab   : > { %v17556_v15 = vpop.f32.mrf.mxu0 }
 0x6ad   : > { %v17557_v9 = vpop.f32.mrf.mxu0 }
 0x6ae   : > { %v17558_v63 = vadd.f32 %v17557_v9, %v17556_v15  ;;  %v19428_v15 = vld [vmem:[%s25529_s7 + $0x448] ss:$16 sps:$4 sm:$0xff]   ;;  %v19431_v9 = vld [vmem:[%s25529_s7 + $0x40] ss:$16 sps:$4 sm:$0xff]  }
 0x6af   : > { %v17559_v14 = vpop.f32.mrf.mxu0 }
 0x6b0   : > { %v10460_v26 = vadd.f32 %v17558_v63, %v17536_v28  ;;  %v19436_v28 = vld [vmem:[%s25529_s7 + $0x42c] ss:$16 sps:$4 sm:$0xff]   ;;  %v19439_v63 = vld [vmem:[%s25529_s7 + $0x24] ss:$16 sps:$4 sm:$0xff]   ;;  %v19434_v14 = vld [vmem:[%s25529_s7 + $0x428] ss:$16 sps:$4 sm:$0xff]  }
 0x6b1   : > { %v17560_v21 = vpop.f32.mrf.mxu0 }
 0x6b2   : > { %v10500_v19 = vadd.f32 %v10499_v3, %v10460_v26  ;;  %v19422_v3 = vld [vmem:[%s25529_s7 + $0x468] ss:$16 sps:$4 sm:$0xff]   ;;  %v19437_v26 = vld [vmem:[%s25529_s7 + $0x20] ss:$16 sps:$4 sm:$0xff]   ;;  %v19442_v21 = vld [vmem:[%s25529_s7 + $0x40c] ss:$16 sps:$4 sm:$0xff]  }
 0x6b4   : > { %v10507_v53 = vadd.f32 %v10500_v19, %v9504_v45  ;;  %v19380_v45 = vld [vmem:[%s25529_s7 + $0x348] ss:$16 sps:$4 sm:$0xff]   ;;  %v19445_v19 = vld [vmem:[%s25529_s7 + $0x4] ss:$16 sps:$4 sm:$0xff]  }
 0x6b6   : > { %v10527_v27 = vadd.f32 %v10521_v18, %v10507_v53  ;;  %v19440_v18 = vld [vmem:[%s25529_s7 + $0x408] ss:$16 sps:$4 sm:$0xff]   ;;  %v19443_v53 = vld [vmem:[%s25529_s7] ss:$16 sps:$4 sm:$0xff]  }
 0x6b8   : > { %v10530_v32 = vmax.f32 %v10527_v27, 0.0  ;;  %v19448_v27 = vld [vmem:[%s25529_s7 + $0x3ec] ss:$16 sps:$4 sm:$0xff]  }
 0x6ba   : > { %10534 = vst.msk [vmem:[#allocation4 + $0x10] sm:$0x1f] %vm10533_vm3, %v10530_v32  ;;  %v19451_v32 = vld [vmem:[%s25529_s7 + $0x1e4] ss:$16 sps:$4 sm:$0xff]  }
 0x6c1   : > { %v10636_v52 = vld [vmem:[#allocation4 + $0x1] ss:$8 sm:$0x7]  ;;  %v24216_v46 = vld [vmem:[#allocation4] ss:$8 sm:$0x7] }
 0x6c2   : > { %v10645_v10 = vrot.slane %v10636_v52, %v21373_v44  ;;  %v10649_v58 = vrot.slane %v10636_v52, %v21398_v35  ;;  %v10641_v5 = vrot.slane %v10636_v52, %v21368_v16  ;;  %v10544_v13 = vrot.slane %v24216_v46, %v21373_v44  ;;  %v19446_v52 = vld [vmem:[%s25529_s7 + $0x3e8] ss:$16 sps:$4 sm:$0xff]  }
 0x6c4   : > { %v10654_v20 = vpack.c.bf16 %v10645_v10, %v10645_v10  ;;  %v10655_v39 = vpack.c.bf16 %v10649_v58, %v10649_v58  ;;  %v24178_v43 = vpack.c.bf16 %v10641_v5, %v10641_v5  ;;  %v24241_v42 = vpack.c.bf16 %v10544_v13, %v10544_v13  ;;  %v19449_v10 = vld [vmem:[%s25529_s7 + $0x1e0] ss:$16 sps:$4 sm:$0xff]   ;;  %v19454_v58 = vld [vmem:[%s25529_s7 + $0x3cc] ss:$16 sps:$4 sm:$0xff]   ;;  %v19457_v5 = vld [vmem:[%s25529_s7 + $0x1c4] ss:$16 sps:$4 sm:$0xff]  }
 0x6c5   : > { %v19484_v13 = vld [vmem:[%s25529_s7 + $0x224] ss:$16 sps:$4 sm:$0xff]  }
 0x6c6   : > { %11172 = vmatprep.mubr.bf16.mxu0 %v10654_v20  ;;  %16549 = vmatmul.mubr.msk.bf16.vlgmr.msra.gmra.mxu1 %vm1731_vm0, %v10655_v39 }
 0x6c7   : > { %11223 = vmatpush1.bf16.msra.mxu1 %v19374_v4  ;;  %11173 = vmatmul.mubr.bf16.vlgmr.msra.gmra.mxu0 %v24178_v43  ;;  %v19452_v4 = vld [vmem:[%s25529_s7 + $0x3c8] ss:$16 sps:$4 sm:$0xff]  }
 0x6c8   : > { %11254 = vmatprep.mubr.bf16.mxu1 %v10654_v20  ;;  %11272 = vmatpush1.bf16.msra.mxu0 %v19377_v59  ;;  %v19455_v20 = vld [vmem:[%s25529_s7 + $0x1c0] ss:$16 sps:$4 sm:$0xff]   ;;  %v19463_v59 = vld [vmem:[%s25529_s7 + $0x1a4] ss:$16 sps:$4 sm:$0xff]  }
 0x6c9   : > { %11224 = vmatprep.subr.bf16.mxu1 %v19382_v57  ;;  %11273 = vmatprep.subr.bf16.mxu0 %v19385_v61  ;;  %v19458_v57 = vld [vmem:[%s25529_s7 + $0x3a8] ss:$16 sps:$4 sm:$0xff]   ;;  %v19461_v61 = vld [vmem:[%s25529_s7 + $0x1a0] ss:$16 sps:$4 sm:$0xff]  }
 0x6ca   : > { %11295 = vmatprep.mubr.bf16.mxu0 %v20008_v41 }
 0x6cb   : > { %11225 = vmatpush1.bf16.msra.mxu1 %v19380_v45  ;;  %v19466_v45 = vld [vmem:[%s25529_s7 + $0x38c] ss:$16 sps:$4 sm:$0xff]  }
 0x6cc   : > { %11274 = vmatpush1.bf16.msra.mxu0 %v19383_v36  ;;  %11226 = vmatprep.subr.bf16.mxu1 %v19388_v23  ;;  %v19469_v36 = vld [vmem:[%s25529_s7 + $0x184] ss:$16 sps:$4 sm:$0xff]   ;;  %v19464_v23 = vld [vmem:[%s25529_s7 + $0x388] ss:$16 sps:$4 sm:$0xff]  }
 0x6cd   : > { %11275 = vmatprep.subr.bf16.mxu0 %v19391_v24  ;;  %v19467_v24 = vld [vmem:[%s25529_s7 + $0x180] ss:$16 sps:$4 sm:$0xff]  }
 0x6cf   : > { %11227 = vmatpush1.bf16.msra.mxu1 %v19386_v49  ;;  %v19472_v49 = vld [vmem:[%s25529_s7 + $0x264] ss:$16 sps:$4 sm:$0xff]  }
 0x6d0   : > { %11276 = vmatpush1.bf16.msra.mxu0 %v19389_v1  ;;  %11228 = vmatprep.subr.bf16.mxu1 %v19394_v22  ;;  %v19475_v1 = vld [vmem:[%s25529_s7 + $0x164] ss:$16 sps:$4 sm:$0xff]   ;;  %v19470_v22 = vld [vmem:[%s25529_s7 + $0x260] ss:$16 sps:$4 sm:$0xff]  }
 0x6d1   : > { %11277 = vmatprep.subr.bf16.mxu0 %v19397_v25  ;;  %v19473_v25 = vld [vmem:[%s25529_s7 + $0x160] ss:$16 sps:$4 sm:$0xff]  }
 0x6d3   : > { %11229 = vmatpush1.bf16.msra.mxu1 %v19392_v7  ;;  %v19478_v7 = vld [vmem:[%s25529_s7 + $0x244] ss:$16 sps:$4 sm:$0xff]  }
 0x6d4   : > { %11278 = vmatpush1.bf16.msra.mxu0 %v19395_v55  ;;  %11230 = vmatprep.subr.bf16.mxu1 %v19400_v29  ;;  %v19481_v55 = vld [vmem:[%s25529_s7 + $0x144] ss:$16 sps:$4 sm:$0xff]   ;;  %v19476_v29 = vld [vmem:[%s25529_s7 + $0x240] ss:$16 sps:$4 sm:$0xff]  }
 0x6d5   : > { %11707 = vmatprep.subr.bf16.mxu0 %v19403_v48  ;;  %v19479_v48 = vld [vmem:[%s25529_s7 + $0x140] ss:$16 sps:$4 sm:$0xff]  }
 0x6d7   : > { %11231 = vmatpush1.bf16.msra.mxu1 %v19398_v12  ;;  %16550 = vmatmul.mubr.msk.bf16.vlgmr.msra.gmra.mxu0 %vm1731_vm0, %v10655_v39  ;;  %v19460_v39 = vld [vmem:[%s25529_s7 + $0x3ac] ss:$16 sps:$4 sm:$0xff]   ;;  %v19482_v12 = vld [vmem:[%s25529_s7 + $0x220] ss:$16 sps:$4 sm:$0xff]  }
 0x6d8   : > { %11708 = vmatpush1.bf16.msra.mxu0 %v19401_v0  ;;  %11739 = vmatprep.mubr.bf16.mxu0 %v24241_v42  ;;  %v19485_v0 = vld [vmem:[%s25529_s7 + $0x120] ss:$16 sps:$4 sm:$0xff]  }
 0x6d9   : > { %11232 = vmatprep.subr.bf16.mxu1 %v19406_v2  ;;  %11709 = vmatprep.subr.bf16.mxu0 %v19409_v40  ;;  %v19490_v2 = vld [vmem:[%s25529_s7 + $0x204] ss:$16 sps:$4 sm:$0xff]  }
 0x6da   : > { %v19493_v40 = vld [vmem:[%s25529_s7 + $0x104] ss:$16 sps:$4 sm:$0xff]  }
 0x6db   : > { %11233 = vmatpush1.bf16.msra.mxu1 %v19404_v62  ;;  %v19488_v62 = vld [vmem:[%s25529_s7 + $0x200] ss:$16 sps:$4 sm:$0xff]  }
 0x6dc   : > { %11710 = vmatpush1.bf16.msra.mxu0 %v19407_v8  ;;  %11234 = vmatprep.subr.bf16.mxu1 %v19412_v11  ;;  %v10548_v8 = vrot.slane %v24216_v46, %v21398_v35  ;;  %v19491_v11 = vld [vmem:[%s25529_s7 + $0x100] ss:$16 sps:$4 sm:$0xff]  }
 0x6dd   : > { %11711 = vmatprep.subr.bf16.mxu0 %v19415_v6  ;;  %v19496_v6 = vld [vmem:[%s25529_s7 + $0xec] ss:$16 sps:$4 sm:$0xff]  }
 0x6df   : > { %11235 = vmatpush1.bf16.msra.mxu1 %v19410_v60  ;;  %v10540_v60 = vrot.slane %v24216_v46, %v21368_v16  ;;  %v19502_v46 = vld [vmem:[%s25529_s7 + $0xcc] ss:$16 sps:$4 sm:$0xff]  }
 0x6e0   : > { %11712 = vmatpush1.bf16.msra.mxu0 %v19413_v34  ;;  %11236 = vmatprep.subr.bf16.mxu1 %v19418_v31  ;;  %v19499_v34 = vld [vmem:[%s25529_s7 + $0x26c] ss:$16 sps:$4 sm:$0xff]   ;;  %v19494_v31 = vld [vmem:[%s25529_s7 + $0xe8] ss:$16 sps:$4 sm:$0xff]  }
 0x6e1   : > { %11713 = vmatprep.subr.bf16.mxu0 %v19421_v56  ;;  %v10554_v56 = vpack.c.bf16 %v10548_v8, %v10548_v8  ;;  %v19566_v8 = vld [vmem:[%s25529_s7 + $0x168] ss:$16 sps:$4 sm:$0xff]  }
 0x6e3   : > { %11237 = vmatpush1.bf16.msra.mxu1 %v19416_v38  ;;  %v19497_v38 = vld [vmem:[%s25529_s7 + $0x268] ss:$16 sps:$4 sm:$0xff]  }
 0x6e4   : > { %11714 = vmatpush1.bf16.msra.mxu0 %v19419_v54  ;;  %11238 = vmatprep.subr.bf16.mxu1 %v19424_v50  ;;  %v24437_v54 = vpack.c.bf16 %v10540_v60, %v10540_v60  ;;  %v19505_v50 = vld [vmem:[%s25529_s7 + $0x24c] ss:$16 sps:$4 sm:$0xff]   ;;  %v19577_v60 = vld [vmem:[%s25529_s7 + $0x6c4] ss:$16 sps:$4 sm:$0xff]  }
 0x6e5   : > { %11715 = vmatprep.subr.bf16.mxu0 %v19427_v30  ;;  %v19500_v30 = vld [vmem:[%s25529_s7 + $0xc8] ss:$16 sps:$4 sm:$0xff]  }
 0x6e7   : > { %11239 = vmatpush2.bf16.msra.mxu1 %v19422_v3  ;;  %v19503_v3 = vld [vmem:[%s25529_s7 + $0x248] ss:$16 sps:$4 sm:$0xff]  }
 0x6e8   : > { %11716 = vmatpush1.bf16.msra.mxu0 %v19425_v51  ;;  %11240 = vmatprep.subr.bf16.mxu1 %v19430_v17  ;;  %v19508_v51 = vld [vmem:[%s25529_s7 + $0xac] ss:$16 sps:$4 sm:$0xff]  }
 0x6e9   : > { %11717 = vmatprep.subr.bf16.mxu0 %v19433_v33  ;;  %v19511_v17 = vld [vmem:[%s25529_s7 + $0x22c] ss:$16 sps:$4 sm:$0xff]   ;;  %v19509_v33 = vld [vmem:[%s25529_s7 + $0x228] ss:$16 sps:$4 sm:$0xff]  }
 0x6eb   : > { %11241 = vmatpush2.bf16.msra.mxu1 %v19428_v15  ;;  %v19514_v15 = vld [vmem:[%s25529_s7 + $0x8c] ss:$16 sps:$4 sm:$0xff]  }
 0x6ec   : > { %11718 = vmatpush1.bf16.msra.mxu0 %v19431_v9  ;;  %11242 = vmatprep.subr.bf16.mxu1 %v19436_v28  ;;  %v19517_v9 = vld [vmem:[%s25529_s7 + $0x20c] ss:$16 sps:$4 sm:$0xff]   ;;  %v19512_v28 = vld [vmem:[%s25529_s7 + $0x88] ss:$16 sps:$4 sm:$0xff]  }
 0x6ed   : > { %11719 = vmatprep.subr.bf16.mxu0 %v19439_v63  ;;  %v24476_v63 = vld [vmem:[#allocation4 + $0x2] ss:$8 sm:$0x7] }
 0x6ef   : > { %11243 = vmatpush2.bf16.msra.mxu1 %v19434_v14  ;;  %v19515_v14 = vld [vmem:[%s25529_s7 + $0x208] ss:$16 sps:$4 sm:$0xff]  }
 0x6f0   : > { %11720 = vmatpush1.bf16.msra.mxu0 %v19437_v26  ;;  %11244 = vmatprep.subr.bf16.mxu1 %v19442_v21  ;;  %v19520_v26 = vld [vmem:[%s25529_s7 + $0x6c] ss:$16 sps:$4 sm:$0xff]   ;;  %v19523_v21 = vld [vmem:[%s25529_s7 + $0x5e4] ss:$16 sps:$4 sm:$0xff]  }
 0x6f1   : > { %11721 = vmatprep.subr.bf16.mxu0 %v19445_v19  ;;  %v11881_v19 = vrot.slane %v24476_v63, %v21373_v44 }
 0x6f3   : > { %11245 = vmatpush2.bf16.msra.mxu1 %v19440_v18  ;;  %v19518_v18 = vld [vmem:[%s25529_s7 + $0x68] ss:$16 sps:$4 sm:$0xff]  }
 0x6f4   : > { %11722 = vmatpush1.bf16.msra.mxu0 %v19443_v53  ;;  %11246 = vmatprep.subr.bf16.mxu1 %v19448_v27  ;;  %v19521_v53 = vld [vmem:[%s25529_s7 + $0x5e0] ss:$16 sps:$4 sm:$0xff]   ;;  %v19526_v27 = vld [vmem:[%s25529_s7 + $0x4c] ss:$16 sps:$4 sm:$0xff]  }
 0x6f5   : > { %11723 = vmatprep.subr.bf16.mxu0 %v19451_v32  ;;  %v19529_v32 = vld [vmem:[%s25529_s7 + $0x5c4] ss:$16 sps:$4 sm:$0xff]  }
 0x6f7   : > { %11247 = vmatpush2.bf16.msra.mxu1 %v19446_v52  ;;  %v24501_v52 = vpack.c.bf16 %v11881_v19, %v11881_v19  ;;  %v19604_v19 = vld [vmem:[%s25529_s7 + $0x724] ss:$16 sps:$4 sm:$0xff]  }
 0x6f8   : > { %11724 = vmatpush2.bf16.msra.mxu0 %v19449_v10  ;;  %11248 = vmatprep.subr.bf16.mxu1 %v19454_v58  ;;  %v19524_v10 = vld [vmem:[%s25529_s7 + $0x48] ss:$16 sps:$4 sm:$0xff]   ;;  %v19527_v58 = vld [vmem:[%s25529_s7 + $0x5c0] ss:$16 sps:$4 sm:$0xff]  }
 0x6f9   : > { %11725 = vmatprep.subr.bf16.mxu0 %v19457_v5  ;;  %v19532_v5 = vld [vmem:[%s25529_s7 + $0x2c] ss:$16 sps:$4 sm:$0xff]  }
 0x6fb   : > { %11249 = vmatpush2.bf16.msra.mxu1 %v19452_v4  ;;  %v19535_v4 = vld [vmem:[%s25529_s7 + $0x5a4] ss:$16 sps:$4 sm:$0xff]  }
 0x6fc   : > { %11726 = vmatpush2.bf16.msra.mxu0 %v19455_v20  ;;  %11250 = vmatprep.subr.bf16.mxu1 %v19460_v39  ;;  %v19530_v20 = vld [vmem:[%s25529_s7 + $0x28] ss:$16 sps:$4 sm:$0xff]   ;;  %v19533_v39 = vld [vmem:[%s25529_s7 + $0x5a0] ss:$16 sps:$4 sm:$0xff]  }
 0x6fd   : > { %11727 = vmatprep.subr.bf16.mxu0 %v19463_v59  ;;  %v19538_v59 = vld [vmem:[%s25529_s7 + $0xc] ss:$16 sps:$4 sm:$0xff]  }
 0x6ff   : > { %11251 = vmatpush2.bf16.msra.mxu1 %v19458_v57  ;;  %v19541_v57 = vld [vmem:[%s25529_s7 + $0x584] ss:$16 sps:$4 sm:$0xff]  }
 0x700   : > { %11728 = vmatpush2.bf16.msra.mxu0 %v19461_v61  ;;  %11252 = vmatprep.subr.bf16.mxu1 %v19466_v45  ;;  %v19536_v61 = vld [vmem:[%s25529_s7 + $0x8] ss:$16 sps:$4 sm:$0xff]   ;;  %v19539_v45 = vld [vmem:[%s25529_s7 + $0x580] ss:$16 sps:$4 sm:$0xff]  }
 0x701   : > { %11729 = vmatprep.subr.bf16.mxu0 %v19469_v36  ;;  %v19544_v36 = vld [vmem:[%s25529_s7 + $0x1ec] ss:$16 sps:$4 sm:$0xff]  }
 0x703   : > { %11253 = vmatpush2.bf16.msra.mxu1 %v19464_v23  ;;  %v19547_v23 = vld [vmem:[%s25529_s7 + $0x564] ss:$16 sps:$4 sm:$0xff]  }
 0x704   : > { %11730 = vmatpush2.bf16.msra.mxu0 %v19467_v24  ;;  %11756 = vmatprep.subr.bf16.mxu1 %v19472_v49  ;;  %v19542_v24 = vld [vmem:[%s25529_s7 + $0x1e8] ss:$16 sps:$4 sm:$0xff]   ;;  %v19545_v49 = vld [vmem:[%s25529_s7 + $0x560] ss:$16 sps:$4 sm:$0xff]  }
 0x705   : > { %11731 = vmatprep.subr.bf16.mxu0 %v19475_v1  ;;  %v19550_v1 = vld [vmem:[%s25529_s7 + $0x1cc] ss:$16 sps:$4 sm:$0xff]  }
 0x706   : > { %11255 = vmatmul.mubr.bf16.vlgmr.msra.gmra.mxu1 %v24178_v43  ;;  %v19487_v43 = vld [vmem:[%s25529_s7 + $0x124] ss:$16 sps:$4 sm:$0xff]  }
 0x707   : > { %11757 = vmatpush1.bf16.msra.mxu1 %v19470_v22  ;;  %11780 = vmatprep.mubr.bf16.mxu1 %v20008_v41  ;;  %v19553_v22 = vld [vmem:[%s25529_s7 + $0x544] ss:$16 sps:$4 sm:$0xff]  }
 0x708   : > { %11732 = vmatpush2.bf16.msra.mxu0 %v19473_v25  ;;  %11758 = vmatprep.subr.bf16.mxu1 %v19478_v7  ;;  %v19548_v25 = vld [vmem:[%s25529_s7 + $0x1c8] ss:$16 sps:$4 sm:$0xff]   ;;  %v19551_v7 = vld [vmem:[%s25529_s7 + $0x540] ss:$16 sps:$4 sm:$0xff]  }
 0x709   : > { %11733 = vmatprep.subr.bf16.mxu0 %v19481_v55  ;;  %v19556_v55 = vld [vmem:[%s25529_s7 + $0x1ac] ss:$16 sps:$4 sm:$0xff]  }
 0x70b   : > { %11759 = vmatpush1.bf16.msra.mxu1 %v19476_v29  ;;  %v19559_v29 = vld [vmem:[%s25529_s7 + $0x524] ss:$16 sps:$4 sm:$0xff]  }
 0x70c   : > { %11734 = vmatpush2.bf16.msra.mxu0 %v19479_v48  ;;  %11760 = vmatprep.subr.bf16.mxu1 %v19484_v13  ;;  %v19554_v48 = vld [vmem:[%s25529_s7 + $0x1a8] ss:$16 sps:$4 sm:$0xff]   ;;  %v19557_v13 = vld [vmem:[%s25529_s7 + $0x520] ss:$16 sps:$4 sm:$0xff]  }
 0x70d   : > { %11735 = vmatprep.subr.bf16.mxu0 %v19487_v43  ;;  %v19562_v43 = vld [vmem:[%s25529_s7 + $0x18c] ss:$16 sps:$4 sm:$0xff]  }
 0x70f   : > { %11761 = vmatpush1.bf16.msra.mxu1 %v19482_v12  ;;  %v19565_v12 = vld [vmem:[%s25529_s7 + $0x504] ss:$16 sps:$4 sm:$0xff]  }
 0x710   : > { %11736 = vmatpush2.bf16.msra.mxu0 %v19485_v0  ;;  %11762 = vmatprep.subr.bf16.mxu1 %v19490_v2  ;;  %v19560_v0 = vld [vmem:[%s25529_s7 + $0x188] ss:$16 sps:$4 sm:$0xff]   ;;  %v19563_v2 = vld [vmem:[%s25529_s7 + $0x500] ss:$16 sps:$4 sm:$0xff]  }
 0x711   : > { %11737 = vmatprep.subr.bf16.mxu0 %v19493_v40  ;;  %v19568_v40 = vld [vmem:[%s25529_s7 + $0x16c] ss:$16 sps:$4 sm:$0xff]  }
 0x713   : > { %11763 = vmatpush1.bf16.msra.mxu1 %v19488_v62  ;;  %v19571_v62 = vld [vmem:[%s25529_s7 + $0x6e4] ss:$16 sps:$4 sm:$0xff]  }
 0x714   : > { %11738 = vmatpush2.bf16.msra.mxu0 %v19491_v11  ;;  %11789 = vmatprep.subr.bf16.mxu1 %v19496_v6  ;;  %v19569_v11 = vld [vmem:[%s25529_s7 + $0x6e0] ss:$16 sps:$4 sm:$0xff]   ;;  %v19574_v6 = vld [vmem:[%s25529_s7 + $0x14c] ss:$16 sps:$4 sm:$0xff]  }
 0x715   : > { %11838 = vmatprep.subr.bf16.mxu0 %v19499_v34  ;;  %v19572_v34 = vld [vmem:[%s25529_s7 + $0x148] ss:$16 sps:$4 sm:$0xff]  }
 0x716   : > { %16631 = vmatmul.mubr.msk.bf16.vlgmr.msra.gmra.mxu1 %vm1731_vm0, %v10554_v56 }
 0x717   : > { %11740 = vmatmul.mubr.bf16.vlgmr.msra.gmra.mxu0 %v24437_v54  ;;  %11790 = vmatpush1.bf16.msra.mxu1 %v19494_v31  ;;  %v19575_v31 = vld [vmem:[%s25529_s7 + $0x6c0] ss:$16 sps:$4 sm:$0xff]  }
 0x718   : > { %11821 = vmatprep.mubr.bf16.mxu1 %v24241_v42  ;;  %11839 = vmatpush1.bf16.msra.mxu0 %v19497_v38  ;;  %v19506_v42 = vld [vmem:[%s25529_s7 + $0xa8] ss:$16 sps:$4 sm:$0xff]   ;;  %v19583_v38 = vld [vmem:[%s25529_s7 + $0x6a4] ss:$16 sps:$4 sm:$0xff]  }
 0x719   : > { %11791 = vmatprep.subr.bf16.mxu1 %v19502_v46  ;;  %11840 = vmatprep.subr.bf16.mxu0 %v19505_v50  ;;  %v19578_v46 = vld [vmem:[%s25529_s7 + $0x128] ss:$16 sps:$4 sm:$0xff]   ;;  %v19581_v50 = vld [vmem:[%s25529_s7 + $0x6a0] ss:$16 sps:$4 sm:$0xff]  }
 0x71a   : > { %11862 = vmatprep.mubr.bf16.mxu0 %v20008_v41 }
 0x71b   : > { %11792 = vmatpush1.bf16.msra.mxu1 %v19500_v30  ;;  %v19586_v30 = vld [vmem:[%s25529_s7 + $0x10c] ss:$16 sps:$4 sm:$0xff]  }
 0x71c   : > { %11841 = vmatpush1.bf16.msra.mxu0 %v19503_v3  ;;  %11793 = vmatprep.subr.bf16.mxu1 %v19508_v51  ;;  %v19589_v3 = vld [vmem:[%s25529_s7 + $0x684] ss:$16 sps:$4 sm:$0xff]   ;;  %v19584_v51 = vld [vmem:[%s25529_s7 + $0x108] ss:$16 sps:$4 sm:$0xff]  }
 0x71d   : > { %11842 = vmatprep.subr.bf16.mxu0 %v19511_v17  ;;  %v19587_v17 = vld [vmem:[%s25529_s7 + $0x680] ss:$16 sps:$4 sm:$0xff]  }
 0x71f   : > { %11794 = vmatpush1.bf16.msra.mxu1 %v19506_v42  ;;  %v19592_v42 = vld [vmem:[%s25529_s7 + $0x764] ss:$16 sps:$4 sm:$0xff]  }
 0x720   : > { %11843 = vmatpush1.bf16.msra.mxu0 %v19509_v33  ;;  %11795 = vmatprep.subr.bf16.mxu1 %v19514_v15  ;;  %v19595_v33 = vld [vmem:[%s25529_s7 + $0x664] ss:$16 sps:$4 sm:$0xff]   ;;  %v19590_v15 = vld [vmem:[%s25529_s7 + $0x760] ss:$16 sps:$4 sm:$0xff]  }
 0x721   : > { %11844 = vmatprep.subr.bf16.mxu0 %v19517_v9  ;;  %v19593_v9 = vld [vmem:[%s25529_s7 + $0x660] ss:$16 sps:$4 sm:$0xff]  }
 0x723   : > { %11796 = vmatpush1.bf16.msra.mxu1 %v19512_v28  ;;  %v19598_v28 = vld [vmem:[%s25529_s7 + $0x744] ss:$16 sps:$4 sm:$0xff]  }
 0x724   : > { %11845 = vmatpush1.bf16.msra.mxu0 %v19515_v14  ;;  %11797 = vmatprep.subr.bf16.mxu1 %v19520_v26  ;;  %v19601_v14 = vld [vmem:[%s25529_s7 + $0x644] ss:$16 sps:$4 sm:$0xff]   ;;  %v19596_v26 = vld [vmem:[%s25529_s7 + $0x740] ss:$16 sps:$4 sm:$0xff]  }
 0x725   : > { %12376 = vmatprep.subr.bf16.mxu0 %v19523_v21  ;;  %v19599_v21 = vld [vmem:[%s25529_s7 + $0x640] ss:$16 sps:$4 sm:$0xff]  }
 0x727   : > { %11798 = vmatpush1.bf16.msra.mxu1 %v19518_v18  ;;  %16632 = vmatmul.mubr.msk.bf16.vlgmr.msra.gmra.mxu0 %vm1731_vm0, %v10554_v56  ;;  %v19580_v56 = vld [vmem:[%s25529_s7 + $0x12c] ss:$16 sps:$4 sm:$0xff]   ;;  %v19602_v18 = vld [vmem:[%s25529_s7 + $0x720] ss:$16 sps:$4 sm:$0xff]  }
 0x728   : > { %12377 = vmatpush1.bf16.msra.mxu0 %v19521_v53  ;;  %12408 = vmatprep.mubr.bf16.mxu0 %v24501_v52  ;;  %v19605_v53 = vld [vmem:[%s25529_s7 + $0x620] ss:$16 sps:$4 sm:$0xff]  }
 0x729   : > { %11799 = vmatprep.subr.bf16.mxu1 %v19526_v27  ;;  %12378 = vmatprep.subr.bf16.mxu0 %v19529_v32  ;;  %v19610_v27 = vld [vmem:[%s25529_s7 + $0x704] ss:$16 sps:$4 sm:$0xff]  }
 0x72a   : > { %v19613_v32 = vld [vmem:[%s25529_s7 + $0x604] ss:$16 sps:$4 sm:$0xff]  }
 0x72b   : > { %11800 = vmatpush1.bf16.msra.mxu1 %v19524_v10  ;;  %v19608_v10 = vld [vmem:[%s25529_s7 + $0x700] ss:$16 sps:$4 sm:$0xff]  }
 0x72c   : > { %12379 = vmatpush1.bf16.msra.mxu0 %v19527_v58  ;;  %11801 = vmatprep.subr.bf16.mxu1 %v19532_v5  ;;  %v11885_v58 = vrot.slane %v24476_v63, %v21398_v35  ;;  %v19611_v5 = vld [vmem:[%s25529_s7 + $0x600] ss:$16 sps:$4 sm:$0xff]  }
 0x72d   : > { %12380 = vmatprep.subr.bf16.mxu0 %v19535_v4  ;;  %v19616_v4 = vld [vmem:[%s25529_s7 + $0x5ec] ss:$16 sps:$4 sm:$0xff]  }
 0x72f   : > { %11802 = vmatpush1.bf16.msra.mxu1 %v19530_v20  ;;  %v11877_v20 = vrot.slane %v24476_v63, %v21368_v16  ;;  %v19622_v63 = vld [vmem:[%s25529_s7 + $0x5cc] ss:$16 sps:$4 sm:$0xff]  }
 0x730   : > { %12381 = vmatpush1.bf16.msra.mxu0 %v19533_v39  ;;  %11803 = vmatprep.subr.bf16.mxu1 %v19538_v59  ;;  %v19619_v39 = vld [vmem:[%s25529_s7 + $0x76c] ss:$16 sps:$4 sm:$0xff]   ;;  %v19614_v59 = vld [vmem:[%s25529_s7 + $0x5e8] ss:$16 sps:$4 sm:$0xff]  }
 0x731   : > { %12382 = vmatprep.subr.bf16.mxu0 %v19541_v57  ;;  %v11891_v57 = vpack.c.bf16 %v11885_v58, %v11885_v58  ;;  %v19674_v58 = vld [vmem:[%s25529_s7 + $0x6a8] ss:$16 sps:$4 sm:$0xff]  }
 0x733   : > { %11804 = vmatpush1.bf16.msra.mxu1 %v19536_v61  ;;  %v19617_v61 = vld [vmem:[%s25529_s7 + $0x768] ss:$16 sps:$4 sm:$0xff]  }
 0x734   : > { %12383 = vmatpush1.bf16.msra.mxu0 %v19539_v45  ;;  %11805 = vmatprep.subr.bf16.mxu1 %v19544_v36  ;;  %v24697_v45 = vpack.c.bf16 %v11877_v20, %v11877_v20  ;;  %v19625_v36 = vld [vmem:[%s25529_s7 + $0x74c] ss:$16 sps:$4 sm:$0xff]  }
 0x735   : > { %12384 = vmatprep.subr.bf16.mxu0 %v19547_v23  ;;  %v19620_v23 = vld [vmem:[%s25529_s7 + $0x5c8] ss:$16 sps:$4 sm:$0xff]   ;;  %v19682_v20 = vld [vmem:[%s25529_s7 + $0x68c] ss:$16 sps:$4 sm:$0xff]  }
 0x737   : > { %11806 = vmatpush2.bf16.msra.mxu1 %v19542_v24  ;;  %v19623_v24 = vld [vmem:[%s25529_s7 + $0x748] ss:$16 sps:$4 sm:$0xff]  }
 0x738   : > { %12385 = vmatpush1.bf16.msra.mxu0 %v19545_v49  ;;  %11807 = vmatprep.subr.bf16.mxu1 %v19550_v1  ;;  %v19628_v49 = vld [vmem:[%s25529_s7 + $0x5ac] ss:$16 sps:$4 sm:$0xff]  }
 0x739   : > { %12386 = vmatprep.subr.bf16.mxu0 %v19553_v22  ;;  %v19631_v1 = vld [vmem:[%s25529_s7 + $0x72c] ss:$16 sps:$4 sm:$0xff]   ;;  %v19629_v22 = vld [vmem:[%s25529_s7 + $0x728] ss:$16 sps:$4 sm:$0xff]  }
 0x73b   : > { %11808 = vmatpush2.bf16.msra.mxu1 %v19548_v25  ;;  %v19634_v25 = vld [vmem:[%s25529_s7 + $0x58c] ss:$16 sps:$4 sm:$0xff]  }
 0x73c   : > { %12387 = vmatpush1.bf16.msra.mxu0 %v19551_v7  ;;  %11809 = vmatprep.subr.bf16.mxu1 %v19556_v55  ;;  %v19637_v7 = vld [vmem:[%s25529_s7 + $0x70c] ss:$16 sps:$4 sm:$0xff]   ;;  %v19632_v55 = vld [vmem:[%s25529_s7 + $0x588] ss:$16 sps:$4 sm:$0xff]  }
 0x73d   : > { %12388 = vmatprep.subr.bf16.mxu0 %v19559_v29  ;;  %v24736_v29 = vld [vmem:[#allocation4 + $0x3] ss:$8 sm:$0x7] }
 0x73f   : > { %11810 = vmatpush2.bf16.msra.mxu1 %v19554_v48  ;;  %v19635_v48 = vld [vmem:[%s25529_s7 + $0x708] ss:$16 sps:$4 sm:$0xff]  }
 0x740   : > { %12389 = vmatpush1.bf16.msra.mxu0 %v19557_v13  ;;  %11811 = vmatprep.subr.bf16.mxu1 %v19562_v43  ;;  %v19640_v13 = vld [vmem:[%s25529_s7 + $0x56c] ss:$16 sps:$4 sm:$0xff]   ;;  %v19643_v43 = vld [vmem:[%s25529_s7 + $0x864] ss:$16 sps:$4 sm:$0xff]  }
 0x741   : > { %12390 = vmatprep.subr.bf16.mxu0 %v19565_v12  ;;  %v12554_v12 = vrot.slane %v24736_v29, %v21373_v44 }
 0x743   : > { %11812 = vmatpush2.bf16.msra.mxu1 %v19560_v0  ;;  %v19638_v0 = vld [vmem:[%s25529_s7 + $0x568] ss:$16 sps:$4 sm:$0xff]  }
 0x744   : > { %12391 = vmatpush1.bf16.msra.mxu0 %v19563_v2  ;;  %11813 = vmatprep.subr.bf16.mxu1 %v19568_v40  ;;  %v19641_v2 = vld [vmem:[%s25529_s7 + $0x860] ss:$16 sps:$4 sm:$0xff]   ;;  %v19646_v40 = vld [vmem:[%s25529_s7 + $0x54c] ss:$16 sps:$4 sm:$0xff]  }
 0x745   : > { %12392 = vmatprep.subr.bf16.mxu0 %v19571_v62  ;;  %v19649_v62 = vld [vmem:[%s25529_s7 + $0x844] ss:$16 sps:$4 sm:$0xff]  }
 0x747   : > { %11814 = vmatpush2.bf16.msra.mxu1 %v19566_v8  ;;  %v24761_v8 = vpack.c.bf16 %v12554_v12, %v12554_v12  ;;  %v19701_v12 = vld [vmem:[%s25529_s7 + $0x920] ss:$16 sps:$4 sm:$0xff]  }
 0x748   : > { %12393 = vmatpush2.bf16.msra.mxu0 %v19569_v11  ;;  %11815 = vmatprep.subr.bf16.mxu1 %v19574_v6  ;;  %v19644_v11 = vld [vmem:[%s25529_s7 + $0x548] ss:$16 sps:$4 sm:$0xff]   ;;  %v19647_v6 = vld [vmem:[%s25529_s7 + $0x840] ss:$16 sps:$4 sm:$0xff]  }
 0x749   : > { %12394 = vmatprep.subr.bf16.mxu0 %v19577_v60  ;;  %v19652_v60 = vld [vmem:[%s25529_s7 + $0x52c] ss:$16 sps:$4 sm:$0xff]  }
 0x74b   : > { %11816 = vmatpush2.bf16.msra.mxu1 %v19572_v34  ;;  %v19655_v34 = vld [vmem:[%s25529_s7 + $0x824] ss:$16 sps:$4 sm:$0xff]  }
 0x74c   : > { %12395 = vmatpush2.bf16.msra.mxu0 %v19575_v31  ;;  %11817 = vmatprep.subr.bf16.mxu1 %v19580_v56  ;;  %v19650_v31 = vld [vmem:[%s25529_s7 + $0x528] ss:$16 sps:$4 sm:$0xff]   ;;  %v19653_v56 = vld [vmem:[%s25529_s7 + $0x820] ss:$16 sps:$4 sm:$0xff]  }
 0x74d   : > { %12396 = vmatprep.subr.bf16.mxu0 %v19583_v38  ;;  %v19658_v38 = vld [vmem:[%s25529_s7 + $0x50c] ss:$16 sps:$4 sm:$0xff]  }
 0x74f   : > { %11818 = vmatpush2.bf16.msra.mxu1 %v19578_v46  ;;  %v19661_v46 = vld [vmem:[%s25529_s7 + $0x804] ss:$16 sps:$4 sm:$0xff]  }
 0x750   : > { %12397 = vmatpush2.bf16.msra.mxu0 %v19581_v50  ;;  %11819 = vmatprep.subr.bf16.mxu1 %v19586_v30  ;;  %v19656_v50 = vld [vmem:[%s25529_s7 + $0x508] ss:$16 sps:$4 sm:$0xff]   ;;  %v19659_v30 = vld [vmem:[%s25529_s7 + $0x800] ss:$16 sps:$4 sm:$0xff]  }
 0x751   : > { %12398 = vmatprep.subr.bf16.mxu0 %v19589_v3  ;;  %v19664_v3 = vld [vmem:[%s25529_s7 + $0x6ec] ss:$16 sps:$4 sm:$0xff]  }
 0x753   : > { %11820 = vmatpush2.bf16.msra.mxu1 %v19584_v51  ;;  %v19667_v51 = vld [vmem:[%s25529_s7 + $0x7e4] ss:$16 sps:$4 sm:$0xff]  }
 0x754   : > { %12399 = vmatpush2.bf16.msra.mxu0 %v19587_v17  ;;  %12425 = vmatprep.subr.bf16.mxu1 %v19592_v42  ;;  %v19662_v17 = vld [vmem:[%s25529_s7 + $0x6e8] ss:$16 sps:$4 sm:$0xff]   ;;  %v19665_v42 = vld [vmem:[%s25529_s7 + $0x7e0] ss:$16 sps:$4 sm:$0xff]  }
 0x755   : > { %12400 = vmatprep.subr.bf16.mxu0 %v19595_v33  ;;  %v19670_v33 = vld [vmem:[%s25529_s7 + $0x6cc] ss:$16 sps:$4 sm:$0xff]  }
 0x756   : > { %11822 = vmatmul.mubr.bf16.vlgmr.msra.gmra.mxu1 %v24437_v54  ;;  %v19607_v54 = vld [vmem:[%s25529_s7 + $0x624] ss:$16 sps:$4 sm:$0xff]  }
 0x757   : > { %12426 = vmatpush1.bf16.msra.mxu1 %v19590_v15  ;;  %12449 = vmatprep.mubr.bf16.mxu1 %v20008_v41  ;;  %v19673_v15 = vld [vmem:[%s25529_s7 + $0x7c4] ss:$16 sps:$4 sm:$0xff]  }
 0x758   : > { %12401 = vmatpush2.bf16.msra.mxu0 %v19593_v9  ;;  %12427 = vmatprep.subr.bf16.mxu1 %v19598_v28 }
 0x759   : > { %12402 = vmatprep.subr.bf16.mxu0 %v19601_v14  ;;  %v19668_v14 = vld [vmem:[%s25529_s7 + $0x6c8] ss:$16 sps:$4 sm:$0xff]  }
 0x75b   : > { %12428 = vmatpush1.bf16.msra.mxu1 %v19596_v26 }
 0x75c   : > { %12403 = vmatpush2.bf16.msra.mxu0 %v19599_v21  ;;  %12429 = vmatprep.subr.bf16.mxu1 %v19604_v19  ;;  %v19671_v19 = vld [vmem:[%s25529_s7 + $0x7c0] ss:$16 sps:$4 sm:$0xff]  }
 0x75d   : > { %12404 = vmatprep.subr.bf16.mxu0 %v19607_v54  ;;  %v19676_v54 = vld [vmem:[%s25529_s7 + $0x6ac] ss:$16 sps:$4 sm:$0xff]  }
 0x75f   : > { %12430 = vmatpush1.bf16.msra.mxu1 %v19602_v18 }
 0x760   : > { %12405 = vmatpush2.bf16.msra.mxu0 %v19605_v53  ;;  %12431 = vmatprep.subr.bf16.mxu1 %v19610_v27  ;;  %v19679_v53 = vld [vmem:[%s25529_s7 + $0x7a4] ss:$16 sps:$4 sm:$0xff]  }
 0x761   : > { %12406 = vmatprep.subr.bf16.mxu0 %v19613_v32 }
 0x763   : > { %12432 = vmatpush1.bf16.msra.mxu1 %v19608_v10 }
 0x764   : > { %12407 = vmatpush2.bf16.msra.mxu0 %v19611_v5  ;;  %12458 = vmatprep.subr.bf16.mxu1 %v19616_v4  ;;  %v19677_v4 = vld [vmem:[%s25529_s7 + $0x7a0] ss:$16 sps:$4 sm:$0xff]  }
 0x765   : > { %12507 = vmatprep.subr.bf16.mxu0 %v19619_v39 }
 0x766   : > { %16793 = vmatmul.mubr.msk.bf16.vlgmr.msra.gmra.mxu1 %vm1731_vm0, %v11891_v57 }
 0x767   : > { %12409 = vmatmul.mubr.bf16.vlgmr.msra.gmra.mxu0 %v24697_v45  ;;  %12459 = vmatpush1.bf16.msra.mxu1 %v19614_v59  ;;  %v19685_v59 = vld [vmem:[%s25529_s7 + $0x784] ss:$16 sps:$4 sm:$0xff]  }
 0x768   : > { %12490 = vmatprep.mubr.bf16.mxu1 %v24501_v52  ;;  %12508 = vmatpush1.bf16.msra.mxu0 %v19617_v61  ;;  %v19626_v52 = vld [vmem:[%s25529_s7 + $0x5a8] ss:$16 sps:$4 sm:$0xff]   ;;  %v19683_v61 = vld [vmem:[%s25529_s7 + $0x780] ss:$16 sps:$4 sm:$0xff]  }
 0x769   : > { %12460 = vmatprep.subr.bf16.mxu1 %v19622_v63  ;;  %12509 = vmatprep.subr.bf16.mxu0 %v19625_v36  ;;  %v19688_v63 = vld [vmem:[%s25529_s7 + $0x66c] ss:$16 sps:$4 sm:$0xff]   ;;  %v19691_v36 = vld [vmem:[%s25529_s7 + $0x964] ss:$16 sps:$4 sm:$0xff]  }
 0x76a   : > { %12531 = vmatprep.mubr.bf16.mxu0 %v20008_v41 }
 0x76b   : > { %12461 = vmatpush1.bf16.msra.mxu1 %v19620_v23  ;;  %v19686_v23 = vld [vmem:[%s25529_s7 + $0x668] ss:$16 sps:$4 sm:$0xff]  }
 0x76c   : > { %12510 = vmatpush1.bf16.msra.mxu0 %v19623_v24  ;;  %12462 = vmatprep.subr.bf16.mxu1 %v19628_v49  ;;  %v19689_v24 = vld [vmem:[%s25529_s7 + $0x960] ss:$16 sps:$4 sm:$0xff]   ;;  %v19694_v49 = vld [vmem:[%s25529_s7 + $0x64c] ss:$16 sps:$4 sm:$0xff]  }
 0x76d   : > { %12511 = vmatprep.subr.bf16.mxu0 %v19631_v1  ;;  %v19697_v1 = vld [vmem:[%s25529_s7 + $0x944] ss:$16 sps:$4 sm:$0xff]  }
 0x76f   : > { %12463 = vmatpush1.bf16.msra.mxu1 %v19626_v52 }
 0x770   : > { %12512 = vmatpush1.bf16.msra.mxu0 %v19629_v22  ;;  %12464 = vmatprep.subr.bf16.mxu1 %v19634_v25  ;;  %v19692_v22 = vld [vmem:[%s25529_s7 + $0x648] ss:$16 sps:$4 sm:$0xff]   ;;  %v19695_v25 = vld [vmem:[%s25529_s7 + $0x940] ss:$16 sps:$4 sm:$0xff]  }
 0x771   : > { %12513 = vmatprep.subr.bf16.mxu0 %v19637_v7  ;;  %v19700_v7 = vld [vmem:[%s25529_s7 + $0x62c] ss:$16 sps:$4 sm:$0xff]  }
 0x773   : > { %12465 = vmatpush1.bf16.msra.mxu1 %v19632_v55 }
 0x774   : > { %12514 = vmatpush1.bf16.msra.mxu0 %v19635_v48  ;;  %12466 = vmatprep.subr.bf16.mxu1 %v19640_v13  ;;  %v19703_v48 = vld [vmem:[%s25529_s7 + $0x924] ss:$16 sps:$4 sm:$0xff]  }
 0x775   : > { %13049 = vmatprep.subr.bf16.mxu0 %v19643_v43  ;;  %v19698_v43 = vld [vmem:[%s25529_s7 + $0x628] ss:$16 sps:$4 sm:$0xff]  }
 0x777   : > { %12467 = vmatpush1.bf16.msra.mxu1 %v19638_v0  ;;  %16794 = vmatmul.mubr.msk.bf16.vlgmr.msra.gmra.mxu0 %vm1731_vm0, %v11891_v57  ;;  %v19680_v57 = vld [vmem:[%s25529_s7 + $0x688] ss:$16 sps:$4 sm:$0xff]   ;;  %v19706_v0 = vld [vmem:[%s25529_s7 + $0x60c] ss:$16 sps:$4 sm:$0xff]  }
 0x778   : > { %13050 = vmatpush1.bf16.msra.mxu0 %v19641_v2  ;;  %13081 = vmatprep.mubr.bf16.mxu0 %v24761_v8 }
 0x779   : > { %12468 = vmatprep.subr.bf16.mxu1 %v19646_v40  ;;  %13051 = vmatprep.subr.bf16.mxu0 %v19649_v62  ;;  %v19709_v40 = vld [vmem:[%s25529_s7 + $0x904] ss:$16 sps:$4 sm:$0xff]   ;;  %v19704_v62 = vld [vmem:[%s25529_s7 + $0x608] ss:$16 sps:$4 sm:$0xff]  }
 0x77b   : > { %12469 = vmatpush1.bf16.msra.mxu1 %v19644_v11  ;;  %v19707_v11 = vld [vmem:[%s25529_s7 + $0x900] ss:$16 sps:$4 sm:$0xff]  }
 0x77c   : > { %13052 = vmatpush1.bf16.msra.mxu0 %v19647_v6  ;;  %12470 = vmatprep.subr.bf16.mxu1 %v19652_v60  ;;  %v19712_v6 = vld [vmem:[%s25529_s7 + $0x9e4] ss:$16 sps:$4 sm:$0xff]  }
 0x77d   : > { %13053 = vmatprep.subr.bf16.mxu0 %v19655_v34  ;;  %v19715_v60 = vld [vmem:[%s25529_s7 + $0x8e4] ss:$16 sps:$4 sm:$0xff]   ;;  %v19710_v34 = vld [vmem:[%s25529_s7 + $0x9e0] ss:$16 sps:$4 sm:$0xff]  }
 0x77f   : > { %12471 = vmatpush1.bf16.msra.mxu1 %v19650_v31  ;;  %v19713_v31 = vld [vmem:[%s25529_s7 + $0x8e0] ss:$16 sps:$4 sm:$0xff]  }
 0x780   : > { %13054 = vmatpush1.bf16.msra.mxu0 %v19653_v56  ;;  %12472 = vmatprep.subr.bf16.mxu1 %v19658_v38  ;;  %v19718_v56 = vld [vmem:[%s25529_s7 + $0x9c4] ss:$16 sps:$4 sm:$0xff]  }
 0x781   : > { %13055 = vmatprep.subr.bf16.mxu0 %v19661_v46  ;;  %v19721_v38 = vld [vmem:[%s25529_s7 + $0x8c4] ss:$16 sps:$4 sm:$0xff]   ;;  %v19716_v46 = vld [vmem:[%s25529_s7 + $0x9c0] ss:$16 sps:$4 sm:$0xff]  }
 0x783   : > { %12473 = vmatpush1.bf16.msra.mxu1 %v19656_v50  ;;  %v19719_v50 = vld [vmem:[%s25529_s7 + $0x8c0] ss:$16 sps:$4 sm:$0xff]  }
 0x784   : > { %13056 = vmatpush1.bf16.msra.mxu0 %v19659_v30  ;;  %12474 = vmatprep.subr.bf16.mxu1 %v19664_v3  ;;  %v19724_v30 = vld [vmem:[%s25529_s7 + $0x9a4] ss:$16 sps:$4 sm:$0xff]   ;;  %v19722_v3 = vld [vmem:[%s25529_s7 + $0x9a0] ss:$16 sps:$4 sm:$0xff]  }
 0x785   : > { %13057 = vmatprep.subr.bf16.mxu0 %v19667_v51  ;;  %v19725_v51 = vld [vmem:[%s25529_s7 + $0x8a0] ss:$16 sps:$4 sm:$0xff]  }
 0x786   : > { %v11215_v9 = vpop.f32.mrf.mxu1 }
 0x787   : > { %12475 = vmatpush2.bf16.msra.mxu1 %v19662_v17  ;;  %v11174_v28 = vpop.f32.mrf.mxu0  ;;  %v19730_v17 = vld [vmem:[%s25529_s7 + $0x984] ss:$16 sps:$4 sm:$0xff]  }
 0x788   : > { %v24816_v26 = vadd.f32 %v11215_v9, %v11174_v28  ;;  %13058 = vmatpush1.bf16.msra.mxu0 %v19665_v42  ;;  %v11217_v21 = vpop.f32.mrf.mxu1  ;;  %12476 = vmatprep.subr.bf16.mxu1 %v19670_v33  ;;  %v19733_v42 = vld [vmem:[%s25529_s7 + $0x884] ss:$16 sps:$4 sm:$0xff]   ;;  %v19728_v33 = vld [vmem:[%s25529_s7 + $0x980] ss:$16 sps:$4 sm:$0xff]   ;;  %v19736_v28 = vld [vmem:[%s25529_s7 + $0x86c] ss:$16 sps:$4 sm:$0xff]  }
 0x789   : > { %v11176_v18 = vpop.f32.mrf.mxu0  ;;  %13059 = vmatprep.subr.bf16.mxu0 %v19673_v15  ;;  %v12558_v15 = vrot.slane %v24736_v29, %v21398_v35  ;;  %v19731_v9 = vld [vmem:[%s25529_s7 + $0x880] ss:$16 sps:$4 sm:$0xff]  }
 0x78a   : > { %v24827_v27 = vadd.f32 %v11217_v21, %v11176_v18  ;;  %v11219_v32 = vpop.f32.mrf.mxu1  ;;  %v19739_v21 = vld [vmem:[%s25529_s7 + $0x9ec] ss:$16 sps:$4 sm:$0xff]   ;;  %v19737_v18 = vld [vmem:[%s25529_s7 + $0x9e8] ss:$16 sps:$4 sm:$0xff]  }
 0x78b   : > { %12477 = vmatpush2.bf16.msra.mxu1 %v19668_v14  ;;  %v11178_v10 = vpop.f32.mrf.mxu0  ;;  %v12550_v14 = vrot.slane %v24736_v29, %v21368_v16  ;;  %v19742_v29 = vld [vmem:[%s25529_s7 + $0x84c] ss:$16 sps:$4 sm:$0xff]  }
 0x78c   : > { %13060 = vmatpush1.bf16.msra.mxu0 %v19671_v19  ;;  %v11220_v5 = vpop.f32.mrf.mxu1  ;;  %12478 = vmatprep.subr.bf16.mxu1 %v19676_v54  ;;  %v19734_v19 = vld [vmem:[%s25529_s7 + $0x868] ss:$16 sps:$4 sm:$0xff]   ;;  %v12564_v54 = vpack.c.bf16 %v12558_v15, %v12558_v15  ;;  %v19745_v32 = vld [vmem:[%s25529_s7 + $0x9cc] ss:$16 sps:$4 sm:$0xff]  }
 0x78d   : > { %v11179_v39 = vpop.f32.mrf.mxu0  ;;  %13061 = vmatprep.subr.bf16.mxu0 %v19679_v53  ;;  %v24965_v53 = vpack.c.bf16 %v12550_v14, %v12550_v14  ;;  %v19740_v10 = vld [vmem:[%s25529_s7 + $0x848] ss:$16 sps:$4 sm:$0xff]   ;;  %v19748_v5 = vld [vmem:[%s25529_s7 + $0x82c] ss:$16 sps:$4 sm:$0xff]  }
 0x78e   : > { %v19754_v39 = vld [vmem:[%s25529_s7 + $0x80c] ss:$16 sps:$4 sm:$0xff]  }
 0x78f   : > { %12479 = vmatpush2.bf16.msra.mxu1 %v19674_v58  ;;  %v19743_v58 = vld [vmem:[%s25529_s7 + $0x9c8] ss:$16 sps:$4 sm:$0xff]  }
 0x790   : > { %13062 = vmatpush1.bf16.msra.mxu0 %v19677_v4  ;;  %12480 = vmatprep.subr.bf16.mxu1 %v19682_v20  ;;  %v19751_v4 = vld [vmem:[%s25529_s7 + $0x9ac] ss:$16 sps:$4 sm:$0xff]   ;;  %v19749_v20 = vld [vmem:[%s25529_s7 + $0x9a8] ss:$16 sps:$4 sm:$0xff]  }
 0x791   : > { %13063 = vmatprep.subr.bf16.mxu0 %v19685_v59  ;;  %v19757_v59 = vld [vmem:[%s25529_s7 + $0x98c] ss:$16 sps:$4 sm:$0xff]  }
 0x793   : > { %12481 = vmatpush2.bf16.msra.mxu1 %v19680_v57  ;;  %v19752_v57 = vld [vmem:[%s25529_s7 + $0x808] ss:$16 sps:$4 sm:$0xff]  }
 0x794   : > { %13064 = vmatpush1.bf16.msra.mxu0 %v19683_v61  ;;  %12482 = vmatprep.subr.bf16.mxu1 %v19688_v63  ;;  %v25004_v61 = vld [vmem:[#allocation4 + $0x4] ss:$8 sm:$0x7]  ;;  %v19755_v63 = vld [vmem:[%s25529_s7 + $0x988] ss:$16 sps:$4 sm:$0xff]  }
 0x795   : > { %13065 = vmatprep.subr.bf16.mxu0 %v19691_v36  ;;  %v19760_v36 = vld [vmem:[%s25529_s7 + $0x7ec] ss:$16 sps:$4 sm:$0xff]  }
 0x797   : > { %v24865_v52 = vpop.f32.mrf.mxu0  ;;  %12483 = vmatpush2.bf16.msra.mxu1 %v19686_v23  ;;  %v19763_v23 = vld [vmem:[%s25529_s7 + $0xae4] ss:$16 sps:$4 sm:$0xff]  }
 0x798   : > { %13066 = vmatpush2.bf16.msra.mxu0 %v19689_v24  ;;  %12484 = vmatprep.subr.bf16.mxu1 %v19694_v49  ;;  %v13227_v24 = vrot.slane %v25004_v61, %v21373_v44  ;;  %v19758_v49 = vld [vmem:[%s25529_s7 + $0x7e8] ss:$16 sps:$4 sm:$0xff]  }
 0x799   : > { %v24876_v55 = vpop.f32.mrf.mxu0  ;;  %13067 = vmatprep.subr.bf16.mxu0 %v19697_v1  ;;  %v19761_v1 = vld [vmem:[%s25529_s7 + $0xae0] ss:$16 sps:$4 sm:$0xff]  }
 0x79b   : > { %v11301_v13 = vpop.f32.mrf.mxu0  ;;  %12485 = vmatpush2.bf16.msra.mxu1 %v19692_v22  ;;  %v19766_v22 = vld [vmem:[%s25529_s7 + $0x7cc] ss:$16 sps:$4 sm:$0xff]  }
 0x79c   : > { %13068 = vmatpush2.bf16.msra.mxu0 %v19695_v25  ;;  %12486 = vmatprep.subr.bf16.mxu1 %v19700_v7  ;;  %v19769_v25 = vld [vmem:[%s25529_s7 + $0xac4] ss:$16 sps:$4 sm:$0xff]  }
 0x79d   : > { %v11302_v2 = vpop.f32.mrf.mxu0  ;;  %13069 = vmatprep.subr.bf16.mxu0 %v19703_v48  ;;  %v25029_v48 = vpack.c.bf16 %v13227_v24, %v13227_v24 }
 0x79f   : > { %12487 = vmatpush2.bf16.msra.mxu1 %v19698_v43  ;;  %v19764_v43 = vld [vmem:[%s25529_s7 + $0x7c8] ss:$16 sps:$4 sm:$0xff]  }
 0x7a0   : > { %13070 = vmatpush2.bf16.msra.mxu0 %v19701_v12  ;;  %12488 = vmatprep.subr.bf16.mxu1 %v19706_v0  ;;  %v19767_v0 = vld [vmem:[%s25529_s7 + $0xac0] ss:$16 sps:$4 sm:$0xff]  }
 0x7a1   : > { %13071 = vmatprep.subr.bf16.mxu0 %v19709_v40  ;;  %v19775_v40 = vld [vmem:[%s25529_s7 + $0xaa4] ss:$16 sps:$4 sm:$0xff]  }
 0x7a3   : > { %12489 = vmatpush2.bf16.msra.mxu1 %v19704_v62 }
 0x7a4   : > { %13072 = vmatpush2.bf16.msra.mxu0 %v19707_v11  ;;  %13098 = vmatprep.subr.bf16.mxu1 %v19712_v6  ;;  %v19770_v11 = vld [vmem:[%s25529_s7 + $0x7a8] ss:$16 sps:$4 sm:$0xff]  }
 0x7a5   : > { %13073 = vmatprep.subr.bf16.mxu0 %v19715_v60  ;;  %v19778_v60 = vld [vmem:[%s25529_s7 + $0x78c] ss:$16 sps:$4 sm:$0xff]  }
 0x7a6   : > { %12491 = vmatmul.mubr.bf16.vlgmr.msra.gmra.mxu1 %v24697_v45  ;;  %v19727_v45 = vld [vmem:[%s25529_s7 + $0x8a4] ss:$16 sps:$4 sm:$0xff]  }
 0x7a7   : > { %13099 = vmatpush1.bf16.msra.mxu1 %v19710_v34  ;;  %13122 = vmatprep.mubr.bf16.mxu1 %v20008_v41  ;;  %v19781_v34 = vld [vmem:[%s25529_s7 + $0xa84] ss:$16 sps:$4 sm:$0xff]  }
 0x7a8   : > { %13074 = vmatpush2.bf16.msra.mxu0 %v19713_v31  ;;  %13100 = vmatprep.subr.bf16.mxu1 %v19718_v56  ;;  %v19776_v31 = vld [vmem:[%s25529_s7 + $0x788] ss:$16 sps:$4 sm:$0xff]   ;;  %v19779_v56 = vld [vmem:[%s25529_s7 + $0xa80] ss:$16 sps:$4 sm:$0xff]  }
 0x7a9   : > { %13075 = vmatprep.subr.bf16.mxu0 %v19721_v38  ;;  %v19784_v38 = vld [vmem:[%s25529_s7 + $0x96c] ss:$16 sps:$4 sm:$0xff]  }
 0x7ab   : > { %13101 = vmatpush1.bf16.msra.mxu1 %v19716_v46  ;;  %v19787_v46 = vld [vmem:[%s25529_s7 + $0xa64] ss:$16 sps:$4 sm:$0xff]  }
 0x7ac   : > { %13076 = vmatpush2.bf16.msra.mxu0 %v19719_v50  ;;  %13102 = vmatprep.subr.bf16.mxu1 %v19724_v30  ;;  %v19782_v50 = vld [vmem:[%s25529_s7 + $0x968] ss:$16 sps:$4 sm:$0xff]   ;;  %v19785_v30 = vld [vmem:[%s25529_s7 + $0xa60] ss:$16 sps:$4 sm:$0xff]  }
 0x7ad   : > { %13077 = vmatprep.subr.bf16.mxu0 %v19727_v45  ;;  %v19790_v45 = vld [vmem:[%s25529_s7 + $0x94c] ss:$16 sps:$4 sm:$0xff]  }
 0x7af   : > { %13103 = vmatpush1.bf16.msra.mxu1 %v19722_v3  ;;  %v19793_v3 = vld [vmem:[%s25529_s7 + $0xa44] ss:$16 sps:$4 sm:$0xff]  }
 0x7b0   : > { %13078 = vmatpush2.bf16.msra.mxu0 %v19725_v51  ;;  %13104 = vmatprep.subr.bf16.mxu1 %v19730_v17 }
 0x7b1   : > { %13079 = vmatprep.subr.bf16.mxu0 %v19733_v42  ;;  %v19788_v42 = vld [vmem:[%s25529_s7 + $0x948] ss:$16 sps:$4 sm:$0xff]  }
 0x7b3   : > { %13105 = vmatpush1.bf16.msra.mxu1 %v19728_v33 }
 0x7b4   : > { %13080 = vmatpush2.bf16.msra.mxu0 %v19731_v9  ;;  %13131 = vmatprep.subr.bf16.mxu1 %v19736_v28  ;;  %v19791_v9 = vld [vmem:[%s25529_s7 + $0xa40] ss:$16 sps:$4 sm:$0xff]   ;;  %v19796_v28 = vld [vmem:[%s25529_s7 + $0x92c] ss:$16 sps:$4 sm:$0xff]  }
 0x7b5   : > { %13180 = vmatprep.subr.bf16.mxu0 %v19739_v21  ;;  %v19799_v21 = vld [vmem:[%s25529_s7 + $0xa24] ss:$16 sps:$4 sm:$0xff]  }
 0x7b6   : > { %16955 = vmatmul.mubr.msk.bf16.vlgmr.msra.gmra.mxu1 %vm1731_vm0, %v12564_v54 }
 0x7b7   : > { %13082 = vmatmul.mubr.bf16.vlgmr.msra.gmra.mxu0 %v24965_v53  ;;  %13132 = vmatpush1.bf16.msra.mxu1 %v19734_v19 }
 0x7b8   : > { %13163 = vmatprep.mubr.bf16.mxu1 %v24761_v8  ;;  %13181 = vmatpush1.bf16.msra.mxu0 %v19737_v18  ;;  %v19746_v8 = vld [vmem:[%s25529_s7 + $0x828] ss:$16 sps:$4 sm:$0xff]  }
 0x7b9   : > { %13133 = vmatprep.subr.bf16.mxu1 %v19742_v29  ;;  %13182 = vmatprep.subr.bf16.mxu0 %v19745_v32  ;;  %v19794_v29 = vld [vmem:[%s25529_s7 + $0x928] ss:$16 sps:$4 sm:$0xff]  }
 0x7ba   : > { %13204 = vmatprep.mubr.bf16.mxu0 %v20008_v41 }
 0x7bb   : > { %13134 = vmatpush1.bf16.msra.mxu1 %v19740_v10 }
 0x7bc   : > { %13183 = vmatpush1.bf16.msra.mxu0 %v19743_v58  ;;  %13135 = vmatprep.subr.bf16.mxu1 %v19748_v5  ;;  %v19797_v58 = vld [vmem:[%s25529_s7 + $0xa20] ss:$16 sps:$4 sm:$0xff]  }
 0x7bd   : > { %13184 = vmatprep.subr.bf16.mxu0 %v19751_v4  ;;  %v19805_v4 = vld [vmem:[%s25529_s7 + $0xa04] ss:$16 sps:$4 sm:$0xff]  }
 0x7bf   : > { %13136 = vmatpush1.bf16.msra.mxu1 %v19746_v8  ;;  %v19800_v8 = vld [vmem:[%s25529_s7 + $0x908] ss:$16 sps:$4 sm:$0xff]  }
 0x7c0   : > { %13185 = vmatpush1.bf16.msra.mxu0 %v19749_v20  ;;  %13137 = vmatprep.subr.bf16.mxu1 %v19754_v39  ;;  %v19803_v20 = vld [vmem:[%s25529_s7 + $0xa00] ss:$16 sps:$4 sm:$0xff]   ;;  %v19808_v39 = vld [vmem:[%s25529_s7 + $0x8ec] ss:$16 sps:$4 sm:$0xff]  }
 0x7c1   : > { %13186 = vmatprep.subr.bf16.mxu0 %v19757_v59  ;;  %v19811_v59 = vld [vmem:[%s25529_s7 + $0xbe4] ss:$16 sps:$4 sm:$0xff]  }
 0x7c3   : > { %13138 = vmatpush1.bf16.msra.mxu1 %v19752_v57  ;;  %v19806_v57 = vld [vmem:[%s25529_s7 + $0x8e8] ss:$16 sps:$4 sm:$0xff]  }
 0x7c4   : > { %13187 = vmatpush1.bf16.msra.mxu0 %v19755_v63  ;;  %13139 = vmatprep.subr.bf16.mxu1 %v19760_v36  ;;  %v19809_v63 = vld [vmem:[%s25529_s7 + $0xbe0] ss:$16 sps:$4 sm:$0xff]   ;;  %v19814_v36 = vld [vmem:[%s25529_s7 + $0x8cc] ss:$16 sps:$4 sm:$0xff]  }
 0x7c5   : > { %13722 = vmatprep.subr.bf16.mxu0 %v19763_v23  ;;  %v19817_v23 = vld [vmem:[%s25529_s7 + $0xbc4] ss:$16 sps:$4 sm:$0xff]  }
 0x7c6   : > { %v11256_v7 = vpop.f32.mrf.mxu1 }
 0x7c7   : > { %v25032_v13 = vadd.f32 %v24865_v52, %v11256_v7  ;;  %13140 = vmatpush1.bf16.msra.mxu1 %v19758_v49  ;;  %16956 = vmatmul.mubr.msk.bf16.vlgmr.msra.gmra.mxu0 %vm1731_vm0, %v12564_v54  ;;  %v19772_v52 = vld [vmem:[%s25529_s7 + $0x7ac] ss:$16 sps:$4 sm:$0xff]   ;;  %v19812_v49 = vld [vmem:[%s25529_s7 + $0x8c8] ss:$16 sps:$4 sm:$0xff]   ;;  %v19823_v7 = vld [vmem:[%s25529_s7 + $0xba4] ss:$16 sps:$4 sm:$0xff]  }
 0x7c8   : > { %v11258_v12 = vpop.f32.mrf.mxu1  ;;  %13723 = vmatpush1.bf16.msra.mxu0 %v19761_v1  ;;  %13754 = vmatprep.mubr.bf16.mxu0 %v25029_v48  ;;  %v19815_v1 = vld [vmem:[%s25529_s7 + $0xbc0] ss:$16 sps:$4 sm:$0xff]  }
 0x7c9   : > { %v25046_v2 = vadd.f32 %v24876_v55, %v11258_v12  ;;  %13141 = vmatprep.subr.bf16.mxu1 %v19766_v22  ;;  %13724 = vmatprep.subr.bf16.mxu0 %v19769_v25  ;;  %v19773_v55 = vld [vmem:[%s25529_s7 + $0xaa0] ss:$16 sps:$4 sm:$0xff]   ;;  %v19820_v22 = vld [vmem:[%s25529_s7 + $0x8ac] ss:$16 sps:$4 sm:$0xff]   ;;  %v19818_v12 = vld [vmem:[%s25529_s7 + $0x8a8] ss:$16 sps:$4 sm:$0xff]  }
 0x7ca   : > { %v11260_v62 = vpop.f32.mrf.mxu1 }
 0x7cb   : > { %13142 = vmatpush1.bf16.msra.mxu1 %v19764_v43  ;;  %v19829_v62 = vld [vmem:[%s25529_s7 + $0xb84] ss:$16 sps:$4 sm:$0xff]  }
 0x7cc   : > { %v11261_v6 = vpop.f32.mrf.mxu1  ;;  %13725 = vmatpush1.bf16.msra.mxu0 %v19767_v0  ;;  %13143 = vmatprep.subr.bf16.mxu1 %v19772_v52  ;;  %v19821_v0 = vld [vmem:[%s25529_s7 + $0xba0] ss:$16 sps:$4 sm:$0xff]   ;;  %v19826_v52 = vld [vmem:[%s25529_s7 + $0x88c] ss:$16 sps:$4 sm:$0xff]  }
 0x7cd   : > { %13726 = vmatprep.subr.bf16.mxu0 %v19775_v40  ;;  %v19827_v6 = vld [vmem:[%s25529_s7 + $0xb80] ss:$16 sps:$4 sm:$0xff]  }
 0x7cf   : > { %13144 = vmatpush1.bf16.msra.mxu1 %v19770_v11  ;;  %v19824_v11 = vld [vmem:[%s25529_s7 + $0x888] ss:$16 sps:$4 sm:$0xff]  }
 0x7d0   : > { %13727 = vmatpush1.bf16.msra.mxu0 %v19773_v55  ;;  %13145 = vmatprep.subr.bf16.mxu1 %v19778_v60  ;;  %v19832_v55 = vld [vmem:[%s25529_s7 + $0xc64] ss:$16 sps:$4 sm:$0xff]  }
 0x7d1   : > { %13728 = vmatprep.subr.bf16.mxu0 %v19781_v34  ;;  %v19835_v60 = vld [vmem:[%s25529_s7 + $0xb64] ss:$16 sps:$4 sm:$0xff]   ;;  %v19830_v34 = vld [vmem:[%s25529_s7 + $0xc60] ss:$16 sps:$4 sm:$0xff]  }
 0x7d3   : > { %13146 = vmatpush1.bf16.msra.mxu1 %v19776_v31  ;;  %v19833_v31 = vld [vmem:[%s25529_s7 + $0xb60] ss:$16 sps:$4 sm:$0xff]  }
 0x7d4   : > { %13729 = vmatpush1.bf16.msra.mxu0 %v19779_v56  ;;  %13147 = vmatprep.subr.bf16.mxu1 %v19784_v38  ;;  %v19838_v56 = vld [vmem:[%s25529_s7 + $0xc44] ss:$16 sps:$4 sm:$0xff]  }
 0x7d5   : > { %13730 = vmatprep.subr.bf16.mxu0 %v19787_v46  ;;  %v19841_v38 = vld [vmem:[%s25529_s7 + $0xb44] ss:$16 sps:$4 sm:$0xff]   ;;  %v19836_v46 = vld [vmem:[%s25529_s7 + $0xc40] ss:$16 sps:$4 sm:$0xff]  }
 0x7d6   : > { %v11782_v51 = vpop.f32.mrf.mxu1 }
 0x7d7   : > { %v11741_v17 = vpop.f32.mrf.mxu0  ;;  %13148 = vmatpush2.bf16.msra.mxu1 %v19782_v50  ;;  %v19839_v50 = vld [vmem:[%s25529_s7 + $0xb40] ss:$16 sps:$4 sm:$0xff]  }
 0x7d8   : > { %v11742_v33 = vadd.f32 %v11741_v17, %v24816_v26  ;;  %v11784_v15 = vpop.f32.mrf.mxu1  ;;  %13731 = vmatpush1.bf16.msra.mxu0 %v19785_v30  ;;  %13149 = vmatprep.subr.bf16.mxu1 %v19790_v45  ;;  %v19844_v30 = vld [vmem:[%s25529_s7 + $0xc24] ss:$16 sps:$4 sm:$0xff]   ;;  %v19842_v45 = vld [vmem:[%s25529_s7 + $0xc20] ss:$16 sps:$4 sm:$0xff]  }
 0x7d9   : > { %v11743_v14 = vpop.f32.mrf.mxu0  ;;  %13732 = vmatprep.subr.bf16.mxu0 %v19793_v3  ;;  %v19845_v3 = vld [vmem:[%s25529_s7 + $0xb20] ss:$16 sps:$4 sm:$0xff]   ;;  %v19853_v17 = vld [vmem:[%s25529_s7 + $0xb04] ss:$16 sps:$4 sm:$0xff]  }
 0x7da   : > { %v25100_v19 = vadd.f32 %v11782_v51, %v11742_v33  ;;  %v11744_v26 = vadd.f32 %v11743_v14, %v24827_v27  ;;  %v11786_v54 = vpop.f32.mrf.mxu1  ;;  %v19802_v27 = vld [vmem:[%s25529_s7 + $0x90c] ss:$16 sps:$4 sm:$0xff]   ;;  %v19850_v51 = vld [vmem:[%s25529_s7 + $0xc04] ss:$16 sps:$4 sm:$0xff]   ;;  %v13231_v33 = vrot.slane %v25004_v61, %v21398_v35 }
 0x7db   : > { %v11745_v18 = vpop.f32.mrf.mxu0  ;;  %13150 = vmatpush2.bf16.msra.mxu1 %v19788_v42  ;;  %v19848_v42 = vld [vmem:[%s25529_s7 + $0xc00] ss:$16 sps:$4 sm:$0xff]   ;;  %v19859_v14 = vld [vmem:[%s25529_s7 + $0xc6c] ss:$16 sps:$4 sm:$0xff]   ;;  %v19857_v54 = vld [vmem:[%s25529_s7 + $0xc68] ss:$16 sps:$4 sm:$0xff]  }
 0x7dc   : > { %v25106_v32 = vadd.f32 %v11784_v15, %v11744_v26  ;;  %v11787_v10 = vpop.f32.mrf.mxu1  ;;  %13733 = vmatpush1.bf16.msra.mxu0 %v19791_v9  ;;  %13151 = vmatprep.subr.bf16.mxu1 %v19796_v28  ;;  %v19851_v15 = vld [vmem:[%s25529_s7 + $0xb00] ss:$16 sps:$4 sm:$0xff]   ;;  %v19856_v9 = vld [vmem:[%s25529_s7 + $0xaec] ss:$16 sps:$4 sm:$0xff]   ;;  %v13223_v28 = vrot.slane %v25004_v61, %v21368_v16  ;;  %v13237_v26 = vpack.c.bf16 %v13231_v33, %v13231_v33 }
 0x7dd   : > { %v11746_v5 = vpop.f32.mrf.mxu0  ;;  %13734 = vmatprep.subr.bf16.mxu0 %v19799_v21  ;;  %v19854_v21 = vld [vmem:[%s25529_s7 + $0xae8] ss:$16 sps:$4 sm:$0xff]   ;;  %v19862_v61 = vld [vmem:[%s25529_s7 + $0xacc] ss:$16 sps:$4 sm:$0xff]  }
 0x7de   : > { %v25241_v18 = vpack.c.bf16 %v13223_v28, %v13223_v28  ;;  %v19860_v10 = vld [vmem:[%s25529_s7 + $0xac8] ss:$16 sps:$4 sm:$0xff]   ;;  %v19871_v5 = vld [vmem:[%s25529_s7 + $0xc2c] ss:$16 sps:$4 sm:$0xff]  }
 0x7df   : > { %13152 = vmatpush2.bf16.msra.mxu1 %v19794_v29  ;;  %v19865_v29 = vld [vmem:[%s25529_s7 + $0xc4c] ss:$16 sps:$4 sm:$0xff]   ;;  %v19905_v28 = vld [vmem:[%s25529_s7 + $0xb48] ss:$16 sps:$4 sm:$0xff]  }
 0x7e0   : > { %13735 = vmatpush1.bf16.msra.mxu0 %v19797_v58  ;;  %13153 = vmatprep.subr.bf16.mxu1 %v19802_v27  ;;  %v19863_v58 = vld [vmem:[%s25529_s7 + $0xc48] ss:$16 sps:$4 sm:$0xff]   ;;  %v19868_v27 = vld [vmem:[%s25529_s7 + $0xaac] ss:$16 sps:$4 sm:$0xff]  }
 0x7e1   : > { %13736 = vmatprep.subr.bf16.mxu0 %v19805_v4  ;;  %v19869_v4 = vld [vmem:[%s25529_s7 + $0xc28] ss:$16 sps:$4 sm:$0xff]   ;;  %v19904_v33 = vld [vmem:[%s25529_s7 + $0xb6c] ss:$16 sps:$4 sm:$0xff]  }
 0x7e3   : > { %13154 = vmatpush2.bf16.msra.mxu1 %v19800_v8  ;;  %v19874_v8 = vld [vmem:[%s25529_s7 + $0xa8c] ss:$16 sps:$4 sm:$0xff]  }
 0x7e4   : > { %13737 = vmatpush1.bf16.msra.mxu0 %v19803_v20  ;;  %13155 = vmatprep.subr.bf16.mxu1 %v19808_v39  ;;  %v19872_v20 = vld [vmem:[%s25529_s7 + $0xa88] ss:$16 sps:$4 sm:$0xff]  }
 0x7e5   : > { %13738 = vmatprep.subr.bf16.mxu0 %v19811_v59  ;;  %v19875_v39 = vld [vmem:[%s25529_s7 + $0xc08] ss:$16 sps:$4 sm:$0xff]   ;;  %v19880_v59 = vld [vmem:[%s25529_s7 + $0xa6c] ss:$16 sps:$4 sm:$0xff]  }
 0x7e7   : > { %v25141_v24 = vpop.f32.mrf.mxu0  ;;  %13156 = vmatpush2.bf16.msra.mxu1 %v19806_v57  ;;  %v19914_v57 = vld [vmem:[%s25531_s9 + $0x78] sm:$0xff]  }
 0x7e8   : > { %13739 = vmatpush2.bf16.msra.mxu0 %v19809_v63  ;;  %13157 = vmatprep.subr.bf16.mxu1 %v19814_v36  ;;  %v19878_v63 = vld [vmem:[%s25529_s7 + $0xa68] ss:$16 sps:$4 sm:$0xff]   ;;  %v19883_v36 = vld [vmem:[%s25529_s7 + $0xa4c] ss:$16 sps:$4 sm:$0xff]  }
 0x7e9   : > { %v25152_v25 = vpop.f32.mrf.mxu0  ;;  %13740 = vmatprep.subr.bf16.mxu0 %v19817_v23 }
 0x7eb   : > { %v11868_v43 = vpop.f32.mrf.mxu0  ;;  %13158 = vmatpush2.bf16.msra.mxu1 %v19812_v49 }
 0x7ec   : > { %13741 = vmatpush2.bf16.msra.mxu0 %v19815_v1  ;;  %13159 = vmatprep.subr.bf16.mxu1 %v19820_v22  ;;  %v19881_v1 = vld [vmem:[%s25529_s7 + $0xa48] ss:$16 sps:$4 sm:$0xff]  }
 0x7ed   : > { %v11869_v40 = vpop.f32.mrf.mxu0  ;;  %13742 = vmatprep.subr.bf16.mxu0 %v19823_v7  ;;  %v19886_v7 = vld [vmem:[%s25529_s7 + $0xa2c] ss:$16 sps:$4 sm:$0xff]  }
 0x7ef   : > { %13160 = vmatpush2.bf16.msra.mxu1 %v19818_v12 }
 0x7f0   : > { %13743 = vmatpush2.bf16.msra.mxu0 %v19821_v0  ;;  %13161 = vmatprep.subr.bf16.mxu1 %v19826_v52  ;;  %v19884_v52 = vld [vmem:[%s25529_s7 + $0xa28] ss:$16 sps:$4 sm:$0xff]  }
 0x7f1   : > { %13744 = vmatprep.subr.bf16.mxu0 %v19829_v62  ;;  %v19889_v62 = vld [vmem:[%s25529_s7 + $0xa0c] ss:$16 sps:$4 sm:$0xff]  }
 0x7f3   : > { %13162 = vmatpush2.bf16.msra.mxu1 %v19824_v11  ;;  %v19895_v11 = vld [vmem:[%s25529_s7 + $0xbcc] ss:$16 sps:$4 sm:$0xff]  }
 0x7f4   : > { %13745 = vmatpush2.bf16.msra.mxu0 %v19827_v6  ;;  %13771 = vmatprep.subr.bf16.mxu1 %v19832_v55 }
 0x7f5   : > { %13746 = vmatprep.subr.bf16.mxu0 %v19835_v60  ;;  %v19893_v60 = vld [vmem:[%s25529_s7 + $0xbc8] ss:$16 sps:$4 sm:$0xff]  }
 0x7f6   : > { %13164 = vmatmul.mubr.bf16.vlgmr.msra.gmra.mxu1 %v24965_v53  ;;  %v19847_v53 = vld [vmem:[%s25529_s7 + $0xb24] ss:$16 sps:$4 sm:$0xff]  }
 0x7f7   : > { %13772 = vmatpush1.bf16.msra.mxu1 %v19830_v34  ;;  %13795 = vmatprep.mubr.bf16.mxu1 %v20008_v41 }
 0x7f8   : > { %13747 = vmatpush2.bf16.msra.mxu0 %v19833_v31  ;;  %13773 = vmatprep.subr.bf16.mxu1 %v19838_v56  ;;  %v19898_v56 = vld [vmem:[%s25529_s7 + $0xbac] ss:$16 sps:$4 sm:$0xff]  }
 0x7f9   : > { %13748 = vmatprep.subr.bf16.mxu0 %v19841_v38 }
 0x7fb   : > { %13774 = vmatpush1.bf16.msra.mxu1 %v19836_v46 }
 0x7fc   : > { %13749 = vmatpush2.bf16.msra.mxu0 %v19839_v50  ;;  %13775 = vmatprep.subr.bf16.mxu1 %v19844_v30 }
 0x7fd   : > { %13750 = vmatprep.subr.bf16.mxu0 %v19847_v53 }
 0x7ff   : > { %13776 = vmatpush1.bf16.msra.mxu1 %v19842_v45  ;;  %v19896_v45 = vld [vmem:[%s25529_s7 + $0xba8] ss:$16 sps:$4 sm:$0xff]  }
 0x800   : > { %13751 = vmatpush2.bf16.msra.mxu0 %v19845_v3  ;;  %13777 = vmatprep.subr.bf16.mxu1 %v19850_v51 }
 0x801   : > { %13752 = vmatprep.subr.bf16.mxu0 %v19853_v17  ;;  %v19901_v17 = vld [vmem:[%s25529_s7 + $0xb8c] ss:$16 sps:$4 sm:$0xff]  }
 0x803   : > { %13778 = vmatpush1.bf16.msra.mxu1 %v19848_v42 }
 0x804   : > { %13753 = vmatpush2.bf16.msra.mxu0 %v19851_v15  ;;  %13804 = vmatprep.subr.bf16.mxu1 %v19856_v9  ;;  %v19907_v15 = vld [vmem:[%s25529_s7 + $0xb4c] ss:$16 sps:$4 sm:$0xff]  }
 0x805   : > { %13853 = vmatprep.subr.bf16.mxu0 %v19859_v14  ;;  %v19910_v14 = vld [vmem:[%s25529_s7 + $0xb2c] ss:$16 sps:$4 sm:$0xff]  }
 0x806   : > { %17117 = vmatmul.mubr.msk.bf16.vlgmr.msra.gmra.mxu1 %vm1731_vm0, %v13237_v26 }
 0x807   : > { %13755 = vmatmul.mubr.bf16.vlgmr.msra.gmra.mxu0 %v25241_v18  ;;  %13805 = vmatpush1.bf16.msra.mxu1 %v19854_v21 }
 0x808   : > { %13836 = vmatprep.mubr.bf16.mxu1 %v25029_v48  ;;  %13854 = vmatpush1.bf16.msra.mxu0 %v19857_v54  ;;  %v19866_v48 = vld [vmem:[%s25529_s7 + $0xaa8] ss:$16 sps:$4 sm:$0xff]  }
 0x809   : > { %13806 = vmatprep.subr.bf16.mxu1 %v19862_v61  ;;  %13855 = vmatprep.subr.bf16.mxu0 %v19865_v29  ;;  %v19908_v61 = vld [vmem:[%s25529_s7 + $0xb28] ss:$16 sps:$4 sm:$0xff]   ;;  %v19916_v29 = vld [vmem:[%s25531_s9 + $0x70] sm:$0xff]  }
 0x80a   : > { %13877 = vmatprep.mubr.bf16.mxu0 %v20008_v41  ;;  %v19877_v41 = vld [vmem:[%s25529_s7 + $0xc0c] ss:$16 sps:$4 sm:$0xff]  }
 0x80b   : > { %13807 = vmatpush1.bf16.msra.mxu1 %v19860_v10  ;;  %v19917_v10 = vld [vmem:[%s25531_s9 + $0x30] sm:$0xff]  }
 0x80c   : > { %13856 = vmatpush1.bf16.msra.mxu0 %v19863_v58  ;;  %13808 = vmatprep.subr.bf16.mxu1 %v19868_v27  ;;  %v19913_v58 = vld [vmem:[%s25529_s7 + $0xb0c] ss:$16 sps:$4 sm:$0xff]  }
 0x80d   : > { %13857 = vmatprep.subr.bf16.mxu0 %v19871_v5  ;;  %v19918_v27 = vld [vmem:[%s25531_s9 + $0x68] sm:$0xff]  }
 0x80f   : > { %13809 = vmatpush1.bf16.msra.mxu1 %v19866_v48  ;;  %v19911_v48 = vld [vmem:[%s25529_s7 + $0xb08] ss:$16 sps:$4 sm:$0xff]  }
 0x810   : > { %13858 = vmatpush1.bf16.msra.mxu0 %v19869_v4  ;;  %13810 = vmatprep.subr.bf16.mxu1 %v19874_v8  ;;  %v19919_v4 = vld [vmem:[%s25531_s9 + $0x28] sm:$0xff]   ;;  %v19920_v8 = vld [vmem:[%s25531_s9 + $0x60] sm:$0xff]  }
 0x811   : > { %13859 = vmatprep.subr.bf16.mxu0 %v19877_v41  ;;  %v19921_v41 = vld [vmem:[%s25531_s9 + $0x20] sm:$0xff]  }
 0x813   : > { %13811 = vmatpush1.bf16.msra.mxu1 %v19872_v20  ;;  %v19922_v20 = vld [vmem:[%s25531_s9 + $0x58] sm:$0xff]  }
 0x814   : > { %13860 = vmatpush1.bf16.msra.mxu0 %v19875_v39  ;;  %13812 = vmatprep.subr.bf16.mxu1 %v19880_v59  ;;  %v19923_v39 = vld [vmem:[%s25531_s9 + $0x18] sm:$0xff]   ;;  %v19924_v59 = vld [vmem:[%s25531_s9 + $0x50] sm:$0xff]  }
 0x815   : > { %17567 = vmatprep.subr.bf16.mxu0 %v19914_v57  ;;  %v19925_v57 = vld [vmem:[%s25531_s9 + $0x10] sm:$0xff]  }
 0x816   : > { %v11823_v23 = vpop.f32.mrf.mxu1 }
 0x817   : > { %v11824_v49 = vadd.f32 %v11823_v23, %v25032_v13  ;;  %13813 = vmatpush1.bf16.msra.mxu1 %v19878_v63  ;;  %17118 = vmatmul.mubr.msk.bf16.vlgmr.msra.gmra.mxu0 %vm1731_vm0, %v13237_v26  ;;  %v19915_v26 = vld [vmem:[%s25531_s9 + $0x38] sm:$0xff]   ;;  %v19927_v63 = vld [vmem:[%s25531_s9 + $0x8] sm:$0xff]   ;;  %v19929_v23 = vld [vmem:[%s25531_s9] sm:$0xff]  }
 0x818   : > { %v11825_v22 = vpop.f32.mrf.mxu1  ;;  %13814 = vmatprep.subr.bf16.mxu1 %v19883_v36  ;;  %17568 = vmatpush3.bf16.msra.mxu0 %v19915_v26  ;;  %v19928_v36 = vld [vmem:[%s25531_s9 + $0x40] sm:$0xff]  }
 0x819   : > { %v25304_v43 = vadd.f32 %v25141_v24, %v11824_v49  ;;  %v11826_v12 = vadd.f32 %v11825_v22, %v25046_v2  ;;  %v19887_v2 = vld [vmem:[%s25529_s7 + $0xa08] ss:$16 sps:$4 sm:$0xff]   ;;  %v19892_v24 = vld [vmem:[%s25529_s7 + $0xbec] ss:$16 sps:$4 sm:$0xff]   ;;  %17569 = vmatprep.subr.bf16.mxu0 %v19916_v29  ;;  %v19932_v22 = vld [vmem:[%s25531_s9 + $0xf0] sm:$0xff]  }
 0x81a   : > { %v11827_v0 = vpop.f32.mrf.mxu1  ;;  %v19930_v49 = vld [vmem:[%s25531_s9 + $0xf8] sm:$0xff]   ;;  %v19945_v26 = vld [vmem:[%s25531_s9 + $0x80] sm:$0xff]  }
 0x81b   : > { %v25308_v13 = vadd.f32 %v25152_v25, %v11826_v12  ;;  %13815 = vmatpush1.bf16.msra.mxu1 %v19881_v1  ;;  %v19890_v25 = vld [vmem:[%s25529_s7 + $0xbe8] ss:$16 sps:$4 sm:$0xff]  }
 0x81c   : > { %v11828_v40 = vpop.f32.mrf.mxu1  ;;  %13816 = vmatprep.subr.bf16.mxu1 %v19886_v7  ;;  %17570 = vmatpush3.bf16.msra.mxu0 %v19917_v10  ;;  %v19931_v1 = vld [vmem:[%s25531_s9 + $0xb8] sm:$0xff]   ;;  %v19933_v7 = vld [vmem:[%s25531_s9 + $0xb0] sm:$0xff]   ;;  %v19934_v12 = vld [vmem:[%s25531_s9 + $0xe8] sm:$0xff]  }
 0x81d   : > { %17571 = vmatprep.subr.bf16.mxu0 %v19918_v27  ;;  %v19935_v0 = vld [vmem:[%s25531_s9 + $0xa8] sm:$0xff]  }
 0x81f   : > { %13817 = vmatpush1.bf16.msra.mxu1 %v19884_v52  ;;  %v19936_v52 = vld [vmem:[%s25531_s9 + $0xe0] sm:$0xff]  }
 0x820   : > { %13818 = vmatprep.subr.bf16.mxu1 %v19889_v62  ;;  %17572 = vmatpush3.bf16.msra.mxu0 %v19919_v4  ;;  %v13890_v4 = vld [vmem:[%s25530_s8] sm:$0xf] }
 0x821   : > { %17573 = vmatprep.subr.bf16.mxu0 %v19920_v8 }
 0x823   : > { %13819 = vmatpush1.bf16.msra.mxu1 %v19887_v2 }
 0x824   : > { %13820 = vmatprep.subr.bf16.mxu1 %v19892_v24  ;;  %17574 = vmatpush3.bf16.msra.mxu0 %v19921_v41  ;;  %v19937_v24 = vld [vmem:[%s25531_s9 + $0xa0] sm:$0xff]  }
 0x825   : > { %17575 = vmatprep.subr.bf16.mxu0 %v19922_v20 }
 0x826   : > { %v12451_v6 = vpop.f32.mrf.mxu1 }
 0x827   : > { %v12410_v55 = vpop.f32.mrf.mxu0  ;;  %13821 = vmatpush2.bf16.msra.mxu1 %v19890_v25 }
 0x828   : > { %v12452_v34 = vadd.f32 %v12451_v6, %v12410_v55  ;;  %v12453_v31 = vpop.f32.mrf.mxu1  ;;  %13822 = vmatprep.subr.bf16.mxu1 %v19895_v11  ;;  %17576 = vmatpush3.bf16.msra.mxu0 %v19923_v39  ;;  %v19938_v6 = vld [vmem:[%s25531_s9 + $0xd8] sm:$0xff]   ;;  %v13895_v39 = vrot.slane %v13890_v4, %v21368_v16 }
 0x829   : > { %v12412_v38 = vpop.f32.mrf.mxu0  ;;  %17577 = vmatprep.subr.bf16.mxu0 %v19924_v59 }
 0x82a   : > { %v25335_v46 = vadd.f32 %v12452_v34, %v25100_v19  ;;  %v12454_v50 = vadd.f32 %v12453_v31, %v12412_v38  ;;  %v12455_v30 = vpop.f32.mrf.mxu1  ;;  %v19899_v19 = vld [vmem:[%s25529_s7 + $0xb88] ss:$16 sps:$4 sm:$0xff]  }
 0x82b   : > { %v12414_v53 = vpop.f32.mrf.mxu0  ;;  %13823 = vmatpush2.bf16.msra.mxu1 %v19893_v60  ;;  %v19939_v31 = vld [vmem:[%s25531_s9 + $0x98] sm:$0xff]  }
 0x82c   : > { %v25341_v3 = vadd.f32 %v12454_v50, %v25106_v32  ;;  %v12456_v51 = vpop.f32.mrf.mxu1  ;;  %13824 = vmatprep.subr.bf16.mxu1 %v19898_v56  ;;  %v19902_v32 = vld [vmem:[%s25529_s7 + $0xb68] ss:$16 sps:$4 sm:$0xff]   ;;  %17578 = vmatpush3.bf16.msra.mxu0 %v19925_v57 }
 0x82d   : > { %v12415_v42 = vpop.f32.mrf.mxu0 }
 0x82f   : > { %13825 = vmatpush2.bf16.msra.mxu1 %v19896_v45 }
 0x830   : > { %13826 = vmatprep.subr.bf16.mxu1 %v19901_v17 }
 0x833   : > { %13827 = vmatpush2.bf16.msra.mxu1 %v19899_v19 }
 0x834   : > { %13828 = vmatprep.subr.bf16.mxu1 %v19904_v33 }
 0x837   : > { %v12533_v9 = vpop.f32.mrf.mxu0  ;;  %13829 = vmatpush2.bf16.msra.mxu1 %v19902_v32 }
 0x838   : > { %13830 = vmatprep.subr.bf16.mxu1 %v19907_v15 }
 0x839   : > { %v12535_v21 = vpop.f32.mrf.mxu0 }
 0x83b   : > { %v12537_v54 = vpop.f32.mrf.mxu0  ;;  %13831 = vmatpush2.bf16.msra.mxu1 %v19905_v28 }
 0x83c   : > { %13832 = vmatprep.subr.bf16.mxu1 %v19910_v14  ;;  %v19941_v14 = vld [vmem:[%s25531_s9 + $0x90] sm:$0xff]  }
 0x83d   : > { %v12538_v5 = vpop.f32.mrf.mxu0 }
 0x83f   : > { %13833 = vmatpush2.bf16.msra.mxu1 %v19908_v61 }
 0x840   : > { %13834 = vmatprep.subr.bf16.mxu1 %v19913_v58 }
 0x843   : > { %13835 = vmatpush2.bf16.msra.mxu1 %v19911_v48 }
 0x844   : > { %17589 = vmatprep.subr.bf16.mxu1 %v19930_v49 }
 0x846   : > { %13837 = vmatmul.mubr.bf16.vlgmr.msra.gmra.mxu1 %v25241_v18  ;;  %v19926_v18 = vld [vmem:[%s25531_s9 + $0x48] sm:$0xff]  }
 0x847   : > { %17579 = vmatprep.subr.bf16.mxu0 %v19926_v18  ;;  %17590 = vmatpush3.bf16.msra.mxu1 %v19931_v1 }
 0x848   : > { %17580 = vmatpush3.bf16.msra.mxu0 %v19927_v63  ;;  %17591 = vmatprep.subr.bf16.mxu1 %v19932_v22 }
 0x849   : > { %17581 = vmatprep.subr.bf16.mxu0 %v19928_v36  ;;  %v13899_v36 = vrot.slane %v13890_v4, %v21373_v44  ;;  %v13903_v44 = vrot.slane %v13890_v4, %v21398_v35 }
 0x84b   : > { %17592 = vmatpush3.bf16.msra.mxu1 %v19933_v7 }
 0x84c   : > { %17582 = vmatpush3.bf16.msra.mxu0 %v19929_v23  ;;  %17593 = vmatprep.subr.bf16.mxu1 %v19934_v12 }
 0x84f   : > { %17594 = vmatpush3.bf16.msra.mxu1 %v19935_v0 }
 0x850   : > { %17595 = vmatprep.subr.bf16.mxu1 %v19936_v52 }
 0x853   : > { %17596 = vmatpush3.bf16.msra.mxu1 %v19937_v24 }
 0x854   : > { %17597 = vmatprep.subr.bf16.mxu1 %v19938_v6 }
 0x857   : > { %17598 = vmatpush3.bf16.msra.mxu1 %v19939_v31 }
 0x866   : > { %v12492_v40 = vpop.f32.mrf.mxu1 }
 0x867   : > { %v12534_v62 = vadd.f32 %v12533_v9, %v12492_v40  ;;  %v19940_v9 = vld [vmem:[%s25531_s9 + $0xd0] sm:$0xff]  }
 0x868   : > { %v12494_v2 = vpop.f32.mrf.mxu1  ;;  %17599 = vmatprep.subr.bf16.mxu1 %v19940_v9 }
 0x869   : > { %v12542_v25 = vadd.f32 %v12534_v62, %v25304_v43  ;;  %v12536_v11 = vadd.f32 %v12535_v21, %v12494_v2  ;;  %17600 = vmatpush3.bf16.msra.mxu1 %v19941_v14  ;;  %v19944_v21 = vld [vmem:[%s25531_s9 + $0xc0] sm:$0xff]  }
 0x86a   : > { %v12496_v55 = vpop.f32.mrf.mxu1 }
 0x86b   : > { %v12543_v60 = vadd.f32 %v12536_v11, %v25308_v13 }
 0x86c   : > { %v12497_v34 = vpop.f32.mrf.mxu1 }
 0x876   : > { %v13124_v56 = vpop.f32.mrf.mxu1 }
 0x877   : > { %v13083_v38 = vpop.f32.mrf.mxu0 }
 0x878   : > { %v13125_v43 = vadd.f32 %v13124_v56, %v13083_v38  ;;  %v13126_v50 = vpop.f32.mrf.mxu1  ;;  %v13907_v56 = vrot.slane %v13890_v4, %v7500_v47  ;;  %v13988_v47 = vld [vmem:[%s25532_s10] sm:$0x1] }
 0x879   : > { %v13085_v30 = vpop.f32.mrf.mxu0 }
 0x87a   : > { %v13213_v53 = vadd.f32 %v13125_v43, %v25335_v46  ;;  %v13127_v45 = vadd.f32 %v13126_v50, %v13085_v30  ;;  %v13128_v51 = vpop.f32.mrf.mxu1  ;;  %v19942_v46 = vld [vmem:[%s25531_s9 + $0xc8] sm:$0xff]  }
 0x87b   : > { %v13087_v17 = vpop.f32.mrf.mxu0  ;;  %17601 = vmatprep.subr.bf16.mxu1 %v19942_v46 }
 0x87c   : > { %v13214_v13 = vadd.f32 %v13127_v45, %v25341_v3  ;;  %v13129_v42 = vpop.f32.mrf.mxu1  ;;  %v19943_v3 = vld [vmem:[%s25531_s9 + $0x88] sm:$0xff]  }
 0x87d   : > { %v13088_v19 = vpop.f32.mrf.mxu0  ;;  %17602 = vmatpush3.bf16.msra.mxu1 %v19943_v3 }
 0x87e   : > { %17603 = vmatprep.subr.bf16.mxu1 %v19944_v21 }
 0x881   : > { %17604 = vmatpush3.bf16.msra.mxu1 %v19945_v26 }
 0x887   : > { %v13206_v33 = vpop.f32.mrf.mxu0 }
 0x889   : > { %v13208_v32 = vpop.f32.mrf.mxu0 }
 0x88b   : > { %v13210_v15 = vpop.f32.mrf.mxu0 }
 0x88d   : > { %v13211_v28 = vpop.f32.mrf.mxu0 }
 0x8b6   : > { %v13165_v54 = vpop.f32.mrf.mxu1 }
 0x8b7   : > { %v13207_v61 = vadd.f32 %v13206_v33, %v13165_v54 }
 0x8b8   : > { %v13167_v29 = vpop.f32.mrf.mxu1 }
 0x8b9   : > { %v13215_v10 = vadd.f32 %v13207_v61, %v12542_v25  ;;  %v13209_v58 = vadd.f32 %v13208_v32, %v13167_v29 }
 0x8ba   : > { %v13169_v27 = vpop.f32.mrf.mxu1 }
 0x8bb   : > { %v13216_v5 = vadd.f32 %v13209_v58, %v12543_v60 }
 0x8bc   : > { %v13170_v48 = vpop.f32.mrf.mxu1 }
 0x8c6   : > { %v13797_v8 = vpop.f32.mrf.mxu1 }
 0x8c7   : > { %v13756_v41 = vpop.f32.mrf.mxu0 }
 0x8c8   : > { %v13798_v20 = vadd.f32 %v13797_v8, %v13756_v41  ;;  %v13799_v59 = vpop.f32.mrf.mxu1 }
 0x8c9   : > { %v13758_v57 = vpop.f32.mrf.mxu0 }
 0x8ca   : > { %v13886_v18 = vadd.f32 %v13798_v20, %v13213_v53  ;;  %v13800_v63 = vadd.f32 %v13799_v59, %v13758_v57  ;;  %v13801_v23 = vpop.f32.mrf.mxu1 }
 0x8cb   : > { %v13760_v49 = vpop.f32.mrf.mxu0 }
 0x8cc   : > { %v13912_v1 = vadd.f32 %v13895_v39, %v13886_v18  ;;  %v13887_v22 = vadd.f32 %v13800_v63, %v13214_v13  ;;  %v13802_v7 = vpop.f32.mrf.mxu1 }
 0x8cd   : > { %v13761_v12 = vpop.f32.mrf.mxu0 }
 0x8ce   : > { %v13913_v0 = vadd.f32 %v13899_v36, %v13887_v22  ;;  %v13916_v52 = vmax.f32 %v13912_v1, 0.0 }
 0x8d0   : > { %v13917_v40 = vmax.f32 %v13913_v0, 0.0  ;;  %v13920_v2 = vpack.c.bf16 %v13916_v52, %v13916_v52 }
 0x8d2   : > { %v13921_v62 = vpack.c.bf16 %v13917_v40, %v13917_v40 }
 0x8d4   : > { %14213 = vmatprep.mubr.bf16.mxu0 %v13921_v62 }
 0x8d5   : > { %14214 = vmatmul.mubr.bf16.vlgmr.msra.gmra.mxu0 %v13920_v2 }
 0x8d7   : > { %v13879_v16 = vpop.f32.mrf.mxu0 }
 0x8d9   : > { %v13881_v24 = vpop.f32.mrf.mxu0 }
 0x8db   : > { %v13883_v25 = vpop.f32.mrf.mxu0 }
 0x8dd   : > { %v13884_v11 = vpop.f32.mrf.mxu0 }
 0x906   : > { %v13838_v6 = vpop.f32.mrf.mxu1 }
 0x907   : > { %v13880_v55 = vadd.f32 %v13879_v16, %v13838_v6 }
 0x908   : > { %v13840_v60 = vpop.f32.mrf.mxu1 }
 0x909   : > { %v13888_v34 = vadd.f32 %v13880_v55, %v13215_v10  ;;  %v13882_v31 = vadd.f32 %v13881_v24, %v13840_v60 }
 0x90a   : > { %v13842_v38 = vpop.f32.mrf.mxu1 }
 0x90b   : > { %v13914_v43 = vadd.f32 %v13903_v44, %v13888_v34  ;;  %v13889_v50 = vadd.f32 %v13882_v31, %v13216_v5 }
 0x90c   : > { %v13843_v30 = vpop.f32.mrf.mxu1 }
 0x90d   : > { %v13915_v53 = vadd.f32 %v13907_v56, %v13889_v50  ;;  %v13918_v45 = vmax.f32 %v13914_v43, 0.0 }
 0x90f   : > { %v13919_v51 = vmax.f32 %v13915_v53, 0.0  ;;  %v13922_v13 = vpack.c.bf16 %v13918_v45, %v13918_v45 }
 0x911   : > { %v13923_v17 = vpack.c.bf16 %v13919_v51, %v13919_v51 }
 0x913   : > { %14253 = vmatprep.mubr.bf16.mxu1 %v13923_v17 }
 0x914   : > { %14254 = vmatmul.mubr.bf16.vlgmr.msra.gmra.mxu1 %v13922_v13 }
 0x995   : > { %v17583_v35 = vpop.f32.mrf.mxu0 }
 0x997   : > { %v17584_v42 = vpop.f32.mrf.mxu0 }
 0x998   : > { %v17585_v37 = vadd.f32 %v17584_v42, %v17583_v35 }
 0x999   : > { %v17586_v19 = vpop.f32.mrf.mxu0 }
 0x99a   : > { %v14216_v9 = vadd.f32 %v17585_v37, %v13988_v47 }
 0x99b   : > { %v17587_v33 = vpop.f32.mrf.mxu0 }
 0x9d4   : > { %v17605_v32 = vpop.f32.mrf.mxu1 }
 0x9d6   : > { %v17606_v15 = vpop.f32.mrf.mxu1 }
 0x9d7   : > { %v17607_v28 = vadd.f32 %v17606_v15, %v17605_v32 }
 0x9d8   : > { %v17608_v14 = vpop.f32.mrf.mxu1 }
 0x9d9   : > { %v14256_v46 = vadd.f32 %v17607_v28, %v14216_v9 }
 0x9da   : > { %v17609_v3 = vpop.f32.mrf.mxu1 }
 0x9db   : > { %14261 = vst [vmem:[%s378_s15] sm:$0x1] %v14256_v46 }
 0x9dc   : > { %19959 = shalt.err (!%p19956_p3)
}
 0x9dd   : > { %s19960_s14 = scalar_lea.hbm %s25487_s12, 16  ;;  %s19964_s15 = scalar_lea.hbm %s25533_s11, 32 }
 0x9de   : > { %p19961_p4 = scmp.ne.s32.totalorder %s25487_s12, %s19960_s14  ;;  %p19965_p9 = scmp.lt.s32.totalorder %s25487_s12, %s25533_s11 }
 0x9df   : > { %p19966_p10 = scmp.lt.s32.totalorder %s19964_s15, %s19960_s14 }
 0x9e0   : > { %p19962_p7 = pnand %p19961_p4, %p20110_p5 }
 0x9e1   : > { %p19967_p11 = por %p19966_p10, %p19965_p9 }
 0x9e2   : > { %p19963_p8 = pneg %p19962_p7 }
 0x9e4   : > { %p19968_p12 = pnand %p19967_p11, %p19963_p8 }
 0x9e6   : > { %19971 = shalt.err (!%p19968_p12)
}
 0x9e7   : > { %17752 = dma.vmem_to_hbm [thread:$0]  (%p20110_p5), %s14276_s25, 16, %s25487_s12, %s14263_s24  }
 0x9e8 PF: > { %p17758_p13 = scmp.ge.s32.totalorder %s20006_s20, 2  ;;  %s14287_s29 = sand.u32 1, %s19994_s17  }
 0x9e9   : > { %s14288_s21 = scalar_lea.sflag [#allocation6], %s14287_s29 }
 0x9ea   : > { %p17755_p0 = pnand %p17758_p13, %p20114_p6 }
 0x9ec   : > { %p17756_p1 = pneg %p17755_p0 }
 0x9ee   : > { %19989 = dma.done.wait (%p17756_p1), %s14288_s21, 16  }
 0x9ef   : > { %19991 = vsyncadd (%p17756_p1), %s14288_s21, 4294967280  ;;  %s25539_s30 = sld [smem:[#allocation8_spill]]  ;;  %p21_p2 = scmp.ge.s32.totalorder %s20097_s23, 4  }
 0x9f0   : > { %s25540_s19 = sld [smem:[#allocation9_spill]]  ;;  %s25541_s17 = smov %s19998_s18 }
 0x9f1   : > { %s25543_s20 = smov %s20097_s23  ;;  %23 = sbr.rel (!%p21_p2) target bundleno = 3 (0x3), region = 113 }
 0x9f5   : > { %s25542_s18 = smov %s25539_s30 }
 0x9f6   :  { %14292 = vsyncpa [#allocation6], 1 }
 0x9f7   :  { %14294 = vsyncpa [#allocation6 + $0x1], 1 }

</bundles_post_ra>
